<compile_context>
chip_gen: v5e
topology: v5e:2x2
jax: 0.10.0
libtpu: 0.0.40
codegen_flags: <defaults>
</compile_context>

<pallas_src>
import functools

import jax
import jax.numpy as jnp
from jax.experimental import pallas as pl
from jax.experimental.pallas import tpu as pltpu


def _round_up(x, m):
    return ((x + m - 1) // m) * m


# ----------------------------------------------------------------------------
# Hoisted, row-tiled matmul kernels (run OUTSIDE the recurrence).
# Weights are pre-transposed to (in, out) and gate-concatenated.
# ----------------------------------------------------------------------------
def _embed_gates_kernel(x_ref, w1_ref, b1_ref, w2_ref, b2_ref, w3_ref, b3_ref,
                        wg_ref, bg_ref, o_ref):
    # Linear -> LeakyReLU -> Linear -> LeakyReLU -> Linear -> Tanh -> gate matmul
    h = jnp.dot(x_ref[...], w1_ref[...], preferred_element_type=jnp.float32) + b1_ref[...]
    h = jnp.where(h > 0, h, 0.01 * h)
    h = jnp.dot(h, w2_ref[...], preferred_element_type=jnp.float32) + b2_ref[...]
    h = jnp.where(h > 0, h, 0.01 * h)
    h = jnp.dot(h, w3_ref[...], preferred_element_type=jnp.float32) + b3_ref[...]
    h = jnp.tanh(h)
    o_ref[...] = (jnp.dot(h, wg_ref[...], preferred_element_type=jnp.float32)
                  + bg_ref[...]).astype(o_ref.dtype)


def _gates1_kernel(x_ref, w_ref, b_ref, o_ref):
    o_ref[...] = (jnp.dot(x_ref[...], w_ref[...], preferred_element_type=jnp.float32)
                  + b_ref[...]).astype(o_ref.dtype)


def _gates2_kernel(xf_ref, xb_ref, wf_ref, wb_ref, b_ref, o_ref):
    acc = jnp.dot(xf_ref[...], wf_ref[...], preferred_element_type=jnp.float32)
    acc = acc + jnp.dot(xb_ref[...], wb_ref[...], preferred_element_type=jnp.float32)
    o_ref[...] = (acc + b_ref[...]).astype(o_ref.dtype)


def _row_tiled_call(kernel, row_inputs, const_inputs, out_cols, tm=512):
    """Tile `kernel` over rows of `row_inputs` (all (N, ·)); weights / biases in
    `const_inputs` stay VMEM-resident via constant index maps."""
    n = row_inputs[0].shape[0]
    tm = min(tm, _round_up(n, 8))
    n_pad = _round_up(n, tm)
    if n_pad != n:
        row_inputs = [jnp.pad(x, ((0, n_pad - n), (0, 0))) for x in row_inputs]
    row_specs = [pl.BlockSpec((tm, x.shape[1]), lambda i: (i, 0)) for x in row_inputs]
    const_specs = [pl.BlockSpec(c.shape, lambda i: (0, 0)) for c in const_inputs]
    out = pl.pallas_call(
        kernel,
        grid=(n_pad // tm,),
        in_specs=row_specs + const_specs,
        out_specs=pl.BlockSpec((tm, out_cols), lambda i: (i, 0)),
        out_shape=jax.ShapeDtypeStruct((n_pad, out_cols), row_inputs[0].dtype),
        compiler_params=pltpu.CompilerParams(dimension_semantics=("parallel",)),
    )(*row_inputs, *const_inputs)
    return out[:n]


def embed_and_gates0(x2d, emb_t, wg0, bg0):
    w1t, b1, w2t, b2, w3t, b3 = emb_t
    return _row_tiled_call(_embed_gates_kernel, [x2d],
                           [w1t, b1, w2t, b2, w3t, b3, wg0, bg0],
                           out_cols=wg0.shape[1])


def gates_from_one(x2d, wg, bg):
    return _row_tiled_call(_gates1_kernel, [x2d], [wg, bg], out_cols=wg.shape[1])


def gates_from_two(xf2d, xb2d, wf, wb, bg):
    return _row_tiled_call(_gates2_kernel, [xf2d, xb2d], [wf, wb, bg],
                           out_cols=wf.shape[1])


# ----------------------------------------------------------------------------
# GRU recurrence kernels: one pallas_call per layer, time loop inside.
# gi already contains x @ Wih^T + bih for all gates (PyTorch order r, z, n).
# ----------------------------------------------------------------------------
def _gru_cell(gi, h, whh_t_ref, bhh_ref, H):
    gh = jnp.dot(h, whh_t_ref[...], preferred_element_type=jnp.float32) + bhh_ref[...]
    r = jax.nn.sigmoid(gi[:, :H] + gh[:, :H])
    z = jax.nn.sigmoid(gi[:, H:2 * H] + gh[:, H:2 * H])
    n = jnp.tanh(gi[:, 2 * H:] + r * gh[:, 2 * H:])
    return (1.0 - z) * n + z * h


def _gru_bidir_kernel(gi_ref, whh_f_ref, bhh_f_ref, whh_b_ref, bhh_b_ref,
                      out_f_ref, out_b_ref, hn_ref, hf_scr, hb_scr):
    T = out_f_ref.shape[0]
    H = hf_scr.shape[1]
    hf_scr[...] = jnp.zeros_like(hf_scr)   # h_0 = 0 (both directions)
    hb_scr[...] = jnp.zeros_like(hb_scr)

    def step(t, carry):
        tb = T - 1 - t
        g_fwd = gi_ref[t]                  # (B, 6H) = [fwd r,z,n | bwd r,z,n]
        g_bwd = gi_ref[tb]
        hf_new = _gru_cell(g_fwd[:, :3 * H], hf_scr[...], whh_f_ref, bhh_f_ref, H)
        hb_new = _gru_cell(g_bwd[:, 3 * H:], hb_scr[...], whh_b_ref, bhh_b_ref, H)
        hf_scr[...] = hf_new
        hb_scr[...] = hb_new
        out_f_ref[t] = hf_new.astype(out_f_ref.dtype)
        out_b_ref[tb] = hb_new.astype(out_b_ref.dtype)
        return carry

    jax.lax.fori_loop(0, T, step, 0, unroll=(T <= 32))
    hn_ref[0] = hf_scr[...].astype(hn_ref.dtype)   # written once, after loop
    hn_ref[1] = hb_scr[...].astype(hn_ref.dtype)


def _gru_unidir_kernel(gi_ref, whh_ref, bhh_ref, out_ref, hn_ref, h_scr):
    T = out_ref.shape[0]
    H = h_scr.shape[1]
    h_scr[...] = jnp.zeros_like(h_scr)

    def step(t, carry):
        h_new = _gru_cell(gi_ref[t], h_scr[...], whh_ref, bhh_ref, H)
        h_scr[...] = h_new
        out_ref[t] = h_new.astype(out_ref.dtype)
        return carry

    jax.lax.fori_loop(0, T, step, 0, unroll=(T <= 32))
    hn_ref[0] = h_scr[...].astype(hn_ref.dtype)


def gru_layer_bidir(gi, whh_f_t, bhh_f, whh_b_t, bhh_b):
    T, B, _ = gi.shape
    H = whh_f_t.shape[0]
    vmem = pl.BlockSpec(memory_space=pltpu.MemorySpace.VMEM)
    # TODO(synk): for very long sequences, stream gi / outputs with
    # pltpu.emit_pipeline instead of whole-array VMEM residency.
    return pl.pallas_call(
        _gru_bidir_kernel,
        in_specs=[vmem] * 5,
        out_specs=[vmem, vmem, vmem],
        out_shape=[
            jax.ShapeDtypeStruct((T, B, H), gi.dtype),   # forward outputs
            jax.ShapeDtypeStruct((T, B, H), gi.dtype),   # backward outputs
            jax.ShapeDtypeStruct((2, B, H), gi.dtype),   # final hidden (fwd,bwd)
        ],
        scratch_shapes=[pltpu.VMEM((B, H), jnp.float32),
                        pltpu.VMEM((B, H), jnp.float32)],
    )(gi, whh_f_t, bhh_f, whh_b_t, bhh_b)


def gru_layer_unidir(gi, whh_t, bhh):
    T, B, _ = gi.shape
    H = whh_t.shape[0]
    vmem = pl.BlockSpec(memory_space=pltpu.MemorySpace.VMEM)
    return pl.pallas_call(
        _gru_unidir_kernel,
        in_specs=[vmem] * 3,
        out_specs=[vmem, vmem],
        out_shape=[
            jax.ShapeDtypeStruct((T, B, H), gi.dtype),
            jax.ShapeDtypeStruct((1, B, H), gi.dtype),
        ],
        scratch_shapes=[pltpu.VMEM((B, H), jnp.float32)],
    )(gi, whh_t, bhh)


# ----------------------------------------------------------------------------
# Parameter preparation: transpose / gate-concat in the wrapper (free plumbing)
# ----------------------------------------------------------------------------
def prepare_params(params, n_layers, bidirectional):
    w1, b1, w2, b2, w3, b3 = params["emb"]
    emb_t = (w1.T, b1.reshape(1, -1), w2.T, b2.reshape(1, -1),
             w3.T, b3.reshape(1, -1))
    layers = []
    for l in range(n_layers):
        dirs = params["gru"][l]
        if bidirectional:
            (wih_f, whh_f, bih_f, bhh_f), (wih_b, whh_b, bih_b, bhh_b) = dirs
            H = whh_f.shape[1]
            wg = jnp.concatenate([wih_f.T, wih_b.T], axis=1)        # (Din, 6H)
            bg = jnp.concatenate([bih_f, bih_b]).reshape(1, -1)     # (1, 6H)
            layer = {
                "wg": wg, "bg": bg,
                "whh_f_t": whh_f.T, "bhh_f": bhh_f.reshape(1, -1),
                "whh_b_t": whh_b.T, "bhh_b": bhh_b.reshape(1, -1),
            }
            if l > 0:
                # rows [:H] multiply the fwd half of the previous layer output,
                # rows [H:] the bwd half (nn.GRU feature-concat order).
                layer["wg_f_rows"] = wg[:H]
                layer["wg_b_rows"] = wg[H:]
            layers.append(layer)
        else:
            (wih, whh, bih, bhh), = dirs
            layers.append({
                "wg": wih.T, "bg": bih.reshape(1, -1),
                "whh_t": whh.T, "bhh": bhh.reshape(1, -1),
            })
    return {"emb_t": emb_t, "layers": layers}


# ----------------------------------------------------------------------------
# Full module forward
# ----------------------------------------------------------------------------
def encoder_seq2seq_forward(z_x_k, prep, n_layers, bidirectional):
    T, B, D = z_x_k.shape
    x_flat = z_x_k.reshape(T * B, D)
    hiddens = []

    l0 = prep["layers"][0]
    # embedding MLP fused with layer-0 input-path gate matmul (both directions)
    gi = embed_and_gates0(x_flat, prep["emb_t"], l0["wg"], l0["bg"]).reshape(T, B, -1)

    if bidirectional:
        out_f = out_b = None
        for l in range(n_layers):
            lp = prep["layers"][l]
            if l > 0:
                gi = gates_from_two(out_f.reshape(T * B, -1),
                                    out_b.reshape(T * B, -1),
                                    lp["wg_f_rows"], lp["wg_b_rows"],
                                    lp["bg"]).reshape(T, B, -1)
            out_f, out_b, hn = gru_layer_bidir(gi, lp["whh_f_t"], lp["bhh_f"],
                                               lp["whh_b_t"], lp["bhh_b"])
            hiddens.append(hn)
        output = jnp.concatenate([out_f, out_b], axis=-1)
    else:
        out = None
        for l in range(n_layers):
            lp = prep["layers"][l]
            if l > 0:
                gi = gates_from_one(out.reshape(T * B, -1),
                                    lp["wg"], lp["bg"]).reshape(T, B, -1)
            out, hn = gru_layer_unidir(gi, lp["whh_t"], lp["bhh"])
            hiddens.append(hn)
        output = out

    hidden = jnp.concatenate(hiddens, axis=0)   # (n_layers*num_dirs, B, latent)
    # TODO(synk): nn.GRU inter-layer dropout is training-only; identity (eval) here.
    return output, hidden


# ----------------------------------------------------------------------------
# Pure-JAX reference (for correctness check)
# ----------------------------------------------------------------------------
def _ref_gru_dir(x, wih, whh, bih, bhh, reverse):
    H = whh.shape[1]
    xs = x[::-1] if reverse else x

    def cell(h, xt):
        gx = xt @ wih.T + bih
        gh = h @ whh.T + bhh
        r = jax.nn.sigmoid(gx[:, :H] + gh[:, :H])
        z = jax.nn.sigmoid(gx[:, H:2 * H] + gh[:, H:2 * H])
        n = jnp.tanh(gx[:, 2 * H:] + r * gh[:, 2 * H:])
        h_new = (1.0 - z) * n + z * h
        return h_new, h_new

    h0 = jnp.zeros((x.shape[1], H), x.dtype)
    hn, ys = jax.lax.scan(cell, h0, xs)
    if reverse:
        ys = ys[::-1]
    return ys, hn


def reference_forward(z_x_k, params, n_layers, bidirectional):
    w1, b1, w2, b2, w3, b3 = params["emb"]
    h = z_x_k @ w1.T + b1
    h = jnp.where(h > 0, h, 0.01 * h)
    h = h @ w2.T + b2
    h = jnp.where(h > 0, h, 0.01 * h)
    h = jnp.tanh(h @ w3.T + b3)

    num_dirs = 2 if bidirectional else 1
    x = h
    hiddens = []
    for l in range(n_layers):
        outs = []
        for d in range(num_dirs):
            wih, whh, bih, bhh = params["gru"][l][d]
            o, hn = _ref_gru_dir(x, wih, whh, bih, bhh, reverse=(d == 1))
            outs.append(o)
            hiddens.append(hn)
        x = jnp.concatenate(outs, axis=-1) if num_dirs == 2 else outs[0]
    return x, jnp.stack(hiddens, axis=0)


# ----------------------------------------------------------------------------
# Deterministic parameter init (shapes follow the PyTorch module __init__)
# ----------------------------------------------------------------------------
def init_params(key, obser_dim, latent_dim, n_layers, bidirectional):
    num_dirs = 2 if bidirectional else 1
    keys = iter(jax.random.split(key, 64))

    def rnd(shape):
        return (0.1 * jax.random.normal(next(keys), shape)).astype(jnp.float32)

    emb = (rnd((obser_dim, obser_dim)), rnd((obser_dim,)),
           rnd((latent_dim, obser_dim)), rnd((latent_dim,)),
           rnd((latent_dim, latent_dim)), rnd((latent_dim,)))

    gru = []
    for l in range(n_layers):
        din = latent_dim if l == 0 else latent_dim * num_dirs
        layer = []
        for _ in range(num_dirs):
            layer.append((rnd((3 * latent_dim, din)),
                          rnd((3 * latent_dim, latent_dim)),
                          rnd((3 * latent_dim,)),
                          rnd((3 * latent_dim,))))
        gru.append(layer)
    return {"emb": emb, "gru": gru}


if __name__ == "__main__":
    T, B = 8, 4
    obser_dim, latent_dim = 16, 32
    n_layers, bidirectional = 2, True

    key = jax.random.PRNGKey(0)
    kp, kx = jax.random.split(key)
    params = init_params(kp, obser_dim, latent_dim, n_layers, bidirectional)
    z_x_k = jax.random.normal(kx, (T, B, obser_dim), dtype=jnp.float32)

    prep = prepare_params(params, n_layers, bidirectional)
    fwd = jax.jit(functools.partial(encoder_seq2seq_forward,
                                    n_layers=n_layers, bidirectional=bidirectional))
    output, hidden = jax.block_until_ready(fwd(z_x_k, prep))

    ref_out, ref_hid = reference_forward(z_x_k, params, n_layers, bidirectional)

    num_dirs = 2 if bidirectional else 1
    assert output.shape == (T, B, num_dirs * latent_dim), output.shape
    assert hidden.shape == (n_layers * num_dirs, B, latent_dim), hidden.shape
    assert jnp.allclose(output, ref_out, rtol=1e-4, atol=1e-4)
    assert jnp.allclose(hidden, ref_hid, rtol=1e-4, atol=1e-4)

    print("KERNEL_OK")
</pallas_src>

<mosaic_0001>
module attributes {stable_mosaic.version = 11 : i64} {
  func.func @_gates2_kernel(%arg0: i32, %arg1: memref<32x32xf32, #tpu.memory_space<vmem>>, %arg2: memref<32x32xf32, #tpu.memory_space<vmem>>, %arg3: memref<32x192xf32, #tpu.memory_space<vmem>>, %arg4: memref<32x192xf32, #tpu.memory_space<vmem>>, %arg5: memref<1x192xf32, #tpu.memory_space<vmem>>, %arg6: memref<32x192xf32, #tpu.memory_space<vmem>>) attributes {dimension_semantics = [#tpu.dimension_semantics<parallel>], iteration_bounds = array<i64: 1>, scalar_prefetch = 0 : i64, scratch_operands = 0 : i64, tpu.core_type = #tpu.core_type<tc>, window_params = [{transform_indices = @transform_0, window_bounds = array<i64: 32, 32>}, {transform_indices = @transform_1, window_bounds = array<i64: 32, 32>}, {pipeline_mode = #tpu.pipeline_mode<synchronous>, transform_indices = @transform_2, window_bounds = array<i64: 32, 192>}, {pipeline_mode = #tpu.pipeline_mode<synchronous>, transform_indices = @transform_3, window_bounds = array<i64: 32, 192>}, {pipeline_mode = #tpu.pipeline_mode<synchronous>, transform_indices = @transform_4, window_bounds = array<i64: 1, 192>}, {transform_indices = @transform_5, window_bounds = array<i64: 32, 192>}]} {
    %c0 = arith.constant 0 : index
    %c0_0 = arith.constant 0 : index
    %0 = vector.load %arg1[%c0, %c0_0] : memref<32x32xf32, #tpu.memory_space<vmem>>, vector<32x32xf32>
    %c0_1 = arith.constant 0 : index
    %c0_2 = arith.constant 0 : index
    %1 = vector.load %arg3[%c0_1, %c0_2] : memref<32x192xf32, #tpu.memory_space<vmem>>, vector<32x192xf32>
    %cst = arith.constant dense<0.000000e+00> : vector<32x192xf32>
    %2 = tpu.matmul %0, %1, %cst {dimension_numbers = #tpu.dot_dimension_numbers<[1], [0], [0], [1], [0, 0, 1, 1], [], []>} : vector<32x32xf32>, vector<32x192xf32>, vector<32x192xf32> -> vector<32x192xf32>
    %c0_3 = arith.constant 0 : index
    %c0_4 = arith.constant 0 : index
    %3 = vector.load %arg2[%c0_3, %c0_4] : memref<32x32xf32, #tpu.memory_space<vmem>>, vector<32x32xf32>
    %c0_5 = arith.constant 0 : index
    %c0_6 = arith.constant 0 : index
    %4 = vector.load %arg4[%c0_5, %c0_6] : memref<32x192xf32, #tpu.memory_space<vmem>>, vector<32x192xf32>
    %cst_7 = arith.constant dense<0.000000e+00> : vector<32x192xf32>
    %5 = tpu.matmul %3, %4, %cst_7 {dimension_numbers = #tpu.dot_dimension_numbers<[1], [0], [0], [1], [0, 0, 1, 1], [], []>} : vector<32x32xf32>, vector<32x192xf32>, vector<32x192xf32> -> vector<32x192xf32>
    %6 = arith.addf %2, %5 : vector<32x192xf32>
    %c0_8 = arith.constant 0 : index
    %c0_9 = arith.constant 0 : index
    %7 = vector.load %arg5[%c0_8, %c0_9] : memref<1x192xf32, #tpu.memory_space<vmem>>, vector<1x192xf32>
    %8 = vector.broadcast %7 : vector<1x192xf32> to vector<32x192xf32>
    %9 = arith.addf %6, %8 : vector<32x192xf32>
    %c0_10 = arith.constant 0 : index
    %c0_11 = arith.constant 0 : index
    %10 = vector.load %arg6[%c0_10, %c0_11] : memref<32x192xf32, #tpu.memory_space<vmem>>, vector<32x192xf32>
    tpu.vector_store %arg6[%c0_10, %c0_11], %9 {strides = array<i32>} : memref<32x192xf32, #tpu.memory_space<vmem>>, vector<32x192xf32>,
    return
  }
  func.func @transform_0(%arg0: i32) -> (i32, i32) {
    %c0_i32 = arith.constant 0 : i32
    %c0_i32_0 = arith.constant 0 : i32
    return %arg0, %c0_i32 : i32, i32
  }
  func.func @transform_1(%arg0: i32) -> (i32, i32) {
    %c0_i32 = arith.constant 0 : i32
    %c0_i32_0 = arith.constant 0 : i32
    return %arg0, %c0_i32 : i32, i32
  }
  func.func @transform_2(%arg0: i32) -> (i32, i32) {
    %c0_i32 = arith.constant 0 : i32
    %c0_i32_0 = arith.constant 0 : i32
    %c0_i32_1 = arith.constant 0 : i32
    return %c0_i32, %c0_i32_0 : i32, i32
  }
  func.func @transform_3(%arg0: i32) -> (i32, i32) {
    %c0_i32 = arith.constant 0 : i32
    %c0_i32_0 = arith.constant 0 : i32
    %c0_i32_1 = arith.constant 0 : i32
    return %c0_i32, %c0_i32_0 : i32, i32
  }
  func.func @transform_4(%arg0: i32) -> (i32, i32) {
    %c0_i32 = arith.constant 0 : i32
    %c0_i32_0 = arith.constant 0 : i32
    %c0_i32_1 = arith.constant 0 : i32
    return %c0_i32, %c0_i32_0 : i32, i32
  }
  func.func @transform_5(%arg0: i32) -> (i32, i32) {
    %c0_i32 = arith.constant 0 : i32
    %c0_i32_0 = arith.constant 0 : i32
    return %arg0, %c0_i32 : i32, i32
  }
}

module attributes {stable_mosaic.version = 11 : i64} {
  func.func @_embed_gates_kernel(%arg0: i32, %arg1: memref<32x16xf32, #tpu.memory_space<vmem>>, %arg2: memref<16x16xf32, #tpu.memory_space<vmem>>, %arg3: memref<1x16xf32, #tpu.memory_space<vmem>>, %arg4: memref<16x32xf32, #tpu.memory_space<vmem>>, %arg5: memref<1x32xf32, #tpu.memory_space<vmem>>, %arg6: memref<32x32xf32, #tpu.memory_space<vmem>>, %arg7: memref<1x32xf32, #tpu.memory_space<vmem>>, %arg8: memref<32x192xf32, #tpu.memory_space<vmem>>, %arg9: memref<1x192xf32, #tpu.memory_space<vmem>>, %arg10: memref<32x192xf32, #tpu.memory_space<vmem>>) attributes {dimension_semantics = [#tpu.dimension_semantics<parallel>], iteration_bounds = array<i64: 1>, scalar_prefetch = 0 : i64, scratch_operands = 0 : i64, tpu.core_type = #tpu.core_type<tc>, window_params = [{transform_indices = @transform_0, window_bounds = array<i64: 32, 16>}, {pipeline_mode = #tpu.pipeline_mode<synchronous>, transform_indices = @transform_1, window_bounds = array<i64: 16, 16>}, {pipeline_mode = #tpu.pipeline_mode<synchronous>, transform_indices = @transform_2, window_bounds = array<i64: 1, 16>}, {pipeline_mode = #tpu.pipeline_mode<synchronous>, transform_indices = @transform_3, window_bounds = array<i64: 16, 32>}, {pipeline_mode = #tpu.pipeline_mode<synchronous>, transform_indices = @transform_4, window_bounds = array<i64: 1, 32>}, {pipeline_mode = #tpu.pipeline_mode<synchronous>, transform_indices = @transform_5, window_bounds = array<i64: 32, 32>}, {pipeline_mode = #tpu.pipeline_mode<synchronous>, transform_indices = @transform_6, window_bounds = array<i64: 1, 32>}, {pipeline_mode = #tpu.pipeline_mode<synchronous>, transform_indices = @transform_7, window_bounds = array<i64: 32, 192>}, {pipeline_mode = #tpu.pipeline_mode<synchronous>, transform_indices = @transform_8, window_bounds = array<i64: 1, 192>}, {transform_indices = @transform_9, window_bounds = array<i64: 32, 192>}]} {
    %c0 = arith.constant 0 : index
    %c0_0 = arith.constant 0 : index
    %0 = vector.load %arg1[%c0, %c0_0] : memref<32x16xf32, #tpu.memory_space<vmem>>, vector<32x16xf32>
    %c0_1 = arith.constant 0 : index
    %c0_2 = arith.constant 0 : index
    %1 = vector.load %arg2[%c0_1, %c0_2] : memref<16x16xf32, #tpu.memory_space<vmem>>, vector<16x16xf32>
    %cst = arith.constant dense<0.000000e+00> : vector<32x16xf32>
    %2 = tpu.matmul %0, %1, %cst {dimension_numbers = #tpu.dot_dimension_numbers<[1], [0], [0], [1], [0, 0, 1, 1], [], []>} : vector<32x16xf32>, vector<16x16xf32>, vector<32x16xf32> -> vector<32x16xf32>
    %c0_3 = arith.constant 0 : index
    %c0_4 = arith.constant 0 : index
    %3 = vector.load %arg3[%c0_3, %c0_4] : memref<1x16xf32, #tpu.memory_space<vmem>>, vector<1x16xf32>
    %4 = vector.broadcast %3 : vector<1x16xf32> to vector<32x16xf32>
    %5 = arith.addf %2, %4 : vector<32x16xf32>
    %cst_5 = arith.constant 0.000000e+00 : f32
    %6 = vector.broadcast %cst_5 : f32 to vector<32x16xf32>
    %7 = arith.cmpf ogt, %5, %6 : vector<32x16xf32>
    %cst_6 = arith.constant 0.00999999977 : f32
    %8 = vector.broadcast %cst_6 : f32 to vector<32x16xf32>
    %9 = arith.mulf %8, %5 : vector<32x16xf32>
    %10 = arith.select %7, %5, %9 : vector<32x16xi1>, vector<32x16xf32>
    %c0_7 = arith.constant 0 : index
    %c0_8 = arith.constant 0 : index
    %11 = vector.load %arg4[%c0_7, %c0_8] : memref<16x32xf32, #tpu.memory_space<vmem>>, vector<16x32xf32>
    %cst_9 = arith.constant dense<0.000000e+00> : vector<32x32xf32>
    %12 = tpu.matmul %10, %11, %cst_9 {dimension_numbers = #tpu.dot_dimension_numbers<[1], [0], [0], [1], [0, 0, 1, 1], [], []>} : vector<32x16xf32>, vector<16x32xf32>, vector<32x32xf32> -> vector<32x32xf32>
    %c0_10 = arith.constant 0 : index
    %c0_11 = arith.constant 0 : index
    %13 = vector.load %arg5[%c0_10, %c0_11] : memref<1x32xf32, #tpu.memory_space<vmem>>, vector<1x32xf32>
    %14 = vector.broadcast %13 : vector<1x32xf32> to vector<32x32xf32>
    %15 = arith.addf %12, %14 : vector<32x32xf32>
    %cst_12 = arith.constant 0.000000e+00 : f32
    %16 = vector.broadcast %cst_12 : f32 to vector<32x32xf32>
    %17 = arith.cmpf ogt, %15, %16 : vector<32x32xf32>
    %cst_13 = arith.constant 0.00999999977 : f32
    %18 = vector.broadcast %cst_13 : f32 to vector<32x32xf32>
    %19 = arith.mulf %18, %15 : vector<32x32xf32>
    %20 = arith.select %17, %15, %19 : vector<32x32xi1>, vector<32x32xf32>
    %c0_14 = arith.constant 0 : index
    %c0_15 = arith.constant 0 : index
    %21 = vector.load %arg6[%c0_14, %c0_15] : memref<32x32xf32, #tpu.memory_space<vmem>>, vector<32x32xf32>
    %cst_16 = arith.constant dense<0.000000e+00> : vector<32x32xf32>
    %22 = tpu.matmul %20, %21, %cst_16 {dimension_numbers = #tpu.dot_dimension_numbers<[1], [0], [0], [1], [0, 0, 1, 1], [], []>} : vector<32x32xf32>, vector<32x32xf32>, vector<32x32xf32> -> vector<32x32xf32>
    %c0_17 = arith.constant 0 : index
    %c0_18 = arith.constant 0 : index
    %23 = vector.load %arg7[%c0_17, %c0_18] : memref<1x32xf32, #tpu.memory_space<vmem>>, vector<1x32xf32>
    %24 = vector.broadcast %23 : vector<1x32xf32> to vector<32x32xf32>
    %25 = arith.addf %22, %24 : vector<32x32xf32>
    %26 = math.tanh %25 : vector<32x32xf32>
    %c0_19 = arith.constant 0 : index
    %c0_20 = arith.constant 0 : index
    %27 = vector.load %arg8[%c0_19, %c0_20] : memref<32x192xf32, #tpu.memory_space<vmem>>, vector<32x192xf32>
    %cst_21 = arith.constant dense<0.000000e+00> : vector<32x192xf32>
    %28 = tpu.matmul %26, %27, %cst_21 {dimension_numbers = #tpu.dot_dimension_numbers<[1], [0], [0], [1], [0, 0, 1, 1], [], []>} : vector<32x32xf32>, vector<32x192xf32>, vector<32x192xf32> -> vector<32x192xf32>
    %c0_22 = arith.constant 0 : index
    %c0_23 = arith.constant 0 : index
    %29 = vector.load %arg9[%c0_22, %c0_23] : memref<1x192xf32, #tpu.memory_space<vmem>>, vector<1x192xf32>
    %30 = vector.broadcast %29 : vector<1x192xf32> to vector<32x192xf32>
    %31 = arith.addf %28, %30 : vector<32x192xf32>
    %c0_24 = arith.constant 0 : index
    %c0_25 = arith.constant 0 : index
    %32 = vector.load %arg10[%c0_24, %c0_25] : memref<32x192xf32, #tpu.memory_space<vmem>>, vector<32x192xf32>
    tpu.vector_store %arg10[%c0_24, %c0_25], %31 {strides = array<i32>} : memref<32x192xf32, #tpu.memory_space<vmem>>, vector<32x192xf32>,
    return
  }
  func.func @transform_0(%arg0: i32) -> (i32, i32) {
    %c0_i32 = arith.constant 0 : i32
    %c0_i32_0 = arith.constant 0 : i32
    return %arg0, %c0_i32 : i32, i32
  }
  func.func @transform_1(%arg0: i32) -> (i32, i32) {
    %c0_i32 = arith.constant 0 : i32
    %c0_i32_0 = arith.constant 0 : i32
    %c0_i32_1 = arith.constant 0 : i32
    return %c0_i32, %c0_i32_0 : i32, i32
  }
  func.func @transform_2(%arg0: i32) -> (i32, i32) {
    %c0_i32 = arith.constant 0 : i32
    %c0_i32_0 = arith.constant 0 : i32
    %c0_i32_1 = arith.constant 0 : i32
    return %c0_i32, %c0_i32_0 : i32, i32
  }
  func.func @transform_3(%arg0: i32) -> (i32, i32) {
    %c0_i32 = arith.constant 0 : i32
    %c0_i32_0 = arith.constant 0 : i32
    %c0_i32_1 = arith.constant 0 : i32
    return %c0_i32, %c0_i32_0 : i32, i32
  }
  func.func @transform_4(%arg0: i32) -> (i32, i32) {
    %c0_i32 = arith.constant 0 : i32
    %c0_i32_0 = arith.constant 0 : i32
    %c0_i32_1 = arith.constant 0 : i32
    return %c0_i32, %c0_i32_0 : i32, i32
  }
  func.func @transform_5(%arg0: i32) -> (i32, i32) {
    %c0_i32 = arith.constant 0 : i32
    %c0_i32_0 = arith.constant 0 : i32
    %c0_i32_1 = arith.constant 0 : i32
    return %c0_i32, %c0_i32_0 : i32, i32
  }
  func.func @transform_6(%arg0: i32) -> (i32, i32) {
    %c0_i32 = arith.constant 0 : i32
    %c0_i32_0 = arith.constant 0 : i32
    %c0_i32_1 = arith.constant 0 : i32
    return %c0_i32, %c0_i32_0 : i32, i32
  }
  func.func @transform_7(%arg0: i32) -> (i32, i32) {
    %c0_i32 = arith.constant 0 : i32
    %c0_i32_0 = arith.constant 0 : i32
    %c0_i32_1 = arith.constant 0 : i32
    return %c0_i32, %c0_i32_0 : i32, i32
  }
  func.func @transform_8(%arg0: i32) -> (i32, i32) {
    %c0_i32 = arith.constant 0 : i32
    %c0_i32_0 = arith.constant 0 : i32
    %c0_i32_1 = arith.constant 0 : i32
    return %c0_i32, %c0_i32_0 : i32, i32
  }
  func.func @transform_9(%arg0: i32) -> (i32, i32) {
    %c0_i32 = arith.constant 0 : i32
    %c0_i32_0 = arith.constant 0 : i32
    return %arg0, %c0_i32 : i32, i32
  }
}

module attributes {stable_mosaic.version = 11 : i64} {
  func.func @_gru_bidir_kernel(%arg0: memref<8x4x192xf32, #tpu.memory_space<vmem>>, %arg1: memref<32x96xf32, #tpu.memory_space<vmem>>, %arg2: memref<1x96xf32, #tpu.memory_space<vmem>>, %arg3: memref<32x96xf32, #tpu.memory_space<vmem>>, %arg4: memref<1x96xf32, #tpu.memory_space<vmem>>, %arg5: memref<8x4x32xf32, #tpu.memory_space<vmem>>, %arg6: memref<8x4x32xf32, #tpu.memory_space<vmem>>, %arg7: memref<2x4x32xf32, #tpu.memory_space<vmem>>, %arg8: memref<4x32xf32, #tpu.memory_space<vmem>>, %arg9: memref<4x32xf32, #tpu.memory_space<vmem>>) attributes {dimension_semantics = [], scalar_prefetch = 0 : i64, scratch_operands = 2 : i64, tpu.core_type = #tpu.core_type<tc>} {
    %cst = arith.constant 0.000000e+00 : f32
    %0 = vector.broadcast %cst : f32 to vector<4x32xf32>
    %c0 = arith.constant 0 : index
    %c0_0 = arith.constant 0 : index
    %1 = vector.load %arg8[%c0, %c0_0] : memref<4x32xf32, #tpu.memory_space<vmem>>, vector<4x32xf32>
    tpu.vector_store %arg8[%c0, %c0_0], %0 {strides = array<i32>} : memref<4x32xf32, #tpu.memory_space<vmem>>, vector<4x32xf32>,
    %cst_1 = arith.constant 0.000000e+00 : f32
    %2 = vector.broadcast %cst_1 : f32 to vector<4x32xf32>
    %c0_2 = arith.constant 0 : index
    %c0_3 = arith.constant 0 : index
    %3 = vector.load %arg9[%c0_2, %c0_3] : memref<4x32xf32, #tpu.memory_space<vmem>>, vector<4x32xf32>
    tpu.vector_store %arg9[%c0_2, %c0_3], %2 {strides = array<i32>} : memref<4x32xf32, #tpu.memory_space<vmem>>, vector<4x32xf32>,
    %c0_i32 = arith.constant 0 : i32
    %c7_i32 = arith.constant 7 : i32
    %4 = arith.subi %c7_i32, %c0_i32 : i32
    %5 = arith.index_cast %c0_i32 : i32 to index
    %c0_4 = arith.constant 0 : index
    %c0_5 = arith.constant 0 : index
    %6 = vector.load %arg0[%5, %c0_4, %c0_5] : memref<8x4x192xf32, #tpu.memory_space<vmem>>, vector<1x4x192xf32>
    %7 = vector.shape_cast %6 : vector<1x4x192xf32> to vector<4x192xf32>
    %8 = arith.index_cast %4 : i32 to index
    %c0_6 = arith.constant 0 : index
    %c0_7 = arith.constant 0 : index
    %9 = vector.load %arg0[%8, %c0_6, %c0_7] : memref<8x4x192xf32, #tpu.memory_space<vmem>>, vector<1x4x192xf32>
    %10 = vector.shape_cast %9 : vector<1x4x192xf32> to vector<4x192xf32>
    %11 = vector.extract_strided_slice %7 {offsets = [0, 0], sizes = [4, 96], strides = [1, 1]} : vector<4x192xf32> to vector<4x96xf32>
    %c0_8 = arith.constant 0 : index
    %c0_9 = arith.constant 0 : index
    %12 = vector.load %arg8[%c0_8, %c0_9] : memref<4x32xf32, #tpu.memory_space<vmem>>, vector<4x32xf32>
    %c0_10 = arith.constant 0 : index
    %c0_11 = arith.constant 0 : index
    %13 = vector.load %arg1[%c0_10, %c0_11] : memref<32x96xf32, #tpu.memory_space<vmem>>, vector<32x96xf32>
    %cst_12 = arith.constant dense<0.000000e+00> : vector<4x96xf32>
    %14 = tpu.matmul %12, %13, %cst_12 {dimension_numbers = #tpu.dot_dimension_numbers<[1], [0], [0], [1], [0, 0, 1, 1], [], []>} : vector<4x32xf32>, vector<32x96xf32>, vector<4x96xf32> -> vector<4x96xf32>
    %c0_13 = arith.constant 0 : index
    %c0_14 = arith.constant 0 : index
    %15 = vector.load %arg2[%c0_13, %c0_14] : memref<1x96xf32, #tpu.memory_space<vmem>>, vector<1x96xf32>
    %16 = vector.broadcast %15 : vector<1x96xf32> to vector<4x96xf32>
    %17 = arith.addf %14, %16 : vector<4x96xf32>
    %18 = vector.extract_strided_slice %11 {offsets = [0, 0], sizes = [4, 32], strides = [1, 1]} : vector<4x96xf32> to vector<4x32xf32>
    %19 = vector.extract_strided_slice %17 {offsets = [0, 0], sizes = [4, 32], strides = [1, 1]} : vector<4x96xf32> to vector<4x32xf32>
    %20 = arith.addf %18, %19 : vector<4x32xf32>
    %21 = arith.negf %20 : vector<4x32xf32>
    %22 = math.exp %21 : vector<4x32xf32>
    %cst_15 = arith.constant 1.000000e+00 : f32
    %23 = vector.broadcast %cst_15 : f32 to vector<4x32xf32>
    %24 = arith.addf %23, %22 : vector<4x32xf32>
    %25 = arith.divf %23, %24 : vector<4x32xf32>
    %26 = vector.extract_strided_slice %11 {offsets = [0, 32], sizes = [4, 32], strides = [1, 1]} : vector<4x96xf32> to vector<4x32xf32>
    %27 = vector.extract_strided_slice %17 {offsets = [0, 32], sizes = [4, 32], strides = [1, 1]} : vector<4x96xf32> to vector<4x32xf32>
    %28 = arith.addf %26, %27 : vector<4x32xf32>
    %29 = arith.negf %28 : vector<4x32xf32>
    %30 = math.exp %29 : vector<4x32xf32>
    %cst_16 = arith.constant 1.000000e+00 : f32
    %31 = vector.broadcast %cst_16 : f32 to vector<4x32xf32>
    %32 = arith.addf %31, %30 : vector<4x32xf32>
    %33 = arith.divf %31, %32 : vector<4x32xf32>
    %34 = vector.extract_strided_slice %11 {offsets = [0, 64], sizes = [4, 32], strides = [1, 1]} : vector<4x96xf32> to vector<4x32xf32>
    %35 = vector.extract_strided_slice %17 {offsets = [0, 64], sizes = [4, 32], strides = [1, 1]} : vector<4x96xf32> to vector<4x32xf32>
    %36 = arith.mulf %25, %35 : vector<4x32xf32>
    %37 = arith.addf %34, %36 : vector<4x32xf32>
    %38 = math.tanh %37 : vector<4x32xf32>
    %cst_17 = arith.constant 1.000000e+00 : f32
    %39 = vector.broadcast %cst_17 : f32 to vector<4x32xf32>
    %40 = arith.subf %39, %33 : vector<4x32xf32>
    %41 = arith.mulf %40, %38 : vector<4x32xf32>
    %42 = arith.mulf %33, %12 : vector<4x32xf32>
    %43 = arith.addf %41, %42 : vector<4x32xf32>
    %44 = vector.extract_strided_slice %10 {offsets = [0, 96], sizes = [4, 96], strides = [1, 1]} : vector<4x192xf32> to vector<4x96xf32>
    %c0_18 = arith.constant 0 : index
    %c0_19 = arith.constant 0 : index
    %45 = vector.load %arg9[%c0_18, %c0_19] : memref<4x32xf32, #tpu.memory_space<vmem>>, vector<4x32xf32>
    %c0_20 = arith.constant 0 : index
    %c0_21 = arith.constant 0 : index
    %46 = vector.load %arg3[%c0_20, %c0_21] : memref<32x96xf32, #tpu.memory_space<vmem>>, vector<32x96xf32>
    %cst_22 = arith.constant dense<0.000000e+00> : vector<4x96xf32>
    %47 = tpu.matmul %45, %46, %cst_22 {dimension_numbers = #tpu.dot_dimension_numbers<[1], [0], [0], [1], [0, 0, 1, 1], [], []>} : vector<4x32xf32>, vector<32x96xf32>, vector<4x96xf32> -> vector<4x96xf32>
    %c0_23 = arith.constant 0 : index
    %c0_24 = arith.constant 0 : index
    %48 = vector.load %arg4[%c0_23, %c0_24] : memref<1x96xf32, #tpu.memory_space<vmem>>, vector<1x96xf32>
    %49 = vector.broadcast %48 : vector<1x96xf32> to vector<4x96xf32>
    %50 = arith.addf %47, %49 : vector<4x96xf32>
    %51 = vector.extract_strided_slice %44 {offsets = [0, 0], sizes = [4, 32], strides = [1, 1]} : vector<4x96xf32> to vector<4x32xf32>
    %52 = vector.extract_strided_slice %50 {offsets = [0, 0], sizes = [4, 32], strides = [1, 1]} : vector<4x96xf32> to vector<4x32xf32>
    %53 = arith.addf %51, %52 : vector<4x32xf32>
    %54 = arith.negf %53 : vector<4x32xf32>
    %55 = math.exp %54 : vector<4x32xf32>
    %cst_25 = arith.constant 1.000000e+00 : f32
    %56 = vector.broadcast %cst_25 : f32 to vector<4x32xf32>
    %57 = arith.addf %56, %55 : vector<4x32xf32>
    %58 = arith.divf %56, %57 : vector<4x32xf32>
    %59 = vector.extract_strided_slice %44 {offsets = [0, 32], sizes = [4, 32], strides = [1, 1]} : vector<4x96xf32> to vector<4x32xf32>
    %60 = vector.extract_strided_slice %50 {offsets = [0, 32], sizes = [4, 32], strides = [1, 1]} : vector<4x96xf32> to vector<4x32xf32>
    %61 = arith.addf %59, %60 : vector<4x32xf32>
    %62 = arith.negf %61 : vector<4x32xf32>
    %63 = math.exp %62 : vector<4x32xf32>
    %cst_26 = arith.constant 1.000000e+00 : f32
    %64 = vector.broadcast %cst_26 : f32 to vector<4x32xf32>
    %65 = arith.addf %64, %63 : vector<4x32xf32>
    %66 = arith.divf %64, %65 : vector<4x32xf32>
    %67 = vector.extract_strided_slice %44 {offsets = [0, 64], sizes = [4, 32], strides = [1, 1]} : vector<4x96xf32> to vector<4x32xf32>
    %68 = vector.extract_strided_slice %50 {offsets = [0, 64], sizes = [4, 32], strides = [1, 1]} : vector<4x96xf32> to vector<4x32xf32>
    %69 = arith.mulf %58, %68 : vector<4x32xf32>
    %70 = arith.addf %67, %69 : vector<4x32xf32>
    %71 = math.tanh %70 : vector<4x32xf32>
    %cst_27 = arith.constant 1.000000e+00 : f32
    %72 = vector.broadcast %cst_27 : f32 to vector<4x32xf32>
    %73 = arith.subf %72, %66 : vector<4x32xf32>
    %74 = arith.mulf %73, %71 : vector<4x32xf32>
    %75 = arith.mulf %66, %45 : vector<4x32xf32>
    %76 = arith.addf %74, %75 : vector<4x32xf32>
    %c0_28 = arith.constant 0 : index
    %c0_29 = arith.constant 0 : index
    %77 = vector.load %arg8[%c0_28, %c0_29] : memref<4x32xf32, #tpu.memory_space<vmem>>, vector<4x32xf32>
    tpu.vector_store %arg8[%c0_28, %c0_29], %43 {strides = array<i32>} : memref<4x32xf32, #tpu.memory_space<vmem>>, vector<4x32xf32>,
    %c0_30 = arith.constant 0 : index
    %c0_31 = arith.constant 0 : index
    %78 = vector.load %arg9[%c0_30, %c0_31] : memref<4x32xf32, #tpu.memory_space<vmem>>, vector<4x32xf32>
    tpu.vector_store %arg9[%c0_30, %c0_31], %76 {strides = array<i32>} : memref<4x32xf32, #tpu.memory_space<vmem>>, vector<4x32xf32>,
    %79 = arith.index_cast %c0_i32 : i32 to index
    %c0_32 = arith.constant 0 : index
    %c0_33 = arith.constant 0 : index
    %80 = vector.load %arg5[%79, %c0_32, %c0_33] : memref<8x4x32xf32, #tpu.memory_space<vmem>>, vector<1x4x32xf32>
    %81 = vector.shape_cast %80 : vector<1x4x32xf32> to vector<4x32xf32>
    %82 = vector.shape_cast %43 : vector<4x32xf32> to vector<1x4x32xf32>
    tpu.vector_store %arg5[%79, %c0_32, %c0_33], %82 {strides = array<i32>} : memref<8x4x32xf32, #tpu.memory_space<vmem>>, vector<1x4x32xf32>,
    %83 = arith.index_cast %4 : i32 to index
    %c0_34 = arith.constant 0 : index
    %c0_35 = arith.constant 0 : index
    %84 = vector.load %arg6[%83, %c0_34, %c0_35] : memref<8x4x32xf32, #tpu.memory_space<vmem>>, vector<1x4x32xf32>
    %85 = vector.shape_cast %84 : vector<1x4x32xf32> to vector<4x32xf32>
    %86 = vector.shape_cast %76 : vector<4x32xf32> to vector<1x4x32xf32>
    tpu.vector_store %arg6[%83, %c0_34, %c0_35], %86 {strides = array<i32>} : memref<8x4x32xf32, #tpu.memory_space<vmem>>, vector<1x4x32xf32>,
    %c1_i32 = arith.constant 1 : i32
    %c7_i32_36 = arith.constant 7 : i32
    %87 = arith.subi %c7_i32_36, %c1_i32 : i32
    %88 = arith.index_cast %c1_i32 : i32 to index
    %c0_37 = arith.constant 0 : index
    %c0_38 = arith.constant 0 : index
    %89 = vector.load %arg0[%88, %c0_37, %c0_38] : memref<8x4x192xf32, #tpu.memory_space<vmem>>, vector<1x4x192xf32>
    %90 = vector.shape_cast %89 : vector<1x4x192xf32> to vector<4x192xf32>
    %91 = arith.index_cast %87 : i32 to index
    %c0_39 = arith.constant 0 : index
    %c0_40 = arith.constant 0 : index
    %92 = vector.load %arg0[%91, %c0_39, %c0_40] : memref<8x4x192xf32, #tpu.memory_space<vmem>>, vector<1x4x192xf32>
    %93 = vector.shape_cast %92 : vector<1x4x192xf32> to vector<4x192xf32>
    %94 = vector.extract_strided_slice %90 {offsets = [0, 0], sizes = [4, 96], strides = [1, 1]} : vector<4x192xf32> to vector<4x96xf32>
    %c0_41 = arith.constant 0 : index
    %c0_42 = arith.constant 0 : index
    %95 = vector.load %arg8[%c0_41, %c0_42] : memref<4x32xf32, #tpu.memory_space<vmem>>, vector<4x32xf32>
    %c0_43 = arith.constant 0 : index
    %c0_44 = arith.constant 0 : index
    %96 = vector.load %arg1[%c0_43, %c0_44] : memref<32x96xf32, #tpu.memory_space<vmem>>, vector<32x96xf32>
    %cst_45 = arith.constant dense<0.000000e+00> : vector<4x96xf32>
    %97 = tpu.matmul %95, %96, %cst_45 {dimension_numbers = #tpu.dot_dimension_numbers<[1], [0], [0], [1], [0, 0, 1, 1], [], []>} : vector<4x32xf32>, vector<32x96xf32>, vector<4x96xf32> -> vector<4x96xf32>
    %c0_46 = arith.constant 0 : index
    %c0_47 = arith.constant 0 : index
    %98 = vector.load %arg2[%c0_46, %c0_47] : memref<1x96xf32, #tpu.memory_space<vmem>>, vector<1x96xf32>
    %99 = vector.broadcast %98 : vector<1x96xf32> to vector<4x96xf32>
    %100 = arith.addf %97, %99 : vector<4x96xf32>
    %101 = vector.extract_strided_slice %94 {offsets = [0, 0], sizes = [4, 32], strides = [1, 1]} : vector<4x96xf32> to vector<4x32xf32>
    %102 = vector.extract_strided_slice %100 {offsets = [0, 0], sizes = [4, 32], strides = [1, 1]} : vector<4x96xf32> to vector<4x32xf32>
    %103 = arith.addf %101, %102 : vector<4x32xf32>
    %104 = arith.negf %103 : vector<4x32xf32>
    %105 = math.exp %104 : vector<4x32xf32>
    %cst_48 = arith.constant 1.000000e+00 : f32
    %106 = vector.broadcast %cst_48 : f32 to vector<4x32xf32>
    %107 = arith.addf %106, %105 : vector<4x32xf32>
    %108 = arith.divf %106, %107 : vector<4x32xf32>
    %109 = vector.extract_strided_slice %94 {offsets = [0, 32], sizes = [4, 32], strides = [1, 1]} : vector<4x96xf32> to vector<4x32xf32>
    %110 = vector.extract_strided_slice %100 {offsets = [0, 32], sizes = [4, 32], strides = [1, 1]} : vector<4x96xf32> to vector<4x32xf32>
    %111 = arith.addf %109, %110 : vector<4x32xf32>
    %112 = arith.negf %111 : vector<4x32xf32>
    %113 = math.exp %112 : vector<4x32xf32>
    %cst_49 = arith.constant 1.000000e+00 : f32
    %114 = vector.broadcast %cst_49 : f32 to vector<4x32xf32>
    %115 = arith.addf %114, %113 : vector<4x32xf32>
    %116 = arith.divf %114, %115 : vector<4x32xf32>
    %117 = vector.extract_strided_slice %94 {offsets = [0, 64], sizes = [4, 32], strides = [1, 1]} : vector<4x96xf32> to vector<4x32xf32>
    %118 = vector.extract_strided_slice %100 {offsets = [0, 64], sizes = [4, 32], strides = [1, 1]} : vector<4x96xf32> to vector<4x32xf32>
    %119 = arith.mulf %108, %118 : vector<4x32xf32>
    %120 = arith.addf %117, %119 : vector<4x32xf32>
    %121 = math.tanh %120 : vector<4x32xf32>
    %cst_50 = arith.constant 1.000000e+00 : f32
    %122 = vector.broadcast %cst_50 : f32 to vector<4x32xf32>
    %123 = arith.subf %122, %116 : vector<4x32xf32>
    %124 = arith.mulf %123, %121 : vector<4x32xf32>
    %125 = arith.mulf %116, %95 : vector<4x32xf32>
    %126 = arith.addf %124, %125 : vector<4x32xf32>
    %127 = vector.extract_strided_slice %93 {offsets = [0, 96], sizes = [4, 96], strides = [1, 1]} : vector<4x192xf32> to vector<4x96xf32>
    %c0_51 = arith.constant 0 : index
    %c0_52 = arith.constant 0 : index
    %128 = vector.load %arg9[%c0_51, %c0_52] : memref<4x32xf32, #tpu.memory_space<vmem>>, vector<4x32xf32>
    %c0_53 = arith.constant 0 : index
    %c0_54 = arith.constant 0 : index
    %129 = vector.load %arg3[%c0_53, %c0_54] : memref<32x96xf32, #tpu.memory_space<vmem>>, vector<32x96xf32>
    %cst_55 = arith.constant dense<0.000000e+00> : vector<4x96xf32>
    %130 = tpu.matmul %128, %129, %cst_55 {dimension_numbers = #tpu.dot_dimension_numbers<[1], [0], [0], [1], [0, 0, 1, 1], [], []>} : vector<4x32xf32>, vector<32x96xf32>, vector<4x96xf32> -> vector<4x96xf32>
    %c0_56 = arith.constant 0 : index
    %c0_57 = arith.constant 0 : index
    %131 = vector.load %arg4[%c0_56, %c0_57] : memref<1x96xf32, #tpu.memory_space<vmem>>, vector<1x96xf32>
    %132 = vector.broadcast %131 : vector<1x96xf32> to vector<4x96xf32>
    %133 = arith.addf %130, %132 : vector<4x96xf32>
    %134 = vector.extract_strided_slice %127 {offsets = [0, 0], sizes = [4, 32], strides = [1, 1]} : vector<4x96xf32> to vector<4x32xf32>
    %135 = vector.extract_strided_slice %133 {offsets = [0, 0], sizes = [4, 32], strides = [1, 1]} : vector<4x96xf32> to vector<4x32xf32>
    %136 = arith.addf %134, %135 : vector<4x32xf32>
    %137 = arith.negf %136 : vector<4x32xf32>
    %138 = math.exp %137 : vector<4x32xf32>
    %cst_58 = arith.constant 1.000000e+00 : f32
    %139 = vector.broadcast %cst_58 : f32 to vector<4x32xf32>
    %140 = arith.addf %139, %138 : vector<4x32xf32>
    %141 = arith.divf %139, %140 : vector<4x32xf32>
    %142 = vector.extract_strided_slice %127 {offsets = [0, 32], sizes = [4, 32], strides = [1, 1]} : vector<4x96xf32> to vector<4x32xf32>
    %143 = vector.extract_strided_slice %133 {offsets = [0, 32], sizes = [4, 32], strides = [1, 1]} : vector<4x96xf32> to vector<4x32xf32>
    %144 = arith.addf %142, %143 : vector<4x32xf32>
    %145 = arith.negf %144 : vector<4x32xf32>
    %146 = math.exp %145 : vector<4x32xf32>
    %cst_59 = arith.constant 1.000000e+00 : f32
    %147 = vector.broadcast %cst_59 : f32 to vector<4x32xf32>
    %148 = arith.addf %147, %146 : vector<4x32xf32>
    %149 = arith.divf %147, %148 : vector<4x32xf32>
    %150 = vector.extract_strided_slice %127 {offsets = [0, 64], sizes = [4, 32], strides = [1, 1]} : vector<4x96xf32> to vector<4x32xf32>
    %151 = vector.extract_strided_slice %133 {offsets = [0, 64], sizes = [4, 32], strides = [1, 1]} : vector<4x96xf32> to vector<4x32xf32>
    %152 = arith.mulf %141, %151 : vector<4x32xf32>
    %153 = arith.addf %150, %152 : vector<4x32xf32>
    %154 = math.tanh %153 : vector<4x32xf32>
    %cst_60 = arith.constant 1.000000e+00 : f32
    %155 = vector.broadcast %cst_60 : f32 to vector<4x32xf32>
    %156 = arith.subf %155, %149 : vector<4x32xf32>
    %157 = arith.mulf %156, %154 : vector<4x32xf32>
    %158 = arith.mulf %149, %128 : vector<4x32xf32>
    %159 = arith.addf %157, %158 : vector<4x32xf32>
    %c0_61 = arith.constant 0 : index
    %c0_62 = arith.constant 0 : index
    %160 = vector.load %arg8[%c0_61, %c0_62] : memref<4x32xf32, #tpu.memory_space<vmem>>, vector<4x32xf32>
    tpu.vector_store %arg8[%c0_61, %c0_62], %126 {strides = array<i32>} : memref<4x32xf32, #tpu.memory_space<vmem>>, vector<4x32xf32>,
    %c0_63 = arith.constant 0 : index
    %c0_64 = arith.constant 0 : index
    %161 = vector.load %arg9[%c0_63, %c0_64] : memref<4x32xf32, #tpu.memory_space<vmem>>, vector<4x32xf32>
    tpu.vector_store %arg9[%c0_63, %c0_64], %159 {strides = array<i32>} : memref<4x32xf32, #tpu.memory_space<vmem>>, vector<4x32xf32>,
    %162 = arith.index_cast %c1_i32 : i32 to index
    %c0_65 = arith.constant 0 : index
    %c0_66 = arith.constant 0 : index
    %163 = vector.load %arg5[%162, %c0_65, %c0_66] : memref<8x4x32xf32, #tpu.memory_space<vmem>>, vector<1x4x32xf32>
    %164 = vector.shape_cast %163 : vector<1x4x32xf32> to vector<4x32xf32>
    %165 = vector.shape_cast %126 : vector<4x32xf32> to vector<1x4x32xf32>
    tpu.vector_store %arg5[%162, %c0_65, %c0_66], %165 {strides = array<i32>} : memref<8x4x32xf32, #tpu.memory_space<vmem>>, vector<1x4x32xf32>,
    %166 = arith.index_cast %87 : i32 to index
    %c0_67 = arith.constant 0 : index
    %c0_68 = arith.constant 0 : index
    %167 = vector.load %arg6[%166, %c0_67, %c0_68] : memref<8x4x32xf32, #tpu.memory_space<vmem>>, vector<1x4x32xf32>
    %168 = vector.shape_cast %167 : vector<1x4x32xf32> to vector<4x32xf32>
    %169 = vector.shape_cast %159 : vector<4x32xf32> to vector<1x4x32xf32>
    tpu.vector_store %arg6[%166, %c0_67, %c0_68], %169 {strides = array<i32>} : memref<8x4x32xf32, #tpu.memory_space<vmem>>, vector<1x4x32xf32>,
    %c2_i32 = arith.constant 2 : i32
    %c7_i32_69 = arith.constant 7 : i32
    %170 = arith.subi %c7_i32_69, %c2_i32 : i32
    %171 = arith.index_cast %c2_i32 : i32 to index
    %c0_70 = arith.constant 0 : index
    %c0_71 = arith.constant 0 : index
    %172 = vector.load %arg0[%171, %c0_70, %c0_71] : memref<8x4x192xf32, #tpu.memory_space<vmem>>, vector<1x4x192xf32>
    %173 = vector.shape_cast %172 : vector<1x4x192xf32> to vector<4x192xf32>
    %174 = arith.index_cast %170 : i32 to index
    %c0_72 = arith.constant 0 : index
    %c0_73 = arith.constant 0 : index
    %175 = vector.load %arg0[%174, %c0_72, %c0_73] : memref<8x4x192xf32, #tpu.memory_space<vmem>>, vector<1x4x192xf32>
    %176 = vector.shape_cast %175 : vector<1x4x192xf32> to vector<4x192xf32>
    %177 = vector.extract_strided_slice %173 {offsets = [0, 0], sizes = [4, 96], strides = [1, 1]} : vector<4x192xf32> to vector<4x96xf32>
    %c0_74 = arith.constant 0 : index
    %c0_75 = arith.constant 0 : index
    %178 = vector.load %arg8[%c0_74, %c0_75] : memref<4x32xf32, #tpu.memory_space<vmem>>, vector<4x32xf32>
    %c0_76 = arith.constant 0 : index
    %c0_77 = arith.constant 0 : index
    %179 = vector.load %arg1[%c0_76, %c0_77] : memref<32x96xf32, #tpu.memory_space<vmem>>, vector<32x96xf32>
    %cst_78 = arith.constant dense<0.000000e+00> : vector<4x96xf32>
    %180 = tpu.matmul %178, %179, %cst_78 {dimension_numbers = #tpu.dot_dimension_numbers<[1], [0], [0], [1], [0, 0, 1, 1], [], []>} : vector<4x32xf32>, vector<32x96xf32>, vector<4x96xf32> -> vector<4x96xf32>
    %c0_79 = arith.constant 0 : index
    %c0_80 = arith.constant 0 : index
    %181 = vector.load %arg2[%c0_79, %c0_80] : memref<1x96xf32, #tpu.memory_space<vmem>>, vector<1x96xf32>
    %182 = vector.broadcast %181 : vector<1x96xf32> to vector<4x96xf32>
    %183 = arith.addf %180, %182 : vector<4x96xf32>
    %184 = vector.extract_strided_slice %177 {offsets = [0, 0], sizes = [4, 32], strides = [1, 1]} : vector<4x96xf32> to vector<4x32xf32>
    %185 = vector.extract_strided_slice %183 {offsets = [0, 0], sizes = [4, 32], strides = [1, 1]} : vector<4x96xf32> to vector<4x32xf32>
    %186 = arith.addf %184, %185 : vector<4x32xf32>
    %187 = arith.negf %186 : vector<4x32xf32>
    %188 = math.exp %187 : vector<4x32xf32>
    %cst_81 = arith.constant 1.000000e+00 : f32
    %189 = vector.broadcast %cst_81 : f32 to vector<4x32xf32>
    %190 = arith.addf %189, %188 : vector<4x32xf32>
    %191 = arith.divf %189, %190 : vector<4x32xf32>
    %192 = vector.extract_strided_slice %177 {offsets = [0, 32], sizes = [4, 32], strides = [1, 1]} : vector<4x96xf32> to vector<4x32xf32>
    %193 = vector.extract_strided_slice %183 {offsets = [0, 32], sizes = [4, 32], strides = [1, 1]} : vector<4x96xf32> to vector<4x32xf32>
    %194 = arith.addf %192, %193 : vector<4x32xf32>
    %195 = arith.negf %194 : vector<4x32xf32>
    %196 = math.exp %195 : vector<4x32xf32>
    %cst_82 = arith.constant 1.000000e+00 : f32
    %197 = vector.broadcast %cst_82 : f32 to vector<4x32xf32>
    %198 = arith.addf %197, %196 : vector<4x32xf32>
    %199 = arith.divf %197, %198 : vector<4x32xf32>
    %200 = vector.extract_strided_slice %177 {offsets = [0, 64], sizes = [4, 32], strides = [1, 1]} : vector<4x96xf32> to vector<4x32xf32>
    %201 = vector.extract_strided_slice %183 {offsets = [0, 64], sizes = [4, 32], strides = [1, 1]} : vector<4x96xf32> to vector<4x32xf32>
    %202 = arith.mulf %191, %201 : vector<4x32xf32>
    %203 = arith.addf %200, %202 : vector<4x32xf32>
    %204 = math.tanh %203 : vector<4x32xf32>
    %cst_83 = arith.constant 1.000000e+00 : f32
    %205 = vector.broadcast %cst_83 : f32 to vector<4x32xf32>
    %206 = arith.subf %205, %199 : vector<4x32xf32>
    %207 = arith.mulf %206, %204 : vector<4x32xf32>
    %208 = arith.mulf %199, %178 : vector<4x32xf32>
    %209 = arith.addf %207, %208 : vector<4x32xf32>
    %210 = vector.extract_strided_slice %176 {offsets = [0, 96], sizes = [4, 96], strides = [1, 1]} : vector<4x192xf32> to vector<4x96xf32>
    %c0_84 = arith.constant 0 : index
    %c0_85 = arith.constant 0 : index
    %211 = vector.load %arg9[%c0_84, %c0_85] : memref<4x32xf32, #tpu.memory_space<vmem>>, vector<4x32xf32>
    %c0_86 = arith.constant 0 : index
    %c0_87 = arith.constant 0 : index
    %212 = vector.load %arg3[%c0_86, %c0_87] : memref<32x96xf32, #tpu.memory_space<vmem>>, vector<32x96xf32>
    %cst_88 = arith.constant dense<0.000000e+00> : vector<4x96xf32>
    %213 = tpu.matmul %211, %212, %cst_88 {dimension_numbers = #tpu.dot_dimension_numbers<[1], [0], [0], [1], [0, 0, 1, 1], [], []>} : vector<4x32xf32>, vector<32x96xf32>, vector<4x96xf32> -> vector<4x96xf32>
    %c0_89 = arith.constant 0 : index
    %c0_90 = arith.constant 0 : index
    %214 = vector.load %arg4[%c0_89, %c0_90] : memref<1x96xf32, #tpu.memory_space<vmem>>, vector<1x96xf32>
    %215 = vector.broadcast %214 : vector<1x96xf32> to vector<4x96xf32>
    %216 = arith.addf %213, %215 : vector<4x96xf32>
    %217 = vector.extract_strided_slice %210 {offsets = [0, 0], sizes = [4, 32], strides = [1, 1]} : vector<4x96xf32> to vector<4x32xf32>
    %218 = vector.extract_strided_slice %216 {offsets = [0, 0], sizes = [4, 32], strides = [1, 1]} : vector<4x96xf32> to vector<4x32xf32>
    %219 = arith.addf %217, %218 : vector<4x32xf32>
    %220 = arith.negf %219 : vector<4x32xf32>
    %221 = math.exp %220 : vector<4x32xf32>
    %cst_91 = arith.constant 1.000000e+00 : f32
    %222 = vector.broadcast %cst_91 : f32 to vector<4x32xf32>
    %223 = arith.addf %222, %221 : vector<4x32xf32>
    %224 = arith.divf %222, %223 : vector<4x32xf32>
    %225 = vector.extract_strided_slice %210 {offsets = [0, 32], sizes = [4, 32], strides = [1, 1]} : vector<4x96xf32> to vector<4x32xf32>
    %226 = vector.extract_strided_slice %216 {offsets = [0, 32], sizes = [4, 32], strides = [1, 1]} : vector<4x96xf32> to vector<4x32xf32>
    %227 = arith.addf %225, %226 : vector<4x32xf32>
    %228 = arith.negf %227 : vector<4x32xf32>
    %229 = math.exp %228 : vector<4x32xf32>
    %cst_92 = arith.constant 1.000000e+00 : f32
    %230 = vector.broadcast %cst_92 : f32 to vector<4x32xf32>
    %231 = arith.addf %230, %229 : vector<4x32xf32>
    %232 = arith.divf %230, %231 : vector<4x32xf32>
    %233 = vector.extract_strided_slice %210 {offsets = [0, 64], sizes = [4, 32], strides = [1, 1]} : vector<4x96xf32> to vector<4x32xf32>
    %234 = vector.extract_strided_slice %216 {offsets = [0, 64], sizes = [4, 32], strides = [1, 1]} : vector<4x96xf32> to vector<4x32xf32>
    %235 = arith.mulf %224, %234 : vector<4x32xf32>
    %236 = arith.addf %233, %235 : vector<4x32xf32>
    %237 = math.tanh %236 : vector<4x32xf32>
    %cst_93 = arith.constant 1.000000e+00 : f32
    %238 = vector.broadcast %cst_93 : f32 to vector<4x32xf32>
    %239 = arith.subf %238, %232 : vector<4x32xf32>
    %240 = arith.mulf %239, %237 : vector<4x32xf32>
    %241 = arith.mulf %232, %211 : vector<4x32xf32>
    %242 = arith.addf %240, %241 : vector<4x32xf32>
    %c0_94 = arith.constant 0 : index
    %c0_95 = arith.constant 0 : index
    %243 = vector.load %arg8[%c0_94, %c0_95] : memref<4x32xf32, #tpu.memory_space<vmem>>, vector<4x32xf32>
    tpu.vector_store %arg8[%c0_94, %c0_95], %209 {strides = array<i32>} : memref<4x32xf32, #tpu.memory_space<vmem>>, vector<4x32xf32>,
    %c0_96 = arith.constant 0 : index
    %c0_97 = arith.constant 0 : index
    %244 = vector.load %arg9[%c0_96, %c0_97] : memref<4x32xf32, #tpu.memory_space<vmem>>, vector<4x32xf32>
    tpu.vector_store %arg9[%c0_96, %c0_97], %242 {strides = array<i32>} : memref<4x32xf32, #tpu.memory_space<vmem>>, vector<4x32xf32>,
    %245 = arith.index_cast %c2_i32 : i32 to index
    %c0_98 = arith.constant 0 : index
    %c0_99 = arith.constant 0 : index
    %246 = vector.load %arg5[%245, %c0_98, %c0_99] : memref<8x4x32xf32, #tpu.memory_space<vmem>>, vector<1x4x32xf32>
    %247 = vector.shape_cast %246 : vector<1x4x32xf32> to vector<4x32xf32>
    %248 = vector.shape_cast %209 : vector<4x32xf32> to vector<1x4x32xf32>
    tpu.vector_store %arg5[%245, %c0_98, %c0_99], %248 {strides = array<i32>} : memref<8x4x32xf32, #tpu.memory_space<vmem>>, vector<1x4x32xf32>,
    %249 = arith.index_cast %170 : i32 to index
    %c0_100 = arith.constant 0 : index
    %c0_101 = arith.constant 0 : index
    %250 = vector.load %arg6[%249, %c0_100, %c0_101] : memref<8x4x32xf32, #tpu.memory_space<vmem>>, vector<1x4x32xf32>
    %251 = vector.shape_cast %250 : vector<1x4x32xf32> to vector<4x32xf32>
    %252 = vector.shape_cast %242 : vector<4x32xf32> to vector<1x4x32xf32>
    tpu.vector_store %arg6[%249, %c0_100, %c0_101], %252 {strides = array<i32>} : memref<8x4x32xf32, #tpu.memory_space<vmem>>, vector<1x4x32xf32>,
    %c3_i32 = arith.constant 3 : i32
    %c7_i32_102 = arith.constant 7 : i32
    %253 = arith.subi %c7_i32_102, %c3_i32 : i32
    %254 = arith.index_cast %c3_i32 : i32 to index
    %c0_103 = arith.constant 0 : index
    %c0_104 = arith.constant 0 : index
    %255 = vector.load %arg0[%254, %c0_103, %c0_104] : memref<8x4x192xf32, #tpu.memory_space<vmem>>, vector<1x4x192xf32>
    %256 = vector.shape_cast %255 : vector<1x4x192xf32> to vector<4x192xf32>
    %257 = arith.index_cast %253 : i32 to index
    %c0_105 = arith.constant 0 : index
    %c0_106 = arith.constant 0 : index
    %258 = vector.load %arg0[%257, %c0_105, %c0_106] : memref<8x4x192xf32, #tpu.memory_space<vmem>>, vector<1x4x192xf32>
    %259 = vector.shape_cast %258 : vector<1x4x192xf32> to vector<4x192xf32>
    %260 = vector.extract_strided_slice %256 {offsets = [0, 0], sizes = [4, 96], strides = [1, 1]} : vector<4x192xf32> to vector<4x96xf32>
    %c0_107 = arith.constant 0 : index
    %c0_108 = arith.constant 0 : index
    %261 = vector.load %arg8[%c0_107, %c0_108] : memref<4x32xf32, #tpu.memory_space<vmem>>, vector<4x32xf32>
    %c0_109 = arith.constant 0 : index
    %c0_110 = arith.constant 0 : index
    %262 = vector.load %arg1[%c0_109, %c0_110] : memref<32x96xf32, #tpu.memory_space<vmem>>, vector<32x96xf32>
    %cst_111 = arith.constant dense<0.000000e+00> : vector<4x96xf32>
    %263 = tpu.matmul %261, %262, %cst_111 {dimension_numbers = #tpu.dot_dimension_numbers<[1], [0], [0], [1], [0, 0, 1, 1], [], []>} : vector<4x32xf32>, vector<32x96xf32>, vector<4x96xf32> -> vector<4x96xf32>
    %c0_112 = arith.constant 0 : index
    %c0_113 = arith.constant 0 : index
    %264 = vector.load %arg2[%c0_112, %c0_113] : memref<1x96xf32, #tpu.memory_space<vmem>>, vector<1x96xf32>
    %265 = vector.broadcast %264 : vector<1x96xf32> to vector<4x96xf32>
    %266 = arith.addf %263, %265 : vector<4x96xf32>
    %267 = vector.extract_strided_slice %260 {offsets = [0, 0], sizes = [4, 32], strides = [1, 1]} : vector<4x96xf32> to vector<4x32xf32>
    %268 = vector.extract_strided_slice %266 {offsets = [0, 0], sizes = [4, 32], strides = [1, 1]} : vector<4x96xf32> to vector<4x32xf32>
    %269 = arith.addf %267, %268 : vector<4x32xf32>
    %270 = arith.negf %269 : vector<4x32xf32>
    %271 = math.exp %270 : vector<4x32xf32>
    %cst_114 = arith.constant 1.000000e+00 : f32
    %272 = vector.broadcast %cst_114 : f32 to vector<4x32xf32>
    %273 = arith.addf %272, %271 : vector<4x32xf32>
    %274 = arith.divf %272, %273 : vector<4x32xf32>
    %275 = vector.extract_strided_slice %260 {offsets = [0, 32], sizes = [4, 32], strides = [1, 1]} : vector<4x96xf32> to vector<4x32xf32>
    %276 = vector.extract_strided_slice %266 {offsets = [0, 32], sizes = [4, 32], strides = [1, 1]} : vector<4x96xf32> to vector<4x32xf32>
    %277 = arith.addf %275, %276 : vector<4x32xf32>
    %278 = arith.negf %277 : vector<4x32xf32>
    %279 = math.exp %278 : vector<4x32xf32>
    %cst_115 = arith.constant 1.000000e+00 : f32
    %280 = vector.broadcast %cst_115 : f32 to vector<4x32xf32>
    %281 = arith.addf %280, %279 : vector<4x32xf32>
    %282 = arith.divf %280, %281 : vector<4x32xf32>
    %283 = vector.extract_strided_slice %260 {offsets = [0, 64], sizes = [4, 32], strides = [1, 1]} : vector<4x96xf32> to vector<4x32xf32>
    %284 = vector.extract_strided_slice %266 {offsets = [0, 64], sizes = [4, 32], strides = [1, 1]} : vector<4x96xf32> to vector<4x32xf32>
    %285 = arith.mulf %274, %284 : vector<4x32xf32>
    %286 = arith.addf %283, %285 : vector<4x32xf32>
    %287 = math.tanh %286 : vector<4x32xf32>
    %cst_116 = arith.constant 1.000000e+00 : f32
    %288 = vector.broadcast %cst_116 : f32 to vector<4x32xf32>
    %289 = arith.subf %288, %282 : vector<4x32xf32>
    %290 = arith.mulf %289, %287 : vector<4x32xf32>
    %291 = arith.mulf %282, %261 : vector<4x32xf32>
    %292 = arith.addf %290, %291 : vector<4x32xf32>
    %293 = vector.extract_strided_slice %259 {offsets = [0, 96], sizes = [4, 96], strides = [1, 1]} : vector<4x192xf32> to vector<4x96xf32>
    %c0_117 = arith.constant 0 : index
    %c0_118 = arith.constant 0 : index
    %294 = vector.load %arg9[%c0_117, %c0_118] : memref<4x32xf32, #tpu.memory_space<vmem>>, vector<4x32xf32>
    %c0_119 = arith.constant 0 : index
    %c0_120 = arith.constant 0 : index
    %295 = vector.load %arg3[%c0_119, %c0_120] : memref<32x96xf32, #tpu.memory_space<vmem>>, vector<32x96xf32>
    %cst_121 = arith.constant dense<0.000000e+00> : vector<4x96xf32>
    %296 = tpu.matmul %294, %295, %cst_121 {dimension_numbers = #tpu.dot_dimension_numbers<[1], [0], [0], [1], [0, 0, 1, 1], [], []>} : vector<4x32xf32>, vector<32x96xf32>, vector<4x96xf32> -> vector<4x96xf32>
    %c0_122 = arith.constant 0 : index
    %c0_123 = arith.constant 0 : index
    %297 = vector.load %arg4[%c0_122, %c0_123] : memref<1x96xf32, #tpu.memory_space<vmem>>, vector<1x96xf32>
    %298 = vector.broadcast %297 : vector<1x96xf32> to vector<4x96xf32>
    %299 = arith.addf %296, %298 : vector<4x96xf32>
    %300 = vector.extract_strided_slice %293 {offsets = [0, 0], sizes = [4, 32], strides = [1, 1]} : vector<4x96xf32> to vector<4x32xf32>
    %301 = vector.extract_strided_slice %299 {offsets = [0, 0], sizes = [4, 32], strides = [1, 1]} : vector<4x96xf32> to vector<4x32xf32>
    %302 = arith.addf %300, %301 : vector<4x32xf32>
    %303 = arith.negf %302 : vector<4x32xf32>
    %304 = math.exp %303 : vector<4x32xf32>
    %cst_124 = arith.constant 1.000000e+00 : f32
    %305 = vector.broadcast %cst_124 : f32 to vector<4x32xf32>
    %306 = arith.addf %305, %304 : vector<4x32xf32>
    %307 = arith.divf %305, %306 : vector<4x32xf32>
    %308 = vector.extract_strided_slice %293 {offsets = [0, 32], sizes = [4, 32], strides = [1, 1]} : vector<4x96xf32> to vector<4x32xf32>
    %309 = vector.extract_strided_slice %299 {offsets = [0, 32], sizes = [4, 32], strides = [1, 1]} : vector<4x96xf32> to vector<4x32xf32>
    %310 = arith.addf %308, %309 : vector<4x32xf32>
    %311 = arith.negf %310 : vector<4x32xf32>
    %312 = math.exp %311 : vector<4x32xf32>
    %cst_125 = arith.constant 1.000000e+00 : f32
    %313 = vector.broadcast %cst_125 : f32 to vector<4x32xf32>
    %314 = arith.addf %313, %312 : vector<4x32xf32>
    %315 = arith.divf %313, %314 : vector<4x32xf32>
    %316 = vector.extract_strided_slice %293 {offsets = [0, 64], sizes = [4, 32], strides = [1, 1]} : vector<4x96xf32> to vector<4x32xf32>
    %317 = vector.extract_strided_slice %299 {offsets = [0, 64], sizes = [4, 32], strides = [1, 1]} : vector<4x96xf32> to vector<4x32xf32>
    %318 = arith.mulf %307, %317 : vector<4x32xf32>
    %319 = arith.addf %316, %318 : vector<4x32xf32>
    %320 = math.tanh %319 : vector<4x32xf32>
    %cst_126 = arith.constant 1.000000e+00 : f32
    %321 = vector.broadcast %cst_126 : f32 to vector<4x32xf32>
    %322 = arith.subf %321, %315 : vector<4x32xf32>
    %323 = arith.mulf %322, %320 : vector<4x32xf32>
    %324 = arith.mulf %315, %294 : vector<4x32xf32>
    %325 = arith.addf %323, %324 : vector<4x32xf32>
    %c0_127 = arith.constant 0 : index
    %c0_128 = arith.constant 0 : index
    %326 = vector.load %arg8[%c0_127, %c0_128] : memref<4x32xf32, #tpu.memory_space<vmem>>, vector<4x32xf32>
    tpu.vector_store %arg8[%c0_127, %c0_128], %292 {strides = array<i32>} : memref<4x32xf32, #tpu.memory_space<vmem>>, vector<4x32xf32>,
    %c0_129 = arith.constant 0 : index
    %c0_130 = arith.constant 0 : index
    %327 = vector.load %arg9[%c0_129, %c0_130] : memref<4x32xf32, #tpu.memory_space<vmem>>, vector<4x32xf32>
    tpu.vector_store %arg9[%c0_129, %c0_130], %325 {strides = array<i32>} : memref<4x32xf32, #tpu.memory_space<vmem>>, vector<4x32xf32>,
    %328 = arith.index_cast %c3_i32 : i32 to index
    %c0_131 = arith.constant 0 : index
    %c0_132 = arith.constant 0 : index
    %329 = vector.load %arg5[%328, %c0_131, %c0_132] : memref<8x4x32xf32, #tpu.memory_space<vmem>>, vector<1x4x32xf32>
    %330 = vector.shape_cast %329 : vector<1x4x32xf32> to vector<4x32xf32>
    %331 = vector.shape_cast %292 : vector<4x32xf32> to vector<1x4x32xf32>
    tpu.vector_store %arg5[%328, %c0_131, %c0_132], %331 {strides = array<i32>} : memref<8x4x32xf32, #tpu.memory_space<vmem>>, vector<1x4x32xf32>,
    %332 = arith.index_cast %253 : i32 to index
    %c0_133 = arith.constant 0 : index
    %c0_134 = arith.constant 0 : index
    %333 = vector.load %arg6[%332, %c0_133, %c0_134] : memref<8x4x32xf32, #tpu.memory_space<vmem>>, vector<1x4x32xf32>
    %334 = vector.shape_cast %333 : vector<1x4x32xf32> to vector<4x32xf32>
    %335 = vector.shape_cast %325 : vector<4x32xf32> to vector<1x4x32xf32>
    tpu.vector_store %arg6[%332, %c0_133, %c0_134], %335 {strides = array<i32>} : memref<8x4x32xf32, #tpu.memory_space<vmem>>, vector<1x4x32xf32>,
    %c4_i32 = arith.constant 4 : i32
    %c7_i32_135 = arith.constant 7 : i32
    %336 = arith.subi %c7_i32_135, %c4_i32 : i32
    %337 = arith.index_cast %c4_i32 : i32 to index
    %c0_136 = arith.constant 0 : index
    %c0_137 = arith.constant 0 : index
    %338 = vector.load %arg0[%337, %c0_136, %c0_137] : memref<8x4x192xf32, #tpu.memory_space<vmem>>, vector<1x4x192xf32>
    %339 = vector.shape_cast %338 : vector<1x4x192xf32> to vector<4x192xf32>
    %340 = arith.index_cast %336 : i32 to index
    %c0_138 = arith.constant 0 : index
    %c0_139 = arith.constant 0 : index
    %341 = vector.load %arg0[%340, %c0_138, %c0_139] : memref<8x4x192xf32, #tpu.memory_space<vmem>>, vector<1x4x192xf32>
    %342 = vector.shape_cast %341 : vector<1x4x192xf32> to vector<4x192xf32>
    %343 = vector.extract_strided_slice %339 {offsets = [0, 0], sizes = [4, 96], strides = [1, 1]} : vector<4x192xf32> to vector<4x96xf32>
    %c0_140 = arith.constant 0 : index
    %c0_141 = arith.constant 0 : index
    %344 = vector.load %arg8[%c0_140, %c0_141] : memref<4x32xf32, #tpu.memory_space<vmem>>, vector<4x32xf32>
    %c0_142 = arith.constant 0 : index
    %c0_143 = arith.constant 0 : index
    %345 = vector.load %arg1[%c0_142, %c0_143] : memref<32x96xf32, #tpu.memory_space<vmem>>, vector<32x96xf32>
    %cst_144 = arith.constant dense<0.000000e+00> : vector<4x96xf32>
    %346 = tpu.matmul %344, %345, %cst_144 {dimension_numbers = #tpu.dot_dimension_numbers<[1], [0], [0], [1], [0, 0, 1, 1], [], []>} : vector<4x32xf32>, vector<32x96xf32>, vector<4x96xf32> -> vector<4x96xf32>
    %c0_145 = arith.constant 0 : index
    %c0_146 = arith.constant 0 : index
    %347 = vector.load %arg2[%c0_145, %c0_146] : memref<1x96xf32, #tpu.memory_space<vmem>>, vector<1x96xf32>
    %348 = vector.broadcast %347 : vector<1x96xf32> to vector<4x96xf32>
    %349 = arith.addf %346, %348 : vector<4x96xf32>
    %350 = vector.extract_strided_slice %343 {offsets = [0, 0], sizes = [4, 32], strides = [1, 1]} : vector<4x96xf32> to vector<4x32xf32>
    %351 = vector.extract_strided_slice %349 {offsets = [0, 0], sizes = [4, 32], strides = [1, 1]} : vector<4x96xf32> to vector<4x32xf32>
    %352 = arith.addf %350, %351 : vector<4x32xf32>
    %353 = arith.negf %352 : vector<4x32xf32>
    %354 = math.exp %353 : vector<4x32xf32>
    %cst_147 = arith.constant 1.000000e+00 : f32
    %355 = vector.broadcast %cst_147 : f32 to vector<4x32xf32>
    %356 = arith.addf %355, %354 : vector<4x32xf32>
    %357 = arith.divf %355, %356 : vector<4x32xf32>
    %358 = vector.extract_strided_slice %343 {offsets = [0, 32], sizes = [4, 32], strides = [1, 1]} : vector<4x96xf32> to vector<4x32xf32>
    %359 = vector.extract_strided_slice %349 {offsets = [0, 32], sizes = [4, 32], strides = [1, 1]} : vector<4x96xf32> to vector<4x32xf32>
    %360 = arith.addf %358, %359 : vector<4x32xf32>
    %361 = arith.negf %360 : vector<4x32xf32>
    %362 = math.exp %361 : vector<4x32xf32>
    %cst_148 = arith.constant 1.000000e+00 : f32
    %363 = vector.broadcast %cst_148 : f32 to vector<4x32xf32>
    %364 = arith.addf %363, %362 : vector<4x32xf32>
    %365 = arith.divf %363, %364 : vector<4x32xf32>
    %366 = vector.extract_strided_slice %343 {offsets = [0, 64], sizes = [4, 32], strides = [1, 1]} : vector<4x96xf32> to vector<4x32xf32>
    %367 = vector.extract_strided_slice %349 {offsets = [0, 64], sizes = [4, 32], strides = [1, 1]} : vector<4x96xf32> to vector<4x32xf32>
    %368 = arith.mulf %357, %367 : vector<4x32xf32>
    %369 = arith.addf %366, %368 : vector<4x32xf32>
    %370 = math.tanh %369 : vector<4x32xf32>
    %cst_149 = arith.constant 1.000000e+00 : f32
    %371 = vector.broadcast %cst_149 : f32 to vector<4x32xf32>
    %372 = arith.subf %371, %365 : vector<4x32xf32>
    %373 = arith.mulf %372, %370 : vector<4x32xf32>
    %374 = arith.mulf %365, %344 : vector<4x32xf32>
    %375 = arith.addf %373, %374 : vector<4x32xf32>
    %376 = vector.extract_strided_slice %342 {offsets = [0, 96], sizes = [4, 96], strides = [1, 1]} : vector<4x192xf32> to vector<4x96xf32>
    %c0_150 = arith.constant 0 : index
    %c0_151 = arith.constant 0 : index
    %377 = vector.load %arg9[%c0_150, %c0_151] : memref<4x32xf32, #tpu.memory_space<vmem>>, vector<4x32xf32>
    %c0_152 = arith.constant 0 : index
    %c0_153 = arith.constant 0 : index
    %378 = vector.load %arg3[%c0_152, %c0_153] : memref<32x96xf32, #tpu.memory_space<vmem>>, vector<32x96xf32>
    %cst_154 = arith.constant dense<0.000000e+00> : vector<4x96xf32>
    %379 = tpu.matmul %377, %378, %cst_154 {dimension_numbers = #tpu.dot_dimension_numbers<[1], [0], [0], [1], [0, 0, 1, 1], [], []>} : vector<4x32xf32>, vector<32x96xf32>, vector<4x96xf32> -> vector<4x96xf32>
    %c0_155 = arith.constant 0 : index
    %c0_156 = arith.constant 0 : index
    %380 = vector.load %arg4[%c0_155, %c0_156] : memref<1x96xf32, #tpu.memory_space<vmem>>, vector<1x96xf32>
    %381 = vector.broadcast %380 : vector<1x96xf32> to vector<4x96xf32>
    %382 = arith.addf %379, %381 : vector<4x96xf32>
    %383 = vector.extract_strided_slice %376 {offsets = [0, 0], sizes = [4, 32], strides = [1, 1]} : vector<4x96xf32> to vector<4x32xf32>
    %384 = vector.extract_strided_slice %382 {offsets = [0, 0], sizes = [4, 32], strides = [1, 1]} : vector<4x96xf32> to vector<4x32xf32>
    %385 = arith.addf %383, %384 : vector<4x32xf32>
    %386 = arith.negf %385 : vector<4x32xf32>
    %387 = math.exp %386 : vector<4x32xf32>
    %cst_157 = arith.constant 1.000000e+00 : f32
    %388 = vector.broadcast %cst_157 : f32 to vector<4x32xf32>
    %389 = arith.addf %388, %387 : vector<4x32xf32>
    %390 = arith.divf %388, %389 : vector<4x32xf32>
    %391 = vector.extract_strided_slice %376 {offsets = [0, 32], sizes = [4, 32], strides = [1, 1]} : vector<4x96xf32> to vector<4x32xf32>
    %392 = vector.extract_strided_slice %382 {offsets = [0, 32], sizes = [4, 32], strides = [1, 1]} : vector<4x96xf32> to vector<4x32xf32>
    %393 = arith.addf %391, %392 : vector<4x32xf32>
    %394 = arith.negf %393 : vector<4x32xf32>
    %395 = math.exp %394 : vector<4x32xf32>
    %cst_158 = arith.constant 1.000000e+00 : f32
    %396 = vector.broadcast %cst_158 : f32 to vector<4x32xf32>
    %397 = arith.addf %396, %395 : vector<4x32xf32>
    %398 = arith.divf %396, %397 : vector<4x32xf32>
    %399 = vector.extract_strided_slice %376 {offsets = [0, 64], sizes = [4, 32], strides = [1, 1]} : vector<4x96xf32> to vector<4x32xf32>
    %400 = vector.extract_strided_slice %382 {offsets = [0, 64], sizes = [4, 32], strides = [1, 1]} : vector<4x96xf32> to vector<4x32xf32>
    %401 = arith.mulf %390, %400 : vector<4x32xf32>
    %402 = arith.addf %399, %401 : vector<4x32xf32>
    %403 = math.tanh %402 : vector<4x32xf32>
    %cst_159 = arith.constant 1.000000e+00 : f32
    %404 = vector.broadcast %cst_159 : f32 to vector<4x32xf32>
    %405 = arith.subf %404, %398 : vector<4x32xf32>
    %406 = arith.mulf %405, %403 : vector<4x32xf32>
    %407 = arith.mulf %398, %377 : vector<4x32xf32>
    %408 = arith.addf %406, %407 : vector<4x32xf32>
    %c0_160 = arith.constant 0 : index
    %c0_161 = arith.constant 0 : index
    %409 = vector.load %arg8[%c0_160, %c0_161] : memref<4x32xf32, #tpu.memory_space<vmem>>, vector<4x32xf32>
    tpu.vector_store %arg8[%c0_160, %c0_161], %375 {strides = array<i32>} : memref<4x32xf32, #tpu.memory_space<vmem>>, vector<4x32xf32>,
    %c0_162 = arith.constant 0 : index
    %c0_163 = arith.constant 0 : index
    %410 = vector.load %arg9[%c0_162, %c0_163] : memref<4x32xf32, #tpu.memory_space<vmem>>, vector<4x32xf32>
    tpu.vector_store %arg9[%c0_162, %c0_163], %408 {strides = array<i32>} : memref<4x32xf32, #tpu.memory_space<vmem>>, vector<4x32xf32>,
    %411 = arith.index_cast %c4_i32 : i32 to index
    %c0_164 = arith.constant 0 : index
    %c0_165 = arith.constant 0 : index
    %412 = vector.load %arg5[%411, %c0_164, %c0_165] : memref<8x4x32xf32, #tpu.memory_space<vmem>>, vector<1x4x32xf32>
    %413 = vector.shape_cast %412 : vector<1x4x32xf32> to vector<4x32xf32>
    %414 = vector.shape_cast %375 : vector<4x32xf32> to vector<1x4x32xf32>
    tpu.vector_store %arg5[%411, %c0_164, %c0_165], %414 {strides = array<i32>} : memref<8x4x32xf32, #tpu.memory_space<vmem>>, vector<1x4x32xf32>,
    %415 = arith.index_cast %336 : i32 to index
    %c0_166 = arith.constant 0 : index
    %c0_167 = arith.constant 0 : index
    %416 = vector.load %arg6[%415, %c0_166, %c0_167] : memref<8x4x32xf32, #tpu.memory_space<vmem>>, vector<1x4x32xf32>
    %417 = vector.shape_cast %416 : vector<1x4x32xf32> to vector<4x32xf32>
    %418 = vector.shape_cast %408 : vector<4x32xf32> to vector<1x4x32xf32>
    tpu.vector_store %arg6[%415, %c0_166, %c0_167], %418 {strides = array<i32>} : memref<8x4x32xf32, #tpu.memory_space<vmem>>, vector<1x4x32xf32>,
    %c5_i32 = arith.constant 5 : i32
    %c7_i32_168 = arith.constant 7 : i32
    %419 = arith.subi %c7_i32_168, %c5_i32 : i32
    %420 = arith.index_cast %c5_i32 : i32 to index
    %c0_169 = arith.constant 0 : index
    %c0_170 = arith.constant 0 : index
    %421 = vector.load %arg0[%420, %c0_169, %c0_170] : memref<8x4x192xf32, #tpu.memory_space<vmem>>, vector<1x4x192xf32>
    %422 = vector.shape_cast %421 : vector<1x4x192xf32> to vector<4x192xf32>
    %423 = arith.index_cast %419 : i32 to index
    %c0_171 = arith.constant 0 : index
    %c0_172 = arith.constant 0 : index
    %424 = vector.load %arg0[%423, %c0_171, %c0_172] : memref<8x4x192xf32, #tpu.memory_space<vmem>>, vector<1x4x192xf32>
    %425 = vector.shape_cast %424 : vector<1x4x192xf32> to vector<4x192xf32>
    %426 = vector.extract_strided_slice %422 {offsets = [0, 0], sizes = [4, 96], strides = [1, 1]} : vector<4x192xf32> to vector<4x96xf32>
    %c0_173 = arith.constant 0 : index
    %c0_174 = arith.constant 0 : index
    %427 = vector.load %arg8[%c0_173, %c0_174] : memref<4x32xf32, #tpu.memory_space<vmem>>, vector<4x32xf32>
    %c0_175 = arith.constant 0 : index
    %c0_176 = arith.constant 0 : index
    %428 = vector.load %arg1[%c0_175, %c0_176] : memref<32x96xf32, #tpu.memory_space<vmem>>, vector<32x96xf32>
    %cst_177 = arith.constant dense<0.000000e+00> : vector<4x96xf32>
    %429 = tpu.matmul %427, %428, %cst_177 {dimension_numbers = #tpu.dot_dimension_numbers<[1], [0], [0], [1], [0, 0, 1, 1], [], []>} : vector<4x32xf32>, vector<32x96xf32>, vector<4x96xf32> -> vector<4x96xf32>
    %c0_178 = arith.constant 0 : index
    %c0_179 = arith.constant 0 : index
    %430 = vector.load %arg2[%c0_178, %c0_179] : memref<1x96xf32, #tpu.memory_space<vmem>>, vector<1x96xf32>
    %431 = vector.broadcast %430 : vector<1x96xf32> to vector<4x96xf32>
    %432 = arith.addf %429, %431 : vector<4x96xf32>
    %433 = vector.extract_strided_slice %426 {offsets = [0, 0], sizes = [4, 32], strides = [1, 1]} : vector<4x96xf32> to vector<4x32xf32>
    %434 = vector.extract_strided_slice %432 {offsets = [0, 0], sizes = [4, 32], strides = [1, 1]} : vector<4x96xf32> to vector<4x32xf32>
    %435 = arith.addf %433, %434 : vector<4x32xf32>
    %436 = arith.negf %435 : vector<4x32xf32>
    %437 = math.exp %436 : vector<4x32xf32>
    %cst_180 = arith.constant 1.000000e+00 : f32
    %438 = vector.broadcast %cst_180 : f32 to vector<4x32xf32>
    %439 = arith.addf %438, %437 : vector<4x32xf32>
    %440 = arith.divf %438, %439 : vector<4x32xf32>
    %441 = vector.extract_strided_slice %426 {offsets = [0, 32], sizes = [4, 32], strides = [1, 1]} : vector<4x96xf32> to vector<4x32xf32>
    %442 = vector.extract_strided_slice %432 {offsets = [0, 32], sizes = [4, 32], strides = [1, 1]} : vector<4x96xf32> to vector<4x32xf32>
    %443 = arith.addf %441, %442 : vector<4x32xf32>
    %444 = arith.negf %443 : vector<4x32xf32>
    %445 = math.exp %444 : vector<4x32xf32>
    %cst_181 = arith.constant 1.000000e+00 : f32
    %446 = vector.broadcast %cst_181 : f32 to vector<4x32xf32>
    %447 = arith.addf %446, %445 : vector<4x32xf32>
    %448 = arith.divf %446, %447 : vector<4x32xf32>
    %449 = vector.extract_strided_slice %426 {offsets = [0, 64], sizes = [4, 32], strides = [1, 1]} : vector<4x96xf32> to vector<4x32xf32>
    %450 = vector.extract_strided_slice %432 {offsets = [0, 64], sizes = [4, 32], strides = [1, 1]} : vector<4x96xf32> to vector<4x32xf32>
    %451 = arith.mulf %440, %450 : vector<4x32xf32>
    %452 = arith.addf %449, %451 : vector<4x32xf32>
    %453 = math.tanh %452 : vector<4x32xf32>
    %cst_182 = arith.constant 1.000000e+00 : f32
    %454 = vector.broadcast %cst_182 : f32 to vector<4x32xf32>
    %455 = arith.subf %454, %448 : vector<4x32xf32>
    %456 = arith.mulf %455, %453 : vector<4x32xf32>
    %457 = arith.mulf %448, %427 : vector<4x32xf32>
    %458 = arith.addf %456, %457 : vector<4x32xf32>
    %459 = vector.extract_strided_slice %425 {offsets = [0, 96], sizes = [4, 96], strides = [1, 1]} : vector<4x192xf32> to vector<4x96xf32>
    %c0_183 = arith.constant 0 : index
    %c0_184 = arith.constant 0 : index
    %460 = vector.load %arg9[%c0_183, %c0_184] : memref<4x32xf32, #tpu.memory_space<vmem>>, vector<4x32xf32>
    %c0_185 = arith.constant 0 : index
    %c0_186 = arith.constant 0 : index
    %461 = vector.load %arg3[%c0_185, %c0_186] : memref<32x96xf32, #tpu.memory_space<vmem>>, vector<32x96xf32>
    %cst_187 = arith.constant dense<0.000000e+00> : vector<4x96xf32>
    %462 = tpu.matmul %460, %461, %cst_187 {dimension_numbers = #tpu.dot_dimension_numbers<[1], [0], [0], [1], [0, 0, 1, 1], [], []>} : vector<4x32xf32>, vector<32x96xf32>, vector<4x96xf32> -> vector<4x96xf32>
    %c0_188 = arith.constant 0 : index
    %c0_189 = arith.constant 0 : index
    %463 = vector.load %arg4[%c0_188, %c0_189] : memref<1x96xf32, #tpu.memory_space<vmem>>, vector<1x96xf32>
    %464 = vector.broadcast %463 : vector<1x96xf32> to vector<4x96xf32>
    %465 = arith.addf %462, %464 : vector<4x96xf32>
    %466 = vector.extract_strided_slice %459 {offsets = [0, 0], sizes = [4, 32], strides = [1, 1]} : vector<4x96xf32> to vector<4x32xf32>
    %467 = vector.extract_strided_slice %465 {offsets = [0, 0], sizes = [4, 32], strides = [1, 1]} : vector<4x96xf32> to vector<4x32xf32>
    %468 = arith.addf %466, %467 : vector<4x32xf32>
    %469 = arith.negf %468 : vector<4x32xf32>
    %470 = math.exp %469 : vector<4x32xf32>
    %cst_190 = arith.constant 1.000000e+00 : f32
    %471 = vector.broadcast %cst_190 : f32 to vector<4x32xf32>
    %472 = arith.addf %471, %470 : vector<4x32xf32>
    %473 = arith.divf %471, %472 : vector<4x32xf32>
    %474 = vector.extract_strided_slice %459 {offsets = [0, 32], sizes = [4, 32], strides = [1, 1]} : vector<4x96xf32> to vector<4x32xf32>
    %475 = vector.extract_strided_slice %465 {offsets = [0, 32], sizes = [4, 32], strides = [1, 1]} : vector<4x96xf32> to vector<4x32xf32>
    %476 = arith.addf %474, %475 : vector<4x32xf32>
    %477 = arith.negf %476 : vector<4x32xf32>
    %478 = math.exp %477 : vector<4x32xf32>
    %cst_191 = arith.constant 1.000000e+00 : f32
    %479 = vector.broadcast %cst_191 : f32 to vector<4x32xf32>
    %480 = arith.addf %479, %478 : vector<4x32xf32>
    %481 = arith.divf %479, %480 : vector<4x32xf32>
    %482 = vector.extract_strided_slice %459 {offsets = [0, 64], sizes = [4, 32], strides = [1, 1]} : vector<4x96xf32> to vector<4x32xf32>
    %483 = vector.extract_strided_slice %465 {offsets = [0, 64], sizes = [4, 32], strides = [1, 1]} : vector<4x96xf32> to vector<4x32xf32>
    %484 = arith.mulf %473, %483 : vector<4x32xf32>
    %485 = arith.addf %482, %484 : vector<4x32xf32>
    %486 = math.tanh %485 : vector<4x32xf32>
    %cst_192 = arith.constant 1.000000e+00 : f32
    %487 = vector.broadcast %cst_192 : f32 to vector<4x32xf32>
    %488 = arith.subf %487, %481 : vector<4x32xf32>
    %489 = arith.mulf %488, %486 : vector<4x32xf32>
    %490 = arith.mulf %481, %460 : vector<4x32xf32>
    %491 = arith.addf %489, %490 : vector<4x32xf32>
    %c0_193 = arith.constant 0 : index
    %c0_194 = arith.constant 0 : index
    %492 = vector.load %arg8[%c0_193, %c0_194] : memref<4x32xf32, #tpu.memory_space<vmem>>, vector<4x32xf32>
    tpu.vector_store %arg8[%c0_193, %c0_194], %458 {strides = array<i32>} : memref<4x32xf32, #tpu.memory_space<vmem>>, vector<4x32xf32>,
    %c0_195 = arith.constant 0 : index
    %c0_196 = arith.constant 0 : index
    %493 = vector.load %arg9[%c0_195, %c0_196] : memref<4x32xf32, #tpu.memory_space<vmem>>, vector<4x32xf32>
    tpu.vector_store %arg9[%c0_195, %c0_196], %491 {strides = array<i32>} : memref<4x32xf32, #tpu.memory_space<vmem>>, vector<4x32xf32>,
    %494 = arith.index_cast %c5_i32 : i32 to index
    %c0_197 = arith.constant 0 : index
    %c0_198 = arith.constant 0 : index
    %495 = vector.load %arg5[%494, %c0_197, %c0_198] : memref<8x4x32xf32, #tpu.memory_space<vmem>>, vector<1x4x32xf32>
    %496 = vector.shape_cast %495 : vector<1x4x32xf32> to vector<4x32xf32>
    %497 = vector.shape_cast %458 : vector<4x32xf32> to vector<1x4x32xf32>
    tpu.vector_store %arg5[%494, %c0_197, %c0_198], %497 {strides = array<i32>} : memref<8x4x32xf32, #tpu.memory_space<vmem>>, vector<1x4x32xf32>,
    %498 = arith.index_cast %419 : i32 to index
    %c0_199 = arith.constant 0 : index
    %c0_200 = arith.constant 0 : index
    %499 = vector.load %arg6[%498, %c0_199, %c0_200] : memref<8x4x32xf32, #tpu.memory_space<vmem>>, vector<1x4x32xf32>
    %500 = vector.shape_cast %499 : vector<1x4x32xf32> to vector<4x32xf32>
    %501 = vector.shape_cast %491 : vector<4x32xf32> to vector<1x4x32xf32>
    tpu.vector_store %arg6[%498, %c0_199, %c0_200], %501 {strides = array<i32>} : memref<8x4x32xf32, #tpu.memory_space<vmem>>, vector<1x4x32xf32>,
    %c6_i32 = arith.constant 6 : i32
    %c7_i32_201 = arith.constant 7 : i32
    %502 = arith.subi %c7_i32_201, %c6_i32 : i32
    %503 = arith.index_cast %c6_i32 : i32 to index
    %c0_202 = arith.constant 0 : index
    %c0_203 = arith.constant 0 : index
    %504 = vector.load %arg0[%503, %c0_202, %c0_203] : memref<8x4x192xf32, #tpu.memory_space<vmem>>, vector<1x4x192xf32>
    %505 = vector.shape_cast %504 : vector<1x4x192xf32> to vector<4x192xf32>
    %506 = arith.index_cast %502 : i32 to index
    %c0_204 = arith.constant 0 : index
    %c0_205 = arith.constant 0 : index
    %507 = vector.load %arg0[%506, %c0_204, %c0_205] : memref<8x4x192xf32, #tpu.memory_space<vmem>>, vector<1x4x192xf32>
    %508 = vector.shape_cast %507 : vector<1x4x192xf32> to vector<4x192xf32>
    %509 = vector.extract_strided_slice %505 {offsets = [0, 0], sizes = [4, 96], strides = [1, 1]} : vector<4x192xf32> to vector<4x96xf32>
    %c0_206 = arith.constant 0 : index
    %c0_207 = arith.constant 0 : index
    %510 = vector.load %arg8[%c0_206, %c0_207] : memref<4x32xf32, #tpu.memory_space<vmem>>, vector<4x32xf32>
    %c0_208 = arith.constant 0 : index
    %c0_209 = arith.constant 0 : index
    %511 = vector.load %arg1[%c0_208, %c0_209] : memref<32x96xf32, #tpu.memory_space<vmem>>, vector<32x96xf32>
    %cst_210 = arith.constant dense<0.000000e+00> : vector<4x96xf32>
    %512 = tpu.matmul %510, %511, %cst_210 {dimension_numbers = #tpu.dot_dimension_numbers<[1], [0], [0], [1], [0, 0, 1, 1], [], []>} : vector<4x32xf32>, vector<32x96xf32>, vector<4x96xf32> -> vector<4x96xf32>
    %c0_211 = arith.constant 0 : index
    %c0_212 = arith.constant 0 : index
    %513 = vector.load %arg2[%c0_211, %c0_212] : memref<1x96xf32, #tpu.memory_space<vmem>>, vector<1x96xf32>
    %514 = vector.broadcast %513 : vector<1x96xf32> to vector<4x96xf32>
    %515 = arith.addf %512, %514 : vector<4x96xf32>
    %516 = vector.extract_strided_slice %509 {offsets = [0, 0], sizes = [4, 32], strides = [1, 1]} : vector<4x96xf32> to vector<4x32xf32>
    %517 = vector.extract_strided_slice %515 {offsets = [0, 0], sizes = [4, 32], strides = [1, 1]} : vector<4x96xf32> to vector<4x32xf32>
    %518 = arith.addf %516, %517 : vector<4x32xf32>
    %519 = arith.negf %518 : vector<4x32xf32>
    %520 = math.exp %519 : vector<4x32xf32>
    %cst_213 = arith.constant 1.000000e+00 : f32
    %521 = vector.broadcast %cst_213 : f32 to vector<4x32xf32>
    %522 = arith.addf %521, %520 : vector<4x32xf32>
    %523 = arith.divf %521, %522 : vector<4x32xf32>
    %524 = vector.extract_strided_slice %509 {offsets = [0, 32], sizes = [4, 32], strides = [1, 1]} : vector<4x96xf32> to vector<4x32xf32>
    %525 = vector.extract_strided_slice %515 {offsets = [0, 32], sizes = [4, 32], strides = [1, 1]} : vector<4x96xf32> to vector<4x32xf32>
    %526 = arith.addf %524, %525 : vector<4x32xf32>
    %527 = arith.negf %526 : vector<4x32xf32>
    %528 = math.exp %527 : vector<4x32xf32>
    %cst_214 = arith.constant 1.000000e+00 : f32
    %529 = vector.broadcast %cst_214 : f32 to vector<4x32xf32>
    %530 = arith.addf %529, %528 : vector<4x32xf32>
    %531 = arith.divf %529, %530 : vector<4x32xf32>
    %532 = vector.extract_strided_slice %509 {offsets = [0, 64], sizes = [4, 32], strides = [1, 1]} : vector<4x96xf32> to vector<4x32xf32>
    %533 = vector.extract_strided_slice %515 {offsets = [0, 64], sizes = [4, 32], strides = [1, 1]} : vector<4x96xf32> to vector<4x32xf32>
    %534 = arith.mulf %523, %533 : vector<4x32xf32>
    %535 = arith.addf %532, %534 : vector<4x32xf32>
    %536 = math.tanh %535 : vector<4x32xf32>
    %cst_215 = arith.constant 1.000000e+00 : f32
    %537 = vector.broadcast %cst_215 : f32 to vector<4x32xf32>
    %538 = arith.subf %537, %531 : vector<4x32xf32>
    %539 = arith.mulf %538, %536 : vector<4x32xf32>
    %540 = arith.mulf %531, %510 : vector<4x32xf32>
    %541 = arith.addf %539, %540 : vector<4x32xf32>
    %542 = vector.extract_strided_slice %508 {offsets = [0, 96], sizes = [4, 96], strides = [1, 1]} : vector<4x192xf32> to vector<4x96xf32>
    %c0_216 = arith.constant 0 : index
    %c0_217 = arith.constant 0 : index
    %543 = vector.load %arg9[%c0_216, %c0_217] : memref<4x32xf32, #tpu.memory_space<vmem>>, vector<4x32xf32>
    %c0_218 = arith.constant 0 : index
    %c0_219 = arith.constant 0 : index
    %544 = vector.load %arg3[%c0_218, %c0_219] : memref<32x96xf32, #tpu.memory_space<vmem>>, vector<32x96xf32>
    %cst_220 = arith.constant dense<0.000000e+00> : vector<4x96xf32>
    %545 = tpu.matmul %543, %544, %cst_220 {dimension_numbers = #tpu.dot_dimension_numbers<[1], [0], [0], [1], [0, 0, 1, 1], [], []>} : vector<4x32xf32>, vector<32x96xf32>, vector<4x96xf32> -> vector<4x96xf32>
    %c0_221 = arith.constant 0 : index
    %c0_222 = arith.constant 0 : index
    %546 = vector.load %arg4[%c0_221, %c0_222] : memref<1x96xf32, #tpu.memory_space<vmem>>, vector<1x96xf32>
    %547 = vector.broadcast %546 : vector<1x96xf32> to vector<4x96xf32>
    %548 = arith.addf %545, %547 : vector<4x96xf32>
    %549 = vector.extract_strided_slice %542 {offsets = [0, 0], sizes = [4, 32], strides = [1, 1]} : vector<4x96xf32> to vector<4x32xf32>
    %550 = vector.extract_strided_slice %548 {offsets = [0, 0], sizes = [4, 32], strides = [1, 1]} : vector<4x96xf32> to vector<4x32xf32>
    %551 = arith.addf %549, %550 : vector<4x32xf32>
    %552 = arith.negf %551 : vector<4x32xf32>
    %553 = math.exp %552 : vector<4x32xf32>
    %cst_223 = arith.constant 1.000000e+00 : f32
    %554 = vector.broadcast %cst_223 : f32 to vector<4x32xf32>
    %555 = arith.addf %554, %553 : vector<4x32xf32>
    %556 = arith.divf %554, %555 : vector<4x32xf32>
    %557 = vector.extract_strided_slice %542 {offsets = [0, 32], sizes = [4, 32], strides = [1, 1]} : vector<4x96xf32> to vector<4x32xf32>
    %558 = vector.extract_strided_slice %548 {offsets = [0, 32], sizes = [4, 32], strides = [1, 1]} : vector<4x96xf32> to vector<4x32xf32>
    %559 = arith.addf %557, %558 : vector<4x32xf32>
    %560 = arith.negf %559 : vector<4x32xf32>
    %561 = math.exp %560 : vector<4x32xf32>
    %cst_224 = arith.constant 1.000000e+00 : f32
    %562 = vector.broadcast %cst_224 : f32 to vector<4x32xf32>
    %563 = arith.addf %562, %561 : vector<4x32xf32>
    %564 = arith.divf %562, %563 : vector<4x32xf32>
    %565 = vector.extract_strided_slice %542 {offsets = [0, 64], sizes = [4, 32], strides = [1, 1]} : vector<4x96xf32> to vector<4x32xf32>
    %566 = vector.extract_strided_slice %548 {offsets = [0, 64], sizes = [4, 32], strides = [1, 1]} : vector<4x96xf32> to vector<4x32xf32>
    %567 = arith.mulf %556, %566 : vector<4x32xf32>
    %568 = arith.addf %565, %567 : vector<4x32xf32>
    %569 = math.tanh %568 : vector<4x32xf32>
    %cst_225 = arith.constant 1.000000e+00 : f32
    %570 = vector.broadcast %cst_225 : f32 to vector<4x32xf32>
    %571 = arith.subf %570, %564 : vector<4x32xf32>
    %572 = arith.mulf %571, %569 : vector<4x32xf32>
    %573 = arith.mulf %564, %543 : vector<4x32xf32>
    %574 = arith.addf %572, %573 : vector<4x32xf32>
    %c0_226 = arith.constant 0 : index
    %c0_227 = arith.constant 0 : index
    %575 = vector.load %arg8[%c0_226, %c0_227] : memref<4x32xf32, #tpu.memory_space<vmem>>, vector<4x32xf32>
    tpu.vector_store %arg8[%c0_226, %c0_227], %541 {strides = array<i32>} : memref<4x32xf32, #tpu.memory_space<vmem>>, vector<4x32xf32>,
    %c0_228 = arith.constant 0 : index
    %c0_229 = arith.constant 0 : index
    %576 = vector.load %arg9[%c0_228, %c0_229] : memref<4x32xf32, #tpu.memory_space<vmem>>, vector<4x32xf32>
    tpu.vector_store %arg9[%c0_228, %c0_229], %574 {strides = array<i32>} : memref<4x32xf32, #tpu.memory_space<vmem>>, vector<4x32xf32>,
    %577 = arith.index_cast %c6_i32 : i32 to index
    %c0_230 = arith.constant 0 : index
    %c0_231 = arith.constant 0 : index
    %578 = vector.load %arg5[%577, %c0_230, %c0_231] : memref<8x4x32xf32, #tpu.memory_space<vmem>>, vector<1x4x32xf32>
    %579 = vector.shape_cast %578 : vector<1x4x32xf32> to vector<4x32xf32>
    %580 = vector.shape_cast %541 : vector<4x32xf32> to vector<1x4x32xf32>
    tpu.vector_store %arg5[%577, %c0_230, %c0_231], %580 {strides = array<i32>} : memref<8x4x32xf32, #tpu.memory_space<vmem>>, vector<1x4x32xf32>,
    %581 = arith.index_cast %502 : i32 to index
    %c0_232 = arith.constant 0 : index
    %c0_233 = arith.constant 0 : index
    %582 = vector.load %arg6[%581, %c0_232, %c0_233] : memref<8x4x32xf32, #tpu.memory_space<vmem>>, vector<1x4x32xf32>
    %583 = vector.shape_cast %582 : vector<1x4x32xf32> to vector<4x32xf32>
    %584 = vector.shape_cast %574 : vector<4x32xf32> to vector<1x4x32xf32>
    tpu.vector_store %arg6[%581, %c0_232, %c0_233], %584 {strides = array<i32>} : memref<8x4x32xf32, #tpu.memory_space<vmem>>, vector<1x4x32xf32>,
    %c7_i32_234 = arith.constant 7 : i32
    %c7_i32_235 = arith.constant 7 : i32
    %585 = arith.subi %c7_i32_235, %c7_i32_234 : i32
    %586 = arith.index_cast %c7_i32_234 : i32 to index
    %c0_236 = arith.constant 0 : index
    %c0_237 = arith.constant 0 : index
    %587 = vector.load %arg0[%586, %c0_236, %c0_237] : memref<8x4x192xf32, #tpu.memory_space<vmem>>, vector<1x4x192xf32>
    %588 = vector.shape_cast %587 : vector<1x4x192xf32> to vector<4x192xf32>
    %589 = arith.index_cast %585 : i32 to index
    %c0_238 = arith.constant 0 : index
    %c0_239 = arith.constant 0 : index
    %590 = vector.load %arg0[%589, %c0_238, %c0_239] : memref<8x4x192xf32, #tpu.memory_space<vmem>>, vector<1x4x192xf32>
    %591 = vector.shape_cast %590 : vector<1x4x192xf32> to vector<4x192xf32>
    %592 = vector.extract_strided_slice %588 {offsets = [0, 0], sizes = [4, 96], strides = [1, 1]} : vector<4x192xf32> to vector<4x96xf32>
    %c0_240 = arith.constant 0 : index
    %c0_241 = arith.constant 0 : index
    %593 = vector.load %arg8[%c0_240, %c0_241] : memref<4x32xf32, #tpu.memory_space<vmem>>, vector<4x32xf32>
    %c0_242 = arith.constant 0 : index
    %c0_243 = arith.constant 0 : index
    %594 = vector.load %arg1[%c0_242, %c0_243] : memref<32x96xf32, #tpu.memory_space<vmem>>, vector<32x96xf32>
    %cst_244 = arith.constant dense<0.000000e+00> : vector<4x96xf32>
    %595 = tpu.matmul %593, %594, %cst_244 {dimension_numbers = #tpu.dot_dimension_numbers<[1], [0], [0], [1], [0, 0, 1, 1], [], []>} : vector<4x32xf32>, vector<32x96xf32>, vector<4x96xf32> -> vector<4x96xf32>
    %c0_245 = arith.constant 0 : index
    %c0_246 = arith.constant 0 : index
    %596 = vector.load %arg2[%c0_245, %c0_246] : memref<1x96xf32, #tpu.memory_space<vmem>>, vector<1x96xf32>
    %597 = vector.broadcast %596 : vector<1x96xf32> to vector<4x96xf32>
    %598 = arith.addf %595, %597 : vector<4x96xf32>
    %599 = vector.extract_strided_slice %592 {offsets = [0, 0], sizes = [4, 32], strides = [1, 1]} : vector<4x96xf32> to vector<4x32xf32>
    %600 = vector.extract_strided_slice %598 {offsets = [0, 0], sizes = [4, 32], strides = [1, 1]} : vector<4x96xf32> to vector<4x32xf32>
    %601 = arith.addf %599, %600 : vector<4x32xf32>
    %602 = arith.negf %601 : vector<4x32xf32>
    %603 = math.exp %602 : vector<4x32xf32>
    %cst_247 = arith.constant 1.000000e+00 : f32
    %604 = vector.broadcast %cst_247 : f32 to vector<4x32xf32>
    %605 = arith.addf %604, %603 : vector<4x32xf32>
    %606 = arith.divf %604, %605 : vector<4x32xf32>
    %607 = vector.extract_strided_slice %592 {offsets = [0, 32], sizes = [4, 32], strides = [1, 1]} : vector<4x96xf32> to vector<4x32xf32>
    %608 = vector.extract_strided_slice %598 {offsets = [0, 32], sizes = [4, 32], strides = [1, 1]} : vector<4x96xf32> to vector<4x32xf32>
    %609 = arith.addf %607, %608 : vector<4x32xf32>
    %610 = arith.negf %609 : vector<4x32xf32>
    %611 = math.exp %610 : vector<4x32xf32>
    %cst_248 = arith.constant 1.000000e+00 : f32
    %612 = vector.broadcast %cst_248 : f32 to vector<4x32xf32>
    %613 = arith.addf %612, %611 : vector<4x32xf32>
    %614 = arith.divf %612, %613 : vector<4x32xf32>
    %615 = vector.extract_strided_slice %592 {offsets = [0, 64], sizes = [4, 32], strides = [1, 1]} : vector<4x96xf32> to vector<4x32xf32>
    %616 = vector.extract_strided_slice %598 {offsets = [0, 64], sizes = [4, 32], strides = [1, 1]} : vector<4x96xf32> to vector<4x32xf32>
    %617 = arith.mulf %606, %616 : vector<4x32xf32>
    %618 = arith.addf %615, %617 : vector<4x32xf32>
    %619 = math.tanh %618 : vector<4x32xf32>
    %cst_249 = arith.constant 1.000000e+00 : f32
    %620 = vector.broadcast %cst_249 : f32 to vector<4x32xf32>
    %621 = arith.subf %620, %614 : vector<4x32xf32>
    %622 = arith.mulf %621, %619 : vector<4x32xf32>
    %623 = arith.mulf %614, %593 : vector<4x32xf32>
    %624 = arith.addf %622, %623 : vector<4x32xf32>
    %625 = vector.extract_strided_slice %591 {offsets = [0, 96], sizes = [4, 96], strides = [1, 1]} : vector<4x192xf32> to vector<4x96xf32>
    %c0_250 = arith.constant 0 : index
    %c0_251 = arith.constant 0 : index
    %626 = vector.load %arg9[%c0_250, %c0_251] : memref<4x32xf32, #tpu.memory_space<vmem>>, vector<4x32xf32>
    %c0_252 = arith.constant 0 : index
    %c0_253 = arith.constant 0 : index
    %627 = vector.load %arg3[%c0_252, %c0_253] : memref<32x96xf32, #tpu.memory_space<vmem>>, vector<32x96xf32>
    %cst_254 = arith.constant dense<0.000000e+00> : vector<4x96xf32>
    %628 = tpu.matmul %626, %627, %cst_254 {dimension_numbers = #tpu.dot_dimension_numbers<[1], [0], [0], [1], [0, 0, 1, 1], [], []>} : vector<4x32xf32>, vector<32x96xf32>, vector<4x96xf32> -> vector<4x96xf32>
    %c0_255 = arith.constant 0 : index
    %c0_256 = arith.constant 0 : index
    %629 = vector.load %arg4[%c0_255, %c0_256] : memref<1x96xf32, #tpu.memory_space<vmem>>, vector<1x96xf32>
    %630 = vector.broadcast %629 : vector<1x96xf32> to vector<4x96xf32>
    %631 = arith.addf %628, %630 : vector<4x96xf32>
    %632 = vector.extract_strided_slice %625 {offsets = [0, 0], sizes = [4, 32], strides = [1, 1]} : vector<4x96xf32> to vector<4x32xf32>
    %633 = vector.extract_strided_slice %631 {offsets = [0, 0], sizes = [4, 32], strides = [1, 1]} : vector<4x96xf32> to vector<4x32xf32>
    %634 = arith.addf %632, %633 : vector<4x32xf32>
    %635 = arith.negf %634 : vector<4x32xf32>
    %636 = math.exp %635 : vector<4x32xf32>
    %cst_257 = arith.constant 1.000000e+00 : f32
    %637 = vector.broadcast %cst_257 : f32 to vector<4x32xf32>
    %638 = arith.addf %637, %636 : vector<4x32xf32>
    %639 = arith.divf %637, %638 : vector<4x32xf32>
    %640 = vector.extract_strided_slice %625 {offsets = [0, 32], sizes = [4, 32], strides = [1, 1]} : vector<4x96xf32> to vector<4x32xf32>
    %641 = vector.extract_strided_slice %631 {offsets = [0, 32], sizes = [4, 32], strides = [1, 1]} : vector<4x96xf32> to vector<4x32xf32>
    %642 = arith.addf %640, %641 : vector<4x32xf32>
    %643 = arith.negf %642 : vector<4x32xf32>
    %644 = math.exp %643 : vector<4x32xf32>
    %cst_258 = arith.constant 1.000000e+00 : f32
    %645 = vector.broadcast %cst_258 : f32 to vector<4x32xf32>
    %646 = arith.addf %645, %644 : vector<4x32xf32>
    %647 = arith.divf %645, %646 : vector<4x32xf32>
    %648 = vector.extract_strided_slice %625 {offsets = [0, 64], sizes = [4, 32], strides = [1, 1]} : vector<4x96xf32> to vector<4x32xf32>
    %649 = vector.extract_strided_slice %631 {offsets = [0, 64], sizes = [4, 32], strides = [1, 1]} : vector<4x96xf32> to vector<4x32xf32>
    %650 = arith.mulf %639, %649 : vector<4x32xf32>
    %651 = arith.addf %648, %650 : vector<4x32xf32>
    %652 = math.tanh %651 : vector<4x32xf32>
    %cst_259 = arith.constant 1.000000e+00 : f32
    %653 = vector.broadcast %cst_259 : f32 to vector<4x32xf32>
    %654 = arith.subf %653, %647 : vector<4x32xf32>
    %655 = arith.mulf %654, %652 : vector<4x32xf32>
    %656 = arith.mulf %647, %626 : vector<4x32xf32>
    %657 = arith.addf %655, %656 : vector<4x32xf32>
    %c0_260 = arith.constant 0 : index
    %c0_261 = arith.constant 0 : index
    %658 = vector.load %arg8[%c0_260, %c0_261] : memref<4x32xf32, #tpu.memory_space<vmem>>, vector<4x32xf32>
    tpu.vector_store %arg8[%c0_260, %c0_261], %624 {strides = array<i32>} : memref<4x32xf32, #tpu.memory_space<vmem>>, vector<4x32xf32>,
    %c0_262 = arith.constant 0 : index
    %c0_263 = arith.constant 0 : index
    %659 = vector.load %arg9[%c0_262, %c0_263] : memref<4x32xf32, #tpu.memory_space<vmem>>, vector<4x32xf32>
    tpu.vector_store %arg9[%c0_262, %c0_263], %657 {strides = array<i32>} : memref<4x32xf32, #tpu.memory_space<vmem>>, vector<4x32xf32>,
    %660 = arith.index_cast %c7_i32_234 : i32 to index
    %c0_264 = arith.constant 0 : index
    %c0_265 = arith.constant 0 : index
    %661 = vector.load %arg5[%660, %c0_264, %c0_265] : memref<8x4x32xf32, #tpu.memory_space<vmem>>, vector<1x4x32xf32>
    %662 = vector.shape_cast %661 : vector<1x4x32xf32> to vector<4x32xf32>
    %663 = vector.shape_cast %624 : vector<4x32xf32> to vector<1x4x32xf32>
    tpu.vector_store %arg5[%660, %c0_264, %c0_265], %663 {strides = array<i32>} : memref<8x4x32xf32, #tpu.memory_space<vmem>>, vector<1x4x32xf32>,
    %664 = arith.index_cast %585 : i32 to index
    %c0_266 = arith.constant 0 : index
    %c0_267 = arith.constant 0 : index
    %665 = vector.load %arg6[%664, %c0_266, %c0_267] : memref<8x4x32xf32, #tpu.memory_space<vmem>>, vector<1x4x32xf32>
    %666 = vector.shape_cast %665 : vector<1x4x32xf32> to vector<4x32xf32>
    %667 = vector.shape_cast %657 : vector<4x32xf32> to vector<1x4x32xf32>
    tpu.vector_store %arg6[%664, %c0_266, %c0_267], %667 {strides = array<i32>} : memref<8x4x32xf32, #tpu.memory_space<vmem>>, vector<1x4x32xf32>,
    %c8_i32 = arith.constant 8 : i32
    %c0_268 = arith.constant 0 : index
    %c0_269 = arith.constant 0 : index
    %668 = vector.load %arg8[%c0_268, %c0_269] : memref<4x32xf32, #tpu.memory_space<vmem>>, vector<4x32xf32>
    %c0_270 = arith.constant 0 : index
    %c0_271 = arith.constant 0 : index
    %c0_272 = arith.constant 0 : index
    %669 = vector.load %arg7[%c0_270, %c0_271, %c0_272] : memref<2x4x32xf32, #tpu.memory_space<vmem>>, vector<1x4x32xf32>
    %670 = vector.shape_cast %669 : vector<1x4x32xf32> to vector<4x32xf32>
    %671 = vector.shape_cast %668 : vector<4x32xf32> to vector<1x4x32xf32>
    tpu.vector_store %arg7[%c0_270, %c0_271, %c0_272], %671 {strides = array<i32>} : memref<2x4x32xf32, #tpu.memory_space<vmem>>, vector<1x4x32xf32>,
    %c0_273 = arith.constant 0 : index
    %c0_274 = arith.constant 0 : index
    %672 = vector.load %arg9[%c0_273, %c0_274] : memref<4x32xf32, #tpu.memory_space<vmem>>, vector<4x32xf32>
    %c1 = arith.constant 1 : index
    %c0_275 = arith.constant 0 : index
    %c0_276 = arith.constant 0 : index
    %673 = vector.load %arg7[%c1, %c0_275, %c0_276] : memref<2x4x32xf32, #tpu.memory_space<vmem>>, vector<1x4x32xf32>
    %674 = vector.shape_cast %673 : vector<1x4x32xf32> to vector<4x32xf32>
    %675 = vector.shape_cast %672 : vector<4x32xf32> to vector<1x4x32xf32>
    tpu.vector_store %arg7[%c1, %c0_275, %c0_276], %675 {strides = array<i32>} : memref<2x4x32xf32, #tpu.memory_space<vmem>>, vector<1x4x32xf32>,
    return
  }
}

module attributes {stable_mosaic.version = 11 : i64} {
  func.func @_gru_bidir_kernel(%arg0: memref<8x4x192xf32, #tpu.memory_space<vmem>>, %arg1: memref<32x96xf32, #tpu.memory_space<vmem>>, %arg2: memref<1x96xf32, #tpu.memory_space<vmem>>, %arg3: memref<32x96xf32, #tpu.memory_space<vmem>>, %arg4: memref<1x96xf32, #tpu.memory_space<vmem>>, %arg5: memref<8x4x32xf32, #tpu.memory_space<vmem>>, %arg6: memref<8x4x32xf32, #tpu.memory_space<vmem>>, %arg7: memref<2x4x32xf32, #tpu.memory_space<vmem>>, %arg8: memref<4x32xf32, #tpu.memory_space<vmem>>, %arg9: memref<4x32xf32, #tpu.memory_space<vmem>>) attributes {dimension_semantics = [], scalar_prefetch = 0 : i64, scratch_operands = 2 : i64, tpu.core_type = #tpu.core_type<tc>} {
    %cst = arith.constant 0.000000e+00 : f32
    %0 = vector.broadcast %cst : f32 to vector<4x32xf32>
    %c0 = arith.constant 0 : index
    %c0_0 = arith.constant 0 : index
    %1 = vector.load %arg8[%c0, %c0_0] : memref<4x32xf32, #tpu.memory_space<vmem>>, vector<4x32xf32>
    tpu.vector_store %arg8[%c0, %c0_0], %0 {strides = array<i32>} : memref<4x32xf32, #tpu.memory_space<vmem>>, vector<4x32xf32>,
    %cst_1 = arith.constant 0.000000e+00 : f32
    %2 = vector.broadcast %cst_1 : f32 to vector<4x32xf32>
    %c0_2 = arith.constant 0 : index
    %c0_3 = arith.constant 0 : index
    %3 = vector.load %arg9[%c0_2, %c0_3] : memref<4x32xf32, #tpu.memory_space<vmem>>, vector<4x32xf32>
    tpu.vector_store %arg9[%c0_2, %c0_3], %2 {strides = array<i32>} : memref<4x32xf32, #tpu.memory_space<vmem>>, vector<4x32xf32>,
    %c0_i32 = arith.constant 0 : i32
    %c7_i32 = arith.constant 7 : i32
    %4 = arith.subi %c7_i32, %c0_i32 : i32
    %5 = arith.index_cast %c0_i32 : i32 to index
    %c0_4 = arith.constant 0 : index
    %c0_5 = arith.constant 0 : index
    %6 = vector.load %arg0[%5, %c0_4, %c0_5] : memref<8x4x192xf32, #tpu.memory_space<vmem>>, vector<1x4x192xf32>
    %7 = vector.shape_cast %6 : vector<1x4x192xf32> to vector<4x192xf32>
    %8 = arith.index_cast %4 : i32 to index
    %c0_6 = arith.constant 0 : index
    %c0_7 = arith.constant 0 : index
    %9 = vector.load %arg0[%8, %c0_6, %c0_7] : memref<8x4x192xf32, #tpu.memory_space<vmem>>, vector<1x4x192xf32>
    %10 = vector.shape_cast %9 : vector<1x4x192xf32> to vector<4x192xf32>
    %11 = vector.extract_strided_slice %7 {offsets = [0, 0], sizes = [4, 96], strides = [1, 1]} : vector<4x192xf32> to vector<4x96xf32>
    %c0_8 = arith.constant 0 : index
    %c0_9 = arith.constant 0 : index
    %12 = vector.load %arg8[%c0_8, %c0_9] : memref<4x32xf32, #tpu.memory_space<vmem>>, vector<4x32xf32>
    %c0_10 = arith.constant 0 : index
    %c0_11 = arith.constant 0 : index
    %13 = vector.load %arg1[%c0_10, %c0_11] : memref<32x96xf32, #tpu.memory_space<vmem>>, vector<32x96xf32>
    %cst_12 = arith.constant dense<0.000000e+00> : vector<4x96xf32>
    %14 = tpu.matmul %12, %13, %cst_12 {dimension_numbers = #tpu.dot_dimension_numbers<[1], [0], [0], [1], [0, 0, 1, 1], [], []>} : vector<4x32xf32>, vector<32x96xf32>, vector<4x96xf32> -> vector<4x96xf32>
    %c0_13 = arith.constant 0 : index
    %c0_14 = arith.constant 0 : index
    %15 = vector.load %arg2[%c0_13, %c0_14] : memref<1x96xf32, #tpu.memory_space<vmem>>, vector<1x96xf32>
    %16 = vector.broadcast %15 : vector<1x96xf32> to vector<4x96xf32>
    %17 = arith.addf %14, %16 : vector<4x96xf32>
    %18 = vector.extract_strided_slice %11 {offsets = [0, 0], sizes = [4, 32], strides = [1, 1]} : vector<4x96xf32> to vector<4x32xf32>
    %19 = vector.extract_strided_slice %17 {offsets = [0, 0], sizes = [4, 32], strides = [1, 1]} : vector<4x96xf32> to vector<4x32xf32>
    %20 = arith.addf %18, %19 : vector<4x32xf32>
    %21 = arith.negf %20 : vector<4x32xf32>
    %22 = math.exp %21 : vector<4x32xf32>
    %cst_15 = arith.constant 1.000000e+00 : f32
    %23 = vector.broadcast %cst_15 : f32 to vector<4x32xf32>
    %24 = arith.addf %23, %22 : vector<4x32xf32>
    %25 = arith.divf %23, %24 : vector<4x32xf32>
    %26 = vector.extract_strided_slice %11 {offsets = [0, 32], sizes = [4, 32], strides = [1, 1]} : vector<4x96xf32> to vector<4x32xf32>
    %27 = vector.extract_strided_slice %17 {offsets = [0, 32], sizes = [4, 32], strides = [1, 1]} : vector<4x96xf32> to vector<4x32xf32>
    %28 = arith.addf %26, %27 : vector<4x32xf32>
    %29 = arith.negf %28 : vector<4x32xf32>
    %30 = math.exp %29 : vector<4x32xf32>
    %cst_16 = arith.constant 1.000000e+00 : f32
    %31 = vector.broadcast %cst_16 : f32 to vector<4x32xf32>
    %32 = arith.addf %31, %30 : vector<4x32xf32>
    %33 = arith.divf %31, %32 : vector<4x32xf32>
    %34 = vector.extract_strided_slice %11 {offsets = [0, 64], sizes = [4, 32], strides = [1, 1]} : vector<4x96xf32> to vector<4x32xf32>
    %35 = vector.extract_strided_slice %17 {offsets = [0, 64], sizes = [4, 32], strides = [1, 1]} : vector<4x96xf32> to vector<4x32xf32>
    %36 = arith.mulf %25, %35 : vector<4x32xf32>
    %37 = arith.addf %34, %36 : vector<4x32xf32>
    %38 = math.tanh %37 : vector<4x32xf32>
    %cst_17 = arith.constant 1.000000e+00 : f32
    %39 = vector.broadcast %cst_17 : f32 to vector<4x32xf32>
    %40 = arith.subf %39, %33 : vector<4x32xf32>
    %41 = arith.mulf %40, %38 : vector<4x32xf32>
    %42 = arith.mulf %33, %12 : vector<4x32xf32>
    %43 = arith.addf %41, %42 : vector<4x32xf32>
    %44 = vector.extract_strided_slice %10 {offsets = [0, 96], sizes = [4, 96], strides = [1, 1]} : vector<4x192xf32> to vector<4x96xf32>
    %c0_18 = arith.constant 0 : index
    %c0_19 = arith.constant 0 : index
    %45 = vector.load %arg9[%c0_18, %c0_19] : memref<4x32xf32, #tpu.memory_space<vmem>>, vector<4x32xf32>
    %c0_20 = arith.constant 0 : index
    %c0_21 = arith.constant 0 : index
    %46 = vector.load %arg3[%c0_20, %c0_21] : memref<32x96xf32, #tpu.memory_space<vmem>>, vector<32x96xf32>
    %cst_22 = arith.constant dense<0.000000e+00> : vector<4x96xf32>
    %47 = tpu.matmul %45, %46, %cst_22 {dimension_numbers = #tpu.dot_dimension_numbers<[1], [0], [0], [1], [0, 0, 1, 1], [], []>} : vector<4x32xf32>, vector<32x96xf32>, vector<4x96xf32> -> vector<4x96xf32>
    %c0_23 = arith.constant 0 : index
    %c0_24 = arith.constant 0 : index
    %48 = vector.load %arg4[%c0_23, %c0_24] : memref<1x96xf32, #tpu.memory_space<vmem>>, vector<1x96xf32>
    %49 = vector.broadcast %48 : vector<1x96xf32> to vector<4x96xf32>
    %50 = arith.addf %47, %49 : vector<4x96xf32>
    %51 = vector.extract_strided_slice %44 {offsets = [0, 0], sizes = [4, 32], strides = [1, 1]} : vector<4x96xf32> to vector<4x32xf32>
    %52 = vector.extract_strided_slice %50 {offsets = [0, 0], sizes = [4, 32], strides = [1, 1]} : vector<4x96xf32> to vector<4x32xf32>
    %53 = arith.addf %51, %52 : vector<4x32xf32>
    %54 = arith.negf %53 : vector<4x32xf32>
    %55 = math.exp %54 : vector<4x32xf32>
    %cst_25 = arith.constant 1.000000e+00 : f32
    %56 = vector.broadcast %cst_25 : f32 to vector<4x32xf32>
    %57 = arith.addf %56, %55 : vector<4x32xf32>
    %58 = arith.divf %56, %57 : vector<4x32xf32>
    %59 = vector.extract_strided_slice %44 {offsets = [0, 32], sizes = [4, 32], strides = [1, 1]} : vector<4x96xf32> to vector<4x32xf32>
    %60 = vector.extract_strided_slice %50 {offsets = [0, 32], sizes = [4, 32], strides = [1, 1]} : vector<4x96xf32> to vector<4x32xf32>
    %61 = arith.addf %59, %60 : vector<4x32xf32>
    %62 = arith.negf %61 : vector<4x32xf32>
    %63 = math.exp %62 : vector<4x32xf32>
    %cst_26 = arith.constant 1.000000e+00 : f32
    %64 = vector.broadcast %cst_26 : f32 to vector<4x32xf32>
    %65 = arith.addf %64, %63 : vector<4x32xf32>
    %66 = arith.divf %64, %65 : vector<4x32xf32>
    %67 = vector.extract_strided_slice %44 {offsets = [0, 64], sizes = [4, 32], strides = [1, 1]} : vector<4x96xf32> to vector<4x32xf32>
    %68 = vector.extract_strided_slice %50 {offsets = [0, 64], sizes = [4, 32], strides = [1, 1]} : vector<4x96xf32> to vector<4x32xf32>
    %69 = arith.mulf %58, %68 : vector<4x32xf32>
    %70 = arith.addf %67, %69 : vector<4x32xf32>
    %71 = math.tanh %70 : vector<4x32xf32>
    %cst_27 = arith.constant 1.000000e+00 : f32
    %72 = vector.broadcast %cst_27 : f32 to vector<4x32xf32>
    %73 = arith.subf %72, %66 : vector<4x32xf32>
    %74 = arith.mulf %73, %71 : vector<4x32xf32>
    %75 = arith.mulf %66, %45 : vector<4x32xf32>
    %76 = arith.addf %74, %75 : vector<4x32xf32>
    %c0_28 = arith.constant 0 : index
    %c0_29 = arith.constant 0 : index
    %77 = vector.load %arg8[%c0_28, %c0_29] : memref<4x32xf32, #tpu.memory_space<vmem>>, vector<4x32xf32>
    tpu.vector_store %arg8[%c0_28, %c0_29], %43 {strides = array<i32>} : memref<4x32xf32, #tpu.memory_space<vmem>>, vector<4x32xf32>,
    %c0_30 = arith.constant 0 : index
    %c0_31 = arith.constant 0 : index
    %78 = vector.load %arg9[%c0_30, %c0_31] : memref<4x32xf32, #tpu.memory_space<vmem>>, vector<4x32xf32>
    tpu.vector_store %arg9[%c0_30, %c0_31], %76 {strides = array<i32>} : memref<4x32xf32, #tpu.memory_space<vmem>>, vector<4x32xf32>,
    %79 = arith.index_cast %c0_i32 : i32 to index
    %c0_32 = arith.constant 0 : index
    %c0_33 = arith.constant 0 : index
    %80 = vector.load %arg5[%79, %c0_32, %c0_33] : memref<8x4x32xf32, #tpu.memory_space<vmem>>, vector<1x4x32xf32>
    %81 = vector.shape_cast %80 : vector<1x4x32xf32> to vector<4x32xf32>
    %82 = vector.shape_cast %43 : vector<4x32xf32> to vector<1x4x32xf32>
    tpu.vector_store %arg5[%79, %c0_32, %c0_33], %82 {strides = array<i32>} : memref<8x4x32xf32, #tpu.memory_space<vmem>>, vector<1x4x32xf32>,
    %83 = arith.index_cast %4 : i32 to index
    %c0_34 = arith.constant 0 : index
    %c0_35 = arith.constant 0 : index
    %84 = vector.load %arg6[%83, %c0_34, %c0_35] : memref<8x4x32xf32, #tpu.memory_space<vmem>>, vector<1x4x32xf32>
    %85 = vector.shape_cast %84 : vector<1x4x32xf32> to vector<4x32xf32>
    %86 = vector.shape_cast %76 : vector<4x32xf32> to vector<1x4x32xf32>
    tpu.vector_store %arg6[%83, %c0_34, %c0_35], %86 {strides = array<i32>} : memref<8x4x32xf32, #tpu.memory_space<vmem>>, vector<1x4x32xf32>,
    %c1_i32 = arith.constant 1 : i32
    %c7_i32_36 = arith.constant 7 : i32
    %87 = arith.subi %c7_i32_36, %c1_i32 : i32
    %88 = arith.index_cast %c1_i32 : i32 to index
    %c0_37 = arith.constant 0 : index
    %c0_38 = arith.constant 0 : index
    %89 = vector.load %arg0[%88, %c0_37, %c0_38] : memref<8x4x192xf32, #tpu.memory_space<vmem>>, vector<1x4x192xf32>
    %90 = vector.shape_cast %89 : vector<1x4x192xf32> to vector<4x192xf32>
    %91 = arith.index_cast %87 : i32 to index
    %c0_39 = arith.constant 0 : index
    %c0_40 = arith.constant 0 : index
    %92 = vector.load %arg0[%91, %c0_39, %c0_40] : memref<8x4x192xf32, #tpu.memory_space<vmem>>, vector<1x4x192xf32>
    %93 = vector.shape_cast %92 : vector<1x4x192xf32> to vector<4x192xf32>
    %94 = vector.extract_strided_slice %90 {offsets = [0, 0], sizes = [4, 96], strides = [1, 1]} : vector<4x192xf32> to vector<4x96xf32>
    %c0_41 = arith.constant 0 : index
    %c0_42 = arith.constant 0 : index
    %95 = vector.load %arg8[%c0_41, %c0_42] : memref<4x32xf32, #tpu.memory_space<vmem>>, vector<4x32xf32>
    %c0_43 = arith.constant 0 : index
    %c0_44 = arith.constant 0 : index
    %96 = vector.load %arg1[%c0_43, %c0_44] : memref<32x96xf32, #tpu.memory_space<vmem>>, vector<32x96xf32>
    %cst_45 = arith.constant dense<0.000000e+00> : vector<4x96xf32>
    %97 = tpu.matmul %95, %96, %cst_45 {dimension_numbers = #tpu.dot_dimension_numbers<[1], [0], [0], [1], [0, 0, 1, 1], [], []>} : vector<4x32xf32>, vector<32x96xf32>, vector<4x96xf32> -> vector<4x96xf32>
    %c0_46 = arith.constant 0 : index
    %c0_47 = arith.constant 0 : index
    %98 = vector.load %arg2[%c0_46, %c0_47] : memref<1x96xf32, #tpu.memory_space<vmem>>, vector<1x96xf32>
    %99 = vector.broadcast %98 : vector<1x96xf32> to vector<4x96xf32>
    %100 = arith.addf %97, %99 : vector<4x96xf32>
    %101 = vector.extract_strided_slice %94 {offsets = [0, 0], sizes = [4, 32], strides = [1, 1]} : vector<4x96xf32> to vector<4x32xf32>
    %102 = vector.extract_strided_slice %100 {offsets = [0, 0], sizes = [4, 32], strides = [1, 1]} : vector<4x96xf32> to vector<4x32xf32>
    %103 = arith.addf %101, %102 : vector<4x32xf32>
    %104 = arith.negf %103 : vector<4x32xf32>
    %105 = math.exp %104 : vector<4x32xf32>
    %cst_48 = arith.constant 1.000000e+00 : f32
    %106 = vector.broadcast %cst_48 : f32 to vector<4x32xf32>
    %107 = arith.addf %106, %105 : vector<4x32xf32>
    %108 = arith.divf %106, %107 : vector<4x32xf32>
    %109 = vector.extract_strided_slice %94 {offsets = [0, 32], sizes = [4, 32], strides = [1, 1]} : vector<4x96xf32> to vector<4x32xf32>
    %110 = vector.extract_strided_slice %100 {offsets = [0, 32], sizes = [4, 32], strides = [1, 1]} : vector<4x96xf32> to vector<4x32xf32>
    %111 = arith.addf %109, %110 : vector<4x32xf32>
    %112 = arith.negf %111 : vector<4x32xf32>
    %113 = math.exp %112 : vector<4x32xf32>
    %cst_49 = arith.constant 1.000000e+00 : f32
    %114 = vector.broadcast %cst_49 : f32 to vector<4x32xf32>
    %115 = arith.addf %114, %113 : vector<4x32xf32>
    %116 = arith.divf %114, %115 : vector<4x32xf32>
    %117 = vector.extract_strided_slice %94 {offsets = [0, 64], sizes = [4, 32], strides = [1, 1]} : vector<4x96xf32> to vector<4x32xf32>
    %118 = vector.extract_strided_slice %100 {offsets = [0, 64], sizes = [4, 32], strides = [1, 1]} : vector<4x96xf32> to vector<4x32xf32>
    %119 = arith.mulf %108, %118 : vector<4x32xf32>
    %120 = arith.addf %117, %119 : vector<4x32xf32>
    %121 = math.tanh %120 : vector<4x32xf32>
    %cst_50 = arith.constant 1.000000e+00 : f32
    %122 = vector.broadcast %cst_50 : f32 to vector<4x32xf32>
    %123 = arith.subf %122, %116 : vector<4x32xf32>
    %124 = arith.mulf %123, %121 : vector<4x32xf32>
    %125 = arith.mulf %116, %95 : vector<4x32xf32>
    %126 = arith.addf %124, %125 : vector<4x32xf32>
    %127 = vector.extract_strided_slice %93 {offsets = [0, 96], sizes = [4, 96], strides = [1, 1]} : vector<4x192xf32> to vector<4x96xf32>
    %c0_51 = arith.constant 0 : index
    %c0_52 = arith.constant 0 : index
    %128 = vector.load %arg9[%c0_51, %c0_52] : memref<4x32xf32, #tpu.memory_space<vmem>>, vector<4x32xf32>
    %c0_53 = arith.constant 0 : index
    %c0_54 = arith.constant 0 : index
    %129 = vector.load %arg3[%c0_53, %c0_54] : memref<32x96xf32, #tpu.memory_space<vmem>>, vector<32x96xf32>
    %cst_55 = arith.constant dense<0.000000e+00> : vector<4x96xf32>
    %130 = tpu.matmul %128, %129, %cst_55 {dimension_numbers = #tpu.dot_dimension_numbers<[1], [0], [0], [1], [0, 0, 1, 1], [], []>} : vector<4x32xf32>, vector<32x96xf32>, vector<4x96xf32> -> vector<4x96xf32>
    %c0_56 = arith.constant 0 : index
    %c0_57 = arith.constant 0 : index
    %131 = vector.load %arg4[%c0_56, %c0_57] : memref<1x96xf32, #tpu.memory_space<vmem>>, vector<1x96xf32>
    %132 = vector.broadcast %131 : vector<1x96xf32> to vector<4x96xf32>
    %133 = arith.addf %130, %132 : vector<4x96xf32>
    %134 = vector.extract_strided_slice %127 {offsets = [0, 0], sizes = [4, 32], strides = [1, 1]} : vector<4x96xf32> to vector<4x32xf32>
    %135 = vector.extract_strided_slice %133 {offsets = [0, 0], sizes = [4, 32], strides = [1, 1]} : vector<4x96xf32> to vector<4x32xf32>
    %136 = arith.addf %134, %135 : vector<4x32xf32>
    %137 = arith.negf %136 : vector<4x32xf32>
    %138 = math.exp %137 : vector<4x32xf32>
    %cst_58 = arith.constant 1.000000e+00 : f32
    %139 = vector.broadcast %cst_58 : f32 to vector<4x32xf32>
    %140 = arith.addf %139, %138 : vector<4x32xf32>
    %141 = arith.divf %139, %140 : vector<4x32xf32>
    %142 = vector.extract_strided_slice %127 {offsets = [0, 32], sizes = [4, 32], strides = [1, 1]} : vector<4x96xf32> to vector<4x32xf32>
    %143 = vector.extract_strided_slice %133 {offsets = [0, 32], sizes = [4, 32], strides = [1, 1]} : vector<4x96xf32> to vector<4x32xf32>
    %144 = arith.addf %142, %143 : vector<4x32xf32>
    %145 = arith.negf %144 : vector<4x32xf32>
    %146 = math.exp %145 : vector<4x32xf32>
    %cst_59 = arith.constant 1.000000e+00 : f32
    %147 = vector.broadcast %cst_59 : f32 to vector<4x32xf32>
    %148 = arith.addf %147, %146 : vector<4x32xf32>
    %149 = arith.divf %147, %148 : vector<4x32xf32>
    %150 = vector.extract_strided_slice %127 {offsets = [0, 64], sizes = [4, 32], strides = [1, 1]} : vector<4x96xf32> to vector<4x32xf32>
    %151 = vector.extract_strided_slice %133 {offsets = [0, 64], sizes = [4, 32], strides = [1, 1]} : vector<4x96xf32> to vector<4x32xf32>
    %152 = arith.mulf %141, %151 : vector<4x32xf32>
    %153 = arith.addf %150, %152 : vector<4x32xf32>
    %154 = math.tanh %153 : vector<4x32xf32>
    %cst_60 = arith.constant 1.000000e+00 : f32
    %155 = vector.broadcast %cst_60 : f32 to vector<4x32xf32>
    %156 = arith.subf %155, %149 : vector<4x32xf32>
    %157 = arith.mulf %156, %154 : vector<4x32xf32>
    %158 = arith.mulf %149, %128 : vector<4x32xf32>
    %159 = arith.addf %157, %158 : vector<4x32xf32>
    %c0_61 = arith.constant 0 : index
    %c0_62 = arith.constant 0 : index
    %160 = vector.load %arg8[%c0_61, %c0_62] : memref<4x32xf32, #tpu.memory_space<vmem>>, vector<4x32xf32>
    tpu.vector_store %arg8[%c0_61, %c0_62], %126 {strides = array<i32>} : memref<4x32xf32, #tpu.memory_space<vmem>>, vector<4x32xf32>,
    %c0_63 = arith.constant 0 : index
    %c0_64 = arith.constant 0 : index
    %161 = vector.load %arg9[%c0_63, %c0_64] : memref<4x32xf32, #tpu.memory_space<vmem>>, vector<4x32xf32>
    tpu.vector_store %arg9[%c0_63, %c0_64], %159 {strides = array<i32>} : memref<4x32xf32, #tpu.memory_space<vmem>>, vector<4x32xf32>,
    %162 = arith.index_cast %c1_i32 : i32 to index
    %c0_65 = arith.constant 0 : index
    %c0_66 = arith.constant 0 : index
    %163 = vector.load %arg5[%162, %c0_65, %c0_66] : memref<8x4x32xf32, #tpu.memory_space<vmem>>, vector<1x4x32xf32>
    %164 = vector.shape_cast %163 : vector<1x4x32xf32> to vector<4x32xf32>
    %165 = vector.shape_cast %126 : vector<4x32xf32> to vector<1x4x32xf32>
    tpu.vector_store %arg5[%162, %c0_65, %c0_66], %165 {strides = array<i32>} : memref<8x4x32xf32, #tpu.memory_space<vmem>>, vector<1x4x32xf32>,
    %166 = arith.index_cast %87 : i32 to index
    %c0_67 = arith.constant 0 : index
    %c0_68 = arith.constant 0 : index
    %167 = vector.load %arg6[%166, %c0_67, %c0_68] : memref<8x4x32xf32, #tpu.memory_space<vmem>>, vector<1x4x32xf32>
    %168 = vector.shape_cast %167 : vector<1x4x32xf32> to vector<4x32xf32>
    %169 = vector.shape_cast %159 : vector<4x32xf32> to vector<1x4x32xf32>
    tpu.vector_store %arg6[%166, %c0_67, %c0_68], %169 {strides = array<i32>} : memref<8x4x32xf32, #tpu.memory_space<vmem>>, vector<1x4x32xf32>,
    %c2_i32 = arith.constant 2 : i32
    %c7_i32_69 = arith.constant 7 : i32
    %170 = arith.subi %c7_i32_69, %c2_i32 : i32
    %171 = arith.index_cast %c2_i32 : i32 to index
    %c0_70 = arith.constant 0 : index
    %c0_71 = arith.constant 0 : index
    %172 = vector.load %arg0[%171, %c0_70, %c0_71] : memref<8x4x192xf32, #tpu.memory_space<vmem>>, vector<1x4x192xf32>
    %173 = vector.shape_cast %172 : vector<1x4x192xf32> to vector<4x192xf32>
    %174 = arith.index_cast %170 : i32 to index
    %c0_72 = arith.constant 0 : index
    %c0_73 = arith.constant 0 : index
    %175 = vector.load %arg0[%174, %c0_72, %c0_73] : memref<8x4x192xf32, #tpu.memory_space<vmem>>, vector<1x4x192xf32>
    %176 = vector.shape_cast %175 : vector<1x4x192xf32> to vector<4x192xf32>
    %177 = vector.extract_strided_slice %173 {offsets = [0, 0], sizes = [4, 96], strides = [1, 1]} : vector<4x192xf32> to vector<4x96xf32>
    %c0_74 = arith.constant 0 : index
    %c0_75 = arith.constant 0 : index
    %178 = vector.load %arg8[%c0_74, %c0_75] : memref<4x32xf32, #tpu.memory_space<vmem>>, vector<4x32xf32>
    %c0_76 = arith.constant 0 : index
    %c0_77 = arith.constant 0 : index
    %179 = vector.load %arg1[%c0_76, %c0_77] : memref<32x96xf32, #tpu.memory_space<vmem>>, vector<32x96xf32>
    %cst_78 = arith.constant dense<0.000000e+00> : vector<4x96xf32>
    %180 = tpu.matmul %178, %179, %cst_78 {dimension_numbers = #tpu.dot_dimension_numbers<[1], [0], [0], [1], [0, 0, 1, 1], [], []>} : vector<4x32xf32>, vector<32x96xf32>, vector<4x96xf32> -> vector<4x96xf32>
    %c0_79 = arith.constant 0 : index
    %c0_80 = arith.constant 0 : index
    %181 = vector.load %arg2[%c0_79, %c0_80] : memref<1x96xf32, #tpu.memory_space<vmem>>, vector<1x96xf32>
    %182 = vector.broadcast %181 : vector<1x96xf32> to vector<4x96xf32>
    %183 = arith.addf %180, %182 : vector<4x96xf32>
    %184 = vector.extract_strided_slice %177 {offsets = [0, 0], sizes = [4, 32], strides = [1, 1]} : vector<4x96xf32> to vector<4x32xf32>
    %185 = vector.extract_strided_slice %183 {offsets = [0, 0], sizes = [4, 32], strides = [1, 1]} : vector<4x96xf32> to vector<4x32xf32>
    %186 = arith.addf %184, %185 : vector<4x32xf32>
    %187 = arith.negf %186 : vector<4x32xf32>
    %188 = math.exp %187 : vector<4x32xf32>
    %cst_81 = arith.constant 1.000000e+00 : f32
    %189 = vector.broadcast %cst_81 : f32 to vector<4x32xf32>
    %190 = arith.addf %189, %188 : vector<4x32xf32>
    %191 = arith.divf %189, %190 : vector<4x32xf32>
    %192 = vector.extract_strided_slice %177 {offsets = [0, 32], sizes = [4, 32], strides = [1, 1]} : vector<4x96xf32> to vector<4x32xf32>
    %193 = vector.extract_strided_slice %183 {offsets = [0, 32], sizes = [4, 32], strides = [1, 1]} : vector<4x96xf32> to vector<4x32xf32>
    %194 = arith.addf %192, %193 : vector<4x32xf32>
    %195 = arith.negf %194 : vector<4x32xf32>
    %196 = math.exp %195 : vector<4x32xf32>
    %cst_82 = arith.constant 1.000000e+00 : f32
    %197 = vector.broadcast %cst_82 : f32 to vector<4x32xf32>
    %198 = arith.addf %197, %196 : vector<4x32xf32>
    %199 = arith.divf %197, %198 : vector<4x32xf32>
    %200 = vector.extract_strided_slice %177 {offsets = [0, 64], sizes = [4, 32], strides = [1, 1]} : vector<4x96xf32> to vector<4x32xf32>
    %201 = vector.extract_strided_slice %183 {offsets = [0, 64], sizes = [4, 32], strides = [1, 1]} : vector<4x96xf32> to vector<4x32xf32>
    %202 = arith.mulf %191, %201 : vector<4x32xf32>
    %203 = arith.addf %200, %202 : vector<4x32xf32>
    %204 = math.tanh %203 : vector<4x32xf32>
    %cst_83 = arith.constant 1.000000e+00 : f32
    %205 = vector.broadcast %cst_83 : f32 to vector<4x32xf32>
    %206 = arith.subf %205, %199 : vector<4x32xf32>
    %207 = arith.mulf %206, %204 : vector<4x32xf32>
    %208 = arith.mulf %199, %178 : vector<4x32xf32>
    %209 = arith.addf %207, %208 : vector<4x32xf32>
    %210 = vector.extract_strided_slice %176 {offsets = [0, 96], sizes = [4, 96], strides = [1, 1]} : vector<4x192xf32> to vector<4x96xf32>
    %c0_84 = arith.constant 0 : index
    %c0_85 = arith.constant 0 : index
    %211 = vector.load %arg9[%c0_84, %c0_85] : memref<4x32xf32, #tpu.memory_space<vmem>>, vector<4x32xf32>
    %c0_86 = arith.constant 0 : index
    %c0_87 = arith.constant 0 : index
    %212 = vector.load %arg3[%c0_86, %c0_87] : memref<32x96xf32, #tpu.memory_space<vmem>>, vector<32x96xf32>
    %cst_88 = arith.constant dense<0.000000e+00> : vector<4x96xf32>
    %213 = tpu.matmul %211, %212, %cst_88 {dimension_numbers = #tpu.dot_dimension_numbers<[1], [0], [0], [1], [0, 0, 1, 1], [], []>} : vector<4x32xf32>, vector<32x96xf32>, vector<4x96xf32> -> vector<4x96xf32>
    %c0_89 = arith.constant 0 : index
    %c0_90 = arith.constant 0 : index
    %214 = vector.load %arg4[%c0_89, %c0_90] : memref<1x96xf32, #tpu.memory_space<vmem>>, vector<1x96xf32>
    %215 = vector.broadcast %214 : vector<1x96xf32> to vector<4x96xf32>
    %216 = arith.addf %213, %215 : vector<4x96xf32>
    %217 = vector.extract_strided_slice %210 {offsets = [0, 0], sizes = [4, 32], strides = [1, 1]} : vector<4x96xf32> to vector<4x32xf32>
    %218 = vector.extract_strided_slice %216 {offsets = [0, 0], sizes = [4, 32], strides = [1, 1]} : vector<4x96xf32> to vector<4x32xf32>
    %219 = arith.addf %217, %218 : vector<4x32xf32>
    %220 = arith.negf %219 : vector<4x32xf32>
    %221 = math.exp %220 : vector<4x32xf32>
    %cst_91 = arith.constant 1.000000e+00 : f32
    %222 = vector.broadcast %cst_91 : f32 to vector<4x32xf32>
    %223 = arith.addf %222, %221 : vector<4x32xf32>
    %224 = arith.divf %222, %223 : vector<4x32xf32>
    %225 = vector.extract_strided_slice %210 {offsets = [0, 32], sizes = [4, 32], strides = [1, 1]} : vector<4x96xf32> to vector<4x32xf32>
    %226 = vector.extract_strided_slice %216 {offsets = [0, 32], sizes = [4, 32], strides = [1, 1]} : vector<4x96xf32> to vector<4x32xf32>
    %227 = arith.addf %225, %226 : vector<4x32xf32>
    %228 = arith.negf %227 : vector<4x32xf32>
    %229 = math.exp %228 : vector<4x32xf32>
    %cst_92 = arith.constant 1.000000e+00 : f32
    %230 = vector.broadcast %cst_92 : f32 to vector<4x32xf32>
    %231 = arith.addf %230, %229 : vector<4x32xf32>
    %232 = arith.divf %230, %231 : vector<4x32xf32>
    %233 = vector.extract_strided_slice %210 {offsets = [0, 64], sizes = [4, 32], strides = [1, 1]} : vector<4x96xf32> to vector<4x32xf32>
    %234 = vector.extract_strided_slice %216 {offsets = [0, 64], sizes = [4, 32], strides = [1, 1]} : vector<4x96xf32> to vector<4x32xf32>
    %235 = arith.mulf %224, %234 : vector<4x32xf32>
    %236 = arith.addf %233, %235 : vector<4x32xf32>
    %237 = math.tanh %236 : vector<4x32xf32>
    %cst_93 = arith.constant 1.000000e+00 : f32
    %238 = vector.broadcast %cst_93 : f32 to vector<4x32xf32>
    %239 = arith.subf %238, %232 : vector<4x32xf32>
    %240 = arith.mulf %239, %237 : vector<4x32xf32>
    %241 = arith.mulf %232, %211 : vector<4x32xf32>
    %242 = arith.addf %240, %241 : vector<4x32xf32>
    %c0_94 = arith.constant 0 : index
    %c0_95 = arith.constant 0 : index
    %243 = vector.load %arg8[%c0_94, %c0_95] : memref<4x32xf32, #tpu.memory_space<vmem>>, vector<4x32xf32>
    tpu.vector_store %arg8[%c0_94, %c0_95], %209 {strides = array<i32>} : memref<4x32xf32, #tpu.memory_space<vmem>>, vector<4x32xf32>,
    %c0_96 = arith.constant 0 : index
    %c0_97 = arith.constant 0 : index
    %244 = vector.load %arg9[%c0_96, %c0_97] : memref<4x32xf32, #tpu.memory_space<vmem>>, vector<4x32xf32>
    tpu.vector_store %arg9[%c0_96, %c0_97], %242 {strides = array<i32>} : memref<4x32xf32, #tpu.memory_space<vmem>>, vector<4x32xf32>,
    %245 = arith.index_cast %c2_i32 : i32 to index
    %c0_98 = arith.constant 0 : index
    %c0_99 = arith.constant 0 : index
    %246 = vector.load %arg5[%245, %c0_98, %c0_99] : memref<8x4x32xf32, #tpu.memory_space<vmem>>, vector<1x4x32xf32>
    %247 = vector.shape_cast %246 : vector<1x4x32xf32> to vector<4x32xf32>
    %248 = vector.shape_cast %209 : vector<4x32xf32> to vector<1x4x32xf32>
    tpu.vector_store %arg5[%245, %c0_98, %c0_99], %248 {strides = array<i32>} : memref<8x4x32xf32, #tpu.memory_space<vmem>>, vector<1x4x32xf32>,
    %249 = arith.index_cast %170 : i32 to index
    %c0_100 = arith.constant 0 : index
    %c0_101 = arith.constant 0 : index
    %250 = vector.load %arg6[%249, %c0_100, %c0_101] : memref<8x4x32xf32, #tpu.memory_space<vmem>>, vector<1x4x32xf32>
    %251 = vector.shape_cast %250 : vector<1x4x32xf32> to vector<4x32xf32>
    %252 = vector.shape_cast %242 : vector<4x32xf32> to vector<1x4x32xf32>
    tpu.vector_store %arg6[%249, %c0_100, %c0_101], %252 {strides = array<i32>} : memref<8x4x32xf32, #tpu.memory_space<vmem>>, vector<1x4x32xf32>,
    %c3_i32 = arith.constant 3 : i32
    %c7_i32_102 = arith.constant 7 : i32
    %253 = arith.subi %c7_i32_102, %c3_i32 : i32
    %254 = arith.index_cast %c3_i32 : i32 to index
    %c0_103 = arith.constant 0 : index
    %c0_104 = arith.constant 0 : index
    %255 = vector.load %arg0[%254, %c0_103, %c0_104] : memref<8x4x192xf32, #tpu.memory_space<vmem>>, vector<1x4x192xf32>
    %256 = vector.shape_cast %255 : vector<1x4x192xf32> to vector<4x192xf32>
    %257 = arith.index_cast %253 : i32 to index
    %c0_105 = arith.constant 0 : index
    %c0_106 = arith.constant 0 : index
    %258 = vector.load %arg0[%257, %c0_105, %c0_106] : memref<8x4x192xf32, #tpu.memory_space<vmem>>, vector<1x4x192xf32>
    %259 = vector.shape_cast %258 : vector<1x4x192xf32> to vector<4x192xf32>
    %260 = vector.extract_strided_slice %256 {offsets = [0, 0], sizes = [4, 96], strides = [1, 1]} : vector<4x192xf32> to vector<4x96xf32>
    %c0_107 = arith.constant 0 : index
    %c0_108 = arith.constant 0 : index
    %261 = vector.load %arg8[%c0_107, %c0_108] : memref<4x32xf32, #tpu.memory_space<vmem>>, vector<4x32xf32>
    %c0_109 = arith.constant 0 : index
    %c0_110 = arith.constant 0 : index
    %262 = vector.load %arg1[%c0_109, %c0_110] : memref<32x96xf32, #tpu.memory_space<vmem>>, vector<32x96xf32>
    %cst_111 = arith.constant dense<0.000000e+00> : vector<4x96xf32>
    %263 = tpu.matmul %261, %262, %cst_111 {dimension_numbers = #tpu.dot_dimension_numbers<[1], [0], [0], [1], [0, 0, 1, 1], [], []>} : vector<4x32xf32>, vector<32x96xf32>, vector<4x96xf32> -> vector<4x96xf32>
    %c0_112 = arith.constant 0 : index
    %c0_113 = arith.constant 0 : index
    %264 = vector.load %arg2[%c0_112, %c0_113] : memref<1x96xf32, #tpu.memory_space<vmem>>, vector<1x96xf32>
    %265 = vector.broadcast %264 : vector<1x96xf32> to vector<4x96xf32>
    %266 = arith.addf %263, %265 : vector<4x96xf32>
    %267 = vector.extract_strided_slice %260 {offsets = [0, 0], sizes = [4, 32], strides = [1, 1]} : vector<4x96xf32> to vector<4x32xf32>
    %268 = vector.extract_strided_slice %266 {offsets = [0, 0], sizes = [4, 32], strides = [1, 1]} : vector<4x96xf32> to vector<4x32xf32>
    %269 = arith.addf %267, %268 : vector<4x32xf32>
    %270 = arith.negf %269 : vector<4x32xf32>
    %271 = math.exp %270 : vector<4x32xf32>
    %cst_114 = arith.constant 1.000000e+00 : f32
    %272 = vector.broadcast %cst_114 : f32 to vector<4x32xf32>
    %273 = arith.addf %272, %271 : vector<4x32xf32>
    %274 = arith.divf %272, %273 : vector<4x32xf32>
    %275 = vector.extract_strided_slice %260 {offsets = [0, 32], sizes = [4, 32], strides = [1, 1]} : vector<4x96xf32> to vector<4x32xf32>
    %276 = vector.extract_strided_slice %266 {offsets = [0, 32], sizes = [4, 32], strides = [1, 1]} : vector<4x96xf32> to vector<4x32xf32>
    %277 = arith.addf %275, %276 : vector<4x32xf32>
    %278 = arith.negf %277 : vector<4x32xf32>
    %279 = math.exp %278 : vector<4x32xf32>
    %cst_115 = arith.constant 1.000000e+00 : f32
    %280 = vector.broadcast %cst_115 : f32 to vector<4x32xf32>
    %281 = arith.addf %280, %279 : vector<4x32xf32>
    %282 = arith.divf %280, %281 : vector<4x32xf32>
    %283 = vector.extract_strided_slice %260 {offsets = [0, 64], sizes = [4, 32], strides = [1, 1]} : vector<4x96xf32> to vector<4x32xf32>
    %284 = vector.extract_strided_slice %266 {offsets = [0, 64], sizes = [4, 32], strides = [1, 1]} : vector<4x96xf32> to vector<4x32xf32>
    %285 = arith.mulf %274, %284 : vector<4x32xf32>
    %286 = arith.addf %283, %285 : vector<4x32xf32>
    %287 = math.tanh %286 : vector<4x32xf32>
    %cst_116 = arith.constant 1.000000e+00 : f32
    %288 = vector.broadcast %cst_116 : f32 to vector<4x32xf32>
    %289 = arith.subf %288, %282 : vector<4x32xf32>
    %290 = arith.mulf %289, %287 : vector<4x32xf32>
    %291 = arith.mulf %282, %261 : vector<4x32xf32>
    %292 = arith.addf %290, %291 : vector<4x32xf32>
    %293 = vector.extract_strided_slice %259 {offsets = [0, 96], sizes = [4, 96], strides = [1, 1]} : vector<4x192xf32> to vector<4x96xf32>
    %c0_117 = arith.constant 0 : index
    %c0_118 = arith.constant 0 : index
    %294 = vector.load %arg9[%c0_117, %c0_118] : memref<4x32xf32, #tpu.memory_space<vmem>>, vector<4x32xf32>
    %c0_119 = arith.constant 0 : index
    %c0_120 = arith.constant 0 : index
    %295 = vector.load %arg3[%c0_119, %c0_120] : memref<32x96xf32, #tpu.memory_space<vmem>>, vector<32x96xf32>
    %cst_121 = arith.constant dense<0.000000e+00> : vector<4x96xf32>
    %296 = tpu.matmul %294, %295, %cst_121 {dimension_numbers = #tpu.dot_dimension_numbers<[1], [0], [0], [1], [0, 0, 1, 1], [], []>} : vector<4x32xf32>, vector<32x96xf32>, vector<4x96xf32> -> vector<4x96xf32>
    %c0_122 = arith.constant 0 : index
    %c0_123 = arith.constant 0 : index
    %297 = vector.load %arg4[%c0_122, %c0_123] : memref<1x96xf32, #tpu.memory_space<vmem>>, vector<1x96xf32>
    %298 = vector.broadcast %297 : vector<1x96xf32> to vector<4x96xf32>
    %299 = arith.addf %296, %298 : vector<4x96xf32>
    %300 = vector.extract_strided_slice %293 {offsets = [0, 0], sizes = [4, 32], strides = [1, 1]} : vector<4x96xf32> to vector<4x32xf32>
    %301 = vector.extract_strided_slice %299 {offsets = [0, 0], sizes = [4, 32], strides = [1, 1]} : vector<4x96xf32> to vector<4x32xf32>
    %302 = arith.addf %300, %301 : vector<4x32xf32>
    %303 = arith.negf %302 : vector<4x32xf32>
    %304 = math.exp %303 : vector<4x32xf32>
    %cst_124 = arith.constant 1.000000e+00 : f32
    %305 = vector.broadcast %cst_124 : f32 to vector<4x32xf32>
    %306 = arith.addf %305, %304 : vector<4x32xf32>
    %307 = arith.divf %305, %306 : vector<4x32xf32>
    %308 = vector.extract_strided_slice %293 {offsets = [0, 32], sizes = [4, 32], strides = [1, 1]} : vector<4x96xf32> to vector<4x32xf32>
    %309 = vector.extract_strided_slice %299 {offsets = [0, 32], sizes = [4, 32], strides = [1, 1]} : vector<4x96xf32> to vector<4x32xf32>
    %310 = arith.addf %308, %309 : vector<4x32xf32>
    %311 = arith.negf %310 : vector<4x32xf32>
    %312 = math.exp %311 : vector<4x32xf32>
    %cst_125 = arith.constant 1.000000e+00 : f32
    %313 = vector.broadcast %cst_125 : f32 to vector<4x32xf32>
    %314 = arith.addf %313, %312 : vector<4x32xf32>
    %315 = arith.divf %313, %314 : vector<4x32xf32>
    %316 = vector.extract_strided_slice %293 {offsets = [0, 64], sizes = [4, 32], strides = [1, 1]} : vector<4x96xf32> to vector<4x32xf32>
    %317 = vector.extract_strided_slice %299 {offsets = [0, 64], sizes = [4, 32], strides = [1, 1]} : vector<4x96xf32> to vector<4x32xf32>
    %318 = arith.mulf %307, %317 : vector<4x32xf32>
    %319 = arith.addf %316, %318 : vector<4x32xf32>
    %320 = math.tanh %319 : vector<4x32xf32>
    %cst_126 = arith.constant 1.000000e+00 : f32
    %321 = vector.broadcast %cst_126 : f32 to vector<4x32xf32>
    %322 = arith.subf %321, %315 : vector<4x32xf32>
    %323 = arith.mulf %322, %320 : vector<4x32xf32>
    %324 = arith.mulf %315, %294 : vector<4x32xf32>
    %325 = arith.addf %323, %324 : vector<4x32xf32>
    %c0_127 = arith.constant 0 : index
    %c0_128 = arith.constant 0 : index
    %326 = vector.load %arg8[%c0_127, %c0_128] : memref<4x32xf32, #tpu.memory_space<vmem>>, vector<4x32xf32>
    tpu.vector_store %arg8[%c0_127, %c0_128], %292 {strides = array<i32>} : memref<4x32xf32, #tpu.memory_space<vmem>>, vector<4x32xf32>,
    %c0_129 = arith.constant 0 : index
    %c0_130 = arith.constant 0 : index
    %327 = vector.load %arg9[%c0_129, %c0_130] : memref<4x32xf32, #tpu.memory_space<vmem>>, vector<4x32xf32>
    tpu.vector_store %arg9[%c0_129, %c0_130], %325 {strides = array<i32>} : memref<4x32xf32, #tpu.memory_space<vmem>>, vector<4x32xf32>,
    %328 = arith.index_cast %c3_i32 : i32 to index
    %c0_131 = arith.constant 0 : index
    %c0_132 = arith.constant 0 : index
    %329 = vector.load %arg5[%328, %c0_131, %c0_132] : memref<8x4x32xf32, #tpu.memory_space<vmem>>, vector<1x4x32xf32>
    %330 = vector.shape_cast %329 : vector<1x4x32xf32> to vector<4x32xf32>
    %331 = vector.shape_cast %292 : vector<4x32xf32> to vector<1x4x32xf32>
    tpu.vector_store %arg5[%328, %c0_131, %c0_132], %331 {strides = array<i32>} : memref<8x4x32xf32, #tpu.memory_space<vmem>>, vector<1x4x32xf32>,
    %332 = arith.index_cast %253 : i32 to index
    %c0_133 = arith.constant 0 : index
    %c0_134 = arith.constant 0 : index
    %333 = vector.load %arg6[%332, %c0_133, %c0_134] : memref<8x4x32xf32, #tpu.memory_space<vmem>>, vector<1x4x32xf32>
    %334 = vector.shape_cast %333 : vector<1x4x32xf32> to vector<4x32xf32>
    %335 = vector.shape_cast %325 : vector<4x32xf32> to vector<1x4x32xf32>
    tpu.vector_store %arg6[%332, %c0_133, %c0_134], %335 {strides = array<i32>} : memref<8x4x32xf32, #tpu.memory_space<vmem>>, vector<1x4x32xf32>,
    %c4_i32 = arith.constant 4 : i32
    %c7_i32_135 = arith.constant 7 : i32
    %336 = arith.subi %c7_i32_135, %c4_i32 : i32
    %337 = arith.index_cast %c4_i32 : i32 to index
    %c0_136 = arith.constant 0 : index
    %c0_137 = arith.constant 0 : index
    %338 = vector.load %arg0[%337, %c0_136, %c0_137] : memref<8x4x192xf32, #tpu.memory_space<vmem>>, vector<1x4x192xf32>
    %339 = vector.shape_cast %338 : vector<1x4x192xf32> to vector<4x192xf32>
    %340 = arith.index_cast %336 : i32 to index
    %c0_138 = arith.constant 0 : index
    %c0_139 = arith.constant 0 : index
    %341 = vector.load %arg0[%340, %c0_138, %c0_139] : memref<8x4x192xf32, #tpu.memory_space<vmem>>, vector<1x4x192xf32>
    %342 = vector.shape_cast %341 : vector<1x4x192xf32> to vector<4x192xf32>
    %343 = vector.extract_strided_slice %339 {offsets = [0, 0], sizes = [4, 96], strides = [1, 1]} : vector<4x192xf32> to vector<4x96xf32>
    %c0_140 = arith.constant 0 : index
    %c0_141 = arith.constant 0 : index
    %344 = vector.load %arg8[%c0_140, %c0_141] : memref<4x32xf32, #tpu.memory_space<vmem>>, vector<4x32xf32>
    %c0_142 = arith.constant 0 : index
    %c0_143 = arith.constant 0 : index
    %345 = vector.load %arg1[%c0_142, %c0_143] : memref<32x96xf32, #tpu.memory_space<vmem>>, vector<32x96xf32>
    %cst_144 = arith.constant dense<0.000000e+00> : vector<4x96xf32>
    %346 = tpu.matmul %344, %345, %cst_144 {dimension_numbers = #tpu.dot_dimension_numbers<[1], [0], [0], [1], [0, 0, 1, 1], [], []>} : vector<4x32xf32>, vector<32x96xf32>, vector<4x96xf32> -> vector<4x96xf32>
    %c0_145 = arith.constant 0 : index
    %c0_146 = arith.constant 0 : index
    %347 = vector.load %arg2[%c0_145, %c0_146] : memref<1x96xf32, #tpu.memory_space<vmem>>, vector<1x96xf32>
    %348 = vector.broadcast %347 : vector<1x96xf32> to vector<4x96xf32>
    %349 = arith.addf %346, %348 : vector<4x96xf32>
    %350 = vector.extract_strided_slice %343 {offsets = [0, 0], sizes = [4, 32], strides = [1, 1]} : vector<4x96xf32> to vector<4x32xf32>
    %351 = vector.extract_strided_slice %349 {offsets = [0, 0], sizes = [4, 32], strides = [1, 1]} : vector<4x96xf32> to vector<4x32xf32>
    %352 = arith.addf %350, %351 : vector<4x32xf32>
    %353 = arith.negf %352 : vector<4x32xf32>
    %354 = math.exp %353 : vector<4x32xf32>
    %cst_147 = arith.constant 1.000000e+00 : f32
    %355 = vector.broadcast %cst_147 : f32 to vector<4x32xf32>
    %356 = arith.addf %355, %354 : vector<4x32xf32>
    %357 = arith.divf %355, %356 : vector<4x32xf32>
    %358 = vector.extract_strided_slice %343 {offsets = [0, 32], sizes = [4, 32], strides = [1, 1]} : vector<4x96xf32> to vector<4x32xf32>
    %359 = vector.extract_strided_slice %349 {offsets = [0, 32], sizes = [4, 32], strides = [1, 1]} : vector<4x96xf32> to vector<4x32xf32>
    %360 = arith.addf %358, %359 : vector<4x32xf32>
    %361 = arith.negf %360 : vector<4x32xf32>
    %362 = math.exp %361 : vector<4x32xf32>
    %cst_148 = arith.constant 1.000000e+00 : f32
    %363 = vector.broadcast %cst_148 : f32 to vector<4x32xf32>
    %364 = arith.addf %363, %362 : vector<4x32xf32>
    %365 = arith.divf %363, %364 : vector<4x32xf32>
    %366 = vector.extract_strided_slice %343 {offsets = [0, 64], sizes = [4, 32], strides = [1, 1]} : vector<4x96xf32> to vector<4x32xf32>
    %367 = vector.extract_strided_slice %349 {offsets = [0, 64], sizes = [4, 32], strides = [1, 1]} : vector<4x96xf32> to vector<4x32xf32>
    %368 = arith.mulf %357, %367 : vector<4x32xf32>
    %369 = arith.addf %366, %368 : vector<4x32xf32>
    %370 = math.tanh %369 : vector<4x32xf32>
    %cst_149 = arith.constant 1.000000e+00 : f32
    %371 = vector.broadcast %cst_149 : f32 to vector<4x32xf32>
    %372 = arith.subf %371, %365 : vector<4x32xf32>
    %373 = arith.mulf %372, %370 : vector<4x32xf32>
    %374 = arith.mulf %365, %344 : vector<4x32xf32>
    %375 = arith.addf %373, %374 : vector<4x32xf32>
    %376 = vector.extract_strided_slice %342 {offsets = [0, 96], sizes = [4, 96], strides = [1, 1]} : vector<4x192xf32> to vector<4x96xf32>
    %c0_150 = arith.constant 0 : index
    %c0_151 = arith.constant 0 : index
    %377 = vector.load %arg9[%c0_150, %c0_151] : memref<4x32xf32, #tpu.memory_space<vmem>>, vector<4x32xf32>
    %c0_152 = arith.constant 0 : index
    %c0_153 = arith.constant 0 : index
    %378 = vector.load %arg3[%c0_152, %c0_153] : memref<32x96xf32, #tpu.memory_space<vmem>>, vector<32x96xf32>
    %cst_154 = arith.constant dense<0.000000e+00> : vector<4x96xf32>
    %379 = tpu.matmul %377, %378, %cst_154 {dimension_numbers = #tpu.dot_dimension_numbers<[1], [0], [0], [1], [0, 0, 1, 1], [], []>} : vector<4x32xf32>, vector<32x96xf32>, vector<4x96xf32> -> vector<4x96xf32>
    %c0_155 = arith.constant 0 : index
    %c0_156 = arith.constant 0 : index
    %380 = vector.load %arg4[%c0_155, %c0_156] : memref<1x96xf32, #tpu.memory_space<vmem>>, vector<1x96xf32>
    %381 = vector.broadcast %380 : vector<1x96xf32> to vector<4x96xf32>
    %382 = arith.addf %379, %381 : vector<4x96xf32>
    %383 = vector.extract_strided_slice %376 {offsets = [0, 0], sizes = [4, 32], strides = [1, 1]} : vector<4x96xf32> to vector<4x32xf32>
    %384 = vector.extract_strided_slice %382 {offsets = [0, 0], sizes = [4, 32], strides = [1, 1]} : vector<4x96xf32> to vector<4x32xf32>
    %385 = arith.addf %383, %384 : vector<4x32xf32>
    %386 = arith.negf %385 : vector<4x32xf32>
    %387 = math.exp %386 : vector<4x32xf32>
    %cst_157 = arith.constant 1.000000e+00 : f32
    %388 = vector.broadcast %cst_157 : f32 to vector<4x32xf32>
    %389 = arith.addf %388, %387 : vector<4x32xf32>
    %390 = arith.divf %388, %389 : vector<4x32xf32>
    %391 = vector.extract_strided_slice %376 {offsets = [0, 32], sizes = [4, 32], strides = [1, 1]} : vector<4x96xf32> to vector<4x32xf32>
    %392 = vector.extract_strided_slice %382 {offsets = [0, 32], sizes = [4, 32], strides = [1, 1]} : vector<4x96xf32> to vector<4x32xf32>
    %393 = arith.addf %391, %392 : vector<4x32xf32>
    %394 = arith.negf %393 : vector<4x32xf32>
    %395 = math.exp %394 : vector<4x32xf32>
    %cst_158 = arith.constant 1.000000e+00 : f32
    %396 = vector.broadcast %cst_158 : f32 to vector<4x32xf32>
    %397 = arith.addf %396, %395 : vector<4x32xf32>
    %398 = arith.divf %396, %397 : vector<4x32xf32>
    %399 = vector.extract_strided_slice %376 {offsets = [0, 64], sizes = [4, 32], strides = [1, 1]} : vector<4x96xf32> to vector<4x32xf32>
    %400 = vector.extract_strided_slice %382 {offsets = [0, 64], sizes = [4, 32], strides = [1, 1]} : vector<4x96xf32> to vector<4x32xf32>
    %401 = arith.mulf %390, %400 : vector<4x32xf32>
    %402 = arith.addf %399, %401 : vector<4x32xf32>
    %403 = math.tanh %402 : vector<4x32xf32>
    %cst_159 = arith.constant 1.000000e+00 : f32
    %404 = vector.broadcast %cst_159 : f32 to vector<4x32xf32>
    %405 = arith.subf %404, %398 : vector<4x32xf32>
    %406 = arith.mulf %405, %403 : vector<4x32xf32>
    %407 = arith.mulf %398, %377 : vector<4x32xf32>
    %408 = arith.addf %406, %407 : vector<4x32xf32>
    %c0_160 = arith.constant 0 : index
    %c0_161 = arith.constant 0 : index
    %409 = vector.load %arg8[%c0_160, %c0_161] : memref<4x32xf32, #tpu.memory_space<vmem>>, vector<4x32xf32>
    tpu.vector_store %arg8[%c0_160, %c0_161], %375 {strides = array<i32>} : memref<4x32xf32, #tpu.memory_space<vmem>>, vector<4x32xf32>,
    %c0_162 = arith.constant 0 : index
    %c0_163 = arith.constant 0 : index
    %410 = vector.load %arg9[%c0_162, %c0_163] : memref<4x32xf32, #tpu.memory_space<vmem>>, vector<4x32xf32>
    tpu.vector_store %arg9[%c0_162, %c0_163], %408 {strides = array<i32>} : memref<4x32xf32, #tpu.memory_space<vmem>>, vector<4x32xf32>,
    %411 = arith.index_cast %c4_i32 : i32 to index
    %c0_164 = arith.constant 0 : index
    %c0_165 = arith.constant 0 : index
    %412 = vector.load %arg5[%411, %c0_164, %c0_165] : memref<8x4x32xf32, #tpu.memory_space<vmem>>, vector<1x4x32xf32>
    %413 = vector.shape_cast %412 : vector<1x4x32xf32> to vector<4x32xf32>
    %414 = vector.shape_cast %375 : vector<4x32xf32> to vector<1x4x32xf32>
    tpu.vector_store %arg5[%411, %c0_164, %c0_165], %414 {strides = array<i32>} : memref<8x4x32xf32, #tpu.memory_space<vmem>>, vector<1x4x32xf32>,
    %415 = arith.index_cast %336 : i32 to index
    %c0_166 = arith.constant 0 : index
    %c0_167 = arith.constant 0 : index
    %416 = vector.load %arg6[%415, %c0_166, %c0_167] : memref<8x4x32xf32, #tpu.memory_space<vmem>>, vector<1x4x32xf32>
    %417 = vector.shape_cast %416 : vector<1x4x32xf32> to vector<4x32xf32>
    %418 = vector.shape_cast %408 : vector<4x32xf32> to vector<1x4x32xf32>
    tpu.vector_store %arg6[%415, %c0_166, %c0_167], %418 {strides = array<i32>} : memref<8x4x32xf32, #tpu.memory_space<vmem>>, vector<1x4x32xf32>,
    %c5_i32 = arith.constant 5 : i32
    %c7_i32_168 = arith.constant 7 : i32
    %419 = arith.subi %c7_i32_168, %c5_i32 : i32
    %420 = arith.index_cast %c5_i32 : i32 to index
    %c0_169 = arith.constant 0 : index
    %c0_170 = arith.constant 0 : index
    %421 = vector.load %arg0[%420, %c0_169, %c0_170] : memref<8x4x192xf32, #tpu.memory_space<vmem>>, vector<1x4x192xf32>
    %422 = vector.shape_cast %421 : vector<1x4x192xf32> to vector<4x192xf32>
    %423 = arith.index_cast %419 : i32 to index
    %c0_171 = arith.constant 0 : index
    %c0_172 = arith.constant 0 : index
    %424 = vector.load %arg0[%423, %c0_171, %c0_172] : memref<8x4x192xf32, #tpu.memory_space<vmem>>, vector<1x4x192xf32>
    %425 = vector.shape_cast %424 : vector<1x4x192xf32> to vector<4x192xf32>
    %426 = vector.extract_strided_slice %422 {offsets = [0, 0], sizes = [4, 96], strides = [1, 1]} : vector<4x192xf32> to vector<4x96xf32>
    %c0_173 = arith.constant 0 : index
    %c0_174 = arith.constant 0 : index
    %427 = vector.load %arg8[%c0_173, %c0_174] : memref<4x32xf32, #tpu.memory_space<vmem>>, vector<4x32xf32>
    %c0_175 = arith.constant 0 : index
    %c0_176 = arith.constant 0 : index
    %428 = vector.load %arg1[%c0_175, %c0_176] : memref<32x96xf32, #tpu.memory_space<vmem>>, vector<32x96xf32>
    %cst_177 = arith.constant dense<0.000000e+00> : vector<4x96xf32>
    %429 = tpu.matmul %427, %428, %cst_177 {dimension_numbers = #tpu.dot_dimension_numbers<[1], [0], [0], [1], [0, 0, 1, 1], [], []>} : vector<4x32xf32>, vector<32x96xf32>, vector<4x96xf32> -> vector<4x96xf32>
    %c0_178 = arith.constant 0 : index
    %c0_179 = arith.constant 0 : index
    %430 = vector.load %arg2[%c0_178, %c0_179] : memref<1x96xf32, #tpu.memory_space<vmem>>, vector<1x96xf32>
    %431 = vector.broadcast %430 : vector<1x96xf32> to vector<4x96xf32>
    %432 = arith.addf %429, %431 : vector<4x96xf32>
    %433 = vector.extract_strided_slice %426 {offsets = [0, 0], sizes = [4, 32], strides = [1, 1]} : vector<4x96xf32> to vector<4x32xf32>
    %434 = vector.extract_strided_slice %432 {offsets = [0, 0], sizes = [4, 32], strides = [1, 1]} : vector<4x96xf32> to vector<4x32xf32>
    %435 = arith.addf %433, %434 : vector<4x32xf32>
    %436 = arith.negf %435 : vector<4x32xf32>
    %437 = math.exp %436 : vector<4x32xf32>
    %cst_180 = arith.constant 1.000000e+00 : f32
    %438 = vector.broadcast %cst_180 : f32 to vector<4x32xf32>
    %439 = arith.addf %438, %437 : vector<4x32xf32>
    %440 = arith.divf %438, %439 : vector<4x32xf32>
    %441 = vector.extract_strided_slice %426 {offsets = [0, 32], sizes = [4, 32], strides = [1, 1]} : vector<4x96xf32> to vector<4x32xf32>
    %442 = vector.extract_strided_slice %432 {offsets = [0, 32], sizes = [4, 32], strides = [1, 1]} : vector<4x96xf32> to vector<4x32xf32>
    %443 = arith.addf %441, %442 : vector<4x32xf32>
    %444 = arith.negf %443 : vector<4x32xf32>
    %445 = math.exp %444 : vector<4x32xf32>
    %cst_181 = arith.constant 1.000000e+00 : f32
    %446 = vector.broadcast %cst_181 : f32 to vector<4x32xf32>
    %447 = arith.addf %446, %445 : vector<4x32xf32>
    %448 = arith.divf %446, %447 : vector<4x32xf32>
    %449 = vector.extract_strided_slice %426 {offsets = [0, 64], sizes = [4, 32], strides = [1, 1]} : vector<4x96xf32> to vector<4x32xf32>
    %450 = vector.extract_strided_slice %432 {offsets = [0, 64], sizes = [4, 32], strides = [1, 1]} : vector<4x96xf32> to vector<4x32xf32>
    %451 = arith.mulf %440, %450 : vector<4x32xf32>
    %452 = arith.addf %449, %451 : vector<4x32xf32>
    %453 = math.tanh %452 : vector<4x32xf32>
    %cst_182 = arith.constant 1.000000e+00 : f32
    %454 = vector.broadcast %cst_182 : f32 to vector<4x32xf32>
    %455 = arith.subf %454, %448 : vector<4x32xf32>
    %456 = arith.mulf %455, %453 : vector<4x32xf32>
    %457 = arith.mulf %448, %427 : vector<4x32xf32>
    %458 = arith.addf %456, %457 : vector<4x32xf32>
    %459 = vector.extract_strided_slice %425 {offsets = [0, 96], sizes = [4, 96], strides = [1, 1]} : vector<4x192xf32> to vector<4x96xf32>
    %c0_183 = arith.constant 0 : index
    %c0_184 = arith.constant 0 : index
    %460 = vector.load %arg9[%c0_183, %c0_184] : memref<4x32xf32, #tpu.memory_space<vmem>>, vector<4x32xf32>
    %c0_185 = arith.constant 0 : index
    %c0_186 = arith.constant 0 : index
    %461 = vector.load %arg3[%c0_185, %c0_186] : memref<32x96xf32, #tpu.memory_space<vmem>>, vector<32x96xf32>
    %cst_187 = arith.constant dense<0.000000e+00> : vector<4x96xf32>
    %462 = tpu.matmul %460, %461, %cst_187 {dimension_numbers = #tpu.dot_dimension_numbers<[1], [0], [0], [1], [0, 0, 1, 1], [], []>} : vector<4x32xf32>, vector<32x96xf32>, vector<4x96xf32> -> vector<4x96xf32>
    %c0_188 = arith.constant 0 : index
    %c0_189 = arith.constant 0 : index
    %463 = vector.load %arg4[%c0_188, %c0_189] : memref<1x96xf32, #tpu.memory_space<vmem>>, vector<1x96xf32>
    %464 = vector.broadcast %463 : vector<1x96xf32> to vector<4x96xf32>
    %465 = arith.addf %462, %464 : vector<4x96xf32>
    %466 = vector.extract_strided_slice %459 {offsets = [0, 0], sizes = [4, 32], strides = [1, 1]} : vector<4x96xf32> to vector<4x32xf32>
    %467 = vector.extract_strided_slice %465 {offsets = [0, 0], sizes = [4, 32], strides = [1, 1]} : vector<4x96xf32> to vector<4x32xf32>
    %468 = arith.addf %466, %467 : vector<4x32xf32>
    %469 = arith.negf %468 : vector<4x32xf32>
    %470 = math.exp %469 : vector<4x32xf32>
    %cst_190 = arith.constant 1.000000e+00 : f32
    %471 = vector.broadcast %cst_190 : f32 to vector<4x32xf32>
    %472 = arith.addf %471, %470 : vector<4x32xf32>
    %473 = arith.divf %471, %472 : vector<4x32xf32>
    %474 = vector.extract_strided_slice %459 {offsets = [0, 32], sizes = [4, 32], strides = [1, 1]} : vector<4x96xf32> to vector<4x32xf32>
    %475 = vector.extract_strided_slice %465 {offsets = [0, 32], sizes = [4, 32], strides = [1, 1]} : vector<4x96xf32> to vector<4x32xf32>
    %476 = arith.addf %474, %475 : vector<4x32xf32>
    %477 = arith.negf %476 : vector<4x32xf32>
    %478 = math.exp %477 : vector<4x32xf32>
    %cst_191 = arith.constant 1.000000e+00 : f32
    %479 = vector.broadcast %cst_191 : f32 to vector<4x32xf32>
    %480 = arith.addf %479, %478 : vector<4x32xf32>
    %481 = arith.divf %479, %480 : vector<4x32xf32>
    %482 = vector.extract_strided_slice %459 {offsets = [0, 64], sizes = [4, 32], strides = [1, 1]} : vector<4x96xf32> to vector<4x32xf32>
    %483 = vector.extract_strided_slice %465 {offsets = [0, 64], sizes = [4, 32], strides = [1, 1]} : vector<4x96xf32> to vector<4x32xf32>
    %484 = arith.mulf %473, %483 : vector<4x32xf32>
    %485 = arith.addf %482, %484 : vector<4x32xf32>
    %486 = math.tanh %485 : vector<4x32xf32>
    %cst_192 = arith.constant 1.000000e+00 : f32
    %487 = vector.broadcast %cst_192 : f32 to vector<4x32xf32>
    %488 = arith.subf %487, %481 : vector<4x32xf32>
    %489 = arith.mulf %488, %486 : vector<4x32xf32>
    %490 = arith.mulf %481, %460 : vector<4x32xf32>
    %491 = arith.addf %489, %490 : vector<4x32xf32>
    %c0_193 = arith.constant 0 : index
    %c0_194 = arith.constant 0 : index
    %492 = vector.load %arg8[%c0_193, %c0_194] : memref<4x32xf32, #tpu.memory_space<vmem>>, vector<4x32xf32>
    tpu.vector_store %arg8[%c0_193, %c0_194], %458 {strides = array<i32>} : memref<4x32xf32, #tpu.memory_space<vmem>>, vector<4x32xf32>,
    %c0_195 = arith.constant 0 : index
    %c0_196 = arith.constant 0 : index
    %493 = vector.load %arg9[%c0_195, %c0_196] : memref<4x32xf32, #tpu.memory_space<vmem>>, vector<4x32xf32>
    tpu.vector_store %arg9[%c0_195, %c0_196], %491 {strides = array<i32>} : memref<4x32xf32, #tpu.memory_space<vmem>>, vector<4x32xf32>,
    %494 = arith.index_cast %c5_i32 : i32 to index
    %c0_197 = arith.constant 0 : index
    %c0_198 = arith.constant 0 : index
    %495 = vector.load %arg5[%494, %c0_197, %c0_198] : memref<8x4x32xf32, #tpu.memory_space<vmem>>, vector<1x4x32xf32>
    %496 = vector.shape_cast %495 : vector<1x4x32xf32> to vector<4x32xf32>
    %497 = vector.shape_cast %458 : vector<4x32xf32> to vector<1x4x32xf32>
    tpu.vector_store %arg5[%494, %c0_197, %c0_198], %497 {strides = array<i32>} : memref<8x4x32xf32, #tpu.memory_space<vmem>>, vector<1x4x32xf32>,
    %498 = arith.index_cast %419 : i32 to index
    %c0_199 = arith.constant 0 : index
    %c0_200 = arith.constant 0 : index
    %499 = vector.load %arg6[%498, %c0_199, %c0_200] : memref<8x4x32xf32, #tpu.memory_space<vmem>>, vector<1x4x32xf32>
    %500 = vector.shape_cast %499 : vector<1x4x32xf32> to vector<4x32xf32>
    %501 = vector.shape_cast %491 : vector<4x32xf32> to vector<1x4x32xf32>
    tpu.vector_store %arg6[%498, %c0_199, %c0_200], %501 {strides = array<i32>} : memref<8x4x32xf32, #tpu.memory_space<vmem>>, vector<1x4x32xf32>,
    %c6_i32 = arith.constant 6 : i32
    %c7_i32_201 = arith.constant 7 : i32
    %502 = arith.subi %c7_i32_201, %c6_i32 : i32
    %503 = arith.index_cast %c6_i32 : i32 to index
    %c0_202 = arith.constant 0 : index
    %c0_203 = arith.constant 0 : index
    %504 = vector.load %arg0[%503, %c0_202, %c0_203] : memref<8x4x192xf32, #tpu.memory_space<vmem>>, vector<1x4x192xf32>
    %505 = vector.shape_cast %504 : vector<1x4x192xf32> to vector<4x192xf32>
    %506 = arith.index_cast %502 : i32 to index
    %c0_204 = arith.constant 0 : index
    %c0_205 = arith.constant 0 : index
    %507 = vector.load %arg0[%506, %c0_204, %c0_205] : memref<8x4x192xf32, #tpu.memory_space<vmem>>, vector<1x4x192xf32>
    %508 = vector.shape_cast %507 : vector<1x4x192xf32> to vector<4x192xf32>
    %509 = vector.extract_strided_slice %505 {offsets = [0, 0], sizes = [4, 96], strides = [1, 1]} : vector<4x192xf32> to vector<4x96xf32>
    %c0_206 = arith.constant 0 : index
    %c0_207 = arith.constant 0 : index
    %510 = vector.load %arg8[%c0_206, %c0_207] : memref<4x32xf32, #tpu.memory_space<vmem>>, vector<4x32xf32>
    %c0_208 = arith.constant 0 : index
    %c0_209 = arith.constant 0 : index
    %511 = vector.load %arg1[%c0_208, %c0_209] : memref<32x96xf32, #tpu.memory_space<vmem>>, vector<32x96xf32>
    %cst_210 = arith.constant dense<0.000000e+00> : vector<4x96xf32>
    %512 = tpu.matmul %510, %511, %cst_210 {dimension_numbers = #tpu.dot_dimension_numbers<[1], [0], [0], [1], [0, 0, 1, 1], [], []>} : vector<4x32xf32>, vector<32x96xf32>, vector<4x96xf32> -> vector<4x96xf32>
    %c0_211 = arith.constant 0 : index
    %c0_212 = arith.constant 0 : index
    %513 = vector.load %arg2[%c0_211, %c0_212] : memref<1x96xf32, #tpu.memory_space<vmem>>, vector<1x96xf32>
    %514 = vector.broadcast %513 : vector<1x96xf32> to vector<4x96xf32>
    %515 = arith.addf %512, %514 : vector<4x96xf32>
    %516 = vector.extract_strided_slice %509 {offsets = [0, 0], sizes = [4, 32], strides = [1, 1]} : vector<4x96xf32> to vector<4x32xf32>
    %517 = vector.extract_strided_slice %515 {offsets = [0, 0], sizes = [4, 32], strides = [1, 1]} : vector<4x96xf32> to vector<4x32xf32>
    %518 = arith.addf %516, %517 : vector<4x32xf32>
    %519 = arith.negf %518 : vector<4x32xf32>
    %520 = math.exp %519 : vector<4x32xf32>
    %cst_213 = arith.constant 1.000000e+00 : f32
    %521 = vector.broadcast %cst_213 : f32 to vector<4x32xf32>
    %522 = arith.addf %521, %520 : vector<4x32xf32>
    %523 = arith.divf %521, %522 : vector<4x32xf32>
    %524 = vector.extract_strided_slice %509 {offsets = [0, 32], sizes = [4, 32], strides = [1, 1]} : vector<4x96xf32> to vector<4x32xf32>
    %525 = vector.extract_strided_slice %515 {offsets = [0, 32], sizes = [4, 32], strides = [1, 1]} : vector<4x96xf32> to vector<4x32xf32>
    %526 = arith.addf %524, %525 : vector<4x32xf32>
    %527 = arith.negf %526 : vector<4x32xf32>
    %528 = math.exp %527 : vector<4x32xf32>
    %cst_214 = arith.constant 1.000000e+00 : f32
    %529 = vector.broadcast %cst_214 : f32 to vector<4x32xf32>
    %530 = arith.addf %529, %528 : vector<4x32xf32>
    %531 = arith.divf %529, %530 : vector<4x32xf32>
    %532 = vector.extract_strided_slice %509 {offsets = [0, 64], sizes = [4, 32], strides = [1, 1]} : vector<4x96xf32> to vector<4x32xf32>
    %533 = vector.extract_strided_slice %515 {offsets = [0, 64], sizes = [4, 32], strides = [1, 1]} : vector<4x96xf32> to vector<4x32xf32>
    %534 = arith.mulf %523, %533 : vector<4x32xf32>
    %535 = arith.addf %532, %534 : vector<4x32xf32>
    %536 = math.tanh %535 : vector<4x32xf32>
    %cst_215 = arith.constant 1.000000e+00 : f32
    %537 = vector.broadcast %cst_215 : f32 to vector<4x32xf32>
    %538 = arith.subf %537, %531 : vector<4x32xf32>
    %539 = arith.mulf %538, %536 : vector<4x32xf32>
    %540 = arith.mulf %531, %510 : vector<4x32xf32>
    %541 = arith.addf %539, %540 : vector<4x32xf32>
    %542 = vector.extract_strided_slice %508 {offsets = [0, 96], sizes = [4, 96], strides = [1, 1]} : vector<4x192xf32> to vector<4x96xf32>
    %c0_216 = arith.constant 0 : index
    %c0_217 = arith.constant 0 : index
    %543 = vector.load %arg9[%c0_216, %c0_217] : memref<4x32xf32, #tpu.memory_space<vmem>>, vector<4x32xf32>
    %c0_218 = arith.constant 0 : index
    %c0_219 = arith.constant 0 : index
    %544 = vector.load %arg3[%c0_218, %c0_219] : memref<32x96xf32, #tpu.memory_space<vmem>>, vector<32x96xf32>
    %cst_220 = arith.constant dense<0.000000e+00> : vector<4x96xf32>
    %545 = tpu.matmul %543, %544, %cst_220 {dimension_numbers = #tpu.dot_dimension_numbers<[1], [0], [0], [1], [0, 0, 1, 1], [], []>} : vector<4x32xf32>, vector<32x96xf32>, vector<4x96xf32> -> vector<4x96xf32>
    %c0_221 = arith.constant 0 : index
    %c0_222 = arith.constant 0 : index
    %546 = vector.load %arg4[%c0_221, %c0_222] : memref<1x96xf32, #tpu.memory_space<vmem>>, vector<1x96xf32>
    %547 = vector.broadcast %546 : vector<1x96xf32> to vector<4x96xf32>
    %548 = arith.addf %545, %547 : vector<4x96xf32>
    %549 = vector.extract_strided_slice %542 {offsets = [0, 0], sizes = [4, 32], strides = [1, 1]} : vector<4x96xf32> to vector<4x32xf32>
    %550 = vector.extract_strided_slice %548 {offsets = [0, 0], sizes = [4, 32], strides = [1, 1]} : vector<4x96xf32> to vector<4x32xf32>
    %551 = arith.addf %549, %550 : vector<4x32xf32>
    %552 = arith.negf %551 : vector<4x32xf32>
    %553 = math.exp %552 : vector<4x32xf32>
    %cst_223 = arith.constant 1.000000e+00 : f32
    %554 = vector.broadcast %cst_223 : f32 to vector<4x32xf32>
    %555 = arith.addf %554, %553 : vector<4x32xf32>
    %556 = arith.divf %554, %555 : vector<4x32xf32>
    %557 = vector.extract_strided_slice %542 {offsets = [0, 32], sizes = [4, 32], strides = [1, 1]} : vector<4x96xf32> to vector<4x32xf32>
    %558 = vector.extract_strided_slice %548 {offsets = [0, 32], sizes = [4, 32], strides = [1, 1]} : vector<4x96xf32> to vector<4x32xf32>
    %559 = arith.addf %557, %558 : vector<4x32xf32>
    %560 = arith.negf %559 : vector<4x32xf32>
    %561 = math.exp %560 : vector<4x32xf32>
    %cst_224 = arith.constant 1.000000e+00 : f32
    %562 = vector.broadcast %cst_224 : f32 to vector<4x32xf32>
    %563 = arith.addf %562, %561 : vector<4x32xf32>
    %564 = arith.divf %562, %563 : vector<4x32xf32>
    %565 = vector.extract_strided_slice %542 {offsets = [0, 64], sizes = [4, 32], strides = [1, 1]} : vector<4x96xf32> to vector<4x32xf32>
    %566 = vector.extract_strided_slice %548 {offsets = [0, 64], sizes = [4, 32], strides = [1, 1]} : vector<4x96xf32> to vector<4x32xf32>
    %567 = arith.mulf %556, %566 : vector<4x32xf32>
    %568 = arith.addf %565, %567 : vector<4x32xf32>
    %569 = math.tanh %568 : vector<4x32xf32>
    %cst_225 = arith.constant 1.000000e+00 : f32
    %570 = vector.broadcast %cst_225 : f32 to vector<4x32xf32>
    %571 = arith.subf %570, %564 : vector<4x32xf32>
    %572 = arith.mulf %571, %569 : vector<4x32xf32>
    %573 = arith.mulf %564, %543 : vector<4x32xf32>
    %574 = arith.addf %572, %573 : vector<4x32xf32>
    %c0_226 = arith.constant 0 : index
    %c0_227 = arith.constant 0 : index
    %575 = vector.load %arg8[%c0_226, %c0_227] : memref<4x32xf32, #tpu.memory_space<vmem>>, vector<4x32xf32>
    tpu.vector_store %arg8[%c0_226, %c0_227], %541 {strides = array<i32>} : memref<4x32xf32, #tpu.memory_space<vmem>>, vector<4x32xf32>,
    %c0_228 = arith.constant 0 : index
    %c0_229 = arith.constant 0 : index
    %576 = vector.load %arg9[%c0_228, %c0_229] : memref<4x32xf32, #tpu.memory_space<vmem>>, vector<4x32xf32>
    tpu.vector_store %arg9[%c0_228, %c0_229], %574 {strides = array<i32>} : memref<4x32xf32, #tpu.memory_space<vmem>>, vector<4x32xf32>,
    %577 = arith.index_cast %c6_i32 : i32 to index
    %c0_230 = arith.constant 0 : index
    %c0_231 = arith.constant 0 : index
    %578 = vector.load %arg5[%577, %c0_230, %c0_231] : memref<8x4x32xf32, #tpu.memory_space<vmem>>, vector<1x4x32xf32>
    %579 = vector.shape_cast %578 : vector<1x4x32xf32> to vector<4x32xf32>
    %580 = vector.shape_cast %541 : vector<4x32xf32> to vector<1x4x32xf32>
    tpu.vector_store %arg5[%577, %c0_230, %c0_231], %580 {strides = array<i32>} : memref<8x4x32xf32, #tpu.memory_space<vmem>>, vector<1x4x32xf32>,
    %581 = arith.index_cast %502 : i32 to index
    %c0_232 = arith.constant 0 : index
    %c0_233 = arith.constant 0 : index
    %582 = vector.load %arg6[%581, %c0_232, %c0_233] : memref<8x4x32xf32, #tpu.memory_space<vmem>>, vector<1x4x32xf32>
    %583 = vector.shape_cast %582 : vector<1x4x32xf32> to vector<4x32xf32>
    %584 = vector.shape_cast %574 : vector<4x32xf32> to vector<1x4x32xf32>
    tpu.vector_store %arg6[%581, %c0_232, %c0_233], %584 {strides = array<i32>} : memref<8x4x32xf32, #tpu.memory_space<vmem>>, vector<1x4x32xf32>,
    %c7_i32_234 = arith.constant 7 : i32
    %c7_i32_235 = arith.constant 7 : i32
    %585 = arith.subi %c7_i32_235, %c7_i32_234 : i32
    %586 = arith.index_cast %c7_i32_234 : i32 to index
    %c0_236 = arith.constant 0 : index
    %c0_237 = arith.constant 0 : index
    %587 = vector.load %arg0[%586, %c0_236, %c0_237] : memref<8x4x192xf32, #tpu.memory_space<vmem>>, vector<1x4x192xf32>
    %588 = vector.shape_cast %587 : vector<1x4x192xf32> to vector<4x192xf32>
    %589 = arith.index_cast %585 : i32 to index
    %c0_238 = arith.constant 0 : index
    %c0_239 = arith.constant 0 : index
    %590 = vector.load %arg0[%589, %c0_238, %c0_239] : memref<8x4x192xf32, #tpu.memory_space<vmem>>, vector<1x4x192xf32>
    %591 = vector.shape_cast %590 : vector<1x4x192xf32> to vector<4x192xf32>
    %592 = vector.extract_strided_slice %588 {offsets = [0, 0], sizes = [4, 96], strides = [1, 1]} : vector<4x192xf32> to vector<4x96xf32>
    %c0_240 = arith.constant 0 : index
    %c0_241 = arith.constant 0 : index
    %593 = vector.load %arg8[%c0_240, %c0_241] : memref<4x32xf32, #tpu.memory_space<vmem>>, vector<4x32xf32>
    %c0_242 = arith.constant 0 : index
    %c0_243 = arith.constant 0 : index
    %594 = vector.load %arg1[%c0_242, %c0_243] : memref<32x96xf32, #tpu.memory_space<vmem>>, vector<32x96xf32>
    %cst_244 = arith.constant dense<0.000000e+00> : vector<4x96xf32>
    %595 = tpu.matmul %593, %594, %cst_244 {dimension_numbers = #tpu.dot_dimension_numbers<[1], [0], [0], [1], [0, 0, 1, 1], [], []>} : vector<4x32xf32>, vector<32x96xf32>, vector<4x96xf32> -> vector<4x96xf32>
    %c0_245 = arith.constant 0 : index
    %c0_246 = arith.constant 0 : index
    %596 = vector.load %arg2[%c0_245, %c0_246] : memref<1x96xf32, #tpu.memory_space<vmem>>, vector<1x96xf32>
    %597 = vector.broadcast %596 : vector<1x96xf32> to vector<4x96xf32>
    %598 = arith.addf %595, %597 : vector<4x96xf32>
    %599 = vector.extract_strided_slice %592 {offsets = [0, 0], sizes = [4, 32], strides = [1, 1]} : vector<4x96xf32> to vector<4x32xf32>
    %600 = vector.extract_strided_slice %598 {offsets = [0, 0], sizes = [4, 32], strides = [1, 1]} : vector<4x96xf32> to vector<4x32xf32>
    %601 = arith.addf %599, %600 : vector<4x32xf32>
    %602 = arith.negf %601 : vector<4x32xf32>
    %603 = math.exp %602 : vector<4x32xf32>
    %cst_247 = arith.constant 1.000000e+00 : f32
    %604 = vector.broadcast %cst_247 : f32 to vector<4x32xf32>
    %605 = arith.addf %604, %603 : vector<4x32xf32>
    %606 = arith.divf %604, %605 : vector<4x32xf32>
    %607 = vector.extract_strided_slice %592 {offsets = [0, 32], sizes = [4, 32], strides = [1, 1]} : vector<4x96xf32> to vector<4x32xf32>
    %608 = vector.extract_strided_slice %598 {offsets = [0, 32], sizes = [4, 32], strides = [1, 1]} : vector<4x96xf32> to vector<4x32xf32>
    %609 = arith.addf %607, %608 : vector<4x32xf32>
    %610 = arith.negf %609 : vector<4x32xf32>
    %611 = math.exp %610 : vector<4x32xf32>
    %cst_248 = arith.constant 1.000000e+00 : f32
    %612 = vector.broadcast %cst_248 : f32 to vector<4x32xf32>
    %613 = arith.addf %612, %611 : vector<4x32xf32>
    %614 = arith.divf %612, %613 : vector<4x32xf32>
    %615 = vector.extract_strided_slice %592 {offsets = [0, 64], sizes = [4, 32], strides = [1, 1]} : vector<4x96xf32> to vector<4x32xf32>
    %616 = vector.extract_strided_slice %598 {offsets = [0, 64], sizes = [4, 32], strides = [1, 1]} : vector<4x96xf32> to vector<4x32xf32>
    %617 = arith.mulf %606, %616 : vector<4x32xf32>
    %618 = arith.addf %615, %617 : vector<4x32xf32>
    %619 = math.tanh %618 : vector<4x32xf32>
    %cst_249 = arith.constant 1.000000e+00 : f32
    %620 = vector.broadcast %cst_249 : f32 to vector<4x32xf32>
    %621 = arith.subf %620, %614 : vector<4x32xf32>
    %622 = arith.mulf %621, %619 : vector<4x32xf32>
    %623 = arith.mulf %614, %593 : vector<4x32xf32>
    %624 = arith.addf %622, %623 : vector<4x32xf32>
    %625 = vector.extract_strided_slice %591 {offsets = [0, 96], sizes = [4, 96], strides = [1, 1]} : vector<4x192xf32> to vector<4x96xf32>
    %c0_250 = arith.constant 0 : index
    %c0_251 = arith.constant 0 : index
    %626 = vector.load %arg9[%c0_250, %c0_251] : memref<4x32xf32, #tpu.memory_space<vmem>>, vector<4x32xf32>
    %c0_252 = arith.constant 0 : index
    %c0_253 = arith.constant 0 : index
    %627 = vector.load %arg3[%c0_252, %c0_253] : memref<32x96xf32, #tpu.memory_space<vmem>>, vector<32x96xf32>
    %cst_254 = arith.constant dense<0.000000e+00> : vector<4x96xf32>
    %628 = tpu.matmul %626, %627, %cst_254 {dimension_numbers = #tpu.dot_dimension_numbers<[1], [0], [0], [1], [0, 0, 1, 1], [], []>} : vector<4x32xf32>, vector<32x96xf32>, vector<4x96xf32> -> vector<4x96xf32>
    %c0_255 = arith.constant 0 : index
    %c0_256 = arith.constant 0 : index
    %629 = vector.load %arg4[%c0_255, %c0_256] : memref<1x96xf32, #tpu.memory_space<vmem>>, vector<1x96xf32>
    %630 = vector.broadcast %629 : vector<1x96xf32> to vector<4x96xf32>
    %631 = arith.addf %628, %630 : vector<4x96xf32>
    %632 = vector.extract_strided_slice %625 {offsets = [0, 0], sizes = [4, 32], strides = [1, 1]} : vector<4x96xf32> to vector<4x32xf32>
    %633 = vector.extract_strided_slice %631 {offsets = [0, 0], sizes = [4, 32], strides = [1, 1]} : vector<4x96xf32> to vector<4x32xf32>
    %634 = arith.addf %632, %633 : vector<4x32xf32>
    %635 = arith.negf %634 : vector<4x32xf32>
    %636 = math.exp %635 : vector<4x32xf32>
    %cst_257 = arith.constant 1.000000e+00 : f32
    %637 = vector.broadcast %cst_257 : f32 to vector<4x32xf32>
    %638 = arith.addf %637, %636 : vector<4x32xf32>
    %639 = arith.divf %637, %638 : vector<4x32xf32>
    %640 = vector.extract_strided_slice %625 {offsets = [0, 32], sizes = [4, 32], strides = [1, 1]} : vector<4x96xf32> to vector<4x32xf32>
    %641 = vector.extract_strided_slice %631 {offsets = [0, 32], sizes = [4, 32], strides = [1, 1]} : vector<4x96xf32> to vector<4x32xf32>
    %642 = arith.addf %640, %641 : vector<4x32xf32>
    %643 = arith.negf %642 : vector<4x32xf32>
    %644 = math.exp %643 : vector<4x32xf32>
    %cst_258 = arith.constant 1.000000e+00 : f32
    %645 = vector.broadcast %cst_258 : f32 to vector<4x32xf32>
    %646 = arith.addf %645, %644 : vector<4x32xf32>
    %647 = arith.divf %645, %646 : vector<4x32xf32>
    %648 = vector.extract_strided_slice %625 {offsets = [0, 64], sizes = [4, 32], strides = [1, 1]} : vector<4x96xf32> to vector<4x32xf32>
    %649 = vector.extract_strided_slice %631 {offsets = [0, 64], sizes = [4, 32], strides = [1, 1]} : vector<4x96xf32> to vector<4x32xf32>
    %650 = arith.mulf %639, %649 : vector<4x32xf32>
    %651 = arith.addf %648, %650 : vector<4x32xf32>
    %652 = math.tanh %651 : vector<4x32xf32>
    %cst_259 = arith.constant 1.000000e+00 : f32
    %653 = vector.broadcast %cst_259 : f32 to vector<4x32xf32>
    %654 = arith.subf %653, %647 : vector<4x32xf32>
    %655 = arith.mulf %654, %652 : vector<4x32xf32>
    %656 = arith.mulf %647, %626 : vector<4x32xf32>
    %657 = arith.addf %655, %656 : vector<4x32xf32>
    %c0_260 = arith.constant 0 : index
    %c0_261 = arith.constant 0 : index
    %658 = vector.load %arg8[%c0_260, %c0_261] : memref<4x32xf32, #tpu.memory_space<vmem>>, vector<4x32xf32>
    tpu.vector_store %arg8[%c0_260, %c0_261], %624 {strides = array<i32>} : memref<4x32xf32, #tpu.memory_space<vmem>>, vector<4x32xf32>,
    %c0_262 = arith.constant 0 : index
    %c0_263 = arith.constant 0 : index
    %659 = vector.load %arg9[%c0_262, %c0_263] : memref<4x32xf32, #tpu.memory_space<vmem>>, vector<4x32xf32>
    tpu.vector_store %arg9[%c0_262, %c0_263], %657 {strides = array<i32>} : memref<4x32xf32, #tpu.memory_space<vmem>>, vector<4x32xf32>,
    %660 = arith.index_cast %c7_i32_234 : i32 to index
    %c0_264 = arith.constant 0 : index
    %c0_265 = arith.constant 0 : index
    %661 = vector.load %arg5[%660, %c0_264, %c0_265] : memref<8x4x32xf32, #tpu.memory_space<vmem>>, vector<1x4x32xf32>
    %662 = vector.shape_cast %661 : vector<1x4x32xf32> to vector<4x32xf32>
    %663 = vector.shape_cast %624 : vector<4x32xf32> to vector<1x4x32xf32>
    tpu.vector_store %arg5[%660, %c0_264, %c0_265], %663 {strides = array<i32>} : memref<8x4x32xf32, #tpu.memory_space<vmem>>, vector<1x4x32xf32>,
    %664 = arith.index_cast %585 : i32 to index
    %c0_266 = arith.constant 0 : index
    %c0_267 = arith.constant 0 : index
    %665 = vector.load %arg6[%664, %c0_266, %c0_267] : memref<8x4x32xf32, #tpu.memory_space<vmem>>, vector<1x4x32xf32>
    %666 = vector.shape_cast %665 : vector<1x4x32xf32> to vector<4x32xf32>
    %667 = vector.shape_cast %657 : vector<4x32xf32> to vector<1x4x32xf32>
    tpu.vector_store %arg6[%664, %c0_266, %c0_267], %667 {strides = array<i32>} : memref<8x4x32xf32, #tpu.memory_space<vmem>>, vector<1x4x32xf32>,
    %c8_i32 = arith.constant 8 : i32
    %c0_268 = arith.constant 0 : index
    %c0_269 = arith.constant 0 : index
    %668 = vector.load %arg8[%c0_268, %c0_269] : memref<4x32xf32, #tpu.memory_space<vmem>>, vector<4x32xf32>
    %c0_270 = arith.constant 0 : index
    %c0_271 = arith.constant 0 : index
    %c0_272 = arith.constant 0 : index
    %669 = vector.load %arg7[%c0_270, %c0_271, %c0_272] : memref<2x4x32xf32, #tpu.memory_space<vmem>>, vector<1x4x32xf32>
    %670 = vector.shape_cast %669 : vector<1x4x32xf32> to vector<4x32xf32>
    %671 = vector.shape_cast %668 : vector<4x32xf32> to vector<1x4x32xf32>
    tpu.vector_store %arg7[%c0_270, %c0_271, %c0_272], %671 {strides = array<i32>} : memref<2x4x32xf32, #tpu.memory_space<vmem>>, vector<1x4x32xf32>,
    %c0_273 = arith.constant 0 : index
    %c0_274 = arith.constant 0 : index
    %672 = vector.load %arg9[%c0_273, %c0_274] : memref<4x32xf32, #tpu.memory_space<vmem>>, vector<4x32xf32>
    %c1 = arith.constant 1 : index
    %c0_275 = arith.constant 0 : index
    %c0_276 = arith.constant 0 : index
    %673 = vector.load %arg7[%c1, %c0_275, %c0_276] : memref<2x4x32xf32, #tpu.memory_space<vmem>>, vector<1x4x32xf32>
    %674 = vector.shape_cast %673 : vector<1x4x32xf32> to vector<4x32xf32>
    %675 = vector.shape_cast %672 : vector<4x32xf32> to vector<1x4x32xf32>
    tpu.vector_store %arg7[%c1, %c0_275, %c0_276], %675 {strides = array<i32>} : memref<2x4x32xf32, #tpu.memory_space<vmem>>, vector<1x4x32xf32>,
    return
  }
}

</mosaic_0001>

<bundles_post_ra>
// kernel: encoder_seq2seq_forward.4
= control target key start
LH: loop header
LB: loop body
LE: loop exit
PB: predicated region body
PF: predicated region fallthrough
CT: control target
= control target key end

     0   :  { %14 = vsyncpa [#allocation3], 0  ;;  %s693_s0 = inlined_call_operand.hbm [shape: f32[32,16], index: 0, kind: input, shape index: {}]   ;;  %s694_s1 = inlined_call_operand.hbm [shape: f32[16,16], index: 1, kind: input, shape index: {}]   ;;  %s695_s2 = inlined_call_operand.vmem [shape: f32[1,16], index: 2, kind: input, shape index: {}]   ;;  %s696_s3 = inlined_call_operand.hbm [shape: f32[16,32], index: 3, kind: input, shape index: {}]   ;;  %s697_s4 = inlined_call_operand.vmem [shape: f32[1,32], index: 4, kind: input, shape index: {}]   ;;  %s698_s5 = inlined_call_operand.hbm [shape: f32[32,32], index: 5, kind: input, shape index: {}]   ;;  %s699_s6 = inlined_call_operand.vmem [shape: f32[1,32], index: 6, kind: input, shape index: {}]   ;;  %s700_s7 = inlined_call_operand.hbm [shape: f32[32,192], index: 7, kind: input, shape index: {}]   ;;  %s701_s8 = inlined_call_operand.vmem [shape: f32[1,192], index: 8, kind: input, shape index: {}]   ;;  %s702_s9 = inlined_call_operand.vmem [shape: f32[32,192], index: 9, kind: output, shape index: {}]  }
   0x1   :  { %15 = vsyncpa [#allocation5], 0 }
   0x2   :  { %16 = vsyncpa [#allocation8], 0  ;;  %s34_s11 = sshll.u32 %s694_s1, 4  ;;  %s559_s12 = smov [#allocation4]   ;;  %s35_s11 = int_to_ptr.hbm [resolvable:$true] %s34_s11 }
   0x3   :  { %s36_s13 = sshll.u32 %s559_s12, 4  ;;  %s64_s16 = sshll.u32 %s698_s5, 4  ;;  %s37_s13 = int_to_ptr.vmem [resolvable:$true] %s36_s13  ;;  %s65_s16 = int_to_ptr.hbm [resolvable:$true] %s64_s16 }
   0x4   :  { %s560_s17 = smov 128   ;;  %s561_s18 = smov 8  }
   0x5   :  { %42 = dma.hbm_to_vmem [thread:$0]  %s35_s11, 256, %s37_s13, [#allocation5], %s560_s17, %s560_s17, %s561_s18  }
   0x6   :  { %s562_s19 = smov [#allocation7]   ;;  %s21_s23 = sshll.u32 %s693_s0, 4  ;;  %s22_s23 = int_to_ptr.hbm [resolvable:$true] %s21_s23 }
   0x7   :  { %s66_s20 = sshll.u32 %s562_s19, 4  ;;  %s49_s25 = sshll.u32 %s696_s3, 4  ;;  %s67_s20 = int_to_ptr.vmem [resolvable:$true] %s66_s20  ;;  %s50_s25 = int_to_ptr.hbm [resolvable:$true] %s49_s25 }
   0x8   :  { %72 = dma.hbm_to_vmem [thread:$0]  %s65_s16, 512, %s67_s20, [#allocation8], %s560_s17, %s560_s17, %s561_s18  }
   0x9   :  { %s563_s26 = smov [#allocation2]   ;;  %s564_s5 = smov [#allocation6]  }
   0xa   :  { %s23_s27 = sshll.u32 %s563_s26, 4  ;;  %s51_s28 = sshll.u32 %s564_s5, 4  ;;  %s24_s27 = int_to_ptr.vmem [resolvable:$true] %s23_s27  ;;  %s52_s28 = int_to_ptr.vmem [resolvable:$true] %s51_s28 }
   0xb   :  { %29 = dma.hbm_to_vmem [thread:$0]  %s22_s23, 512, %s24_s27, [#allocation3], %s560_s17, %s560_s17, %s561_s18  }
   0xc   :  { %s79_s10 = sshll.u32 %s700_s7, 4  ;;  %s565_s0 = smov [#allocation9]   ;;  %s80_s10 = int_to_ptr.hbm [resolvable:$true] %s79_s10 }
   0xd   :  { %57 = dma.hbm_to_vmem [thread:$0]  %s50_s25, 256, %s52_s28, [#allocation5], %s560_s17, %s560_s17, %s561_s18  }
   0xe   :  { %s81_s11 = sshll.u32 %s565_s0, 4  ;;  %s566_s12 = smov 256   ;;  %s82_s11 = int_to_ptr.vmem [resolvable:$true] %s81_s11 }
   0xf   :  { %s567_s13 = smov 16  }
  0x10   :  { %87 = dma.hbm_to_vmem [thread:$0]  %s80_s10, 1024, %s82_s11, [#allocation8], %s566_s12, %s566_s12, %s567_s13  }
  0x11   :  { %553 = dma.done.wait [#allocation3], 512  }
  0x12   :  { %554 = vsyncadd [#allocation3], 4294966784 }
  0x13   :  { %555 = dma.done.wait [#allocation5], 512  }
  0x14   :  { %556 = vsyncadd [#allocation5], 4294966784 }
  0x15   :  { %557 = dma.done.wait [#allocation8], 1536  }
  0x16   :  { %558 = vsyncadd [#allocation8], 4294965760  ;;  %v115_v0 = vld [vmem:[#allocation4 + $0x8] sm:$0xff]  ;;  %v114_v1 = vld [vmem:[#allocation4] sm:$0xff]  ;;  %vm120_vm0 = vcmask 130048   ;;  %vm241_vm6 = vcmask 261120  }
  0x17   :  { %147 = vmatpush.msra.mxu0 %v115_v0  ;;  %v110_v2 = vld [vmem:[#allocation2] sm:$0xff]  ;;  %407 = vmatpush.msra.mxu1 %v115_v0  ;;  %v111_v3 = vld [vmem:[#allocation2 + $0x8] sm:$0xff]  ;;  %v112_v4 = vld [vmem:[#allocation2 + $0x10] sm:$0xff]  ;;  %vm372_vm10 = vcmask 523264  }
  0x18   :  { %408 = vmatpush.msra.mxu2 %v115_v0  ;;  %409 = vmatpush.msra.mxu3 %v115_v0  ;;  %v113_v5 = vld [vmem:[#allocation2 + $0x18] sm:$0xff]  ;;  %v174_v7 = vld [vmem:[#allocation6] sm:$0xff]  ;;  %v422_v8 = vld [vmem:[%s695_s2] ss:$0 sm:$0xff] }
  0x19   :  { %148 = vmatpush.msra.mxu0 %v114_v1  ;;  %410 = vmatpush.msra.mxu1 %v114_v1  ;;  %v175_v6 = vld [vmem:[#allocation6 + $0x8] sm:$0xff]  ;;  %v235_v26 = vld [vmem:[#allocation7 + $0x10] sm:$0xff]  ;;  %v234_v27 = vld [vmem:[#allocation7 + $0x8] sm:$0xff] }
  0x1a   :  { %387 = vmatmul.msk.f32.vlgmr.msra.gmra.mxu0 %vm120_vm0, %v110_v2  ;;  %388 = vmatmul.msk.f32.vlgmr.msra.gmra.mxu1 %vm120_vm0, %v111_v3  ;;  %v236_v9 = vld [vmem:[#allocation7 + $0x18] sm:$0xff]  ;;  %v233_v28 = vld [vmem:[#allocation7] sm:$0xff]  ;;  %v293_v46 = vld [vmem:[#allocation9 + $0x30] sm:$0xff] }
  0x1b   :  { %411 = vmatpush.msra.mxu2 %v114_v1  ;;  %412 = vmatpush.msra.mxu3 %v114_v1  ;;  %v423_v29 = vld [vmem:[%s697_s4] ss:$0 sm:$0xff]  ;;  %v294_v47 = vld [vmem:[#allocation9 + $0x38] sm:$0xff]  ;;  %v292_v49 = vld [vmem:[#allocation9 + $0x28] sm:$0xff] }
  0x1c   :  { %389 = vmatmul.msk.f32.vlgmr.msra.gmra.mxu2 %vm120_vm0, %v112_v4  ;;  %390 = vmatmul.msk.f32.vlgmr.msra.gmra.mxu3 %vm120_vm0, %v113_v5  ;;  %v291_v48 = vld [vmem:[#allocation9 + $0x20] sm:$0xff]  ;;  %v289_v50 = vld [vmem:[#allocation9 + $0x10] sm:$0xff]  ;;  %v290_v51 = vld [vmem:[#allocation9 + $0x18] sm:$0xff] }
  0x1d   :  { %206 = vmatpush.msrb.mxu1 %v175_v6  ;;  %266 = vmatpush.msrb.mxu2 %v236_v9  ;;  %v287_v52 = vld [vmem:[#allocation9] sm:$0xff]  ;;  %v288_v53 = vld [vmem:[#allocation9 + $0x8] sm:$0xff] }
  0x1e   :  { %325 = vmatpush.msrb.mxu3 %v293_v46  ;;  %354 = vmatpush.msrb.mxu0 %v294_v47  ;;  %v424_v54 = vld [vmem:[%s699_s6] ss:$0 sm:$0xff] }
  0x1f   :  { %207 = vmatpush.msrb.mxu1 %v174_v7  ;;  %267 = vmatpush.msrb.mxu2 %v235_v26  ;;  %v295_v3 = vld [vmem:[%s701_s8] sm:$0x3] }
  0x20   :  { %326 = vmatpush.msrb.mxu3 %v291_v48  ;;  %355 = vmatpush.msrb.mxu0 %v292_v49  ;;  %v298_v4 = vperm.slane %v295_v3, 1  ;;  %v297_v7 = vperm.slane %v295_v3, 0 }
  0x21   :  { %268 = vmatpush.msrb.mxu2 %v234_v27 }
  0x22   :  { %327 = vmatpush.msrb.mxu3 %v289_v50  ;;  %356 = vmatpush.msrb.mxu0 %v290_v51 }
  0x23   :  { %269 = vmatpush.msrb.mxu2 %v233_v28 }
  0x24   :  { %328 = vmatpush.msrb.mxu3 %v287_v52  ;;  %357 = vmatpush.msrb.mxu0 %v288_v53 }
  0x97   :  { %v150_v10 = vpop.f32.mrf.mxu0  ;;  %v153_v12 = vpop.f32.mrf.mxu1 }
  0x98   :  { %v151_v11 = vadd.f32 %v422_v8, %v150_v10  ;;  %v154_v14 = vadd.f32 %v422_v8, %v153_v12 }
  0x9a   :  { %vm162_vm1 = vcmp.gt.f32.partialorder %v151_v11, 0.0  ;;  %v166_v13 = vmul.f32 0.01, %v151_v11  ;;  %v167_v16 = vmul.f32 0.01, %v154_v14  ;;  %vm163_vm2 = vcmp.gt.f32.partialorder %v154_v14, 0.0 }
  0x9c   :  { %v170_v15 = vsel %vm162_vm1, %v151_v11, %v166_v13  ;;  %v171_v19 = vsel %vm163_vm2, %v154_v14, %v167_v16 }
  0x9d   :  { %391 = vmatmul.msk.f32.vlgmr.msrb.gmra.mxu1 %vm120_vm0, %v170_v15 }
  0x9f   :  { %v156_v17 = vpop.f32.mrf.mxu2  ;;  %v159_v21 = vpop.f32.mrf.mxu3 }
  0xa0   :  { %v157_v18 = vadd.f32 %v422_v8, %v156_v17  ;;  %v160_v22 = vadd.f32 %v422_v8, %v159_v21 }
  0xa2   :  { %v168_v20 = vmul.f32 0.01, %v157_v18  ;;  %vm164_vm3 = vcmp.gt.f32.partialorder %v157_v18, 0.0  ;;  %v169_v24 = vmul.f32 0.01, %v160_v22  ;;  %vm165_vm4 = vcmp.gt.f32.partialorder %v160_v22, 0.0 }
  0xa4   :  { %v172_v23 = vsel %vm164_vm3, %v157_v18, %v168_v20  ;;  %v173_v25 = vsel %vm165_vm4, %v160_v22, %v169_v24 }
  0xa5   :  { %392 = vmatmul.msk.f32.gmra.mxu1 %vm120_vm0, %v171_v19 }
  0xad   :  { %393 = vmatmul.msk.f32.gmra.mxu1 %vm120_vm0, %v172_v23 }
  0xb5   :  { %394 = vmatmul.msk.f32.gmra.mxu1 %vm120_vm0, %v173_v25 }
 0x11a   :  { %v209_v30 = vpop.f32.mrf.mxu1 }
 0x11b   :  { %v210_v31 = vadd.f32 %v423_v29, %v209_v30 }
 0x11d   :  { %vm221_vm5 = vcmp.gt.f32.partialorder %v210_v31, 0.0  ;;  %v225_v32 = vmul.f32 0.01, %v210_v31 }
 0x11f   :  { %v229_v33 = vsel %vm221_vm5, %v210_v31, %v225_v32 }
 0x120   :  { %395 = vmatmul.msk.f32.vlgmr.msrb.gmra.mxu2 %vm241_vm6, %v229_v33 }
 0x122   :  { %v212_v34 = vpop.f32.mrf.mxu1 }
 0x123   :  { %v213_v35 = vadd.f32 %v423_v29, %v212_v34 }
 0x125   :  { %v226_v36 = vmul.f32 0.01, %v213_v35  ;;  %vm222_vm7 = vcmp.gt.f32.partialorder %v213_v35, 0.0 }
 0x127   :  { %v230_v37 = vsel %vm222_vm7, %v213_v35, %v226_v36 }
 0x128   :  { %396 = vmatmul.msk.f32.gmra.mxu2 %vm241_vm6, %v230_v37 }
 0x12a   :  { %v215_v38 = vpop.f32.mrf.mxu1 }
 0x12b   :  { %v216_v39 = vadd.f32 %v423_v29, %v215_v38 }
 0x12d   :  { %v227_v40 = vmul.f32 0.01, %v216_v39  ;;  %vm223_vm8 = vcmp.gt.f32.partialorder %v216_v39, 0.0 }
 0x12f   :  { %v231_v41 = vsel %vm223_vm8, %v216_v39, %v227_v40 }
 0x130   :  { %397 = vmatmul.msk.f32.gmra.mxu2 %vm241_vm6, %v231_v41 }
 0x132   :  { %v218_v42 = vpop.f32.mrf.mxu1 }
 0x133   :  { %v219_v43 = vadd.f32 %v423_v29, %v218_v42 }
 0x135   :  { %v228_v44 = vmul.f32 0.01, %v219_v43  ;;  %vm224_vm9 = vcmp.gt.f32.partialorder %v219_v43, 0.0 }
 0x137   :  { %v232_v45 = vsel %vm224_vm9, %v219_v43, %v228_v44 }
 0x138   :  { %398 = vmatmul.msk.f32.gmra.mxu2 %vm241_vm6, %v232_v45 }
 0x1a3   :  { %v271_v55 = vpop.f32.mrf.mxu2 }
 0x1a4   :  { %v272_v56 = vadd.f32 %v424_v54, %v271_v55 }
 0x1a6   :  { %425 = vtanh.f32 %v272_v56 }
 0x1ab   :  { %v274_v57 = vpop.f32.mrf.mxu2 }
 0x1ac   :  { %v426_v58 = vpop.eup %425  ;;  %v275_v59 = vadd.f32 %v424_v54, %v274_v57 }
 0x1ad   :  { %399 = vmatmul.msk.f32.vlgmr.msrb.gmra.mxu3 %vm241_vm6, %v426_v58  ;;  %403 = vmatmul.msk.f32.vlgmr.msrb.gmra.mxu0 %vm241_vm6, %v426_v58 }
 0x1ae   :  { %427 = vtanh.f32 %v275_v59 }
 0x1b3   :  { %v277_v60 = vpop.f32.mrf.mxu2 }
 0x1b4   :  { %v428_v61 = vpop.eup %427  ;;  %v278_v62 = vadd.f32 %v424_v54, %v277_v60 }
 0x1b5   :  { %400 = vmatmul.msk.f32.gmra.mxu3 %vm241_vm6, %v428_v61  ;;  %404 = vmatmul.msk.f32.gmra.mxu0 %vm241_vm6, %v428_v61 }
 0x1b6   :  { %429 = vtanh.f32 %v278_v62 }
 0x1bb   :  { %v280_v63 = vpop.f32.mrf.mxu2 }
 0x1bc   :  { %v430_v0 = vpop.eup %429  ;;  %v281_v1 = vadd.f32 %v424_v54, %v280_v63 }
 0x1bd   :  { %401 = vmatmul.msk.f32.gmra.mxu3 %vm241_vm6, %v430_v0  ;;  %405 = vmatmul.msk.f32.gmra.mxu0 %vm241_vm6, %v430_v0 }
 0x1be   :  { %431 = vtanh.f32 %v281_v1 }
 0x1c4   :  { %v432_v2 = vpop.eup %431 }
 0x1c5   :  { %402 = vmatmul.msk.f32.gmra.mxu3 %vm241_vm6, %v432_v2  ;;  %406 = vmatmul.msk.f32.gmra.mxu0 %vm241_vm6, %v432_v2 }
 0x22a   :  { %v359_v5 = vpop.f32.mrf.mxu0 }
 0x22b   :  { %v360_v6 = vadd.f32 %v359_v5, %v298_v4 }
 0x22d   :  { %373 = vst.msk [vmem:[%s702_s9 + $0x8] sm:$0xff] %vm372_vm10, %v360_v6 }
 0x230   :  { %v330_v8 = vpop.f32.mrf.mxu3 }
 0x231   :  { %v331_v9 = vadd.f32 %v330_v8, %v297_v7 }
 0x232   :  { %v362_v10 = vpop.f32.mrf.mxu0 }
 0x233   :  { %371 = vst [vmem:[%s702_s9] sm:$0xff] %v331_v9  ;;  %v363_v11 = vadd.f32 %v362_v10, %v298_v4 }
 0x235   :  { %375 = vst.msk [vmem:[%s702_s9 + $0x18] sm:$0xff] %vm372_vm10, %v363_v11 }
 0x238   :  { %v333_v12 = vpop.f32.mrf.mxu3 }
 0x239   :  { %v334_v13 = vadd.f32 %v333_v12, %v297_v7 }
 0x23a   :  { %v365_v14 = vpop.f32.mrf.mxu0 }
 0x23b   :  { %374 = vst [vmem:[%s702_s9 + $0x10] sm:$0xff] %v334_v13  ;;  %v366_v15 = vadd.f32 %v365_v14, %v298_v4 }
 0x23d   :  { %377 = vst.msk [vmem:[%s702_s9 + $0x28] sm:$0xff] %vm372_vm10, %v366_v15 }
 0x240   :  { %v336_v16 = vpop.f32.mrf.mxu3 }
 0x241   :  { %v337_v17 = vadd.f32 %v336_v16, %v297_v7 }
 0x242   :  { %v368_v18 = vpop.f32.mrf.mxu0 }
 0x243   :  { %376 = vst [vmem:[%s702_s9 + $0x20] sm:$0xff] %v337_v17  ;;  %v369_v19 = vadd.f32 %v368_v18, %v298_v4 }
 0x245   :  { %379 = vst.msk [vmem:[%s702_s9 + $0x38] sm:$0xff] %vm372_vm10, %v369_v19 }
 0x248   :  { %v339_v20 = vpop.f32.mrf.mxu3 }
 0x249   :  { %v340_v21 = vadd.f32 %v339_v20, %v297_v7 }
 0x24b   :  { %378 = vst [vmem:[%s702_s9 + $0x30] sm:$0xff] %v340_v21 }
 0x24c   :  { %384 = vsyncpa [#allocation3], 1 }
 0x24d   :  { %385 = vsyncpa [#allocation5], 1 }
 0x24e   :  { %386 = vsyncpa [#allocation8], 1 }

// kernel: encoder_seq2seq_forward.6
= control target key start
LH: loop header
LB: loop body
LE: loop exit
PB: predicated region body
PF: predicated region fallthrough
CT: control target
= control target key end

     0   :  { %vm44_vm0 = vcmask 261120   ;;  %vm200_vm1 = vcmask 523264   ;;  %s377_s2 = inlined_call_operand.vmem [shape: f32[32,192], index: 2, kind: input, shape index: {}]   ;;  %s378_s3 = inlined_call_operand.vmem [shape: f32[32,192], index: 3, kind: input, shape index: {}]   ;;  %s379_s0 = inlined_call_operand.vmem [shape: f32[32,32], index: 0, kind: input, shape index: {}]   ;;  %s380_s1 = inlined_call_operand.vmem [shape: f32[32,32], index: 1, kind: input, shape index: {}]   ;;  %s381_s4 = inlined_call_operand.vmem [shape: f32[1,192], index: 4, kind: input, shape index: {}]   ;;  %s382_s5 = inlined_call_operand.vmem [shape: f32[32,192], index: 5, kind: output, shape index: {}]  }
   0x1   :  { %v30_v0 = vld [vmem:[%s377_s2 + $0x30] sm:$0xff]  ;;  %v31_v1 = vld [vmem:[%s377_s2 + $0x38] sm:$0xff]  ;;  %v28_v2 = vld [vmem:[%s377_s2 + $0x20] sm:$0xff] }
   0x2   :  { %139 = vmatpush.msra.mxu2 %v30_v0  ;;  %168 = vmatpush.msra.mxu3 %v31_v1  ;;  %v29_v3 = vld [vmem:[%s377_s2 + $0x28] sm:$0xff]  ;;  %v26_v4 = vld [vmem:[%s377_s2 + $0x10] sm:$0xff]  ;;  %v27_v5 = vld [vmem:[%s377_s2 + $0x18] sm:$0xff] }
   0x3   :  { %v42_v6 = vld [vmem:[%s378_s3 + $0x30] sm:$0xff]  ;;  %v43_v7 = vld [vmem:[%s378_s3 + $0x38] sm:$0xff]  ;;  %v40_v8 = vld [vmem:[%s378_s3 + $0x20] sm:$0xff] }
   0x4   :  { %140 = vmatpush.msra.mxu2 %v28_v2  ;;  %169 = vmatpush.msra.mxu3 %v29_v3  ;;  %v24_v9 = vld [vmem:[%s377_s2] sm:$0xff]  ;;  %v25_v10 = vld [vmem:[%s377_s2 + $0x8] sm:$0xff]  ;;  %v38_v13 = vld [vmem:[%s378_s3 + $0x10] sm:$0xff] }
   0x5   :  { %69 = vmatpush.msra.mxu0 %v42_v6  ;;  %98 = vmatpush.msra.mxu1 %v43_v7  ;;  %v41_v11 = vld [vmem:[%s378_s3 + $0x28] sm:$0xff]  ;;  %v20_v12 = vld [vmem:[%s379_s0] sm:$0xff]  ;;  %v39_v14 = vld [vmem:[%s378_s3 + $0x18] sm:$0xff] }
   0x6   :  { %141 = vmatpush.msra.mxu2 %v26_v4  ;;  %170 = vmatpush.msra.mxu3 %v27_v5  ;;  %v36_v15 = vld [vmem:[%s378_s3] sm:$0xff]  ;;  %v37_v16 = vld [vmem:[%s378_s3 + $0x8] sm:$0xff]  ;;  %v22_v20 = vld [vmem:[%s379_s0 + $0x10] sm:$0xff] }
   0x7   :  { %70 = vmatpush.msra.mxu0 %v40_v8  ;;  %99 = vmatpush.msra.mxu1 %v41_v11  ;;  %v32_v17 = vld [vmem:[%s380_s1] sm:$0xff]  ;;  %v21_v18 = vld [vmem:[%s379_s0 + $0x8] sm:$0xff]  ;;  %v34_v21 = vld [vmem:[%s380_s1 + $0x10] sm:$0xff] }
   0x8   :  { %142 = vmatpush.msra.mxu2 %v24_v9  ;;  %171 = vmatpush.msra.mxu3 %v25_v10  ;;  %v33_v19 = vld [vmem:[%s380_s1 + $0x8] sm:$0xff]  ;;  %v23_v22 = vld [vmem:[%s379_s0 + $0x18] sm:$0xff]  ;;  %v185_v24 = vld [vmem:[%s381_s4] sm:$0x3] }
   0x9   :  { %220 = vmatmul.msk.f32.vlgmr.msra.gmra.mxu2 %vm44_vm0, %v20_v12  ;;  %224 = vmatmul.msk.f32.vlgmr.msra.gmra.mxu3 %vm44_vm0, %v20_v12  ;;  %v35_v23 = vld [vmem:[%s380_s1 + $0x18] sm:$0xff]  ;;  %v187_v27 = vperm.slane %v185_v24, 0  ;;  %v188_v28 = vperm.slane %v185_v24, 1 }
   0xa   :  { %71 = vmatpush.msra.mxu0 %v38_v13  ;;  %100 = vmatpush.msra.mxu1 %v39_v14 }
   0xc   :  { %72 = vmatpush.msra.mxu0 %v36_v15  ;;  %101 = vmatpush.msra.mxu1 %v37_v16 }
   0xd   :  { %212 = vmatmul.msk.f32.vlgmr.msra.gmra.mxu0 %vm44_vm0, %v32_v17  ;;  %216 = vmatmul.msk.f32.vlgmr.msra.gmra.mxu1 %vm44_vm0, %v32_v17 }
  0x11   :  { %221 = vmatmul.msk.f32.gmra.mxu2 %vm44_vm0, %v21_v18  ;;  %225 = vmatmul.msk.f32.gmra.mxu3 %vm44_vm0, %v21_v18 }
  0x15   :  { %213 = vmatmul.msk.f32.gmra.mxu0 %vm44_vm0, %v33_v19  ;;  %217 = vmatmul.msk.f32.gmra.mxu1 %vm44_vm0, %v33_v19 }
  0x19   :  { %222 = vmatmul.msk.f32.gmra.mxu2 %vm44_vm0, %v22_v20  ;;  %226 = vmatmul.msk.f32.gmra.mxu3 %vm44_vm0, %v22_v20 }
  0x1d   :  { %214 = vmatmul.msk.f32.gmra.mxu0 %vm44_vm0, %v34_v21  ;;  %218 = vmatmul.msk.f32.gmra.mxu1 %vm44_vm0, %v34_v21 }
  0x21   :  { %223 = vmatmul.msk.f32.gmra.mxu2 %vm44_vm0, %v23_v22  ;;  %227 = vmatmul.msk.f32.gmra.mxu3 %vm44_vm0, %v23_v22 }
  0x25   :  { %215 = vmatmul.msk.f32.gmra.mxu0 %vm44_vm0, %v35_v23  ;;  %219 = vmatmul.msk.f32.gmra.mxu1 %vm44_vm0, %v35_v23 }
  0x8a   :  { %v74_v25 = vpop.f32.mrf.mxu0  ;;  %v103_v26 = vpop.f32.mrf.mxu1 }
  0x8c   :  { %v144_v29 = vpop.f32.mrf.mxu2  ;;  %v173_v30 = vpop.f32.mrf.mxu3 }
  0x8d   :  { %v145_v31 = vadd.f32 %v144_v29, %v74_v25  ;;  %v174_v32 = vadd.f32 %v173_v30, %v103_v26 }
  0x8f   :  { %v191_v33 = vadd.f32 %v187_v27, %v145_v31  ;;  %v192_v34 = vadd.f32 %v188_v28, %v174_v32 }
  0x91   :  { %199 = vst [vmem:[%s382_s5] sm:$0xff] %v191_v33 }
  0x92   :  { %201 = vst.msk [vmem:[%s382_s5 + $0x8] sm:$0xff] %vm200_vm1, %v192_v34  ;;  %v77_v35 = vpop.f32.mrf.mxu0  ;;  %v106_v36 = vpop.f32.mrf.mxu1 }
  0x94   :  { %v147_v37 = vpop.f32.mrf.mxu2  ;;  %v176_v38 = vpop.f32.mrf.mxu3 }
  0x95   :  { %v148_v39 = vadd.f32 %v147_v37, %v77_v35  ;;  %v177_v40 = vadd.f32 %v176_v38, %v106_v36 }
  0x97   :  { %v193_v41 = vadd.f32 %v187_v27, %v148_v39  ;;  %v194_v42 = vadd.f32 %v188_v28, %v177_v40 }
  0x99   :  { %202 = vst [vmem:[%s382_s5 + $0x10] sm:$0xff] %v193_v41 }
  0x9a   :  { %203 = vst.msk [vmem:[%s382_s5 + $0x18] sm:$0xff] %vm200_vm1, %v194_v42  ;;  %v80_v43 = vpop.f32.mrf.mxu0  ;;  %v109_v44 = vpop.f32.mrf.mxu1 }
  0x9c   :  { %v150_v45 = vpop.f32.mrf.mxu2  ;;  %v179_v46 = vpop.f32.mrf.mxu3 }
  0x9d   :  { %v151_v47 = vadd.f32 %v150_v45, %v80_v43  ;;  %v180_v48 = vadd.f32 %v179_v46, %v109_v44 }
  0x9f   :  { %v195_v49 = vadd.f32 %v187_v27, %v151_v47  ;;  %v196_v50 = vadd.f32 %v188_v28, %v180_v48 }
  0xa1   :  { %204 = vst [vmem:[%s382_s5 + $0x20] sm:$0xff] %v195_v49 }
  0xa2   :  { %205 = vst.msk [vmem:[%s382_s5 + $0x28] sm:$0xff] %vm200_vm1, %v196_v50  ;;  %v83_v51 = vpop.f32.mrf.mxu0  ;;  %v112_v52 = vpop.f32.mrf.mxu1 }
  0xa4   :  { %v153_v53 = vpop.f32.mrf.mxu2  ;;  %v182_v54 = vpop.f32.mrf.mxu3 }
  0xa5   :  { %v154_v55 = vadd.f32 %v153_v53, %v83_v51  ;;  %v183_v56 = vadd.f32 %v182_v54, %v112_v52 }
  0xa7   :  { %v197_v57 = vadd.f32 %v187_v27, %v154_v55  ;;  %v198_v58 = vadd.f32 %v188_v28, %v183_v56 }
  0xa9   :  { %206 = vst [vmem:[%s382_s5 + $0x30] sm:$0xff] %v197_v57 }
  0xaa   :  { %207 = vst.msk [vmem:[%s382_s5 + $0x38] sm:$0xff] %vm200_vm1, %v198_v58 }

// kernel: encoder_seq2seq_forward.5
= control target key start
LH: loop header
LB: loop body
LE: loop exit
PB: predicated region body
PF: predicated region fallthrough
CT: control target
= control target key end

     0   :  { %13 = vsyncpa [#allocation5], 0  ;;  %s2288_s0 = inlined_call_operand.vmem [shape: f32[8,4,192], index: 0, kind: input, shape index: {}]   ;;  %s2289_s1 = inlined_call_operand.hbm [shape: f32[32,96], index: 1, kind: input, shape index: {}]   ;;  %s2290_s2 = inlined_call_operand.vmem [shape: f32[1,96], index: 2, kind: input, shape index: {}]   ;;  %s2291_s3 = inlined_call_operand.hbm [shape: f32[32,96], index: 3, kind: input, shape index: {}]   ;;  %s2292_s4 = inlined_call_operand.vmem [shape: f32[1,96], index: 4, kind: input, shape index: {}]   ;;  %s2293_s5 = inlined_call_operand.vmem [shape: f32[8,4,32], index: 5, kind: output, shape index: {0}]   ;;  %s2294_s6 = inlined_call_operand.vmem [shape: f32[8,4,32], index: 6, kind: output, shape index: {1}]   ;;  %s2295_s7 = inlined_call_operand.vmem [shape: f32[2,4,32], index: 7, kind: output, shape index: {2}]  }
   0x1   :  { %s21_s26 = sshll.u32 %s2289_s1, 4  ;;  %s22_s26 = int_to_ptr.hbm [resolvable:$true] %s21_s26 }
   0x2   :  { %14 = vsyncpa [#allocation7], 0  ;;  %s1876_s27 = smov [#allocation4]   ;;  %s36_s8 = sshll.u32 %s2291_s3, 4  ;;  %s37_s8 = int_to_ptr.hbm [resolvable:$true] %s36_s8 }
   0x3   :  { %s23_s28 = sshll.u32 %s1876_s27, 4  ;;  %s1877_s9 = smov 128   ;;  %s24_s28 = int_to_ptr.vmem [resolvable:$true] %s23_s28 }
   0x4   :  { %s1878_s10 = smov 8   ;;  %s1879_s11 = smov [#allocation6]  }
   0x5   :  { %29 = dma.hbm_to_vmem [thread:$0]  %s22_s26, 512, %s24_s28, [#allocation5], %s1877_s9, %s1877_s9, %s1878_s10  }
   0x6   :  { %s38_s12 = sshll.u32 %s1879_s11, 4  ;;  %s39_s12 = int_to_ptr.vmem [resolvable:$true] %s38_s12 }
   0x7   :  { %44 = dma.hbm_to_vmem [thread:$0]  %s37_s8, 512, %s39_s12, [#allocation7], %s1877_s9, %s1877_s9, %s1878_s10  }
   0x8   :  { %1872 = dma.done.wait [#allocation5], 512  }
   0x9   :  { %1873 = vsyncadd [#allocation5], 4294966784 }
   0xa   :  { %1874 = dma.done.wait [#allocation7], 512  }
   0xb   :  { %1875 = vsyncadd [#allocation7], 4294966784  ;;  %vm55_vm0 = vcmask 257024   ;;  %v1880_v0 = vmov 0.0   ;;  %v65_v1 = vld [vmem:[#allocation4 + $0x18] sm:$0xff]  ;;  %v64_v2 = vld [vmem:[#allocation4 + $0x10] sm:$0xff] }
   0xc   :  { %56 = vst.msk [vmem:[#allocation2] sm:$0xf] %vm55_vm0, %v1880_v0  ;;  %86 = vmatpush.msra.mxu0 %v65_v1  ;;  %v63_v3 = vld [vmem:[#allocation4 + $0x8] sm:$0xff]  ;;  %277 = vmatpush.msra.mxu2 %v65_v1  ;;  %v62_v4 = vld [vmem:[#allocation4] sm:$0xff]  ;;  %vm70_vm1 = vcmask 261120   ;;  %s1881_s13 = smov 64  }
   0xd   :  { %57 = vst.msk [vmem:[#allocation3] sm:$0xf] %vm55_vm0, %v1880_v0  ;;  %v1680_v6 = vld [vmem:[%s2290_s2] ss:$0 sm:$0xff]  ;;  %s1882_s16 = smov 96   ;;  %s1883_s17 = smov 32  }
   0xe   :  { %87 = vmatpush.msra.mxu0 %v64_v2  ;;  %278 = vmatpush.msra.mxu2 %v64_v2  ;;  %v58_v9 = vld [vmem:[%s2288_s0] sm:$0xff]  ;;  %v140_v38 = vld [vmem:[#allocation6 + $0x18] sm:$0xff]  ;;  %v138_v40 = vld [vmem:[#allocation6 + $0x8] sm:$0xff] }
   0xf   :  { %v139_v39 = vld [vmem:[#allocation6 + $0x10] sm:$0xff]  ;;  %160 = vmatpush.msra.mxu1 %v140_v38  ;;  %351 = vmatpush.msra.mxu3 %v140_v38  ;;  %v137_v41 = vld [vmem:[#allocation6] sm:$0xff]  ;;  %v1610_v46 = vld [vmem:[%s2288_s0 + $0x8] sm:$0xff] }
  0x10   :  { %88 = vmatpush.msra.mxu0 %v63_v3  ;;  %279 = vmatpush.msra.mxu2 %v63_v3  ;;  %v1681_v43 = vld [vmem:[%s2290_s2] ss:$0 sm:$0xff] }
  0x11   :  { %161 = vmatpush.msra.mxu1 %v139_v39  ;;  %352 = vmatpush.msra.mxu3 %v139_v39  ;;  %v1682_v63 = vld [vmem:[%s2292_s4] ss:$0 sm:$0xff] }
  0x12   :  { %89 = vmatpush.msra.mxu0 %v62_v4  ;;  %280 = vmatpush.msra.mxu2 %v62_v4 }
  0x13   :  { %v61_v5 = vld [vmem:[#allocation2] sm:$0xf]  ;;  %162 = vmatpush.msra.mxu1 %v138_v40  ;;  %353 = vmatpush.msra.mxu3 %v138_v40 }
  0x14   :  { %1604 = vmatmul.msk.f32.vlgmr.msra.gmra.mxu0 %vm70_vm1, %v61_v5  ;;  %661 = vmatpush.msrb.mxu2 %v65_v1  ;;  %v1946_v42 = vld [vmem:[#allocation3] sm:$0xf] }
  0x15   :  { %469 = vmatpush.msrb.mxu0 %v65_v1  ;;  %163 = vmatpush.msra.mxu1 %v137_v41 }
  0x16   :  { %662 = vmatpush.msrb.mxu2 %v64_v2  ;;  %354 = vmatpush.msra.mxu3 %v137_v41 }
  0x17   :  { %470 = vmatpush.msrb.mxu0 %v64_v2  ;;  %1606 = vmatmul.msk.f32.vlgmr.msra.gmra.mxu1 %vm70_vm1, %v1946_v42 }
  0x18   :  { %663 = vmatpush.msrb.mxu2 %v63_v3  ;;  %735 = vmatpush.msrb.mxu3 %v140_v38 }
  0x19   :  { %471 = vmatpush.msrb.mxu0 %v63_v3  ;;  %543 = vmatpush.msrb.mxu1 %v140_v38 }
  0x1a   :  { %664 = vmatpush.msrb.mxu2 %v62_v4  ;;  %736 = vmatpush.msrb.mxu3 %v139_v39 }
  0x1b   :  { %472 = vmatpush.msrb.mxu0 %v62_v4  ;;  %544 = vmatpush.msrb.mxu1 %v139_v39 }
  0x1c   :  { %737 = vmatpush.msrb.mxu3 %v138_v40 }
  0x1d   :  { %851 = vmatpush.msra.mxu0 %v65_v1  ;;  %545 = vmatpush.msrb.mxu1 %v138_v40 }
  0x1e   :  { %738 = vmatpush.msrb.mxu3 %v137_v41 }
  0x1f   :  { %852 = vmatpush.msra.mxu0 %v64_v2  ;;  %546 = vmatpush.msrb.mxu1 %v137_v41  ;;  %v1603_v2 = vld [vmem:[%s2288_s0 + $0x38] sm:$0xff] }
  0x21   :  { %853 = vmatpush.msra.mxu0 %v63_v3  ;;  %925 = vmatpush.msra.mxu1 %v140_v38 }
  0x23   :  { %854 = vmatpush.msra.mxu0 %v62_v4  ;;  %926 = vmatpush.msra.mxu1 %v139_v39 }
  0x25   :  { %927 = vmatpush.msra.mxu1 %v138_v40 }
  0x27   :  { %928 = vmatpush.msra.mxu1 %v137_v41 }
  0x91   :  { %v91_v7 = vpop.f32.mrf.mxu0 }
  0x92   :  { %v92_v8 = vadd.f32 %v1680_v6, %v91_v7 }
  0x94   :  { %115 = vrot.lane.b32.xlu0 %v92_v8, %s1881_s13  ;;  %v94_v10 = vadd.f32 %v92_v8, %v58_v9  ;;  %v165_v0 = vpop.f32.mrf.mxu1 }
  0x95   :  { %v166_v1 = vadd.f32 %v1682_v63, %v165_v0  ;;  %v1997_v0 = vld [vmem:[%s2288_s0 + $0x10] sm:$0xff] }
  0x96   :  { %v1605_v11 = vmul.f32 -1.442695, %v94_v10 }
  0x98   :  { %1696 = vpow2.f32 %v1605_v11 }
  0x9e   :  { %v1697_v12 = vpop.eup %1696 }
  0x9f   :  { %v98_v13 = vadd.f32 1.0, %v1697_v12 }
  0xa1   :  { %1698 = vrcp.f32 %v98_v13  ;;  %v110_v19 = vand.u32 2147483648, %v98_v13  ;;  %vm104_vm3 = vweird.f32 %v98_v13  ;;  %v108_v20 = vand.u32 2147483647, %v98_v13 }
  0xa3   :  { %v111_v22 = vor.u32 1.1754944e-38, %v110_v19  ;;  %vm109_vm5 = vcmp.eq.f32.partialorder %v108_v20, 8.507059e+37 }
  0xa7   :  { %v1699_v14 = vpop.eup %1698 }
  0xa8   :  { %v100_v15 = vmul.f32 %v1699_v14, %v98_v13  ;;  %vm105_vm2 = vweird.f32 %v1699_v14 }
  0xa9   :  { %vm106_vm4 = vmor %vm104_vm3, %vm105_vm2 }
  0xaa   :  { %v101_v16 = vsub.f32 1.0, %v100_v15 }
  0xac   :  { %v102_v17 = vmul.f32 %v1699_v14, %v101_v16 }
  0xae   :  { %v103_v18 = vadd.f32 %v1699_v14, %v102_v17 }
  0xb0   :  { %v107_v21 = vsel %vm106_vm4, %v1699_v14, %v103_v18 }
  0xb1   :  { %v112_v24 = vsel %vm109_vm5, %v111_v22, %v107_v21 }
  0xb2   :  { %v125_v30 = vsub.f32 1.0, %v112_v24 }
 0x106   :  { %v116_v23 = vpop.permute.xlu0 %115 }
 0x107   :  { %v118_v25 = vmul.f32 %v116_v23, %v112_v24 }
 0x109   :  { %120 = vrot.lane.b32.xlu0 %v118_v25, %s1881_s13 }
 0x17b   :  { %v121_v26 = vpop.permute.xlu0 %120 }
 0x17c   :  { %v123_v27 = vadd.f32 %v121_v26, %v58_v9 }
 0x17e   :  { %1700 = vtanh.f32 %v123_v27 }
 0x184   :  { %v1701_v28 = vpop.eup %1700 }
 0x185   :  { %127 = vrot.lane.b32.xlu1 %v1701_v28, %s1882_s16 }
 0x18d   :  { %131 = vrot.lane.b32.xlu1 %v61_v5, %s1883_s17 }
 0x1f7   :  { %v128_v29 = vpop.permute.xlu1 %127 }
 0x1f8   :  { %v130_v32 = vmul.f32 %v128_v29, %v125_v30 }
 0x1ff   :  { %v132_v31 = vpop.permute.xlu1 %131 }
 0x200   :  { %v134_v33 = vmul.f32 %v132_v31, %v112_v24  ;;  %v193_v31 = vrot.slane %v1603_v2, 4 }
 0x202   :  { %v135_v34 = vadd.f32 %v134_v33, %v130_v32 }
 0x204   :  { %234 = vst [vmem:[#allocation1] ss:$2 sm:$0xff] %v135_v34 }
 0x20b   :  { %v235_v35 = vld.sshfl [vmem:[#allocation1] sm:$0xff pattern:$0x75316420] }
 0x20c   :  { %241 = vst [vmem:[#allocation1] ss:$2 sm:$0xff] %v135_v34  ;;  %236 = vrot.lane.b32.xlu2 %v235_v35, %s1882_s16 }
 0x213   :  { %v1969_v21 = vld.sshfl [vmem:[#allocation1] sm:$0xff pattern:$0x75316420] }
 0x266   :  { %v237_v36 = vpop.permute.xlu2 %236 }
 0x267   :  { %239 = vst.msk [vmem:[#allocation2] sm:$0xf] %vm55_vm0, %v237_v36 }
 0x26e   :  { %v253_v37 = vld [vmem:[#allocation2] sm:$0xf] }
 0x26f   :  { %1612 = vmatmul.msk.f32.vlgmr.msra.gmra.mxu2 %vm70_vm1, %v253_v37 }
 0x2f2   :  { %v282_v44 = vpop.f32.mrf.mxu2 }
 0x2f3   :  { %v283_v45 = vadd.f32 %v1681_v43, %v282_v44 }
 0x2f5   :  { %306 = vrot.lane.b32.xlu2 %v283_v45, %s1881_s13  ;;  %v285_v47 = vadd.f32 %v1610_v46, %v283_v45 }
 0x2f7   :  { %v1613_v48 = vmul.f32 -1.442695, %v285_v47 }
 0x2f9   :  { %1702 = vpow2.f32 %v1613_v48 }
 0x2fd   :  { %322 = vrot.lane.b32.xlu2 %v253_v37, %s1883_s17 }
 0x2ff   :  { %v1703_v49 = vpop.eup %1702 }
 0x300   :  { %v289_v50 = vadd.f32 1.0, %v1703_v49 }
 0x302   :  { %1704 = vrcp.f32 %v289_v50  ;;  %v301_v56 = vand.u32 2147483648, %v289_v50  ;;  %vm295_vm7 = vweird.f32 %v289_v50  ;;  %v299_v57 = vand.u32 2147483647, %v289_v50 }
 0x304   :  { %v302_v59 = vor.u32 1.1754944e-38, %v301_v56  ;;  %vm300_vm9 = vcmp.eq.f32.partialorder %v299_v57, 8.507059e+37 }
 0x305   :  { %215 = vrot.lane.b32.xlu2 %v166_v1, %s1883_s17 }
 0x308   :  { %v1705_v51 = vpop.eup %1704 }
 0x309   :  { %v291_v52 = vmul.f32 %v1705_v51, %v289_v50  ;;  %vm296_vm6 = vweird.f32 %v1705_v51 }
 0x30a   :  { %vm297_vm8 = vmor %vm295_vm7, %vm296_vm6 }
 0x30b   :  { %v292_v53 = vsub.f32 1.0, %v291_v52 }
 0x30d   :  { %v293_v54 = vmul.f32 %v1705_v51, %v292_v53 }
 0x30f   :  { %v294_v55 = vadd.f32 %v1705_v51, %v293_v54 }
 0x311   :  { %v298_v58 = vsel %vm297_vm8, %v1705_v51, %v294_v55 }
 0x312   :  { %v303_v61 = vsel %vm300_vm9, %v302_v59, %v298_v58  ;;  %v1683_v59 = vld [vmem:[%s2290_s2] ss:$0 sm:$0xff] }
 0x313   :  { %v316_v14 = vsub.f32 1.0, %v303_v61 }
 0x34f   :  { %v307_v60 = vpop.permute.xlu2 %306 }
 0x350   :  { %v309_v62 = vmul.f32 %v307_v60, %v303_v61 }
 0x352   :  { %311 = vrot.lane.b32.xlu0 %v309_v62, %s1881_s13 }
 0x357   :  { %v323_v13 = vpop.permute.xlu2 %322 }
 0x358   :  { %v325_v17 = vmul.f32 %v323_v13, %v303_v61  ;;  %v1684_v61 = vld [vmem:[%s2292_s4] ss:$0 sm:$0xff] }
 0x35a   :  { %169 = vrot.lane.b32.xlu0 %v166_v1, %s1882_s16 }
 0x35f   :  { %v216_v28 = vpop.permute.xlu2 %215 }
 0x362   :  { %219 = vrot.lane.b32.xlu0 %v1603_v2, %s1882_s16 }
 0x3c4   :  { %v312_v3 = vpop.permute.xlu0 %311 }
 0x3c5   :  { %v314_v4 = vadd.f32 %v1610_v46, %v312_v3 }
 0x3c7   :  { %1706 = vtanh.f32 %v314_v4 }
 0x3cc   :  { %v170_v6 = vpop.permute.xlu0 %169 }
 0x3cd   :  { %v1707_v5 = vpop.eup %1706  ;;  %v172_v7 = vadd.f32 %v1603_v2, %v170_v6  ;;  %v195_v32 = vadd.f32 %v193_v31, %v170_v6 }
 0x3ce   :  { %318 = vrot.lane.b32.xlu1 %v1707_v5, %s1882_s16 }
 0x3cf   :  { %v1607_v8 = vmul.f32 -1.442695, %v172_v7  ;;  %v1608_v33 = vmul.f32 -1.442695, %v195_v32 }
 0x3d1   :  { %1708 = vpow2.f32 %v1607_v8 }
 0x3d4   :  { %v220_v41 = vpop.permute.xlu0 %219 }
 0x3d5   :  { %v221_v46 = vrot.slane %v220_v41, 4 }
 0x3d7   :  { %v1709_v9 = vpop.eup %1708 }
 0x3d8   :  { %v176_v10 = vadd.f32 1.0, %v1709_v9 }
 0x3da   :  { %1710 = vrcp.f32 %v176_v10  ;;  %vm182_vm10 = vweird.f32 %v176_v10  ;;  %v188_v22 = vand.u32 2147483648, %v176_v10  ;;  %v186_v24 = vand.u32 2147483647, %v176_v10 }
 0x3db   :  { %1712 = vpow2.f32 %v1608_v33 }
 0x3dc   :  { %v189_v25 = vor.u32 1.1754944e-38, %v188_v22  ;;  %vm187_vm13 = vcmp.eq.f32.partialorder %v186_v24, 8.507059e+37 }
 0x3e0   :  { %v1711_v11 = vpop.eup %1710 }
 0x3e1   :  { %v178_v12 = vmul.f32 %v1711_v11, %v176_v10  ;;  %vm183_vm11 = vweird.f32 %v1711_v11  ;;  %v1713_v34 = vpop.eup %1712 }
 0x3e2   :  { %vm184_vm12 = vmor %vm182_vm10, %vm183_vm11  ;;  %v199_v35 = vadd.f32 1.0, %v1713_v34 }
 0x3e3   :  { %v179_v15 = vsub.f32 1.0, %v178_v12 }
 0x3e4   :  { %1714 = vrcp.f32 %v199_v35  ;;  %vm205_vm14 = vweird.f32 %v199_v35  ;;  %v211_v43 = vand.u32 2147483648, %v199_v35  ;;  %v209_v45 = vand.u32 2147483647, %v199_v35 }
 0x3e5   :  { %v180_v20 = vmul.f32 %v1711_v11, %v179_v15 }
 0x3e6   :  { %v212_v47 = vor.u32 1.1754944e-38, %v211_v43  ;;  %vm210_vm3 = vcmp.eq.f32.partialorder %v209_v45, 8.507059e+37 }
 0x3e7   :  { %v181_v23 = vadd.f32 %v1711_v11, %v180_v20 }
 0x3e9   :  { %v185_v26 = vsel %vm184_vm12, %v1711_v11, %v181_v23 }
 0x3ea   :  { %v190_v29 = vsel %vm187_vm13, %v189_v25, %v185_v26  ;;  %v1715_v36 = vpop.eup %1714 }
 0x3eb   :  { %v218_v30 = vmul.f32 %v216_v28, %v190_v29  ;;  %v201_v37 = vmul.f32 %v1715_v36, %v199_v35  ;;  %vm206_vm15 = vweird.f32 %v1715_v36 }
 0x3ec   :  { %vm207_vm2 = vmor %vm205_vm14, %vm206_vm15 }
 0x3ed   :  { %v202_v38 = vsub.f32 1.0, %v201_v37 }
 0x3ef   :  { %v203_v39 = vmul.f32 %v1715_v36, %v202_v38 }
 0x3f1   :  { %v204_v44 = vadd.f32 %v1715_v36, %v203_v39 }
 0x3f3   :  { %v208_v48 = vsel %vm207_vm2, %v1715_v36, %v204_v44 }
 0x3f4   :  { %v213_v52 = vsel %vm210_vm3, %v212_v47, %v208_v48 }
 0x3f5   :  { %v229_v53 = vsub.f32 1.0, %v213_v52  ;;  %v231_v54 = vmul.f32 %v213_v52, %v1946_v42 }
 0x440   :  { %v319_v16 = vpop.permute.xlu1 %318 }
 0x441   :  { %v321_v18 = vmul.f32 %v319_v16, %v316_v14 }
 0x443   :  { %v326_v19 = vadd.f32 %v325_v17, %v321_v18  ;;  %v1611_v17 = vld [vmem:[%s2288_s0 + $0x30] sm:$0xff] }
 0x444   :  { %v384_v39 = vrot.slane %v1611_v17, 4 }
 0x445   :  { %425 = vst [vmem:[#allocation1] ss:$2 sm:$0xff] %v326_v19 }
 0x44c   :  { %v426_v27 = vld.sshfl [vmem:[#allocation1] sm:$0xff pattern:$0x75316420] }
 0x44d   :  { %432 = vst [vmem:[#allocation1] ss:$2 sm:$0xff] %v326_v19  ;;  %427 = vrot.lane.b32.xlu1 %v426_v27, %s1882_s16 }
 0x455   :  { %224 = vrot.lane.b32.xlu1 %v218_v30, %s1883_s17 }
 0x4bf   :  { %v428_v40 = vpop.permute.xlu1 %427 }
 0x4c0   :  { %430 = vst.msk [vmem:[#allocation2] sm:$0xf] %vm55_vm0, %v428_v40 }
 0x4c7   :  { %v225_v49 = vpop.permute.xlu1 %224  ;;  %v445_v50 = vld [vmem:[#allocation2] sm:$0xf] }
 0x4c8   :  { %v227_v51 = vadd.f32 %v225_v49, %v221_v46  ;;  %1621 = vmatmul.msk.f32.vlgmr.msrb.gmra.mxu0 %vm70_vm1, %v445_v50 }
 0x4ca   :  { %1716 = vtanh.f32 %v227_v51 }
 0x4d0   :  { %v1717_v55 = vpop.eup %1716 }
 0x4d1   :  { %v230_v56 = vmul.f32 %v1717_v55, %v229_v53 }
 0x4d3   :  { %v232_v57 = vadd.f32 %v231_v54, %v230_v56 }
 0x4d5   :  { %240 = vst.msk [vmem:[#allocation3] sm:$0xf] %vm55_vm0, %v232_v57 }
 0x4d6   :  { %1609 = vst.msk [vmem:[%s2294_s6 + $0x1c] sm:$0xf] %vm55_vm0, %v232_v57 }
 0x4dc   :  { %v1981_v58 = vld [vmem:[#allocation3] sm:$0xf] }
 0x4dd   :  { %1614 = vmatmul.msk.f32.vlgmr.msra.gmra.mxu3 %vm70_vm1, %v1981_v58 }
 0x545   :  { %v474_v42 = vpop.f32.mrf.mxu0 }
 0x546   :  { %v475_v60 = vadd.f32 %v1683_v59, %v474_v42 }
 0x548   :  { %498 = vrot.lane.b32.xlu2 %v475_v60, %s1881_s13  ;;  %v477_v1 = vadd.f32 %v1997_v0, %v475_v60 }
 0x54a   :  { %v1622_v2 = vmul.f32 -1.442695, %v477_v1 }
 0x54c   :  { %1718 = vpow2.f32 %v1622_v2 }
 0x552   :  { %v1719_v3 = vpop.eup %1718 }
 0x553   :  { %v481_v4 = vadd.f32 1.0, %v1719_v3 }
 0x555   :  { %1720 = vrcp.f32 %v481_v4  ;;  %v493_v10 = vand.u32 2147483648, %v481_v4  ;;  %vm487_vm5 = vweird.f32 %v481_v4  ;;  %v491_v11 = vand.u32 2147483647, %v481_v4 }
 0x557   :  { %v494_v13 = vor.u32 1.1754944e-38, %v493_v10  ;;  %vm492_vm7 = vcmp.eq.f32.partialorder %v491_v11, 8.507059e+37  ;;  %v1685_v11 = vld [vmem:[%s2292_s4] ss:$0 sm:$0xff] }
 0x55b   :  { %v1721_v5 = vpop.eup %1720 }
 0x55c   :  { %v483_v6 = vmul.f32 %v1721_v5, %v481_v4  ;;  %vm488_vm4 = vweird.f32 %v1721_v5 }
 0x55d   :  { %vm489_vm6 = vmor %vm487_vm5, %vm488_vm4 }
 0x55e   :  { %v484_v7 = vsub.f32 1.0, %v483_v6 }
 0x560   :  { %v356_v62 = vpop.f32.mrf.mxu3  ;;  %v485_v8 = vmul.f32 %v1721_v5, %v484_v7 }
 0x561   :  { %v357_v63 = vadd.f32 %v1684_v61, %v356_v62 }
 0x562   :  { %v486_v9 = vadd.f32 %v1721_v5, %v485_v8 }
 0x563   :  { %360 = vrot.lane.b32.xlu1 %v357_v63, %s1882_s16 }
 0x564   :  { %v490_v12 = vsel %vm489_vm6, %v1721_v5, %v486_v9 }
 0x565   :  { %v2000_v15 = vsel %vm492_vm7, %v494_v13, %v490_v12 }
 0x566   :  { %v508_v2 = vsub.f32 1.0, %v2000_v15 }
 0x56b   :  { %406 = vrot.lane.b32.xlu1 %v357_v63, %s1883_s17 }
 0x5a2   :  { %v499_v14 = vpop.permute.xlu2 %498 }
 0x5a3   :  { %v501_v16 = vmul.f32 %v499_v14, %v2000_v15  ;;  %v2036_v14 = vld [vmem:[%s2288_s0 + $0x28] sm:$0xff] }
 0x5a5   :  { %503 = vrot.lane.b32.xlu0 %v501_v16, %s1881_s13 }
 0x5ad   :  { %514 = vrot.lane.b32.xlu0 %v445_v50, %s1883_s17 }
 0x5b5   :  { %410 = vrot.lane.b32.xlu0 %v1611_v17, %s1882_s16 }
 0x5d5   :  { %v361_v18 = vpop.permute.xlu1 %360 }
 0x5d6   :  { %v363_v19 = vadd.f32 %v1611_v17, %v361_v18  ;;  %v386_v40 = vadd.f32 %v384_v39, %v361_v18  ;;  %v2049_v18 = vld [vmem:[%s2288_s0 + $0x18] sm:$0xff] }
 0x5d8   :  { %v1615_v20 = vmul.f32 -1.442695, %v363_v19  ;;  %v1616_v41 = vmul.f32 -1.442695, %v386_v40 }
 0x5da   :  { %1722 = vpow2.f32 %v1615_v20 }
 0x5dd   :  { %v407_v32 = vpop.permute.xlu1 %406 }
 0x5e0   :  { %v1723_v22 = vpop.eup %1722 }
 0x5e1   :  { %v367_v23 = vadd.f32 1.0, %v1723_v22 }
 0x5e3   :  { %1724 = vrcp.f32 %v367_v23  ;;  %v379_v26 = vand.u32 2147483648, %v367_v23  ;;  %vm373_vm8 = vweird.f32 %v367_v23  ;;  %v377_v28 = vand.u32 2147483647, %v367_v23 }
 0x5e5   :  { %v380_v30 = vor.u32 1.1754944e-38, %v379_v26  ;;  %vm378_vm11 = vcmp.eq.f32.partialorder %v377_v28, 8.507059e+37 }
 0x5e9   :  { %v1725_v24 = vpop.eup %1724 }
 0x5ea   :  { %v369_v25 = vmul.f32 %v1725_v24, %v367_v23  ;;  %vm374_vm9 = vweird.f32 %v1725_v24 }
 0x5eb   :  { %vm375_vm10 = vmor %vm373_vm8, %vm374_vm9 }
 0x5ec   :  { %v370_v27 = vsub.f32 1.0, %v369_v25 }
 0x5ee   :  { %v371_v29 = vmul.f32 %v1725_v24, %v370_v27 }
 0x5f0   :  { %v372_v31 = vadd.f32 %v1725_v24, %v371_v29 }
 0x5f2   :  { %v376_v33 = vsel %vm375_vm10, %v1725_v24, %v372_v31 }
 0x5f3   :  { %v381_v34 = vsel %vm378_vm11, %v380_v30, %v376_v33 }
 0x5f4   :  { %v409_v35 = vmul.f32 %v407_v32, %v381_v34 }
 0x5f6   :  { %415 = vrot.lane.b32.xlu1 %v409_v35, %s1883_s17 }
 0x617   :  { %v504_v36 = vpop.permute.xlu0 %503 }
 0x618   :  { %v506_v37 = vadd.f32 %v1997_v0, %v504_v36 }
 0x61a   :  { %1726 = vtanh.f32 %v506_v37 }
 0x61b   :  { %1728 = vpow2.f32 %v1616_v41 }
 0x61f   :  { %v515_v47 = vpop.permute.xlu0 %514 }
 0x620   :  { %v1727_v38 = vpop.eup %1726  ;;  %v517_v4 = vmul.f32 %v515_v47, %v2000_v15  ;;  %v1686_v15 = vld [vmem:[%s2290_s2] ss:$0 sm:$0xff] }
 0x621   :  { %510 = vrot.lane.b32.xlu2 %v1727_v38, %s1882_s16  ;;  %v1729_v43 = vpop.eup %1728 }
 0x622   :  { %v390_v44 = vadd.f32 1.0, %v1729_v43 }
 0x624   :  { %1730 = vrcp.f32 %v390_v44  ;;  %vm396_vm12 = vweird.f32 %v390_v44  ;;  %v402_v52 = vand.u32 2147483648, %v390_v44  ;;  %v400_v54 = vand.u32 2147483647, %v390_v44 }
 0x626   :  { %v403_v56 = vor.u32 1.1754944e-38, %v402_v52  ;;  %vm401_vm15 = vcmp.eq.f32.partialorder %v400_v54, 8.507059e+37  ;;  %v576_v54 = vrot.slane %v2036_v14, 4 }
 0x627   :  { %v411_v50 = vpop.permute.xlu0 %410 }
 0x628   :  { %v412_v51 = vrot.slane %v411_v50, 4 }
 0x62a   :  { %v1731_v45 = vpop.eup %1730 }
 0x62b   :  { %v392_v46 = vmul.f32 %v1731_v45, %v390_v44  ;;  %vm397_vm13 = vweird.f32 %v1731_v45 }
 0x62c   :  { %vm398_vm14 = vmor %vm396_vm12, %vm397_vm13 }
 0x62d   :  { %v393_v48 = vsub.f32 1.0, %v392_v46 }
 0x62f   :  { %v394_v49 = vmul.f32 %v1731_v45, %v393_v48 }
 0x631   :  { %v395_v53 = vadd.f32 %v1731_v45, %v394_v49 }
 0x633   :  { %v399_v59 = vsel %vm398_vm14, %v1731_v45, %v395_v53 }
 0x634   :  { %v404_v42 = vsel %vm401_vm15, %v403_v56, %v399_v59 }
 0x635   :  { %v420_v60 = vsub.f32 1.0, %v404_v42  ;;  %v422_v62 = vmul.f32 %v404_v42, %v1981_v58  ;;  %v2024_v58 = vld.sshfl [vmem:[#allocation1] sm:$0xff pattern:$0x75316420] }
 0x668   :  { %v416_v55 = vpop.permute.xlu1 %415 }
 0x669   :  { %v418_v57 = vadd.f32 %v416_v55, %v412_v51 }
 0x66b   :  { %1732 = vtanh.f32 %v418_v57 }
 0x671   :  { %v1733_v61 = vpop.eup %1732 }
 0x672   :  { %v421_v63 = vmul.f32 %v1733_v61, %v420_v60 }
 0x674   :  { %v423_v1 = vadd.f32 %v422_v62, %v421_v63 }
 0x676   :  { %431 = vst.msk [vmem:[#allocation3] sm:$0xf] %vm55_vm0, %v423_v1 }
 0x677   :  { %1618 = vst.msk [vmem:[%s2294_s6 + $0x18] sm:$0xf] %vm55_vm0, %v423_v1 }
 0x67b   :  { %v511_v3 = vpop.permute.xlu2 %510 }
 0x67c   :  { %v513_v5 = vmul.f32 %v511_v3, %v508_v2 }
 0x67d   :  { %v2020_v6 = vld [vmem:[#allocation3] sm:$0xf] }
 0x67e   :  { %v518_v7 = vadd.f32 %v517_v4, %v513_v5  ;;  %1623 = vmatmul.msk.f32.vlgmr.msrb.gmra.mxu1 %vm70_vm1, %v2020_v6 }
 0x680   :  { %617 = vst [vmem:[#allocation1] ss:$2 sm:$0xff] %v518_v7 }
 0x687   :  { %v618_v8 = vld.sshfl [vmem:[#allocation1] sm:$0xff pattern:$0x75316420] }
 0x688   :  { %624 = vst [vmem:[#allocation1] ss:$2 sm:$0xff] %v518_v7  ;;  %619 = vrot.lane.b32.xlu2 %v618_v8, %s1882_s16 }
 0x6e2   :  { %v620_v9 = vpop.permute.xlu2 %619 }
 0x6e3   :  { %622 = vst.msk [vmem:[#allocation2] sm:$0xf] %vm55_vm0, %v620_v9 }
 0x6ea   :  { %v637_v10 = vld [vmem:[#allocation2] sm:$0xf] }
 0x6eb   :  { %1630 = vmatmul.msk.f32.vlgmr.msrb.gmra.mxu2 %vm70_vm1, %v637_v10 }
 0x6fb   :  { %v548_v12 = vpop.f32.mrf.mxu1 }
 0x6fc   :  { %v549_v13 = vadd.f32 %v1685_v11, %v548_v12 }
 0x6fe   :  { %552 = vrot.lane.b32.xlu0 %v549_v13, %s1882_s16 }
 0x706   :  { %602 = vrot.lane.b32.xlu0 %v2036_v14, %s1882_s16 }
 0x70e   :  { %706 = vrot.lane.b32.xlu0 %v637_v10, %s1883_s17 }
 0x76e   :  { %v666_v16 = vpop.f32.mrf.mxu2 }
 0x76f   :  { %v667_v17 = vadd.f32 %v1686_v15, %v666_v16 }
 0x770   :  { %v553_v22 = vpop.permute.xlu0 %552 }
 0x771   :  { %690 = vrot.lane.b32.xlu2 %v667_v17, %s1881_s13  ;;  %v669_v19 = vadd.f32 %v2049_v18, %v667_v17  ;;  %v555_v23 = vadd.f32 %v2036_v14, %v553_v22  ;;  %v578_v55 = vadd.f32 %v576_v54, %v553_v22 }
 0x773   :  { %v1631_v20 = vmul.f32 -1.442695, %v669_v19  ;;  %v1624_v24 = vmul.f32 -1.442695, %v555_v23  ;;  %v1625_v56 = vmul.f32 -1.442695, %v578_v55 }
 0x775   :  { %1734 = vpow2.f32 %v1631_v20 }
 0x776   :  { %1736 = vpow2.f32 %v1624_v24 }
 0x778   :  { %v603_v2 = vpop.permute.xlu0 %602 }
 0x779   :  { %598 = vrot.lane.b32.xlu2 %v549_v13, %s1883_s17  ;;  %v604_v3 = vrot.slane %v603_v2, 4 }
 0x77b   :  { %v1735_v25 = vpop.eup %1734 }
 0x77c   :  { %v673_v26 = vadd.f32 1.0, %v1735_v25  ;;  %v1737_v27 = vpop.eup %1736 }
 0x77d   :  { %v559_v28 = vadd.f32 1.0, %v1737_v27 }
 0x77e   :  { %1738 = vrcp.f32 %v673_v26  ;;  %v685_v37 = vand.u32 2147483648, %v673_v26  ;;  %vm679_vm3 = vweird.f32 %v673_v26  ;;  %v683_v38 = vand.u32 2147483647, %v673_v26 }
 0x77f   :  { %1740 = vrcp.f32 %v559_v28  ;;  %v571_v47 = vand.u32 2147483648, %v559_v28  ;;  %vm565_vm7 = vweird.f32 %v559_v28  ;;  %v569_v48 = vand.u32 2147483647, %v559_v28 }
 0x780   :  { %v686_v41 = vor.u32 1.1754944e-38, %v685_v37  ;;  %vm684_vm5 = vcmp.eq.f32.partialorder %v683_v38, 8.507059e+37  ;;  %1742 = vpow2.f32 %v1625_v56  ;;  %v707_v24 = vpop.permute.xlu0 %706  ;;  %v1688_v56 = vld [vmem:[%s2290_s2] ss:$0 sm:$0xff] }
 0x781   :  { %v572_v50 = vor.u32 1.1754944e-38, %v571_v47  ;;  %vm570_vm9 = vcmp.eq.f32.partialorder %v569_v48, 8.507059e+37 }
 0x784   :  { %v1739_v29 = vpop.eup %1738 }
 0x785   :  { %v675_v30 = vmul.f32 %v1739_v29, %v673_v26  ;;  %v1741_v32 = vpop.eup %1740  ;;  %vm680_vm2 = vweird.f32 %v1739_v29 }
 0x786   :  { %v561_v34 = vmul.f32 %v1741_v32, %v559_v28  ;;  %vm681_vm4 = vmor %vm679_vm3, %vm680_vm2  ;;  %vm566_vm6 = vweird.f32 %v1741_v32  ;;  %v1743_v57 = vpop.eup %1742  ;;  %v2068_v28 = vld.sshfl [vmem:[#allocation1] sm:$0xff pattern:$0x75316420] }
 0x787   :  { %v676_v31 = vsub.f32 1.0, %v675_v30  ;;  %vm567_vm8 = vmor %vm565_vm7, %vm566_vm6  ;;  %v582_v59 = vadd.f32 1.0, %v1743_v57  ;;  %v1687_v30 = vld [vmem:[%s2292_s4] ss:$0 sm:$0xff] }
 0x788   :  { %v562_v36 = vsub.f32 1.0, %v561_v34 }
 0x789   :  { %v677_v33 = vmul.f32 %v1739_v29, %v676_v31  ;;  %1744 = vrcp.f32 %v582_v59  ;;  %v594_v5 = vand.u32 2147483648, %v582_v59  ;;  %vm588_vm11 = vweird.f32 %v582_v59 }
 0x78a   :  { %v563_v40 = vmul.f32 %v1741_v32, %v562_v36  ;;  %v592_v7 = vand.u32 2147483647, %v582_v59 }
 0x78b   :  { %v678_v35 = vadd.f32 %v1739_v29, %v677_v33  ;;  %v595_v12 = vor.u32 1.1754944e-38, %v594_v5  ;;  %v2079_v33 = vld [vmem:[%s2288_s0 + $0x20] sm:$0xff] }
 0x78c   :  { %v564_v46 = vadd.f32 %v1741_v32, %v563_v40  ;;  %vm593_vm13 = vcmp.eq.f32.partialorder %v592_v7, 8.507059e+37  ;;  %v768_v54 = vrot.slane %v2079_v33, 4 }
 0x78d   :  { %v682_v39 = vsel %vm681_vm4, %v1739_v29, %v678_v35 }
 0x78e   :  { %v687_v43 = vsel %vm684_vm5, %v686_v41, %v682_v39  ;;  %v568_v49 = vsel %vm567_vm8, %v1741_v32, %v564_v46 }
 0x78f   :  { %v573_v51 = vsel %vm570_vm9, %v572_v50, %v568_v49  ;;  %v1745_v42 = vpop.eup %1744  ;;  %v700_v23 = vsub.f32 1.0, %v687_v43  ;;  %v709_v26 = vmul.f32 %v707_v24, %v687_v43 }
 0x790   :  { %v584_v60 = vmul.f32 %v1745_v42, %v582_v59  ;;  %vm589_vm10 = vweird.f32 %v1745_v42 }
 0x791   :  { %vm590_vm12 = vmor %vm588_vm11, %vm589_vm10 }
 0x792   :  { %v585_v61 = vsub.f32 1.0, %v584_v60 }
 0x794   :  { %v586_v1 = vmul.f32 %v1745_v42, %v585_v61 }
 0x796   :  { %v587_v4 = vadd.f32 %v1745_v42, %v586_v1 }
 0x798   :  { %v591_v11 = vsel %vm590_vm12, %v1745_v42, %v587_v4 }
 0x799   :  { %v596_v13 = vsel %vm593_vm13, %v595_v12, %v591_v11 }
 0x79a   :  { %v612_v15 = vsub.f32 1.0, %v596_v13  ;;  %v614_v17 = vmul.f32 %v596_v13, %v2020_v6 }
 0x7cb   :  { %v691_v44 = vpop.permute.xlu2 %690 }
 0x7cc   :  { %v693_v45 = vmul.f32 %v691_v44, %v687_v43 }
 0x7ce   :  { %695 = vrot.lane.b32.xlu1 %v693_v45, %s1881_s13 }
 0x7d3   :  { %v599_v52 = vpop.permute.xlu2 %598 }
 0x7d4   :  { %v601_v53 = vmul.f32 %v599_v52, %v573_v51 }
 0x7d6   :  { %607 = vrot.lane.b32.xlu1 %v601_v53, %s1883_s17 }
 0x840   :  { %v696_v62 = vpop.permute.xlu1 %695 }
 0x841   :  { %v698_v63 = vadd.f32 %v2049_v18, %v696_v62 }
 0x843   :  { %1746 = vtanh.f32 %v698_v63 }
 0x848   :  { %v608_v8 = vpop.permute.xlu1 %607 }
 0x849   :  { %v1747_v9 = vpop.eup %1746  ;;  %v610_v10 = vadd.f32 %v608_v8, %v604_v3 }
 0x84a   :  { %702 = vrot.lane.b32.xlu2 %v1747_v9, %s1882_s16 }
 0x84b   :  { %1748 = vtanh.f32 %v610_v10 }
 0x851   :  { %v1749_v16 = vpop.eup %1748 }
 0x852   :  { %v613_v19 = vmul.f32 %v1749_v16, %v612_v15 }
 0x854   :  { %v615_v20 = vadd.f32 %v614_v17, %v613_v19 }
 0x856   :  { %623 = vst.msk [vmem:[#allocation3] sm:$0xf] %vm55_vm0, %v615_v20 }
 0x857   :  { %1627 = vst.msk [vmem:[%s2294_s6 + $0x14] sm:$0xf] %vm55_vm0, %v615_v20 }
 0x85d   :  { %v2064_v22 = vld [vmem:[#allocation3] sm:$0xf] }
 0x85e   :  { %1632 = vmatmul.msk.f32.vlgmr.msrb.gmra.mxu3 %vm70_vm1, %v2064_v22 }
 0x8a4   :  { %v703_v25 = vpop.permute.xlu2 %702 }
 0x8a5   :  { %v705_v27 = vmul.f32 %v703_v25, %v700_v23 }
 0x8a7   :  { %v710_v6 = vadd.f32 %v709_v26, %v705_v27 }
 0x8a9   :  { %809 = vst [vmem:[#allocation1] ss:$2 sm:$0xff] %v710_v6 }
 0x8b0   :  { %v810_v29 = vld.sshfl [vmem:[#allocation1] sm:$0xff pattern:$0x75316420] }
 0x8b1   :  { %811 = vrot.lane.b32.xlu1 %v810_v29, %s1882_s16  ;;  %816 = vst [vmem:[#allocation1] ss:$2 sm:$0xff] %v710_v6 }
 0x8e1   :  { %v740_v31 = vpop.f32.mrf.mxu3 }
 0x8e2   :  { %v741_v32 = vadd.f32 %v1687_v30, %v740_v31 }
 0x8e4   :  { %790 = vrot.lane.b32.xlu0 %v741_v32, %s1883_s17  ;;  %744 = vrot.lane.b32.xlu2 %v741_v32, %s1882_s16 }
 0x8ec   :  { %794 = vrot.lane.b32.xlu2 %v2079_v33, %s1882_s16 }
 0x923   :  { %v812_v34 = vpop.permute.xlu1 %811 }
 0x924   :  { %814 = vst.msk [vmem:[#allocation2] sm:$0xf] %vm55_vm0, %v812_v34 }
 0x92b   :  { %v827_v35 = vld [vmem:[#allocation2] sm:$0xf] }
 0x92c   :  { %1639 = vmatmul.msk.f32.vlgmr.msra.gmra.mxu0 %vm70_vm1, %v827_v35 }
 0x93e   :  { %v745_v36 = vpop.permute.xlu2 %744 }
 0x93f   :  { %v747_v37 = vadd.f32 %v2079_v33, %v745_v36  ;;  %v770_v55 = vadd.f32 %v768_v54, %v745_v36 }
 0x941   :  { %v1633_v38 = vmul.f32 -1.442695, %v747_v37  ;;  %v1634_v57 = vmul.f32 -1.442695, %v770_v55 }
 0x943   :  { %1750 = vpow2.f32 %v1633_v38 }
 0x946   :  { %v795_v3 = vpop.permute.xlu2 %794 }
 0x947   :  { %v796_v4 = vrot.slane %v795_v3, 4 }
 0x949   :  { %v1751_v39 = vpop.eup %1750 }
 0x94a   :  { %v751_v40 = vadd.f32 1.0, %v1751_v39 }
 0x94c   :  { %1752 = vrcp.f32 %v751_v40  ;;  %v763_v45 = vand.u32 2147483648, %v751_v40  ;;  %v761_v47 = vand.u32 2147483647, %v751_v40  ;;  %vm757_vm15 = vweird.f32 %v751_v40 }
 0x94d   :  { %1754 = vpow2.f32 %v1634_v57 }
 0x94e   :  { %v764_v49 = vor.u32 1.1754944e-38, %v763_v45  ;;  %vm762_vm3 = vcmp.eq.f32.partialorder %v761_v47, 8.507059e+37 }
 0x952   :  { %v1753_v41 = vpop.eup %1752 }
 0x953   :  { %v753_v43 = vmul.f32 %v1753_v41, %v751_v40  ;;  %vm758_vm14 = vweird.f32 %v1753_v41  ;;  %v1755_v60 = vpop.eup %1754  ;;  %v1689_v40 = vld [vmem:[%s2292_s4] ss:$0 sm:$0xff] }
 0x954   :  { %vm759_vm2 = vmor %vm757_vm15, %vm758_vm14  ;;  %v774_v61 = vadd.f32 1.0, %v1755_v60 }
 0x955   :  { %v754_v44 = vsub.f32 1.0, %v753_v43 }
 0x956   :  { %v791_v51 = vpop.permute.xlu0 %790  ;;  %1756 = vrcp.f32 %v774_v61  ;;  %v786_v7 = vand.u32 2147483648, %v774_v61  ;;  %vm780_vm5 = vweird.f32 %v774_v61  ;;  %v784_v8 = vand.u32 2147483647, %v774_v61 }
 0x957   :  { %v755_v46 = vmul.f32 %v1753_v41, %v754_v44 }
 0x958   :  { %v787_v12 = vor.u32 1.1754944e-38, %v786_v7  ;;  %vm785_vm7 = vcmp.eq.f32.partialorder %v784_v8, 8.507059e+37 }
 0x959   :  { %v756_v48 = vadd.f32 %v1753_v41, %v755_v46 }
 0x95b   :  { %v760_v50 = vsel %vm759_vm2, %v1753_v41, %v756_v48 }
 0x95c   :  { %v765_v52 = vsel %vm762_vm3, %v764_v49, %v760_v50  ;;  %v1757_v62 = vpop.eup %1756 }
 0x95d   :  { %v793_v53 = vmul.f32 %v791_v51, %v765_v52  ;;  %v776_v63 = vmul.f32 %v1757_v62, %v774_v61  ;;  %vm781_vm4 = vweird.f32 %v1757_v62 }
 0x95e   :  { %vm782_vm6 = vmor %vm780_vm5, %vm781_vm4 }
 0x95f   :  { %799 = vrot.lane.b32.xlu0 %v793_v53, %s1883_s17  ;;  %v777_v1 = vsub.f32 1.0, %v776_v63  ;;  %v2112_v53 = vld.sshfl [vmem:[#allocation1] sm:$0xff pattern:$0x75316420] }
 0x961   :  { %v778_v2 = vmul.f32 %v1757_v62, %v777_v1 }
 0x963   :  { %v779_v5 = vadd.f32 %v1757_v62, %v778_v2 }
 0x965   :  { %v783_v11 = vsel %vm782_vm6, %v1757_v62, %v779_v5 }
 0x966   :  { %v788_v13 = vsel %vm785_vm7, %v787_v12, %v783_v11  ;;  %v1021_v11 = vld [vmem:[#allocation4 + $0x18] sm:$0xff]  ;;  %v1020_v12 = vld [vmem:[#allocation4 + $0x10] sm:$0xff] }
 0x967   :  { %896 = vrot.lane.b32.xlu0 %v827_v35, %s1883_s17  ;;  %v804_v15 = vsub.f32 1.0, %v788_v13  ;;  %v806_v17 = vmul.f32 %v788_v13, %v2064_v22  ;;  %1041 = vmatpush.msra.mxu2 %v1021_v11 }
 0x968   :  { %1231 = vmatpush.msrb.mxu0 %v1021_v11 }
 0x969   :  { %1042 = vmatpush.msra.mxu2 %v1020_v12 }
 0x96a   :  { %1232 = vmatpush.msrb.mxu0 %v1020_v12 }
 0x9a9   :  { %v856_v59 = vpop.f32.mrf.mxu0 }
 0x9aa   :  { %v857_v42 = vadd.f32 %v1688_v56, %v856_v59 }
 0x9ac   :  { %880 = vrot.lane.b32.xlu1 %v857_v42, %s1881_s13  ;;  %v859_v24 = vadd.f32 %v2079_v33, %v857_v42 }
 0x9ae   :  { %v1640_v25 = vmul.f32 -1.442695, %v859_v24  ;;  %v1094_v24 = vld [vmem:[#allocation6 + $0x10] sm:$0xff] }
 0x9d1   :  { %v800_v9 = vpop.permute.xlu0 %799 }
 0x9d2   :  { %v802_v10 = vadd.f32 %v800_v9, %v796_v4  ;;  %v958_v9 = vrot.slane %v2049_v18, 4 }
 0x9d4   :  { %1758 = vtanh.f32 %v802_v10 }
 0x9d5   :  { %1760 = vpow2.f32 %v1640_v25  ;;  %v1093_v25 = vld [vmem:[#allocation6 + $0x8] sm:$0xff] }
 0x9d9   :  { %v897_v47 = vpop.permute.xlu0 %896 }
 0x9da   :  { %v1759_v16 = vpop.eup %1758 }
 0x9db   :  { %v805_v19 = vmul.f32 %v1759_v16, %v804_v15  ;;  %v1761_v26 = vpop.eup %1760  ;;  %v1019_v15 = vld [vmem:[#allocation4 + $0x8] sm:$0xff]  ;;  %v1018_v16 = vld [vmem:[#allocation4] sm:$0xff] }
 0x9dc   :  { %v863_v22 = vadd.f32 1.0, %v1761_v26  ;;  %1043 = vmatpush.msra.mxu2 %v1019_v15  ;;  %1233 = vmatpush.msrb.mxu0 %v1019_v15 }
 0x9dd   :  { %v807_v20 = vadd.f32 %v806_v17, %v805_v19 }
 0x9de   :  { %1762 = vrcp.f32 %v863_v22  ;;  %v875_v32 = vand.u32 2147483648, %v863_v22  ;;  %vm869_vm9 = vweird.f32 %v863_v22  ;;  %v873_v34 = vand.u32 2147483647, %v863_v22  ;;  %1044 = vmatpush.msra.mxu2 %v1018_v16  ;;  %1234 = vmatpush.msrb.mxu0 %v1018_v16 }
 0x9df   :  { %1636 = vst.msk [vmem:[%s2294_s6 + $0x10] sm:$0xf] %vm55_vm0, %v807_v20 }
 0x9e0   :  { %815 = vst.msk [vmem:[#allocation3] sm:$0xf] %vm55_vm0, %v807_v20  ;;  %v876_v36 = vor.u32 1.1754944e-38, %v875_v32  ;;  %vm874_vm11 = vcmp.eq.f32.partialorder %v873_v34, 8.507059e+37  ;;  %1421 = vmatpush.msrb.mxu2 %v1021_v11  ;;  %v1095_v20 = vld [vmem:[#allocation6 + $0x18] sm:$0xff] }
 0x9e1   :  { %1115 = vmatpush.msra.mxu3 %v1095_v20  ;;  %1305 = vmatpush.msrb.mxu1 %v1095_v20 }
 0x9e2   :  { %1422 = vmatpush.msrb.mxu2 %v1020_v12 }
 0x9e3   :  { %1116 = vmatpush.msra.mxu3 %v1094_v24  ;;  %1306 = vmatpush.msrb.mxu1 %v1094_v24 }
 0x9e4   :  { %v1763_v27 = vpop.eup %1762  ;;  %1423 = vmatpush.msrb.mxu2 %v1019_v15 }
 0x9e5   :  { %v865_v6 = vmul.f32 %v1763_v27, %v863_v22  ;;  %vm870_vm8 = vweird.f32 %v1763_v27  ;;  %v1092_v22 = vld [vmem:[#allocation6] sm:$0xff]  ;;  %1117 = vmatpush.msra.mxu3 %v1093_v25  ;;  %1307 = vmatpush.msrb.mxu1 %v1093_v25 }
 0x9e6   :  { %vm871_vm10 = vmor %vm869_vm9, %vm870_vm8  ;;  %1424 = vmatpush.msrb.mxu2 %v1018_v16 }
 0x9e7   :  { %v2099_v23 = vld [vmem:[#allocation3] sm:$0xf]  ;;  %v866_v29 = vsub.f32 1.0, %v865_v6  ;;  %1118 = vmatpush.msra.mxu3 %v1092_v22  ;;  %1308 = vmatpush.msrb.mxu1 %v1092_v22 }
 0x9e8   :  { %1641 = vmatmul.msk.f32.vlgmr.msra.gmra.mxu1 %vm70_vm1, %v2099_v23 }
 0x9e9   :  { %v867_v30 = vmul.f32 %v1763_v27, %v866_v29  ;;  %1495 = vmatpush.msrb.mxu3 %v1095_v20 }
 0x9eb   :  { %v868_v31 = vadd.f32 %v1763_v27, %v867_v30  ;;  %1496 = vmatpush.msrb.mxu3 %v1094_v24 }
 0x9ed   :  { %v872_v35 = vsel %vm871_vm10, %v1763_v27, %v868_v31  ;;  %1497 = vmatpush.msrb.mxu3 %v1093_v25 }
 0x9ee   :  { %v877_v37 = vsel %vm874_vm11, %v876_v36, %v872_v35 }
 0x9ef   :  { %v890_v48 = vsub.f32 1.0, %v877_v37  ;;  %v899_v50 = vmul.f32 %v897_v47, %v877_v37  ;;  %1498 = vmatpush.msrb.mxu3 %v1092_v22 }
 0xa1e   :  { %v881_v38 = vpop.permute.xlu1 %880 }
 0xa1f   :  { %v883_v39 = vmul.f32 %v881_v38, %v877_v37 }
 0xa21   :  { %885 = vrot.lane.b32.xlu1 %v883_v39, %s1881_s13 }
 0xa65   :  { %v930_v41 = vpop.f32.mrf.mxu1 }
 0xa66   :  { %v931_v43 = vadd.f32 %v1689_v40, %v930_v41 }
 0xa68   :  { %980 = vrot.lane.b32.xlu0 %v931_v43, %s1883_s17 }
 0xa93   :  { %v886_v44 = vpop.permute.xlu1 %885 }
 0xa94   :  { %v888_v45 = vadd.f32 %v2079_v33, %v886_v44 }
 0xa96   :  { %1764 = vtanh.f32 %v888_v45 }
 0xa9c   :  { %v1765_v46 = vpop.eup %1764 }
 0xa9d   :  { %892 = vrot.lane.b32.xlu2 %v1765_v46, %s1882_s16 }
 0xaa5   :  { %934 = vrot.lane.b32.xlu2 %v931_v43, %s1882_s16 }
 0xada   :  { %v981_v5 = vpop.permute.xlu0 %980 }
 0xaf7   :  { %v893_v49 = vpop.permute.xlu2 %892 }
 0xaf8   :  { %v895_v51 = vmul.f32 %v893_v49, %v890_v48  ;;  %v1690_v49 = vld [vmem:[%s2290_s2] ss:$0 sm:$0xff] }
 0xafa   :  { %v900_v52 = vadd.f32 %v899_v50, %v895_v51  ;;  %v1691_v51 = vld [vmem:[%s2292_s4] ss:$0 sm:$0xff] }
 0xafc   :  { %999 = vst [vmem:[#allocation1] ss:$2 sm:$0xff] %v900_v52 }
 0xaff   :  { %v935_v54 = vpop.permute.xlu2 %934 }
 0xb00   :  { %v937_v55 = vadd.f32 %v2049_v18, %v935_v54  ;;  %v960_v10 = vadd.f32 %v958_v9, %v935_v54 }
 0xb02   :  { %v1642_v56 = vmul.f32 -1.442695, %v937_v55  ;;  %v1643_v13 = vmul.f32 -1.442695, %v960_v10 }
 0xb03   :  { %v1000_v33 = vld.sshfl [vmem:[#allocation1] sm:$0xff pattern:$0x75316420] }
 0xb04   :  { %1766 = vpow2.f32 %v1642_v56  ;;  %1001 = vrot.lane.b32.xlu1 %v1000_v33, %s1882_s16  ;;  %1006 = vst [vmem:[#allocation1] ss:$2 sm:$0xff] %v900_v52 }
 0xb0a   :  { %v1767_v57 = vpop.eup %1766 }
 0xb0b   :  { %v941_v59 = vadd.f32 1.0, %v1767_v57 }
 0xb0c   :  { %984 = vrot.lane.b32.xlu1 %v2049_v18, %s1882_s16 }
 0xb0d   :  { %1768 = vrcp.f32 %v941_v59  ;;  %v953_v62 = vand.u32 2147483648, %v941_v59  ;;  %v951_v1 = vand.u32 2147483647, %v941_v59  ;;  %vm947_vm13 = vweird.f32 %v941_v59 }
 0xb0e   :  { %1770 = vpow2.f32 %v1643_v13 }
 0xb0f   :  { %v954_v3 = vor.u32 1.1754944e-38, %v953_v62  ;;  %vm952_vm15 = vcmp.eq.f32.partialorder %v951_v1, 8.507059e+37 }
 0xb13   :  { %v1769_v42 = vpop.eup %1768 }
 0xb14   :  { %v943_v60 = vmul.f32 %v1769_v42, %v941_v59  ;;  %vm948_vm12 = vweird.f32 %v1769_v42  ;;  %v1771_v17 = vpop.eup %1770 }
 0xb15   :  { %vm949_vm14 = vmor %vm947_vm13, %vm948_vm12  ;;  %v964_v18 = vadd.f32 1.0, %v1771_v17 }
 0xb16   :  { %v944_v61 = vsub.f32 1.0, %v943_v60 }
 0xb17   :  { %1772 = vrcp.f32 %v964_v18  ;;  %v976_v34 = vand.u32 2147483648, %v964_v18  ;;  %vm970_vm3 = vweird.f32 %v964_v18  ;;  %v974_v37 = vand.u32 2147483647, %v964_v18 }
 0xb18   :  { %v945_v63 = vmul.f32 %v1769_v42, %v944_v61 }
 0xb19   :  { %v977_v40 = vor.u32 1.1754944e-38, %v976_v34  ;;  %vm975_vm5 = vcmp.eq.f32.partialorder %v974_v37, 8.507059e+37 }
 0xb1a   :  { %v946_v2 = vadd.f32 %v1769_v42, %v945_v63 }
 0xb1c   :  { %v950_v4 = vsel %vm949_vm14, %v1769_v42, %v946_v2 }
 0xb1d   :  { %v955_v7 = vsel %vm952_vm15, %v954_v3, %v950_v4  ;;  %v1773_v19 = vpop.eup %1772 }
 0xb1e   :  { %v983_v8 = vmul.f32 %v981_v5, %v955_v7  ;;  %v966_v26 = vmul.f32 %v1773_v19, %v964_v18  ;;  %vm971_vm2 = vweird.f32 %v1773_v19  ;;  %v2146_v18 = vld.sshfl [vmem:[#allocation1] sm:$0xff pattern:$0x75316420] }
 0xb1f   :  { %vm972_vm4 = vmor %vm970_vm3, %vm971_vm2 }
 0xb20   :  { %989 = vrot.lane.b32.xlu2 %v983_v8, %s1883_s17  ;;  %v967_v27 = vsub.f32 1.0, %v966_v26 }
 0xb22   :  { %v968_v29 = vmul.f32 %v1773_v19, %v967_v27 }
 0xb24   :  { %v969_v30 = vadd.f32 %v1773_v19, %v968_v29 }
 0xb26   :  { %v973_v39 = vsel %vm972_vm4, %v1773_v19, %v969_v30 }
 0xb27   :  { %v978_v41 = vsel %vm975_vm5, %v977_v40, %v973_v39  ;;  %v1148_v39 = vrot.slane %v1997_v0, 4 }
 0xb28   :  { %v994_v43 = vsub.f32 1.0, %v978_v41  ;;  %v996_v45 = vmul.f32 %v978_v41, %v2099_v23 }
 0xb76   :  { %v1002_v6 = vpop.permute.xlu1 %1001 }
 0xb77   :  { %1004 = vst.msk [vmem:[#allocation2] sm:$0xf] %vm55_vm0, %v1002_v6 }
 0xb7a   :  { %v990_v36 = vpop.permute.xlu2 %989 }
 0xb7e   :  { %v985_v31 = vpop.permute.xlu1 %984  ;;  %v1017_v32 = vld [vmem:[#allocation2] sm:$0xf] }
 0xb7f   :  { %v986_v35 = vrot.slane %v985_v31, 4  ;;  %1648 = vmatmul.msk.f32.vlgmr.msra.gmra.mxu2 %vm70_vm1, %v1017_v32 }
 0xb81   :  { %v992_v38 = vadd.f32 %v990_v36, %v986_v35 }
 0xb83   :  { %1774 = vtanh.f32 %v992_v38 }
 0xb89   :  { %v1775_v44 = vpop.eup %1774 }
 0xb8a   :  { %v995_v46 = vmul.f32 %v1775_v44, %v994_v43 }
 0xb8c   :  { %v997_v47 = vadd.f32 %v996_v45, %v995_v46 }
 0xb8e   :  { %1645 = vst.msk [vmem:[%s2294_s6 + $0xc] sm:$0xf] %vm55_vm0, %v997_v47 }
 0xb8f   :  { %1005 = vst.msk [vmem:[#allocation3] sm:$0xf] %vm55_vm0, %v997_v47 }
 0xb96   :  { %v2128_v48 = vld [vmem:[#allocation3] sm:$0xf] }
 0xb97   :  { %1650 = vmatmul.msk.f32.vlgmr.msra.gmra.mxu3 %vm70_vm1, %v2128_v48 }
 0xc02   :  { %v1046_v50 = vpop.f32.mrf.mxu2 }
 0xc03   :  { %v1047_v23 = vadd.f32 %v1690_v49, %v1046_v50 }
 0xc05   :  { %1070 = vrot.lane.b32.xlu0 %v1047_v23, %s1881_s13  ;;  %v1049_v55 = vadd.f32 %v2036_v14, %v1047_v23 }
 0xc07   :  { %v1649_v56 = vmul.f32 -1.442695, %v1049_v55 }
 0xc09   :  { %1776 = vpow2.f32 %v1649_v56 }
 0xc0d   :  { %1086 = vrot.lane.b32.xlu0 %v1017_v32, %s1883_s17 }
 0xc0f   :  { %v1777_v33 = vpop.eup %1776 }
 0xc10   :  { %v1053_v57 = vadd.f32 1.0, %v1777_v33 }
 0xc12   :  { %1778 = vrcp.f32 %v1053_v57  ;;  %v1065_v63 = vand.u32 2147483648, %v1053_v57  ;;  %vm1059_vm7 = vweird.f32 %v1053_v57  ;;  %v1063_v1 = vand.u32 2147483647, %v1053_v57 }
 0xc14   :  { %v1066_v3 = vor.u32 1.1754944e-38, %v1065_v63  ;;  %vm1064_vm9 = vcmp.eq.f32.partialorder %v1063_v1, 8.507059e+37 }
 0xc18   :  { %v1779_v59 = vpop.eup %1778 }
 0xc19   :  { %v1055_v42 = vmul.f32 %v1779_v59, %v1053_v57  ;;  %vm1060_vm6 = vweird.f32 %v1779_v59 }
 0xc1a   :  { %v1120_v52 = vpop.f32.mrf.mxu3  ;;  %vm1061_vm8 = vmor %vm1059_vm7, %vm1060_vm6 }
 0xc1b   :  { %v1121_v54 = vadd.f32 %v1691_v51, %v1120_v52  ;;  %v1056_v60 = vsub.f32 1.0, %v1055_v42 }
 0xc1d   :  { %1170 = vrot.lane.b32.xlu0 %v1121_v54, %s1883_s17  ;;  %v1057_v61 = vmul.f32 %v1779_v59, %v1056_v60 }
 0xc1f   :  { %v1058_v62 = vadd.f32 %v1779_v59, %v1057_v61 }
 0xc21   :  { %v1062_v2 = vsel %vm1061_vm8, %v1779_v59, %v1058_v62 }
 0xc22   :  { %v1067_v5 = vsel %vm1064_vm9, %v1066_v3, %v1062_v2  ;;  %v1692_v3 = vld [vmem:[%s2290_s2] ss:$0 sm:$0xff] }
 0xc23   :  { %v1080_v12 = vsub.f32 1.0, %v1067_v5 }
 0xc77   :  { %v1071_v4 = vpop.permute.xlu0 %1070 }
 0xc78   :  { %v1073_v7 = vmul.f32 %v1071_v4, %v1067_v5 }
 0xc7a   :  { %1075 = vrot.lane.b32.xlu1 %v1073_v7, %s1881_s13 }
 0xc7f   :  { %v1087_v11 = vpop.permute.xlu0 %1086 }
 0xc80   :  { %v1089_v15 = vmul.f32 %v1087_v11, %v1067_v5  ;;  %v1693_v5 = vld [vmem:[%s2292_s4] ss:$0 sm:$0xff] }
 0xc8f   :  { %v1171_v36 = vpop.permute.xlu0 %1170 }
 0xcec   :  { %v1076_v8 = vpop.permute.xlu1 %1075 }
 0xced   :  { %v1078_v9 = vadd.f32 %v2036_v14, %v1076_v8 }
 0xcef   :  { %1780 = vtanh.f32 %v1078_v9  ;;  %v1655_v9 = vld [vmem:[%s2288_s0 + $0x30] sm:$0xff] }
 0xcf5   :  { %v1781_v10 = vpop.eup %1780 }
 0xcf6   :  { %1082 = vrot.lane.b32.xlu2 %v1781_v10, %s1882_s16 }
 0xcfe   :  { %1124 = vrot.lane.b32.xlu2 %v1121_v54, %s1882_s16 }
 0xd50   :  { %v1083_v13 = vpop.permute.xlu2 %1082 }
 0xd51   :  { %v1085_v16 = vmul.f32 %v1083_v13, %v1080_v12 }
 0xd53   :  { %v1090_v17 = vadd.f32 %v1089_v15, %v1085_v16 }
 0xd55   :  { %1189 = vst [vmem:[#allocation1] ss:$2 sm:$0xff] %v1090_v17 }
 0xd58   :  { %v1125_v19 = vpop.permute.xlu2 %1124 }
 0xd59   :  { %v1127_v20 = vadd.f32 %v1997_v0, %v1125_v19  ;;  %v1150_v40 = vadd.f32 %v1148_v39, %v1125_v19 }
 0xd5b   :  { %v1651_v24 = vmul.f32 -1.442695, %v1127_v20  ;;  %v1652_v41 = vmul.f32 -1.442695, %v1150_v40 }
 0xd5c   :  { %v1190_v14 = vld.sshfl [vmem:[#allocation1] sm:$0xff pattern:$0x75316420] }
 0xd5d   :  { %1782 = vpow2.f32 %v1651_v24  ;;  %1191 = vrot.lane.b32.xlu1 %v1190_v14, %s1882_s16  ;;  %1196 = vst [vmem:[#allocation1] ss:$2 sm:$0xff] %v1090_v17 }
 0xd63   :  { %v1783_v25 = vpop.eup %1782 }
 0xd64   :  { %v1131_v26 = vadd.f32 1.0, %v1783_v25 }
 0xd65   :  { %1174 = vrot.lane.b32.xlu1 %v1997_v0, %s1882_s16 }
 0xd66   :  { %1784 = vrcp.f32 %v1131_v26  ;;  %v1143_v29 = vand.u32 2147483648, %v1131_v26  ;;  %v1141_v31 = vand.u32 2147483647, %v1131_v26  ;;  %vm1137_vm11 = vweird.f32 %v1131_v26 }
 0xd67   :  { %1786 = vpow2.f32 %v1652_v41 }
 0xd68   :  { %v1144_v34 = vor.u32 1.1754944e-38, %v1143_v29  ;;  %vm1142_vm13 = vcmp.eq.f32.partialorder %v1141_v31, 8.507059e+37  ;;  %v1656_v29 = vld [vmem:[%s2288_s0 + $0x8] sm:$0xff] }
 0xd6c   :  { %v1785_v22 = vpop.eup %1784 }
 0xd6d   :  { %v1133_v27 = vmul.f32 %v1785_v22, %v1131_v26  ;;  %vm1138_vm10 = vweird.f32 %v1785_v22  ;;  %v1787_v43 = vpop.eup %1786 }
 0xd6e   :  { %vm1139_vm12 = vmor %vm1137_vm11, %vm1138_vm10  ;;  %v1154_v44 = vadd.f32 1.0, %v1787_v43 }
 0xd6f   :  { %v1134_v6 = vsub.f32 1.0, %v1133_v27 }
 0xd70   :  { %1788 = vrcp.f32 %v1154_v44  ;;  %v1166_v54 = vand.u32 2147483648, %v1154_v44  ;;  %vm1160_vm15 = vweird.f32 %v1154_v44  ;;  %v1164_v56 = vand.u32 2147483647, %v1154_v44 }
 0xd71   :  { %v1135_v30 = vmul.f32 %v1785_v22, %v1134_v6 }
 0xd72   :  { %v1167_v59 = vor.u32 1.1754944e-38, %v1166_v54  ;;  %vm1165_vm3 = vcmp.eq.f32.partialorder %v1164_v56, 8.507059e+37 }
 0xd73   :  { %v1136_v32 = vadd.f32 %v1785_v22, %v1135_v30 }
 0xd75   :  { %v1140_v35 = vsel %vm1139_vm12, %v1785_v22, %v1136_v32 }
 0xd76   :  { %v1145_v37 = vsel %vm1142_vm13, %v1144_v34, %v1140_v35  ;;  %v1789_v45 = vpop.eup %1788 }
 0xd77   :  { %v1173_v38 = vmul.f32 %v1171_v36, %v1145_v37  ;;  %v1156_v46 = vmul.f32 %v1789_v45, %v1154_v44  ;;  %vm1161_vm14 = vweird.f32 %v1789_v45 }
 0xd78   :  { %vm1162_vm2 = vmor %vm1160_vm15, %vm1161_vm14 }
 0xd79   :  { %1179 = vrot.lane.b32.xlu2 %v1173_v38, %s1883_s17  ;;  %v1157_v47 = vsub.f32 1.0, %v1156_v46 }
 0xd7b   :  { %v1158_v50 = vmul.f32 %v1789_v45, %v1157_v47 }
 0xd7d   :  { %v1159_v23 = vadd.f32 %v1789_v45, %v1158_v50  ;;  %v2185_v50 = vld.sshfl [vmem:[#allocation1] sm:$0xff pattern:$0x75316420] }
 0xd7f   :  { %v1163_v57 = vsel %vm1162_vm2, %v1789_v45, %v1159_v23 }
 0xd80   :  { %v1168_v42 = vsel %vm1165_vm3, %v1167_v59, %v1163_v57 }
 0xd81   :  { %v1184_v60 = vsub.f32 1.0, %v1168_v42  ;;  %v1186_v62 = vmul.f32 %v1168_v42, %v2128_v48  ;;  %v1338_v42 = vrot.slane %v1656_v29, 4 }
 0xdcf   :  { %v1192_v49 = vpop.permute.xlu1 %1191 }
 0xdd0   :  { %1194 = vst.msk [vmem:[#allocation2] sm:$0xf] %vm55_vm0, %v1192_v49 }
 0xdd3   :  { %v1180_v0 = vpop.permute.xlu2 %1179 }
 0xdd7   :  { %v1175_v51 = vpop.permute.xlu1 %1174  ;;  %v1207_v52 = vld [vmem:[#allocation2] sm:$0xf] }
 0xdd8   :  { %v1176_v55 = vrot.slane %v1175_v51, 4  ;;  %1657 = vmatmul.msk.f32.vlgmr.msrb.gmra.mxu0 %vm70_vm1, %v1207_v52 }
 0xdda   :  { %v1182_v33 = vadd.f32 %v1180_v0, %v1176_v55 }
 0xddc   :  { %1790 = vtanh.f32 %v1182_v33 }
 0xde2   :  { %v1791_v61 = vpop.eup %1790 }
 0xde3   :  { %v1185_v63 = vmul.f32 %v1791_v61, %v1184_v60 }
 0xde5   :  { %v1187_v1 = vadd.f32 %v1186_v62, %v1185_v63 }
 0xde7   :  { %1654 = vst.msk [vmem:[%s2294_s6 + $0x8] sm:$0xf] %vm55_vm0, %v1187_v1 }
 0xde8   :  { %1195 = vst.msk [vmem:[#allocation3] sm:$0xf] %vm55_vm0, %v1187_v1 }
 0xdef   :  { %v2162_v2 = vld [vmem:[#allocation3] sm:$0xf] }
 0xdf0   :  { %1659 = vmatmul.msk.f32.vlgmr.msrb.gmra.mxu1 %vm70_vm1, %v2162_v2 }
 0xe55   :  { %v1236_v4 = vpop.f32.mrf.mxu0 }
 0xe56   :  { %v1237_v48 = vadd.f32 %v1692_v3, %v1236_v4 }
 0xe58   :  { %1260 = vrot.lane.b32.xlu0 %v1237_v48, %s1881_s13  ;;  %v1239_v10 = vadd.f32 %v1655_v9, %v1237_v48 }
 0xe5a   :  { %v1658_v11 = vmul.f32 -1.442695, %v1239_v10 }
 0xe5c   :  { %1792 = vpow2.f32 %v1658_v11 }
 0xe60   :  { %1276 = vrot.lane.b32.xlu0 %v1207_v52, %s1883_s17 }
 0xe62   :  { %v1793_v12 = vpop.eup %1792 }
 0xe63   :  { %v1243_v13 = vadd.f32 1.0, %v1793_v12 }
 0xe65   :  { %1794 = vrcp.f32 %v1243_v13  ;;  %v1255_v24 = vand.u32 2147483648, %v1243_v13  ;;  %vm1249_vm5 = vweird.f32 %v1243_v13  ;;  %v1253_v14 = vand.u32 2147483647, %v1243_v13 }
 0xe67   :  { %v1256_v26 = vor.u32 1.1754944e-38, %v1255_v24  ;;  %vm1254_vm7 = vcmp.eq.f32.partialorder %v1253_v14, 8.507059e+37 }
 0xe6b   :  { %v1795_v15 = vpop.eup %1794 }
 0xe6c   :  { %v1245_v16 = vmul.f32 %v1795_v15, %v1243_v13  ;;  %vm1250_vm4 = vweird.f32 %v1795_v15 }
 0xe6d   :  { %v1310_v7 = vpop.f32.mrf.mxu1  ;;  %vm1251_vm6 = vmor %vm1249_vm5, %vm1250_vm4 }
 0xe6e   :  { %v1311_v8 = vadd.f32 %v1693_v5, %v1310_v7  ;;  %v1246_v17 = vsub.f32 1.0, %v1245_v16 }
 0xe70   :  { %1360 = vrot.lane.b32.xlu0 %v1311_v8, %s1883_s17  ;;  %v1247_v19 = vmul.f32 %v1795_v15, %v1246_v17 }
 0xe72   :  { %v1248_v20 = vadd.f32 %v1795_v15, %v1247_v19 }
 0xe74   :  { %v1252_v25 = vsel %vm1251_vm6, %v1795_v15, %v1248_v20 }
 0xe75   :  { %v1257_v27 = vsel %vm1254_vm7, %v1256_v26, %v1252_v25 }
 0xe76   :  { %v1270_v43 = vsub.f32 1.0, %v1257_v27 }
 0xeca   :  { %v1261_v22 = vpop.permute.xlu0 %1260 }
 0xecb   :  { %v1263_v6 = vmul.f32 %v1261_v22, %v1257_v27 }
 0xecd   :  { %1265 = vrot.lane.b32.xlu1 %v1263_v6, %s1881_s13 }
 0xed2   :  { %v1277_v41 = vpop.permute.xlu0 %1276 }
 0xed3   :  { %v1279_v45 = vmul.f32 %v1277_v41, %v1257_v27  ;;  %v1694_v27 = vld [vmem:[%s2290_s2] ss:$0 sm:$0xff] }
 0xed5   :  { %1314 = vrot.lane.b32.xlu1 %v1311_v8, %s1882_s16 }
 0xedd   :  { %1364 = vrot.lane.b32.xlu1 %v1656_v29, %s1882_s16 }
 0xee2   :  { %v1361_v57 = vpop.permute.xlu0 %1360 }
 0xf3f   :  { %v1266_v30 = vpop.permute.xlu1 %1265 }
 0xf40   :  { %v1268_v31 = vadd.f32 %v1655_v9, %v1266_v30 }
 0xf42   :  { %1796 = vtanh.f32 %v1268_v31 }
 0xf47   :  { %v1315_v34 = vpop.permute.xlu1 %1314 }
 0xf48   :  { %v1797_v32 = vpop.eup %1796  ;;  %v1317_v35 = vadd.f32 %v1656_v29, %v1315_v34  ;;  %v1340_v60 = vadd.f32 %v1338_v42, %v1315_v34  ;;  %v1695_v29 = vld [vmem:[%s2292_s4] ss:$0 sm:$0xff] }
 0xf49   :  { %1272 = vrot.lane.b32.xlu2 %v1797_v32, %s1882_s16  ;;  %v2213_v32 = vld [vmem:[%s2288_s0] sm:$0xff] }
 0xf4a   :  { %v1660_v36 = vmul.f32 -1.442695, %v1317_v35  ;;  %v1661_v61 = vmul.f32 -1.442695, %v1340_v60  ;;  %v1664_v35 = vld [vmem:[%s2288_s0 + $0x38] sm:$0xff] }
 0xf4c   :  { %1798 = vpow2.f32 %v1660_v36 }
 0xf4f   :  { %v1365_v7 = vpop.permute.xlu1 %1364 }
 0xf50   :  { %v1366_v8 = vrot.slane %v1365_v7, 4 }
 0xf52   :  { %v1799_v37 = vpop.eup %1798 }
 0xf53   :  { %v1321_v38 = vadd.f32 1.0, %v1799_v37 }
 0xf55   :  { %1800 = vrcp.f32 %v1321_v38  ;;  %v1333_v52 = vand.u32 2147483648, %v1321_v38  ;;  %vm1327_vm9 = vweird.f32 %v1321_v38  ;;  %v1331_v54 = vand.u32 2147483647, %v1321_v38 }
 0xf56   :  { %1802 = vpow2.f32 %v1661_v61 }
 0xf57   :  { %v1334_v56 = vor.u32 1.1754944e-38, %v1333_v52  ;;  %vm1332_vm11 = vcmp.eq.f32.partialorder %v1331_v54, 8.507059e+37 }
 0xf5b   :  { %v1801_v39 = vpop.eup %1800 }
 0xf5c   :  { %v1323_v40 = vmul.f32 %v1801_v39, %v1321_v38  ;;  %vm1328_vm8 = vweird.f32 %v1801_v39  ;;  %v1803_v62 = vpop.eup %1802 }
 0xf5d   :  { %vm1329_vm10 = vmor %vm1327_vm9, %vm1328_vm8  ;;  %v1344_v63 = vadd.f32 1.0, %v1803_v62 }
 0xf5e   :  { %v1324_v47 = vsub.f32 1.0, %v1323_v40 }
 0xf5f   :  { %1804 = vrcp.f32 %v1344_v63  ;;  %v1356_v10 = vand.u32 2147483648, %v1344_v63  ;;  %vm1350_vm13 = vweird.f32 %v1344_v63  ;;  %v1354_v11 = vand.u32 2147483647, %v1344_v63 }
 0xf60   :  { %v1325_v23 = vmul.f32 %v1801_v39, %v1324_v47 }
 0xf61   :  { %v1357_v17 = vor.u32 1.1754944e-38, %v1356_v10  ;;  %vm1355_vm15 = vcmp.eq.f32.partialorder %v1354_v11, 8.507059e+37 }
 0xf62   :  { %v1326_v51 = vadd.f32 %v1801_v39, %v1325_v23 }
 0xf64   :  { %v1330_v0 = vsel %vm1329_vm10, %v1801_v39, %v1326_v51 }
 0xf65   :  { %v1335_v33 = vsel %vm1332_vm11, %v1334_v56, %v1330_v0  ;;  %v1805_v1 = vpop.eup %1804 }
 0xf66   :  { %v1363_v59 = vmul.f32 %v1361_v57, %v1335_v33  ;;  %v1346_v3 = vmul.f32 %v1805_v1, %v1344_v63  ;;  %vm1351_vm12 = vweird.f32 %v1805_v1 }
 0xf67   :  { %vm1352_vm14 = vmor %vm1350_vm13, %vm1351_vm12 }
 0xf68   :  { %v1347_v4 = vsub.f32 1.0, %v1346_v3 }
 0xf6a   :  { %v1348_v5 = vmul.f32 %v1805_v1, %v1347_v4 }
 0xf6c   :  { %v1349_v9 = vadd.f32 %v1805_v1, %v1348_v5 }
 0xf6e   :  { %v1353_v16 = vsel %vm1352_vm14, %v1805_v1, %v1349_v9 }
 0xf6f   :  { %v1358_v19 = vsel %vm1355_vm15, %v1357_v17, %v1353_v16 }
 0xf70   :  { %v1374_v20 = vsub.f32 1.0, %v1358_v19  ;;  %v1376_v14 = vmul.f32 %v1358_v19, %v2162_v2 }
 0xfa3   :  { %v1273_v44 = vpop.permute.xlu2 %1272 }
 0xfa4   :  { %v1275_v46 = vmul.f32 %v1273_v44, %v1270_v43 }
 0xfa6   :  { %v1280_v49 = vadd.f32 %v1279_v45, %v1275_v46 }
 0xfa8   :  { %1379 = vst [vmem:[#allocation1] ss:$2 sm:$0xff] %v1280_v49 }
 0xfaf   :  { %v1380_v55 = vld.sshfl [vmem:[#allocation1] sm:$0xff pattern:$0x75316420] }
 0xfb0   :  { %1381 = vrot.lane.b32.xlu2 %v1380_v55, %s1882_s16  ;;  %1386 = vst [vmem:[#allocation1] ss:$2 sm:$0xff] %v1280_v49 }
 0xfb7   :  { %v1387_v34 = vld.sshfl [vmem:[#allocation1] sm:$0xff pattern:$0x75316420] }
 0xfb8   :  { %1369 = vrot.lane.b32.xlu2 %v1363_v59, %s1883_s17 }
0x100a   :  { %v1382_v48 = vpop.permute.xlu2 %1381 }
0x100b   :  { %1384 = vst.msk [vmem:[#allocation2] sm:$0xf] %vm55_vm0, %v1382_v48 }
0x1012   :  { %v1370_v12 = vpop.permute.xlu2 %1369  ;;  %v1397_v13 = vld [vmem:[#allocation2] sm:$0xf] }
0x1013   :  { %v1372_v15 = vadd.f32 %v1370_v12, %v1366_v8  ;;  %1665 = vmatmul.msk.f32.vlgmr.msrb.gmra.mxu2 %vm70_vm1, %v1397_v13 }
0x1015   :  { %1806 = vtanh.f32 %v1372_v15  ;;  %v1528_v15 = vrot.slane %v2213_v32, 4 }
0x101b   :  { %v1807_v24 = vpop.eup %1806 }
0x101c   :  { %v1375_v25 = vmul.f32 %v1807_v24, %v1374_v20 }
0x101e   :  { %v1377_v26 = vadd.f32 %v1376_v14, %v1375_v25 }
0x1020   :  { %1663 = vst.msk [vmem:[%s2294_s6 + $0x4] sm:$0xf] %vm55_vm0, %v1377_v26 }
0x1021   :  { %1385 = vst.msk [vmem:[#allocation3] sm:$0xf] %vm55_vm0, %v1377_v26 }
0x1028   :  { %v2197_v22 = vld [vmem:[#allocation3] sm:$0xf] }
0x1029   :  { %1667 = vmatmul.msk.f32.vlgmr.msrb.gmra.mxu3 %vm70_vm1, %v2197_v22 }
0x1096   :  { %v1426_v6 = vpop.f32.mrf.mxu2 }
0x1097   :  { %v1427_v2 = vadd.f32 %v1694_v27, %v1426_v6 }
0x1099   :  { %1450 = vrot.lane.b32.xlu0 %v1427_v2, %s1881_s13  ;;  %v1429_v36 = vadd.f32 %v1664_v35, %v1427_v2 }
0x109b   :  { %v1666_v37 = vmul.f32 -1.442695, %v1429_v36 }
0x109d   :  { %1808 = vpow2.f32 %v1666_v37 }
0x10a3   :  { %v1809_v38 = vpop.eup %1808 }
0x10a4   :  { %v1433_v39 = vadd.f32 1.0, %v1809_v38 }
0x10a6   :  { %1810 = vrcp.f32 %v1433_v39  ;;  %vm1439_vm2 = vweird.f32 %v1433_v39  ;;  %v1443_v44 = vand.u32 2147483647, %v1433_v39 }
0x10a8   :  { %vm1444_vm4 = vcmp.eq.f32.partialorder %v1443_v44, 8.507059e+37 }
0x10ac   :  { %v1500_v30 = vpop.f32.mrf.mxu3 }
0x10ad   :  { %v1501_v31 = vadd.f32 %v1695_v29, %v1500_v30 }
0x10af   :  { %1550 = vrot.lane.b32.xlu0 %v1501_v31, %s1883_s17  ;;  %1504 = vrot.lane.b32.xlu2 %v1501_v31, %s1882_s16 }
0x10b7   :  { %1554 = vrot.lane.b32.xlu0 %v2213_v32, %s1882_s16  ;;  %1466 = vrot.lane.b32.xlu2 %v1397_v13, %s1883_s17 }
0x10bf   :  { %243 = vrot.lane.b32.xlu0 %v1969_v21, %s1882_s16  ;;  %626 = vrot.lane.b32.xlu2 %v2068_v28, %s1882_s16  ;;  %v1811_v21 = vpop.eup %1810 }
0x10c0   :  { %v1435_v40 = vmul.f32 %v1811_v21, %v1433_v39  ;;  %vm1440_vm1 = vweird.f32 %v1811_v21 }
0x10c1   :  { %vm1441_vm3 = vmor %vm1439_vm2, %vm1440_vm1 }
0x10c2   :  { %v1436_v41 = vsub.f32 1.0, %v1435_v40 }
0x10c4   :  { %v1437_v28 = vmul.f32 %v1811_v21, %v1436_v41 }
0x10c6   :  { %v1438_v43 = vadd.f32 %v1811_v21, %v1437_v28 }
0x10c7   :  { %818 = vrot.lane.b32.xlu0 %v2112_v53, %s1882_s16  ;;  %v1445_v53 = vand.u32 2147483648, %v1433_v39 }
0x10c8   :  { %v1442_v45 = vsel %vm1441_vm3, %v1811_v21, %v1438_v43 }
0x10c9   :  { %v1446_v47 = vor.u32 1.1754944e-38, %v1445_v53 }
0x10cb   :  { %v1447_v51 = vsel %vm1444_vm4, %v1446_v47, %v1442_v45 }
0x10cc   :  { %v1460_v26 = vsub.f32 1.0, %v1447_v51 }
0x10cf   :  { %1388 = vrot.lane.b32.xlu0 %v1387_v34, %s1882_s16 }
0x1109   :  { %v1505_v46 = vpop.permute.xlu2 %1504 }
0x110a   :  { %v1507_v49 = vadd.f32 %v1505_v46, %v2213_v32  ;;  %v1530_v16 = vadd.f32 %v1528_v15, %v1505_v46 }
0x110b   :  { %v1451_v23 = vpop.permute.xlu0 %1450 }
0x110c   :  { %v1668_v52 = vmul.f32 -1.442695, %v1507_v49  ;;  %v1453_v54 = vmul.f32 %v1451_v23, %v1447_v51  ;;  %v1669_v17 = vmul.f32 -1.442695, %v1530_v16 }
0x110e   :  { %1812 = vpow2.f32 %v1668_v52  ;;  %1455 = vrot.lane.b32.xlu1 %v1453_v54, %s1881_s13 }
0x1111   :  { %v1467_v55 = vpop.permute.xlu2 %1466 }
0x1112   :  { %v1469_v6 = vmul.f32 %v1467_v55, %v1447_v51 }
0x1114   :  { %v1813_v0 = vpop.eup %1812 }
0x1115   :  { %v1511_v56 = vadd.f32 1.0, %v1813_v0 }
0x1117   :  { %1814 = vrcp.f32 %v1511_v56  ;;  %v1523_v61 = vand.u32 2147483648, %v1511_v56  ;;  %v1521_v63 = vand.u32 2147483647, %v1511_v56  ;;  %vm1517_vm6 = vweird.f32 %v1511_v56 }
0x1119   :  { %v627_v33 = vpop.permute.xlu2 %626  ;;  %v1524_v3 = vor.u32 1.1754944e-38, %v1523_v61  ;;  %vm1522_vm8 = vcmp.eq.f32.partialorder %v1521_v63, 8.507059e+37 }
0x111a   :  { %1626 = vst.msk [vmem:[%s2293_s5 + $0x8] sm:$0xf] %vm55_vm0, %v627_v33 }
0x111d   :  { %v1815_v57 = vpop.eup %1814 }
0x111e   :  { %v1513_v59 = vmul.f32 %v1815_v57, %v1511_v56  ;;  %vm1518_vm5 = vweird.f32 %v1815_v57 }
0x111f   :  { %vm1519_vm7 = vmor %vm1517_vm6, %vm1518_vm5 }
0x1120   :  { %v1514_v42 = vsub.f32 1.0, %v1513_v59 }
0x1121   :  { %v1551_v60 = vpop.permute.xlu0 %1550 }
0x1122   :  { %v1515_v62 = vmul.f32 %v1815_v57, %v1514_v42 }
0x1124   :  { %v1516_v1 = vadd.f32 %v1815_v57, %v1515_v62 }
0x1126   :  { %v1520_v4 = vsel %vm1519_vm7, %v1815_v57, %v1516_v1 }
0x1127   :  { %v1525_v48 = vsel %vm1522_vm8, %v1524_v3, %v1520_v4 }
0x1128   :  { %v1553_v5 = vmul.f32 %v1551_v60, %v1525_v48 }
0x1129   :  { %v1555_v7 = vpop.permute.xlu0 %1554 }
0x112a   :  { %v1556_v30 = vrot.slane %v1555_v7, 4 }
0x1131   :  { %v244_v8 = vpop.permute.xlu0 %243 }
0x1132   :  { %246 = vst.msk [vmem:[%s2293_s5] sm:$0xf] %vm55_vm0, %v244_v8 }
0x1139   :  { %v819_v9 = vpop.permute.xlu0 %818 }
0x113a   :  { %1635 = vst.msk [vmem:[%s2293_s5 + $0xc] sm:$0xf] %vm55_vm0, %v819_v9 }
0x1141   :  { %v1389_v10 = vpop.permute.xlu0 %1388 }
0x1142   :  { %1662 = vst.msk [vmem:[%s2293_s5 + $0x18] sm:$0xf] %vm55_vm0, %v1389_v10 }
0x1180   :  { %v1456_v11 = vpop.permute.xlu1 %1455 }
0x1181   :  { %v1458_v12 = vadd.f32 %v1664_v35, %v1456_v11 }
0x1183   :  { %1816 = vtanh.f32 %v1458_v12 }
0x1184   :  { %1818 = vpow2.f32 %v1669_v17 }
0x1189   :  { %v1817_v13 = vpop.eup %1816 }
0x118a   :  { %1462 = vrot.lane.b32.xlu1 %v1817_v13, %s1882_s16  ;;  %v1819_v19 = vpop.eup %1818 }
0x118b   :  { %v1534_v20 = vadd.f32 1.0, %v1819_v19 }
0x118d   :  { %1820 = vrcp.f32 %v1534_v20  ;;  %v1546_v31 = vand.u32 2147483648, %v1534_v20  ;;  %vm1540_vm10 = vweird.f32 %v1534_v20  ;;  %v1544_v34 = vand.u32 2147483647, %v1534_v20 }
0x118f   :  { %v1547_v37 = vor.u32 1.1754944e-38, %v1546_v31  ;;  %vm1545_vm12 = vcmp.eq.f32.partialorder %v1544_v34, 8.507059e+37 }
0x1192   :  { %1559 = vrot.lane.b32.xlu1 %v1553_v5, %s1883_s17 }
0x1193   :  { %v1821_v24 = vpop.eup %1820 }
0x1194   :  { %v1536_v14 = vmul.f32 %v1821_v24, %v1534_v20  ;;  %vm1541_vm9 = vweird.f32 %v1821_v24 }
0x1195   :  { %vm1542_vm11 = vmor %vm1540_vm10, %vm1541_vm9 }
0x1196   :  { %v1537_v25 = vsub.f32 1.0, %v1536_v14 }
0x1198   :  { %v1538_v29 = vmul.f32 %v1821_v24, %v1537_v25 }
0x119a   :  { %434 = vrot.lane.b32.xlu1 %v2024_v58, %s1882_s16 }
0x11a2   :  { %1008 = vrot.lane.b32.xlu1 %v2146_v18, %s1882_s16  ;;  %v1539_v18 = vadd.f32 %v1821_v24, %v1538_v29 }
0x11a4   :  { %v1543_v36 = vsel %vm1542_vm11, %v1821_v24, %v1539_v18 }
0x11a5   :  { %v1548_v39 = vsel %vm1545_vm12, %v1547_v37, %v1543_v36 }
0x11a6   :  { %v1564_v21 = vsub.f32 1.0, %v1548_v39  ;;  %v1566_v43 = vmul.f32 %v1548_v39, %v2197_v22 }
0x11fc   :  { %v1463_v27 = vpop.permute.xlu1 %1462 }
0x11fd   :  { %v1465_v2 = vmul.f32 %v1463_v27, %v1460_v26 }
0x11ff   :  { %v1470_v58 = vadd.f32 %v1469_v6, %v1465_v2 }
0x1201   :  { %1569 = vst [vmem:[#allocation1] ss:$2 sm:$0xff] %v1470_v58 }
0x1204   :  { %v1560_v32 = vpop.permute.xlu1 %1559 }
0x1205   :  { %v1562_v35 = vadd.f32 %v1560_v32, %v1556_v30 }
0x1207   :  { %1822 = vtanh.f32 %v1562_v35 }
0x1208   :  { %v1570_v38 = vld.sshfl [vmem:[#allocation1] sm:$0xff pattern:$0x75316420] }
0x1209   :  { %1571 = vrot.lane.b32.xlu2 %v1570_v38, %s1882_s16  ;;  %1576 = vst [vmem:[#allocation1] ss:$2 sm:$0xff] %v1470_v58 }
0x120c   :  { %v435_v40 = vpop.permute.xlu1 %434 }
0x120d   :  { %v1823_v41 = vpop.eup %1822  ;;  %1617 = vst.msk [vmem:[%s2293_s5 + $0x4] sm:$0xf] %vm55_vm0, %v435_v40 }
0x120e   :  { %v1565_v28 = vmul.f32 %v1823_v41, %v1564_v21 }
0x1210   :  { %v1567_v53 = vadd.f32 %v1566_v43, %v1565_v28  ;;  %v1577_v44 = vld.sshfl [vmem:[#allocation1] sm:$0xff pattern:$0x75316420] }
0x1211   :  { %1198 = vrot.lane.b32.xlu2 %v2185_v50, %s1882_s16  ;;  %1578 = vrot.lane.b32.xlu1 %v1577_v44, %s1882_s16 }
0x1212   :  { %1575 = vst.msk [vmem:[#allocation3] sm:$0xf] %vm55_vm0, %v1567_v53 }
0x1213   :  { %1583 = vst.msk [vmem:[%s2294_s6] sm:$0xf] %vm55_vm0, %v1567_v53 }
0x1214   :  { %v1009_v45 = vpop.permute.xlu1 %1008 }
0x1215   :  { %1644 = vst.msk [vmem:[%s2293_s5 + $0x10] sm:$0xf] %vm55_vm0, %v1009_v45 }
0x1219   :  { %v1586_v22 = vld [vmem:[#allocation3] sm:$0xf] }
0x121a   :  { %1671 = vst.msk [vmem:[%s2295_s7 + $0x4] sm:$0xf] %vm55_vm0, %v1586_v22 }
0x1263   :  { %v1572_v50 = vpop.permute.xlu2 %1571 }
0x1264   :  { %1574 = vst.msk [vmem:[#allocation2] sm:$0xf] %vm55_vm0, %v1572_v50 }
0x126b   :  { %v1584_v46 = vld [vmem:[#allocation2] sm:$0xf]  ;;  %v1199_v47 = vpop.permute.xlu2 %1198 }
0x126c   :  { %1585 = vst.msk [vmem:[%s2295_s7] sm:$0xf] %vm55_vm0, %v1584_v46 }
0x126d   :  { %1653 = vst.msk [vmem:[%s2293_s5 + $0x14] sm:$0xf] %vm55_vm0, %v1199_v47 }
0x1283   :  { %v1579_v49 = vpop.permute.xlu1 %1578 }
0x1284   :  { %1670 = vst.msk [vmem:[%s2293_s5 + $0x1c] sm:$0xf] %vm55_vm0, %v1579_v49 }
0x1285   :  { %1601 = vsyncpa [#allocation5], 1 }
0x1286   :  { %1602 = vsyncpa [#allocation7], 1 }

// kernel: encoder_seq2seq_forward.7
= control target key start
LH: loop header
LB: loop body
LE: loop exit
PB: predicated region body
PF: predicated region fallthrough
CT: control target
= control target key end

     0   :  { %vm23_vm0 = vcmask 257024   ;;  %v1786_v2 = vmov 0.0   ;;  %vm38_vm1 = vcmask 261120   ;;  %s1787_s11 = smov 64   ;;  %s1788_s14 = smov 96   ;;  %s2236_s1 = inlined_call_operand.vmem [shape: f32[32,96], index: 1, kind: input, shape index: {}]   ;;  %s2237_s2 = inlined_call_operand.vmem [shape: f32[1,96], index: 2, kind: input, shape index: {}]   ;;  %s2238_s0 = inlined_call_operand.vmem [shape: f32[8,4,192], index: 0, kind: input, shape index: {}]   ;;  %s2239_s4 = inlined_call_operand.vmem [shape: f32[1,96], index: 4, kind: input, shape index: {}]   ;;  %s2240_s3 = inlined_call_operand.vmem [shape: f32[32,96], index: 3, kind: input, shape index: {}]   ;;  %s2241_s6 = inlined_call_operand.vmem [shape: f32[8,4,32], index: 6, kind: output, shape index: {1}]   ;;  %s2242_s5 = inlined_call_operand.vmem [shape: f32[8,4,32], index: 5, kind: output, shape index: {0}]   ;;  %s2243_s7 = inlined_call_operand.vmem [shape: f32[2,4,32], index: 7, kind: output, shape index: {2}]  }
   0x1   :  { %v33_v0 = vld [vmem:[%s2236_s1 + $0x18] sm:$0xff]  ;;  %v32_v1 = vld [vmem:[%s2236_s1 + $0x10] sm:$0xff]  ;;  %24 = vst.msk [vmem:[#allocation2] sm:$0xf] %vm23_vm0, %v1786_v2  ;;  %v31_v3 = vld [vmem:[%s2236_s1 + $0x8] sm:$0xff]  ;;  %s1789_s15 = smov 32  }
   0x2   :  { %54 = vmatpush.msra.mxu0 %v33_v0  ;;  %25 = vst.msk [vmem:[#allocation3] sm:$0xf] %vm23_vm0, %v1786_v2  ;;  %245 = vmatpush.msra.mxu2 %v33_v0  ;;  %v30_v4 = vld [vmem:[%s2236_s1] sm:$0xff]  ;;  %v108_v38 = vld [vmem:[%s2240_s3 + $0x18] sm:$0xff]  ;;  %v107_v39 = vld [vmem:[%s2240_s3 + $0x10] sm:$0xff] }
   0x3   :  { %v1642_v6 = vld [vmem:[%s2237_s2] ss:$0 sm:$0xff]  ;;  %128 = vmatpush.msra.mxu1 %v108_v38  ;;  %319 = vmatpush.msra.mxu3 %v108_v38  ;;  %v106_v40 = vld [vmem:[%s2240_s3 + $0x8] sm:$0xff]  ;;  %v1569_v2 = vld [vmem:[%s2238_s0 + $0x38] sm:$0xff] }
   0x4   :  { %55 = vmatpush.msra.mxu0 %v32_v1  ;;  %246 = vmatpush.msra.mxu2 %v32_v1  ;;  %v26_v9 = vld [vmem:[%s2238_s0] sm:$0xff]  ;;  %v1576_v46 = vld [vmem:[%s2238_s0 + $0x8] sm:$0xff] }
   0x5   :  { %129 = vmatpush.msra.mxu1 %v107_v39  ;;  %320 = vmatpush.msra.mxu3 %v107_v39  ;;  %v105_v41 = vld [vmem:[%s2240_s3] sm:$0xff] }
   0x6   :  { %56 = vmatpush.msra.mxu0 %v31_v3  ;;  %247 = vmatpush.msra.mxu2 %v31_v3  ;;  %v1643_v43 = vld [vmem:[%s2237_s2] ss:$0 sm:$0xff] }
   0x7   :  { %130 = vmatpush.msra.mxu1 %v106_v40  ;;  %321 = vmatpush.msra.mxu3 %v106_v40  ;;  %v1644_v63 = vld [vmem:[%s2239_s4] ss:$0 sm:$0xff] }
   0x8   :  { %57 = vmatpush.msra.mxu0 %v30_v4  ;;  %v29_v5 = vld [vmem:[#allocation2] sm:$0xf]  ;;  %248 = vmatpush.msra.mxu2 %v30_v4 }
   0x9   :  { %1570 = vmatmul.msk.f32.vlgmr.msra.gmra.mxu0 %vm38_vm1, %v29_v5  ;;  %v1870_v42 = vld [vmem:[#allocation3] sm:$0xf]  ;;  %131 = vmatpush.msra.mxu1 %v105_v41 }
   0xa   :  { %629 = vmatpush.msrb.mxu2 %v33_v0  ;;  %437 = vmatpush.msrb.mxu0 %v33_v0 }
   0xb   :  { %322 = vmatpush.msra.mxu3 %v105_v41  ;;  %1572 = vmatmul.msk.f32.vlgmr.msra.gmra.mxu1 %vm38_vm1, %v1870_v42 }
   0xc   :  { %630 = vmatpush.msrb.mxu2 %v32_v1  ;;  %438 = vmatpush.msrb.mxu0 %v32_v1 }
   0xd   :  { %703 = vmatpush.msrb.mxu3 %v108_v38  ;;  %511 = vmatpush.msrb.mxu1 %v108_v38 }
   0xe   :  { %631 = vmatpush.msrb.mxu2 %v31_v3  ;;  %439 = vmatpush.msrb.mxu0 %v31_v3 }
   0xf   :  { %704 = vmatpush.msrb.mxu3 %v107_v39  ;;  %512 = vmatpush.msrb.mxu1 %v107_v39 }
  0x10   :  { %632 = vmatpush.msrb.mxu2 %v30_v4  ;;  %440 = vmatpush.msrb.mxu0 %v30_v4 }
  0x11   :  { %705 = vmatpush.msrb.mxu3 %v106_v40  ;;  %513 = vmatpush.msrb.mxu1 %v106_v40 }
  0x12   :  { %819 = vmatpush.msra.mxu0 %v33_v0 }
  0x13   :  { %706 = vmatpush.msrb.mxu3 %v105_v41  ;;  %514 = vmatpush.msrb.mxu1 %v105_v41 }
  0x14   :  { %820 = vmatpush.msra.mxu0 %v32_v1 }
  0x15   :  { %893 = vmatpush.msra.mxu1 %v108_v38 }
  0x16   :  { %821 = vmatpush.msra.mxu0 %v31_v3 }
  0x17   :  { %894 = vmatpush.msra.mxu1 %v107_v39 }
  0x18   :  { %822 = vmatpush.msra.mxu0 %v30_v4 }
  0x19   :  { %895 = vmatpush.msra.mxu1 %v106_v40 }
  0x1b   :  { %896 = vmatpush.msra.mxu1 %v105_v41 }
  0x86   :  { %v59_v7 = vpop.f32.mrf.mxu0 }
  0x87   :  { %v60_v8 = vadd.f32 %v1642_v6, %v59_v7 }
  0x88   :  { %v133_v0 = vpop.f32.mrf.mxu1 }
  0x89   :  { %83 = vrot.lane.b32.xlu0 %v60_v8, %s1787_s11  ;;  %v62_v10 = vadd.f32 %v60_v8, %v26_v9  ;;  %v134_v1 = vadd.f32 %v1644_v63, %v133_v0  ;;  %v1921_v0 = vld [vmem:[%s2238_s0 + $0x10] sm:$0xff] }
  0x8b   :  { %v1571_v11 = vmul.f32 -1.442695, %v62_v10 }
  0x8d   :  { %1658 = vpow2.f32 %v1571_v11 }
  0x93   :  { %v1659_v12 = vpop.eup %1658 }
  0x94   :  { %v66_v13 = vadd.f32 1.0, %v1659_v12 }
  0x96   :  { %1660 = vrcp.f32 %v66_v13  ;;  %v78_v19 = vand.u32 2147483648, %v66_v13  ;;  %vm72_vm3 = vweird.f32 %v66_v13  ;;  %v76_v20 = vand.u32 2147483647, %v66_v13 }
  0x98   :  { %v79_v22 = vor.u32 1.1754944e-38, %v78_v19  ;;  %vm77_vm5 = vcmp.eq.f32.partialorder %v76_v20, 8.507059e+37 }
  0x9c   :  { %v1661_v14 = vpop.eup %1660 }
  0x9d   :  { %v68_v15 = vmul.f32 %v1661_v14, %v66_v13  ;;  %vm73_vm2 = vweird.f32 %v1661_v14 }
  0x9e   :  { %vm74_vm4 = vmor %vm72_vm3, %vm73_vm2 }
  0x9f   :  { %v69_v16 = vsub.f32 1.0, %v68_v15 }
  0xa1   :  { %v70_v17 = vmul.f32 %v1661_v14, %v69_v16 }
  0xa3   :  { %v71_v18 = vadd.f32 %v1661_v14, %v70_v17 }
  0xa5   :  { %v75_v21 = vsel %vm74_vm4, %v1661_v14, %v71_v18 }
  0xa6   :  { %v80_v24 = vsel %vm77_vm5, %v79_v22, %v75_v21 }
  0xa7   :  { %v93_v30 = vsub.f32 1.0, %v80_v24 }
  0xfb   :  { %v84_v23 = vpop.permute.xlu0 %83 }
  0xfc   :  { %v86_v25 = vmul.f32 %v84_v23, %v80_v24 }
  0xfe   :  { %88 = vrot.lane.b32.xlu0 %v86_v25, %s1787_s11 }
 0x170   :  { %v89_v26 = vpop.permute.xlu0 %88 }
 0x171   :  { %v91_v27 = vadd.f32 %v89_v26, %v26_v9 }
 0x173   :  { %1662 = vtanh.f32 %v91_v27 }
 0x179   :  { %v1663_v28 = vpop.eup %1662 }
 0x17a   :  { %95 = vrot.lane.b32.xlu1 %v1663_v28, %s1788_s14 }
 0x182   :  { %99 = vrot.lane.b32.xlu1 %v29_v5, %s1789_s15 }
 0x1ec   :  { %v96_v29 = vpop.permute.xlu1 %95 }
 0x1ed   :  { %v98_v32 = vmul.f32 %v96_v29, %v93_v30 }
 0x1f4   :  { %v100_v31 = vpop.permute.xlu1 %99 }
 0x1f5   :  { %v102_v33 = vmul.f32 %v100_v31, %v80_v24  ;;  %v161_v31 = vrot.slane %v1569_v2, 4 }
 0x1f7   :  { %v103_v34 = vadd.f32 %v102_v33, %v98_v32 }
 0x1f9   :  { %202 = vst [vmem:[#allocation1] ss:$2 sm:$0xff] %v103_v34 }
 0x200   :  { %v203_v35 = vld.sshfl [vmem:[#allocation1] sm:$0xff pattern:$0x75316420] }
 0x201   :  { %209 = vst [vmem:[#allocation1] ss:$2 sm:$0xff] %v103_v34  ;;  %204 = vrot.lane.b32.xlu2 %v203_v35, %s1788_s14 }
 0x208   :  { %v1893_v21 = vld.sshfl [vmem:[#allocation1] sm:$0xff pattern:$0x75316420] }
 0x25b   :  { %v205_v36 = vpop.permute.xlu2 %204 }
 0x25c   :  { %207 = vst.msk [vmem:[#allocation2] sm:$0xf] %vm23_vm0, %v205_v36 }
 0x263   :  { %v221_v37 = vld [vmem:[#allocation2] sm:$0xf] }
 0x264   :  { %1578 = vmatmul.msk.f32.vlgmr.msra.gmra.mxu2 %vm38_vm1, %v221_v37 }
 0x2e7   :  { %v250_v44 = vpop.f32.mrf.mxu2 }
 0x2e8   :  { %v251_v45 = vadd.f32 %v1643_v43, %v250_v44 }
 0x2ea   :  { %274 = vrot.lane.b32.xlu2 %v251_v45, %s1787_s11  ;;  %v253_v47 = vadd.f32 %v1576_v46, %v251_v45 }
 0x2ec   :  { %v1579_v48 = vmul.f32 -1.442695, %v253_v47 }
 0x2ee   :  { %1664 = vpow2.f32 %v1579_v48 }
 0x2f2   :  { %290 = vrot.lane.b32.xlu2 %v221_v37, %s1789_s15 }
 0x2f4   :  { %v1665_v49 = vpop.eup %1664 }
 0x2f5   :  { %v257_v50 = vadd.f32 1.0, %v1665_v49 }
 0x2f7   :  { %1666 = vrcp.f32 %v257_v50  ;;  %v269_v56 = vand.u32 2147483648, %v257_v50  ;;  %vm263_vm7 = vweird.f32 %v257_v50  ;;  %v267_v57 = vand.u32 2147483647, %v257_v50 }
 0x2f9   :  { %v270_v59 = vor.u32 1.1754944e-38, %v269_v56  ;;  %vm268_vm9 = vcmp.eq.f32.partialorder %v267_v57, 8.507059e+37 }
 0x2fa   :  { %183 = vrot.lane.b32.xlu2 %v134_v1, %s1789_s15 }
 0x2fd   :  { %v1667_v51 = vpop.eup %1666 }
 0x2fe   :  { %v259_v52 = vmul.f32 %v1667_v51, %v257_v50  ;;  %vm264_vm6 = vweird.f32 %v1667_v51 }
 0x2ff   :  { %vm265_vm8 = vmor %vm263_vm7, %vm264_vm6 }
 0x300   :  { %v260_v53 = vsub.f32 1.0, %v259_v52 }
 0x302   :  { %v261_v54 = vmul.f32 %v1667_v51, %v260_v53 }
 0x304   :  { %v262_v55 = vadd.f32 %v1667_v51, %v261_v54 }
 0x306   :  { %v266_v58 = vsel %vm265_vm8, %v1667_v51, %v262_v55 }
 0x307   :  { %v271_v61 = vsel %vm268_vm9, %v270_v59, %v266_v58  ;;  %v1645_v59 = vld [vmem:[%s2237_s2] ss:$0 sm:$0xff] }
 0x308   :  { %v284_v14 = vsub.f32 1.0, %v271_v61 }
 0x344   :  { %v275_v60 = vpop.permute.xlu2 %274 }
 0x345   :  { %v277_v62 = vmul.f32 %v275_v60, %v271_v61 }
 0x347   :  { %279 = vrot.lane.b32.xlu0 %v277_v62, %s1787_s11 }
 0x34c   :  { %v291_v13 = vpop.permute.xlu2 %290 }
 0x34d   :  { %v293_v17 = vmul.f32 %v291_v13, %v271_v61  ;;  %v1646_v61 = vld [vmem:[%s2239_s4] ss:$0 sm:$0xff] }
 0x34f   :  { %137 = vrot.lane.b32.xlu0 %v134_v1, %s1788_s14 }
 0x354   :  { %v184_v28 = vpop.permute.xlu2 %183 }
 0x357   :  { %187 = vrot.lane.b32.xlu0 %v1569_v2, %s1788_s14 }
 0x3b9   :  { %v280_v3 = vpop.permute.xlu0 %279 }
 0x3ba   :  { %v282_v4 = vadd.f32 %v1576_v46, %v280_v3 }
 0x3bc   :  { %1668 = vtanh.f32 %v282_v4 }
 0x3c1   :  { %v138_v6 = vpop.permute.xlu0 %137 }
 0x3c2   :  { %v1669_v5 = vpop.eup %1668  ;;  %v140_v7 = vadd.f32 %v1569_v2, %v138_v6  ;;  %v163_v32 = vadd.f32 %v161_v31, %v138_v6 }
 0x3c3   :  { %286 = vrot.lane.b32.xlu1 %v1669_v5, %s1788_s14 }
 0x3c4   :  { %v1573_v8 = vmul.f32 -1.442695, %v140_v7  ;;  %v1574_v33 = vmul.f32 -1.442695, %v163_v32 }
 0x3c6   :  { %1670 = vpow2.f32 %v1573_v8 }
 0x3c9   :  { %v188_v41 = vpop.permute.xlu0 %187 }
 0x3ca   :  { %v189_v46 = vrot.slane %v188_v41, 4 }
 0x3cc   :  { %v1671_v9 = vpop.eup %1670 }
 0x3cd   :  { %v144_v10 = vadd.f32 1.0, %v1671_v9 }
 0x3cf   :  { %1672 = vrcp.f32 %v144_v10  ;;  %vm150_vm10 = vweird.f32 %v144_v10  ;;  %v156_v22 = vand.u32 2147483648, %v144_v10  ;;  %v154_v24 = vand.u32 2147483647, %v144_v10 }
 0x3d0   :  { %1674 = vpow2.f32 %v1574_v33 }
 0x3d1   :  { %v157_v25 = vor.u32 1.1754944e-38, %v156_v22  ;;  %vm155_vm13 = vcmp.eq.f32.partialorder %v154_v24, 8.507059e+37 }
 0x3d5   :  { %v1673_v11 = vpop.eup %1672 }
 0x3d6   :  { %v146_v12 = vmul.f32 %v1673_v11, %v144_v10  ;;  %vm151_vm11 = vweird.f32 %v1673_v11  ;;  %v1675_v34 = vpop.eup %1674 }
 0x3d7   :  { %vm152_vm12 = vmor %vm150_vm10, %vm151_vm11  ;;  %v167_v35 = vadd.f32 1.0, %v1675_v34 }
 0x3d8   :  { %v147_v15 = vsub.f32 1.0, %v146_v12 }
 0x3d9   :  { %1676 = vrcp.f32 %v167_v35  ;;  %vm173_vm14 = vweird.f32 %v167_v35  ;;  %v179_v43 = vand.u32 2147483648, %v167_v35  ;;  %v177_v45 = vand.u32 2147483647, %v167_v35 }
 0x3da   :  { %v148_v20 = vmul.f32 %v1673_v11, %v147_v15 }
 0x3db   :  { %v180_v47 = vor.u32 1.1754944e-38, %v179_v43  ;;  %vm178_vm3 = vcmp.eq.f32.partialorder %v177_v45, 8.507059e+37 }
 0x3dc   :  { %v149_v23 = vadd.f32 %v1673_v11, %v148_v20 }
 0x3de   :  { %v153_v26 = vsel %vm152_vm12, %v1673_v11, %v149_v23 }
 0x3df   :  { %v158_v29 = vsel %vm155_vm13, %v157_v25, %v153_v26  ;;  %v1677_v36 = vpop.eup %1676 }
 0x3e0   :  { %v186_v30 = vmul.f32 %v184_v28, %v158_v29  ;;  %v169_v37 = vmul.f32 %v1677_v36, %v167_v35  ;;  %vm174_vm15 = vweird.f32 %v1677_v36 }
 0x3e1   :  { %vm175_vm2 = vmor %vm173_vm14, %vm174_vm15 }
 0x3e2   :  { %v170_v38 = vsub.f32 1.0, %v169_v37 }
 0x3e4   :  { %v171_v39 = vmul.f32 %v1677_v36, %v170_v38 }
 0x3e6   :  { %v172_v44 = vadd.f32 %v1677_v36, %v171_v39 }
 0x3e8   :  { %v176_v48 = vsel %vm175_vm2, %v1677_v36, %v172_v44 }
 0x3e9   :  { %v181_v52 = vsel %vm178_vm3, %v180_v47, %v176_v48 }
 0x3ea   :  { %v197_v53 = vsub.f32 1.0, %v181_v52  ;;  %v199_v54 = vmul.f32 %v181_v52, %v1870_v42 }
 0x435   :  { %v287_v16 = vpop.permute.xlu1 %286 }
 0x436   :  { %v289_v18 = vmul.f32 %v287_v16, %v284_v14 }
 0x438   :  { %v294_v19 = vadd.f32 %v293_v17, %v289_v18  ;;  %v1577_v17 = vld [vmem:[%s2238_s0 + $0x30] sm:$0xff] }
 0x439   :  { %v352_v39 = vrot.slane %v1577_v17, 4 }
 0x43a   :  { %393 = vst [vmem:[#allocation1] ss:$2 sm:$0xff] %v294_v19 }
 0x441   :  { %v394_v27 = vld.sshfl [vmem:[#allocation1] sm:$0xff pattern:$0x75316420] }
 0x442   :  { %400 = vst [vmem:[#allocation1] ss:$2 sm:$0xff] %v294_v19  ;;  %395 = vrot.lane.b32.xlu1 %v394_v27, %s1788_s14 }
 0x44a   :  { %192 = vrot.lane.b32.xlu1 %v186_v30, %s1789_s15 }
 0x4b4   :  { %v396_v40 = vpop.permute.xlu1 %395 }
 0x4b5   :  { %398 = vst.msk [vmem:[#allocation2] sm:$0xf] %vm23_vm0, %v396_v40 }
 0x4bc   :  { %v193_v49 = vpop.permute.xlu1 %192  ;;  %v413_v50 = vld [vmem:[#allocation2] sm:$0xf] }
 0x4bd   :  { %v195_v51 = vadd.f32 %v193_v49, %v189_v46  ;;  %1587 = vmatmul.msk.f32.vlgmr.msrb.gmra.mxu0 %vm38_vm1, %v413_v50 }
 0x4bf   :  { %1678 = vtanh.f32 %v195_v51 }
 0x4c5   :  { %v1679_v55 = vpop.eup %1678 }
 0x4c6   :  { %v198_v56 = vmul.f32 %v1679_v55, %v197_v53 }
 0x4c8   :  { %v200_v57 = vadd.f32 %v199_v54, %v198_v56 }
 0x4ca   :  { %208 = vst.msk [vmem:[#allocation3] sm:$0xf] %vm23_vm0, %v200_v57 }
 0x4cb   :  { %1575 = vst.msk [vmem:[%s2241_s6 + $0x1c] sm:$0xf] %vm23_vm0, %v200_v57 }
 0x4d1   :  { %v1905_v58 = vld [vmem:[#allocation3] sm:$0xf] }
 0x4d2   :  { %1580 = vmatmul.msk.f32.vlgmr.msra.gmra.mxu3 %vm38_vm1, %v1905_v58 }
 0x53a   :  { %v442_v42 = vpop.f32.mrf.mxu0 }
 0x53b   :  { %v443_v60 = vadd.f32 %v1645_v59, %v442_v42 }
 0x53d   :  { %466 = vrot.lane.b32.xlu2 %v443_v60, %s1787_s11  ;;  %v445_v1 = vadd.f32 %v1921_v0, %v443_v60 }
 0x53f   :  { %v1588_v2 = vmul.f32 -1.442695, %v445_v1 }
 0x541   :  { %1680 = vpow2.f32 %v1588_v2 }
 0x547   :  { %v1681_v3 = vpop.eup %1680 }
 0x548   :  { %v449_v4 = vadd.f32 1.0, %v1681_v3 }
 0x54a   :  { %1682 = vrcp.f32 %v449_v4  ;;  %v461_v10 = vand.u32 2147483648, %v449_v4  ;;  %vm455_vm5 = vweird.f32 %v449_v4  ;;  %v459_v11 = vand.u32 2147483647, %v449_v4 }
 0x54c   :  { %v462_v13 = vor.u32 1.1754944e-38, %v461_v10  ;;  %vm460_vm7 = vcmp.eq.f32.partialorder %v459_v11, 8.507059e+37  ;;  %v1647_v11 = vld [vmem:[%s2239_s4] ss:$0 sm:$0xff] }
 0x550   :  { %v1683_v5 = vpop.eup %1682 }
 0x551   :  { %v451_v6 = vmul.f32 %v1683_v5, %v449_v4  ;;  %vm456_vm4 = vweird.f32 %v1683_v5 }
 0x552   :  { %vm457_vm6 = vmor %vm455_vm5, %vm456_vm4 }
 0x553   :  { %v452_v7 = vsub.f32 1.0, %v451_v6 }
 0x555   :  { %v324_v62 = vpop.f32.mrf.mxu3  ;;  %v453_v8 = vmul.f32 %v1683_v5, %v452_v7 }
 0x556   :  { %v325_v63 = vadd.f32 %v1646_v61, %v324_v62 }
 0x557   :  { %v454_v9 = vadd.f32 %v1683_v5, %v453_v8 }
 0x558   :  { %328 = vrot.lane.b32.xlu1 %v325_v63, %s1788_s14 }
 0x559   :  { %v458_v12 = vsel %vm457_vm6, %v1683_v5, %v454_v9 }
 0x55a   :  { %v1924_v15 = vsel %vm460_vm7, %v462_v13, %v458_v12 }
 0x55b   :  { %v476_v2 = vsub.f32 1.0, %v1924_v15 }
 0x560   :  { %374 = vrot.lane.b32.xlu1 %v325_v63, %s1789_s15 }
 0x597   :  { %v467_v14 = vpop.permute.xlu2 %466 }
 0x598   :  { %v469_v16 = vmul.f32 %v467_v14, %v1924_v15  ;;  %v1960_v14 = vld [vmem:[%s2238_s0 + $0x28] sm:$0xff] }
 0x59a   :  { %471 = vrot.lane.b32.xlu0 %v469_v16, %s1787_s11 }
 0x5a2   :  { %482 = vrot.lane.b32.xlu0 %v413_v50, %s1789_s15 }
 0x5aa   :  { %378 = vrot.lane.b32.xlu0 %v1577_v17, %s1788_s14 }
 0x5ca   :  { %v329_v18 = vpop.permute.xlu1 %328 }
 0x5cb   :  { %v331_v19 = vadd.f32 %v1577_v17, %v329_v18  ;;  %v354_v40 = vadd.f32 %v352_v39, %v329_v18  ;;  %v1973_v18 = vld [vmem:[%s2238_s0 + $0x18] sm:$0xff] }
 0x5cd   :  { %v1581_v20 = vmul.f32 -1.442695, %v331_v19  ;;  %v1582_v41 = vmul.f32 -1.442695, %v354_v40 }
 0x5cf   :  { %1684 = vpow2.f32 %v1581_v20 }
 0x5d2   :  { %v375_v32 = vpop.permute.xlu1 %374 }
 0x5d5   :  { %v1685_v22 = vpop.eup %1684 }
 0x5d6   :  { %v335_v23 = vadd.f32 1.0, %v1685_v22 }
 0x5d8   :  { %1686 = vrcp.f32 %v335_v23  ;;  %v347_v26 = vand.u32 2147483648, %v335_v23  ;;  %vm341_vm8 = vweird.f32 %v335_v23  ;;  %v345_v28 = vand.u32 2147483647, %v335_v23 }
 0x5da   :  { %v348_v30 = vor.u32 1.1754944e-38, %v347_v26  ;;  %vm346_vm11 = vcmp.eq.f32.partialorder %v345_v28, 8.507059e+37 }
 0x5de   :  { %v1687_v24 = vpop.eup %1686 }
 0x5df   :  { %v337_v25 = vmul.f32 %v1687_v24, %v335_v23  ;;  %vm342_vm9 = vweird.f32 %v1687_v24 }
 0x5e0   :  { %vm343_vm10 = vmor %vm341_vm8, %vm342_vm9 }
 0x5e1   :  { %v338_v27 = vsub.f32 1.0, %v337_v25 }
 0x5e3   :  { %v339_v29 = vmul.f32 %v1687_v24, %v338_v27 }
 0x5e5   :  { %v340_v31 = vadd.f32 %v1687_v24, %v339_v29 }
 0x5e7   :  { %v344_v33 = vsel %vm343_vm10, %v1687_v24, %v340_v31 }
 0x5e8   :  { %v349_v34 = vsel %vm346_vm11, %v348_v30, %v344_v33 }
 0x5e9   :  { %v377_v35 = vmul.f32 %v375_v32, %v349_v34 }
 0x5eb   :  { %383 = vrot.lane.b32.xlu1 %v377_v35, %s1789_s15 }
 0x60c   :  { %v472_v36 = vpop.permute.xlu0 %471 }
 0x60d   :  { %v474_v37 = vadd.f32 %v1921_v0, %v472_v36 }
 0x60f   :  { %1688 = vtanh.f32 %v474_v37 }
 0x610   :  { %1690 = vpow2.f32 %v1582_v41 }
 0x614   :  { %v483_v47 = vpop.permute.xlu0 %482 }
 0x615   :  { %v1689_v38 = vpop.eup %1688  ;;  %v485_v4 = vmul.f32 %v483_v47, %v1924_v15  ;;  %v1648_v15 = vld [vmem:[%s2237_s2] ss:$0 sm:$0xff] }
 0x616   :  { %478 = vrot.lane.b32.xlu2 %v1689_v38, %s1788_s14  ;;  %v1691_v43 = vpop.eup %1690 }
 0x617   :  { %v358_v44 = vadd.f32 1.0, %v1691_v43 }
 0x619   :  { %1692 = vrcp.f32 %v358_v44  ;;  %vm364_vm12 = vweird.f32 %v358_v44  ;;  %v370_v52 = vand.u32 2147483648, %v358_v44  ;;  %v368_v54 = vand.u32 2147483647, %v358_v44 }
 0x61b   :  { %v371_v56 = vor.u32 1.1754944e-38, %v370_v52  ;;  %vm369_vm15 = vcmp.eq.f32.partialorder %v368_v54, 8.507059e+37  ;;  %v544_v54 = vrot.slane %v1960_v14, 4 }
 0x61c   :  { %v379_v50 = vpop.permute.xlu0 %378 }
 0x61d   :  { %v380_v51 = vrot.slane %v379_v50, 4 }
 0x61f   :  { %v1693_v45 = vpop.eup %1692 }
 0x620   :  { %v360_v46 = vmul.f32 %v1693_v45, %v358_v44  ;;  %vm365_vm13 = vweird.f32 %v1693_v45 }
 0x621   :  { %vm366_vm14 = vmor %vm364_vm12, %vm365_vm13 }
 0x622   :  { %v361_v48 = vsub.f32 1.0, %v360_v46 }
 0x624   :  { %v362_v49 = vmul.f32 %v1693_v45, %v361_v48 }
 0x626   :  { %v363_v53 = vadd.f32 %v1693_v45, %v362_v49 }
 0x628   :  { %v367_v59 = vsel %vm366_vm14, %v1693_v45, %v363_v53 }
 0x629   :  { %v372_v42 = vsel %vm369_vm15, %v371_v56, %v367_v59 }
 0x62a   :  { %v388_v60 = vsub.f32 1.0, %v372_v42  ;;  %v390_v62 = vmul.f32 %v372_v42, %v1905_v58  ;;  %v1948_v58 = vld.sshfl [vmem:[#allocation1] sm:$0xff pattern:$0x75316420] }
 0x65d   :  { %v384_v55 = vpop.permute.xlu1 %383 }
 0x65e   :  { %v386_v57 = vadd.f32 %v384_v55, %v380_v51 }
 0x660   :  { %1694 = vtanh.f32 %v386_v57 }
 0x666   :  { %v1695_v61 = vpop.eup %1694 }
 0x667   :  { %v389_v63 = vmul.f32 %v1695_v61, %v388_v60 }
 0x669   :  { %v391_v1 = vadd.f32 %v390_v62, %v389_v63 }
 0x66b   :  { %399 = vst.msk [vmem:[#allocation3] sm:$0xf] %vm23_vm0, %v391_v1 }
 0x66c   :  { %1584 = vst.msk [vmem:[%s2241_s6 + $0x18] sm:$0xf] %vm23_vm0, %v391_v1 }
 0x670   :  { %v479_v3 = vpop.permute.xlu2 %478 }
 0x671   :  { %v481_v5 = vmul.f32 %v479_v3, %v476_v2 }
 0x672   :  { %v1944_v6 = vld [vmem:[#allocation3] sm:$0xf] }
 0x673   :  { %v486_v7 = vadd.f32 %v485_v4, %v481_v5  ;;  %1589 = vmatmul.msk.f32.vlgmr.msrb.gmra.mxu1 %vm38_vm1, %v1944_v6 }
 0x675   :  { %585 = vst [vmem:[#allocation1] ss:$2 sm:$0xff] %v486_v7 }
 0x67c   :  { %v586_v8 = vld.sshfl [vmem:[#allocation1] sm:$0xff pattern:$0x75316420] }
 0x67d   :  { %592 = vst [vmem:[#allocation1] ss:$2 sm:$0xff] %v486_v7  ;;  %587 = vrot.lane.b32.xlu2 %v586_v8, %s1788_s14 }
 0x6d7   :  { %v588_v9 = vpop.permute.xlu2 %587 }
 0x6d8   :  { %590 = vst.msk [vmem:[#allocation2] sm:$0xf] %vm23_vm0, %v588_v9 }
 0x6df   :  { %v605_v10 = vld [vmem:[#allocation2] sm:$0xf] }
 0x6e0   :  { %1596 = vmatmul.msk.f32.vlgmr.msrb.gmra.mxu2 %vm38_vm1, %v605_v10 }
 0x6f0   :  { %v516_v12 = vpop.f32.mrf.mxu1 }
 0x6f1   :  { %v517_v13 = vadd.f32 %v1647_v11, %v516_v12 }
 0x6f3   :  { %520 = vrot.lane.b32.xlu0 %v517_v13, %s1788_s14 }
 0x6fb   :  { %570 = vrot.lane.b32.xlu0 %v1960_v14, %s1788_s14 }
 0x703   :  { %674 = vrot.lane.b32.xlu0 %v605_v10, %s1789_s15 }
 0x763   :  { %v634_v16 = vpop.f32.mrf.mxu2 }
 0x764   :  { %v635_v17 = vadd.f32 %v1648_v15, %v634_v16 }
 0x765   :  { %v521_v22 = vpop.permute.xlu0 %520 }
 0x766   :  { %658 = vrot.lane.b32.xlu2 %v635_v17, %s1787_s11  ;;  %v637_v19 = vadd.f32 %v1973_v18, %v635_v17  ;;  %v523_v23 = vadd.f32 %v1960_v14, %v521_v22  ;;  %v546_v55 = vadd.f32 %v544_v54, %v521_v22 }
 0x768   :  { %v1597_v20 = vmul.f32 -1.442695, %v637_v19  ;;  %v1590_v24 = vmul.f32 -1.442695, %v523_v23  ;;  %v1591_v56 = vmul.f32 -1.442695, %v546_v55 }
 0x76a   :  { %1696 = vpow2.f32 %v1597_v20 }
 0x76b   :  { %1698 = vpow2.f32 %v1590_v24 }
 0x76d   :  { %v571_v2 = vpop.permute.xlu0 %570 }
 0x76e   :  { %566 = vrot.lane.b32.xlu2 %v517_v13, %s1789_s15  ;;  %v572_v3 = vrot.slane %v571_v2, 4 }
 0x770   :  { %v1697_v25 = vpop.eup %1696 }
 0x771   :  { %v641_v26 = vadd.f32 1.0, %v1697_v25  ;;  %v1699_v27 = vpop.eup %1698 }
 0x772   :  { %v527_v28 = vadd.f32 1.0, %v1699_v27 }
 0x773   :  { %1700 = vrcp.f32 %v641_v26  ;;  %v653_v37 = vand.u32 2147483648, %v641_v26  ;;  %vm647_vm3 = vweird.f32 %v641_v26  ;;  %v651_v38 = vand.u32 2147483647, %v641_v26 }
 0x774   :  { %1702 = vrcp.f32 %v527_v28  ;;  %v539_v47 = vand.u32 2147483648, %v527_v28  ;;  %vm533_vm7 = vweird.f32 %v527_v28  ;;  %v537_v48 = vand.u32 2147483647, %v527_v28 }
 0x775   :  { %v654_v41 = vor.u32 1.1754944e-38, %v653_v37  ;;  %vm652_vm5 = vcmp.eq.f32.partialorder %v651_v38, 8.507059e+37  ;;  %1704 = vpow2.f32 %v1591_v56  ;;  %v675_v24 = vpop.permute.xlu0 %674  ;;  %v1650_v56 = vld [vmem:[%s2237_s2] ss:$0 sm:$0xff] }
 0x776   :  { %v540_v50 = vor.u32 1.1754944e-38, %v539_v47  ;;  %vm538_vm9 = vcmp.eq.f32.partialorder %v537_v48, 8.507059e+37 }
 0x779   :  { %v1701_v29 = vpop.eup %1700 }
 0x77a   :  { %v643_v30 = vmul.f32 %v1701_v29, %v641_v26  ;;  %v1703_v32 = vpop.eup %1702  ;;  %vm648_vm2 = vweird.f32 %v1701_v29 }
 0x77b   :  { %v529_v34 = vmul.f32 %v1703_v32, %v527_v28  ;;  %vm649_vm4 = vmor %vm647_vm3, %vm648_vm2  ;;  %vm534_vm6 = vweird.f32 %v1703_v32  ;;  %v1705_v57 = vpop.eup %1704  ;;  %v1992_v28 = vld.sshfl [vmem:[#allocation1] sm:$0xff pattern:$0x75316420] }
 0x77c   :  { %v644_v31 = vsub.f32 1.0, %v643_v30  ;;  %vm535_vm8 = vmor %vm533_vm7, %vm534_vm6  ;;  %v550_v59 = vadd.f32 1.0, %v1705_v57  ;;  %v1649_v30 = vld [vmem:[%s2239_s4] ss:$0 sm:$0xff] }
 0x77d   :  { %v530_v36 = vsub.f32 1.0, %v529_v34 }
 0x77e   :  { %v645_v33 = vmul.f32 %v1701_v29, %v644_v31  ;;  %1706 = vrcp.f32 %v550_v59  ;;  %v562_v5 = vand.u32 2147483648, %v550_v59  ;;  %vm556_vm11 = vweird.f32 %v550_v59 }
 0x77f   :  { %v531_v40 = vmul.f32 %v1703_v32, %v530_v36  ;;  %v560_v7 = vand.u32 2147483647, %v550_v59 }
 0x780   :  { %v646_v35 = vadd.f32 %v1701_v29, %v645_v33  ;;  %v563_v12 = vor.u32 1.1754944e-38, %v562_v5  ;;  %v2003_v33 = vld [vmem:[%s2238_s0 + $0x20] sm:$0xff] }
 0x781   :  { %v532_v46 = vadd.f32 %v1703_v32, %v531_v40  ;;  %vm561_vm13 = vcmp.eq.f32.partialorder %v560_v7, 8.507059e+37  ;;  %v736_v54 = vrot.slane %v2003_v33, 4 }
 0x782   :  { %v650_v39 = vsel %vm649_vm4, %v1701_v29, %v646_v35 }
 0x783   :  { %v655_v43 = vsel %vm652_vm5, %v654_v41, %v650_v39  ;;  %v536_v49 = vsel %vm535_vm8, %v1703_v32, %v532_v46 }
 0x784   :  { %v541_v51 = vsel %vm538_vm9, %v540_v50, %v536_v49  ;;  %v1707_v42 = vpop.eup %1706  ;;  %v668_v23 = vsub.f32 1.0, %v655_v43  ;;  %v677_v26 = vmul.f32 %v675_v24, %v655_v43 }
 0x785   :  { %v552_v60 = vmul.f32 %v1707_v42, %v550_v59  ;;  %vm557_vm10 = vweird.f32 %v1707_v42 }
 0x786   :  { %vm558_vm12 = vmor %vm556_vm11, %vm557_vm10 }
 0x787   :  { %v553_v61 = vsub.f32 1.0, %v552_v60 }
 0x789   :  { %v554_v1 = vmul.f32 %v1707_v42, %v553_v61 }
 0x78b   :  { %v555_v4 = vadd.f32 %v1707_v42, %v554_v1 }
 0x78d   :  { %v559_v11 = vsel %vm558_vm12, %v1707_v42, %v555_v4 }
 0x78e   :  { %v564_v13 = vsel %vm561_vm13, %v563_v12, %v559_v11 }
 0x78f   :  { %v580_v15 = vsub.f32 1.0, %v564_v13  ;;  %v582_v17 = vmul.f32 %v564_v13, %v1944_v6 }
 0x7c0   :  { %v659_v44 = vpop.permute.xlu2 %658 }
 0x7c1   :  { %v661_v45 = vmul.f32 %v659_v44, %v655_v43 }
 0x7c3   :  { %663 = vrot.lane.b32.xlu1 %v661_v45, %s1787_s11 }
 0x7c8   :  { %v567_v52 = vpop.permute.xlu2 %566 }
 0x7c9   :  { %v569_v53 = vmul.f32 %v567_v52, %v541_v51 }
 0x7cb   :  { %575 = vrot.lane.b32.xlu1 %v569_v53, %s1789_s15 }
 0x835   :  { %v664_v62 = vpop.permute.xlu1 %663 }
 0x836   :  { %v666_v63 = vadd.f32 %v1973_v18, %v664_v62 }
 0x838   :  { %1708 = vtanh.f32 %v666_v63 }
 0x83d   :  { %v576_v8 = vpop.permute.xlu1 %575 }
 0x83e   :  { %v1709_v9 = vpop.eup %1708  ;;  %v578_v10 = vadd.f32 %v576_v8, %v572_v3 }
 0x83f   :  { %670 = vrot.lane.b32.xlu2 %v1709_v9, %s1788_s14 }
 0x840   :  { %1710 = vtanh.f32 %v578_v10 }
 0x846   :  { %v1711_v16 = vpop.eup %1710 }
 0x847   :  { %v581_v19 = vmul.f32 %v1711_v16, %v580_v15 }
 0x849   :  { %v583_v20 = vadd.f32 %v582_v17, %v581_v19 }
 0x84b   :  { %591 = vst.msk [vmem:[#allocation3] sm:$0xf] %vm23_vm0, %v583_v20 }
 0x84c   :  { %1593 = vst.msk [vmem:[%s2241_s6 + $0x14] sm:$0xf] %vm23_vm0, %v583_v20 }
 0x852   :  { %v1988_v22 = vld [vmem:[#allocation3] sm:$0xf] }
 0x853   :  { %1598 = vmatmul.msk.f32.vlgmr.msrb.gmra.mxu3 %vm38_vm1, %v1988_v22 }
 0x899   :  { %v671_v25 = vpop.permute.xlu2 %670 }
 0x89a   :  { %v673_v27 = vmul.f32 %v671_v25, %v668_v23 }
 0x89c   :  { %v678_v6 = vadd.f32 %v677_v26, %v673_v27 }
 0x89e   :  { %777 = vst [vmem:[#allocation1] ss:$2 sm:$0xff] %v678_v6 }
 0x8a5   :  { %v778_v29 = vld.sshfl [vmem:[#allocation1] sm:$0xff pattern:$0x75316420] }
 0x8a6   :  { %779 = vrot.lane.b32.xlu1 %v778_v29, %s1788_s14  ;;  %784 = vst [vmem:[#allocation1] ss:$2 sm:$0xff] %v678_v6 }
 0x8d6   :  { %v708_v31 = vpop.f32.mrf.mxu3 }
 0x8d7   :  { %v709_v32 = vadd.f32 %v1649_v30, %v708_v31 }
 0x8d9   :  { %758 = vrot.lane.b32.xlu0 %v709_v32, %s1789_s15  ;;  %712 = vrot.lane.b32.xlu2 %v709_v32, %s1788_s14 }
 0x8e1   :  { %762 = vrot.lane.b32.xlu2 %v2003_v33, %s1788_s14 }
 0x918   :  { %v780_v34 = vpop.permute.xlu1 %779 }
 0x919   :  { %782 = vst.msk [vmem:[#allocation2] sm:$0xf] %vm23_vm0, %v780_v34 }
 0x920   :  { %v795_v35 = vld [vmem:[#allocation2] sm:$0xf] }
 0x921   :  { %1605 = vmatmul.msk.f32.vlgmr.msra.gmra.mxu0 %vm38_vm1, %v795_v35 }
 0x933   :  { %v713_v36 = vpop.permute.xlu2 %712 }
 0x934   :  { %v715_v37 = vadd.f32 %v2003_v33, %v713_v36  ;;  %v738_v55 = vadd.f32 %v736_v54, %v713_v36 }
 0x936   :  { %v1599_v38 = vmul.f32 -1.442695, %v715_v37  ;;  %v1600_v57 = vmul.f32 -1.442695, %v738_v55 }
 0x938   :  { %1712 = vpow2.f32 %v1599_v38 }
 0x93b   :  { %v763_v3 = vpop.permute.xlu2 %762 }
 0x93c   :  { %v764_v4 = vrot.slane %v763_v3, 4 }
 0x93e   :  { %v1713_v39 = vpop.eup %1712 }
 0x93f   :  { %v719_v40 = vadd.f32 1.0, %v1713_v39 }
 0x941   :  { %1714 = vrcp.f32 %v719_v40  ;;  %v731_v45 = vand.u32 2147483648, %v719_v40  ;;  %v729_v47 = vand.u32 2147483647, %v719_v40  ;;  %vm725_vm15 = vweird.f32 %v719_v40 }
 0x942   :  { %1716 = vpow2.f32 %v1600_v57 }
 0x943   :  { %v732_v49 = vor.u32 1.1754944e-38, %v731_v45  ;;  %vm730_vm3 = vcmp.eq.f32.partialorder %v729_v47, 8.507059e+37 }
 0x947   :  { %v1715_v41 = vpop.eup %1714 }
 0x948   :  { %v721_v43 = vmul.f32 %v1715_v41, %v719_v40  ;;  %vm726_vm14 = vweird.f32 %v1715_v41  ;;  %v1717_v60 = vpop.eup %1716  ;;  %v1651_v40 = vld [vmem:[%s2239_s4] ss:$0 sm:$0xff] }
 0x949   :  { %vm727_vm2 = vmor %vm725_vm15, %vm726_vm14  ;;  %v742_v61 = vadd.f32 1.0, %v1717_v60 }
 0x94a   :  { %v722_v44 = vsub.f32 1.0, %v721_v43 }
 0x94b   :  { %v759_v51 = vpop.permute.xlu0 %758  ;;  %1718 = vrcp.f32 %v742_v61  ;;  %v754_v7 = vand.u32 2147483648, %v742_v61  ;;  %vm748_vm5 = vweird.f32 %v742_v61  ;;  %v752_v8 = vand.u32 2147483647, %v742_v61 }
 0x94c   :  { %v723_v46 = vmul.f32 %v1715_v41, %v722_v44 }
 0x94d   :  { %v755_v12 = vor.u32 1.1754944e-38, %v754_v7  ;;  %vm753_vm7 = vcmp.eq.f32.partialorder %v752_v8, 8.507059e+37 }
 0x94e   :  { %v724_v48 = vadd.f32 %v1715_v41, %v723_v46 }
 0x950   :  { %v728_v50 = vsel %vm727_vm2, %v1715_v41, %v724_v48 }
 0x951   :  { %v733_v52 = vsel %vm730_vm3, %v732_v49, %v728_v50  ;;  %v1719_v62 = vpop.eup %1718 }
 0x952   :  { %v761_v53 = vmul.f32 %v759_v51, %v733_v52  ;;  %v744_v63 = vmul.f32 %v1719_v62, %v742_v61  ;;  %vm749_vm4 = vweird.f32 %v1719_v62 }
 0x953   :  { %vm750_vm6 = vmor %vm748_vm5, %vm749_vm4 }
 0x954   :  { %767 = vrot.lane.b32.xlu0 %v761_v53, %s1789_s15  ;;  %v745_v1 = vsub.f32 1.0, %v744_v63  ;;  %v2036_v53 = vld.sshfl [vmem:[#allocation1] sm:$0xff pattern:$0x75316420] }
 0x956   :  { %v746_v2 = vmul.f32 %v1719_v62, %v745_v1 }
 0x958   :  { %v747_v5 = vadd.f32 %v1719_v62, %v746_v2 }
 0x95a   :  { %v751_v11 = vsel %vm750_vm6, %v1719_v62, %v747_v5 }
 0x95b   :  { %v756_v13 = vsel %vm753_vm7, %v755_v12, %v751_v11  ;;  %v989_v11 = vld [vmem:[%s2236_s1 + $0x18] sm:$0xff]  ;;  %v988_v12 = vld [vmem:[%s2236_s1 + $0x10] sm:$0xff] }
 0x95c   :  { %864 = vrot.lane.b32.xlu0 %v795_v35, %s1789_s15  ;;  %v772_v15 = vsub.f32 1.0, %v756_v13  ;;  %v774_v17 = vmul.f32 %v756_v13, %v1988_v22  ;;  %1009 = vmatpush.msra.mxu2 %v989_v11 }
 0x95d   :  { %1199 = vmatpush.msrb.mxu0 %v989_v11 }
 0x95e   :  { %1010 = vmatpush.msra.mxu2 %v988_v12 }
 0x95f   :  { %1200 = vmatpush.msrb.mxu0 %v988_v12 }
 0x99e   :  { %v824_v59 = vpop.f32.mrf.mxu0 }
 0x99f   :  { %v825_v42 = vadd.f32 %v1650_v56, %v824_v59 }
 0x9a1   :  { %848 = vrot.lane.b32.xlu1 %v825_v42, %s1787_s11  ;;  %v827_v24 = vadd.f32 %v2003_v33, %v825_v42 }
 0x9a3   :  { %v1606_v25 = vmul.f32 -1.442695, %v827_v24  ;;  %v1062_v24 = vld [vmem:[%s2240_s3 + $0x10] sm:$0xff] }
 0x9c6   :  { %v768_v9 = vpop.permute.xlu0 %767 }
 0x9c7   :  { %v770_v10 = vadd.f32 %v768_v9, %v764_v4  ;;  %v926_v9 = vrot.slane %v1973_v18, 4 }
 0x9c9   :  { %1720 = vtanh.f32 %v770_v10 }
 0x9ca   :  { %1722 = vpow2.f32 %v1606_v25  ;;  %v1061_v25 = vld [vmem:[%s2240_s3 + $0x8] sm:$0xff] }
 0x9ce   :  { %v865_v47 = vpop.permute.xlu0 %864 }
 0x9cf   :  { %v1721_v16 = vpop.eup %1720 }
 0x9d0   :  { %v773_v19 = vmul.f32 %v1721_v16, %v772_v15  ;;  %v1723_v26 = vpop.eup %1722  ;;  %v987_v15 = vld [vmem:[%s2236_s1 + $0x8] sm:$0xff] }
 0x9d1   :  { %v831_v22 = vadd.f32 1.0, %v1723_v26  ;;  %1011 = vmatpush.msra.mxu2 %v987_v15  ;;  %1201 = vmatpush.msrb.mxu0 %v987_v15 }
 0x9d2   :  { %v775_v20 = vadd.f32 %v774_v17, %v773_v19 }
 0x9d3   :  { %1724 = vrcp.f32 %v831_v22  ;;  %v843_v32 = vand.u32 2147483648, %v831_v22  ;;  %vm837_vm9 = vweird.f32 %v831_v22  ;;  %v841_v34 = vand.u32 2147483647, %v831_v22 }
 0x9d4   :  { %783 = vst.msk [vmem:[#allocation3] sm:$0xf] %vm23_vm0, %v775_v20 }
 0x9d5   :  { %1602 = vst.msk [vmem:[%s2241_s6 + $0x10] sm:$0xf] %vm23_vm0, %v775_v20  ;;  %v844_v36 = vor.u32 1.1754944e-38, %v843_v32  ;;  %vm842_vm11 = vcmp.eq.f32.partialorder %v841_v34, 8.507059e+37  ;;  %v1063_v20 = vld [vmem:[%s2240_s3 + $0x18] sm:$0xff] }
 0x9d6   :  { %1083 = vmatpush.msra.mxu3 %v1063_v20  ;;  %1273 = vmatpush.msrb.mxu1 %v1063_v20 }
 0x9d8   :  { %1084 = vmatpush.msra.mxu3 %v1062_v24  ;;  %1274 = vmatpush.msrb.mxu1 %v1062_v24 }
 0x9d9   :  { %v1725_v27 = vpop.eup %1724 }
 0x9da   :  { %v833_v6 = vmul.f32 %v1725_v27, %v831_v22  ;;  %vm838_vm8 = vweird.f32 %v1725_v27  ;;  %v1060_v22 = vld [vmem:[%s2240_s3] sm:$0xff]  ;;  %1085 = vmatpush.msra.mxu3 %v1061_v25  ;;  %1275 = vmatpush.msrb.mxu1 %v1061_v25 }
 0x9db   :  { %v2023_v23 = vld [vmem:[#allocation3] sm:$0xf]  ;;  %vm839_vm10 = vmor %vm837_vm9, %vm838_vm8 }
 0x9dc   :  { %1607 = vmatmul.msk.f32.vlgmr.msra.gmra.mxu1 %vm38_vm1, %v2023_v23  ;;  %v834_v29 = vsub.f32 1.0, %v833_v6  ;;  %1086 = vmatpush.msra.mxu3 %v1060_v22 }
 0x9dd   :  { %1276 = vmatpush.msrb.mxu1 %v1060_v22 }
 0x9de   :  { %v835_v30 = vmul.f32 %v1725_v27, %v834_v29  ;;  %1463 = vmatpush.msrb.mxu3 %v1063_v20 }
 0x9e0   :  { %v836_v31 = vadd.f32 %v1725_v27, %v835_v30  ;;  %1464 = vmatpush.msrb.mxu3 %v1062_v24 }
 0x9e2   :  { %v840_v35 = vsel %vm839_vm10, %v1725_v27, %v836_v31  ;;  %1465 = vmatpush.msrb.mxu3 %v1061_v25 }
 0x9e3   :  { %v845_v37 = vsel %vm842_vm11, %v844_v36, %v840_v35 }
 0x9e4   :  { %v858_v48 = vsub.f32 1.0, %v845_v37  ;;  %v867_v50 = vmul.f32 %v865_v47, %v845_v37  ;;  %1466 = vmatpush.msrb.mxu3 %v1060_v22 }
 0xa13   :  { %v849_v38 = vpop.permute.xlu1 %848 }
 0xa14   :  { %v851_v39 = vmul.f32 %v849_v38, %v845_v37 }
 0xa16   :  { %853 = vrot.lane.b32.xlu1 %v851_v39, %s1787_s11 }
 0xa59   :  { %v898_v41 = vpop.f32.mrf.mxu1 }
 0xa5a   :  { %v899_v43 = vadd.f32 %v1651_v40, %v898_v41 }
 0xa5c   :  { %948 = vrot.lane.b32.xlu0 %v899_v43, %s1789_s15 }
 0xa88   :  { %v854_v44 = vpop.permute.xlu1 %853 }
 0xa89   :  { %v856_v45 = vadd.f32 %v2003_v33, %v854_v44 }
 0xa8b   :  { %1726 = vtanh.f32 %v856_v45 }
 0xa91   :  { %v1727_v46 = vpop.eup %1726 }
 0xa92   :  { %860 = vrot.lane.b32.xlu2 %v1727_v46, %s1788_s14 }
 0xa9a   :  { %902 = vrot.lane.b32.xlu2 %v899_v43, %s1788_s14 }
 0xace   :  { %v949_v5 = vpop.permute.xlu0 %948 }
 0xaec   :  { %v861_v49 = vpop.permute.xlu2 %860 }
 0xaed   :  { %v863_v51 = vmul.f32 %v861_v49, %v858_v48  ;;  %v1652_v49 = vld [vmem:[%s2237_s2] ss:$0 sm:$0xff] }
 0xaef   :  { %v868_v52 = vadd.f32 %v867_v50, %v863_v51  ;;  %v1653_v51 = vld [vmem:[%s2239_s4] ss:$0 sm:$0xff] }
 0xaf1   :  { %967 = vst [vmem:[#allocation1] ss:$2 sm:$0xff] %v868_v52 }
 0xaf4   :  { %v903_v54 = vpop.permute.xlu2 %902 }
 0xaf5   :  { %v905_v55 = vadd.f32 %v1973_v18, %v903_v54  ;;  %v928_v10 = vadd.f32 %v926_v9, %v903_v54 }
 0xaf7   :  { %v1608_v56 = vmul.f32 -1.442695, %v905_v55  ;;  %v1609_v13 = vmul.f32 -1.442695, %v928_v10 }
 0xaf8   :  { %v968_v33 = vld.sshfl [vmem:[#allocation1] sm:$0xff pattern:$0x75316420] }
 0xaf9   :  { %1728 = vpow2.f32 %v1608_v56  ;;  %969 = vrot.lane.b32.xlu1 %v968_v33, %s1788_s14  ;;  %974 = vst [vmem:[#allocation1] ss:$2 sm:$0xff] %v868_v52 }
 0xaff   :  { %v1729_v57 = vpop.eup %1728 }
 0xb00   :  { %v909_v59 = vadd.f32 1.0, %v1729_v57 }
 0xb01   :  { %952 = vrot.lane.b32.xlu1 %v1973_v18, %s1788_s14  ;;  %v986_v18 = vld [vmem:[%s2236_s1] sm:$0xff] }
 0xb02   :  { %1730 = vrcp.f32 %v909_v59  ;;  %v921_v62 = vand.u32 2147483648, %v909_v59  ;;  %v919_v1 = vand.u32 2147483647, %v909_v59  ;;  %vm915_vm13 = vweird.f32 %v909_v59  ;;  %1012 = vmatpush.msra.mxu2 %v986_v18  ;;  %1202 = vmatpush.msrb.mxu0 %v986_v18 }
 0xb03   :  { %1732 = vpow2.f32 %v1609_v13 }
 0xb04   :  { %v922_v3 = vor.u32 1.1754944e-38, %v921_v62  ;;  %vm920_vm15 = vcmp.eq.f32.partialorder %v919_v1, 8.507059e+37  ;;  %1389 = vmatpush.msrb.mxu2 %v989_v11 }
 0xb06   :  { %1390 = vmatpush.msrb.mxu2 %v988_v12 }
 0xb08   :  { %v1731_v42 = vpop.eup %1730  ;;  %1391 = vmatpush.msrb.mxu2 %v987_v15 }
 0xb09   :  { %v911_v60 = vmul.f32 %v1731_v42, %v909_v59  ;;  %vm916_vm12 = vweird.f32 %v1731_v42  ;;  %v1733_v16 = vpop.eup %1732 }
 0xb0a   :  { %vm917_vm14 = vmor %vm915_vm13, %vm916_vm12  ;;  %v932_v17 = vadd.f32 1.0, %v1733_v16  ;;  %1392 = vmatpush.msrb.mxu2 %v986_v18 }
 0xb0b   :  { %v912_v61 = vsub.f32 1.0, %v911_v60 }
 0xb0c   :  { %1734 = vrcp.f32 %v932_v17  ;;  %v944_v34 = vand.u32 2147483648, %v932_v17  ;;  %vm938_vm3 = vweird.f32 %v932_v17  ;;  %v942_v37 = vand.u32 2147483647, %v932_v17 }
 0xb0d   :  { %v913_v63 = vmul.f32 %v1731_v42, %v912_v61 }
 0xb0e   :  { %v945_v40 = vor.u32 1.1754944e-38, %v944_v34  ;;  %vm943_vm5 = vcmp.eq.f32.partialorder %v942_v37, 8.507059e+37 }
 0xb0f   :  { %v914_v2 = vadd.f32 %v1731_v42, %v913_v63 }
 0xb11   :  { %v918_v4 = vsel %vm917_vm14, %v1731_v42, %v914_v2 }
 0xb12   :  { %v923_v7 = vsel %vm920_vm15, %v922_v3, %v918_v4  ;;  %v1735_v19 = vpop.eup %1734 }
 0xb13   :  { %v951_v8 = vmul.f32 %v949_v5, %v923_v7  ;;  %v934_v26 = vmul.f32 %v1735_v19, %v932_v17  ;;  %vm939_vm2 = vweird.f32 %v1735_v19  ;;  %v2094_v17 = vld.sshfl [vmem:[#allocation1] sm:$0xff pattern:$0x75316420] }
 0xb14   :  { %vm940_vm4 = vmor %vm938_vm3, %vm939_vm2 }
 0xb15   :  { %957 = vrot.lane.b32.xlu2 %v951_v8, %s1789_s15  ;;  %v935_v27 = vsub.f32 1.0, %v934_v26 }
 0xb17   :  { %v936_v29 = vmul.f32 %v1735_v19, %v935_v27 }
 0xb19   :  { %v937_v30 = vadd.f32 %v1735_v19, %v936_v29 }
 0xb1b   :  { %v941_v39 = vsel %vm940_vm4, %v1735_v19, %v937_v30 }
 0xb1c   :  { %v946_v41 = vsel %vm943_vm5, %v945_v40, %v941_v39  ;;  %v1116_v39 = vrot.slane %v1921_v0, 4 }
 0xb1d   :  { %v962_v43 = vsub.f32 1.0, %v946_v41  ;;  %v964_v45 = vmul.f32 %v946_v41, %v2023_v23 }
 0xb6b   :  { %v970_v6 = vpop.permute.xlu1 %969 }
 0xb6c   :  { %972 = vst.msk [vmem:[#allocation2] sm:$0xf] %vm23_vm0, %v970_v6 }
 0xb6f   :  { %v958_v36 = vpop.permute.xlu2 %957 }
 0xb73   :  { %v953_v31 = vpop.permute.xlu1 %952  ;;  %v985_v32 = vld [vmem:[#allocation2] sm:$0xf] }
 0xb74   :  { %v954_v35 = vrot.slane %v953_v31, 4  ;;  %1614 = vmatmul.msk.f32.vlgmr.msra.gmra.mxu2 %vm38_vm1, %v985_v32 }
 0xb76   :  { %v960_v38 = vadd.f32 %v958_v36, %v954_v35 }
 0xb78   :  { %1736 = vtanh.f32 %v960_v38 }
 0xb7e   :  { %v1737_v44 = vpop.eup %1736 }
 0xb7f   :  { %v963_v46 = vmul.f32 %v1737_v44, %v962_v43 }
 0xb81   :  { %v965_v47 = vadd.f32 %v964_v45, %v963_v46 }
 0xb83   :  { %1611 = vst.msk [vmem:[%s2241_s6 + $0xc] sm:$0xf] %vm23_vm0, %v965_v47 }
 0xb84   :  { %973 = vst.msk [vmem:[#allocation3] sm:$0xf] %vm23_vm0, %v965_v47 }
 0xb8b   :  { %v2076_v48 = vld [vmem:[#allocation3] sm:$0xf] }
 0xb8c   :  { %1616 = vmatmul.msk.f32.vlgmr.msra.gmra.mxu3 %vm38_vm1, %v2076_v48 }
 0xbf7   :  { %v1014_v50 = vpop.f32.mrf.mxu2 }
 0xbf8   :  { %v1015_v23 = vadd.f32 %v1652_v49, %v1014_v50 }
 0xbfa   :  { %1038 = vrot.lane.b32.xlu0 %v1015_v23, %s1787_s11  ;;  %v1017_v55 = vadd.f32 %v1960_v14, %v1015_v23 }
 0xbfc   :  { %v1615_v56 = vmul.f32 -1.442695, %v1017_v55 }
 0xbfe   :  { %1738 = vpow2.f32 %v1615_v56 }
 0xc02   :  { %1054 = vrot.lane.b32.xlu0 %v985_v32, %s1789_s15 }
 0xc04   :  { %v1739_v33 = vpop.eup %1738 }
 0xc05   :  { %v1021_v57 = vadd.f32 1.0, %v1739_v33 }
 0xc07   :  { %1740 = vrcp.f32 %v1021_v57  ;;  %v1033_v63 = vand.u32 2147483648, %v1021_v57  ;;  %vm1027_vm7 = vweird.f32 %v1021_v57  ;;  %v1031_v1 = vand.u32 2147483647, %v1021_v57 }
 0xc09   :  { %v1034_v3 = vor.u32 1.1754944e-38, %v1033_v63  ;;  %vm1032_vm9 = vcmp.eq.f32.partialorder %v1031_v1, 8.507059e+37 }
 0xc0d   :  { %v1741_v59 = vpop.eup %1740 }
 0xc0e   :  { %v1023_v42 = vmul.f32 %v1741_v59, %v1021_v57  ;;  %vm1028_vm6 = vweird.f32 %v1741_v59 }
 0xc0f   :  { %v1088_v52 = vpop.f32.mrf.mxu3  ;;  %vm1029_vm8 = vmor %vm1027_vm7, %vm1028_vm6 }
 0xc10   :  { %v1089_v54 = vadd.f32 %v1653_v51, %v1088_v52  ;;  %v1024_v60 = vsub.f32 1.0, %v1023_v42 }
 0xc12   :  { %1138 = vrot.lane.b32.xlu0 %v1089_v54, %s1789_s15  ;;  %v1025_v61 = vmul.f32 %v1741_v59, %v1024_v60 }
 0xc14   :  { %v1026_v62 = vadd.f32 %v1741_v59, %v1025_v61 }
 0xc16   :  { %v1030_v2 = vsel %vm1029_vm8, %v1741_v59, %v1026_v62 }
 0xc17   :  { %v1035_v5 = vsel %vm1032_vm9, %v1034_v3, %v1030_v2  ;;  %v1654_v3 = vld [vmem:[%s2237_s2] ss:$0 sm:$0xff] }
 0xc18   :  { %v1048_v12 = vsub.f32 1.0, %v1035_v5 }
 0xc6c   :  { %v1039_v4 = vpop.permute.xlu0 %1038 }
 0xc6d   :  { %v1041_v7 = vmul.f32 %v1039_v4, %v1035_v5 }
 0xc6f   :  { %1043 = vrot.lane.b32.xlu1 %v1041_v7, %s1787_s11 }
 0xc74   :  { %v1055_v11 = vpop.permute.xlu0 %1054 }
 0xc75   :  { %v1057_v15 = vmul.f32 %v1055_v11, %v1035_v5  ;;  %v1655_v5 = vld [vmem:[%s2239_s4] ss:$0 sm:$0xff] }
 0xc84   :  { %v1139_v36 = vpop.permute.xlu0 %1138 }
 0xce1   :  { %v1044_v8 = vpop.permute.xlu1 %1043 }
 0xce2   :  { %v1046_v9 = vadd.f32 %v1960_v14, %v1044_v8 }
 0xce4   :  { %1742 = vtanh.f32 %v1046_v9  ;;  %v1621_v9 = vld [vmem:[%s2238_s0 + $0x30] sm:$0xff] }
 0xcea   :  { %v1743_v10 = vpop.eup %1742 }
 0xceb   :  { %1050 = vrot.lane.b32.xlu2 %v1743_v10, %s1788_s14 }
 0xcf3   :  { %1092 = vrot.lane.b32.xlu2 %v1089_v54, %s1788_s14 }
 0xd45   :  { %v1051_v13 = vpop.permute.xlu2 %1050 }
 0xd46   :  { %v1053_v18 = vmul.f32 %v1051_v13, %v1048_v12 }
 0xd48   :  { %v1058_v16 = vadd.f32 %v1057_v15, %v1053_v18 }
 0xd4a   :  { %1157 = vst [vmem:[#allocation1] ss:$2 sm:$0xff] %v1058_v16 }
 0xd4d   :  { %v1093_v19 = vpop.permute.xlu2 %1092 }
 0xd4e   :  { %v1095_v20 = vadd.f32 %v1921_v0, %v1093_v19  ;;  %v1118_v40 = vadd.f32 %v1116_v39, %v1093_v19 }
 0xd50   :  { %v1617_v24 = vmul.f32 -1.442695, %v1095_v20  ;;  %v1618_v41 = vmul.f32 -1.442695, %v1118_v40 }
 0xd51   :  { %v1158_v14 = vld.sshfl [vmem:[#allocation1] sm:$0xff pattern:$0x75316420] }
 0xd52   :  { %1744 = vpow2.f32 %v1617_v24  ;;  %1159 = vrot.lane.b32.xlu1 %v1158_v14, %s1788_s14  ;;  %1164 = vst [vmem:[#allocation1] ss:$2 sm:$0xff] %v1058_v16 }
 0xd58   :  { %v1745_v25 = vpop.eup %1744 }
 0xd59   :  { %v1099_v26 = vadd.f32 1.0, %v1745_v25 }
 0xd5a   :  { %1142 = vrot.lane.b32.xlu1 %v1921_v0, %s1788_s14 }
 0xd5b   :  { %1746 = vrcp.f32 %v1099_v26  ;;  %v1111_v29 = vand.u32 2147483648, %v1099_v26  ;;  %v1109_v31 = vand.u32 2147483647, %v1099_v26  ;;  %vm1105_vm11 = vweird.f32 %v1099_v26 }
 0xd5c   :  { %1748 = vpow2.f32 %v1618_v41 }
 0xd5d   :  { %v1112_v34 = vor.u32 1.1754944e-38, %v1111_v29  ;;  %vm1110_vm13 = vcmp.eq.f32.partialorder %v1109_v31, 8.507059e+37  ;;  %v1622_v29 = vld [vmem:[%s2238_s0 + $0x8] sm:$0xff] }
 0xd61   :  { %v1747_v22 = vpop.eup %1746 }
 0xd62   :  { %v1101_v27 = vmul.f32 %v1747_v22, %v1099_v26  ;;  %vm1106_vm10 = vweird.f32 %v1747_v22  ;;  %v1749_v43 = vpop.eup %1748 }
 0xd63   :  { %vm1107_vm12 = vmor %vm1105_vm11, %vm1106_vm10  ;;  %v1122_v44 = vadd.f32 1.0, %v1749_v43 }
 0xd64   :  { %v1102_v6 = vsub.f32 1.0, %v1101_v27 }
 0xd65   :  { %1750 = vrcp.f32 %v1122_v44  ;;  %v1134_v54 = vand.u32 2147483648, %v1122_v44  ;;  %vm1128_vm15 = vweird.f32 %v1122_v44  ;;  %v1132_v56 = vand.u32 2147483647, %v1122_v44 }
 0xd66   :  { %v1103_v30 = vmul.f32 %v1747_v22, %v1102_v6 }
 0xd67   :  { %v1135_v59 = vor.u32 1.1754944e-38, %v1134_v54  ;;  %vm1133_vm3 = vcmp.eq.f32.partialorder %v1132_v56, 8.507059e+37 }
 0xd68   :  { %v1104_v32 = vadd.f32 %v1747_v22, %v1103_v30 }
 0xd6a   :  { %v1108_v35 = vsel %vm1107_vm12, %v1747_v22, %v1104_v32 }
 0xd6b   :  { %v1113_v37 = vsel %vm1110_vm13, %v1112_v34, %v1108_v35  ;;  %v1751_v45 = vpop.eup %1750 }
 0xd6c   :  { %v1141_v38 = vmul.f32 %v1139_v36, %v1113_v37  ;;  %v1124_v46 = vmul.f32 %v1751_v45, %v1122_v44  ;;  %vm1129_vm14 = vweird.f32 %v1751_v45 }
 0xd6d   :  { %vm1130_vm2 = vmor %vm1128_vm15, %vm1129_vm14 }
 0xd6e   :  { %1147 = vrot.lane.b32.xlu2 %v1141_v38, %s1789_s15  ;;  %v1125_v47 = vsub.f32 1.0, %v1124_v46 }
 0xd70   :  { %v1126_v50 = vmul.f32 %v1751_v45, %v1125_v47 }
 0xd72   :  { %v1127_v23 = vadd.f32 %v1751_v45, %v1126_v50  ;;  %v2133_v50 = vld.sshfl [vmem:[#allocation1] sm:$0xff pattern:$0x75316420] }
 0xd74   :  { %v1131_v57 = vsel %vm1130_vm2, %v1751_v45, %v1127_v23 }
 0xd75   :  { %v1136_v42 = vsel %vm1133_vm3, %v1135_v59, %v1131_v57 }
 0xd76   :  { %v1152_v60 = vsub.f32 1.0, %v1136_v42  ;;  %v1154_v62 = vmul.f32 %v1136_v42, %v2076_v48  ;;  %v1306_v42 = vrot.slane %v1622_v29, 4 }
 0xdc4   :  { %v1160_v49 = vpop.permute.xlu1 %1159 }
 0xdc5   :  { %1162 = vst.msk [vmem:[#allocation2] sm:$0xf] %vm23_vm0, %v1160_v49 }
 0xdc8   :  { %v1148_v0 = vpop.permute.xlu2 %1147 }
 0xdcc   :  { %v1143_v51 = vpop.permute.xlu1 %1142  ;;  %v1175_v52 = vld [vmem:[#allocation2] sm:$0xf] }
 0xdcd   :  { %v1144_v55 = vrot.slane %v1143_v51, 4  ;;  %1623 = vmatmul.msk.f32.vlgmr.msrb.gmra.mxu0 %vm38_vm1, %v1175_v52 }
 0xdcf   :  { %v1150_v33 = vadd.f32 %v1148_v0, %v1144_v55 }
 0xdd1   :  { %1752 = vtanh.f32 %v1150_v33 }
 0xdd7   :  { %v1753_v61 = vpop.eup %1752 }
 0xdd8   :  { %v1153_v63 = vmul.f32 %v1753_v61, %v1152_v60 }
 0xdda   :  { %v1155_v1 = vadd.f32 %v1154_v62, %v1153_v63 }
 0xddc   :  { %1620 = vst.msk [vmem:[%s2241_s6 + $0x8] sm:$0xf] %vm23_vm0, %v1155_v1 }
 0xddd   :  { %1163 = vst.msk [vmem:[#allocation3] sm:$0xf] %vm23_vm0, %v1155_v1 }
 0xde4   :  { %v2110_v2 = vld [vmem:[#allocation3] sm:$0xf] }
 0xde5   :  { %1625 = vmatmul.msk.f32.vlgmr.msrb.gmra.mxu1 %vm38_vm1, %v2110_v2 }
 0xe4a   :  { %v1204_v4 = vpop.f32.mrf.mxu0 }
 0xe4b   :  { %v1205_v48 = vadd.f32 %v1654_v3, %v1204_v4 }
 0xe4d   :  { %1228 = vrot.lane.b32.xlu0 %v1205_v48, %s1787_s11  ;;  %v1207_v10 = vadd.f32 %v1621_v9, %v1205_v48 }
 0xe4f   :  { %v1624_v11 = vmul.f32 -1.442695, %v1207_v10 }
 0xe51   :  { %1754 = vpow2.f32 %v1624_v11 }
 0xe55   :  { %1244 = vrot.lane.b32.xlu0 %v1175_v52, %s1789_s15 }
 0xe57   :  { %v1755_v12 = vpop.eup %1754 }
 0xe58   :  { %v1211_v13 = vadd.f32 1.0, %v1755_v12 }
 0xe5a   :  { %1756 = vrcp.f32 %v1211_v13  ;;  %v1223_v24 = vand.u32 2147483648, %v1211_v13  ;;  %vm1217_vm5 = vweird.f32 %v1211_v13  ;;  %v1221_v14 = vand.u32 2147483647, %v1211_v13 }
 0xe5c   :  { %v1224_v26 = vor.u32 1.1754944e-38, %v1223_v24  ;;  %vm1222_vm7 = vcmp.eq.f32.partialorder %v1221_v14, 8.507059e+37 }
 0xe60   :  { %v1757_v15 = vpop.eup %1756 }
 0xe61   :  { %v1213_v18 = vmul.f32 %v1757_v15, %v1211_v13  ;;  %vm1218_vm4 = vweird.f32 %v1757_v15 }
 0xe62   :  { %v1278_v7 = vpop.f32.mrf.mxu1  ;;  %vm1219_vm6 = vmor %vm1217_vm5, %vm1218_vm4 }
 0xe63   :  { %v1279_v8 = vadd.f32 %v1655_v5, %v1278_v7  ;;  %v1214_v16 = vsub.f32 1.0, %v1213_v18 }
 0xe65   :  { %1328 = vrot.lane.b32.xlu0 %v1279_v8, %s1789_s15  ;;  %v1215_v19 = vmul.f32 %v1757_v15, %v1214_v16 }
 0xe67   :  { %v1216_v20 = vadd.f32 %v1757_v15, %v1215_v19 }
 0xe69   :  { %v1220_v25 = vsel %vm1219_vm6, %v1757_v15, %v1216_v20 }
 0xe6a   :  { %v1225_v27 = vsel %vm1222_vm7, %v1224_v26, %v1220_v25 }
 0xe6b   :  { %v1238_v43 = vsub.f32 1.0, %v1225_v27 }
 0xebf   :  { %v1229_v22 = vpop.permute.xlu0 %1228 }
 0xec0   :  { %v1231_v6 = vmul.f32 %v1229_v22, %v1225_v27 }
 0xec2   :  { %1233 = vrot.lane.b32.xlu1 %v1231_v6, %s1787_s11 }
 0xec7   :  { %v1245_v41 = vpop.permute.xlu0 %1244 }
 0xec8   :  { %v1247_v45 = vmul.f32 %v1245_v41, %v1225_v27  ;;  %v1656_v27 = vld [vmem:[%s2237_s2] ss:$0 sm:$0xff] }
 0xeca   :  { %1282 = vrot.lane.b32.xlu1 %v1279_v8, %s1788_s14 }
 0xed2   :  { %1332 = vrot.lane.b32.xlu1 %v1622_v29, %s1788_s14 }
 0xed7   :  { %v1329_v57 = vpop.permute.xlu0 %1328 }
 0xf34   :  { %v1234_v30 = vpop.permute.xlu1 %1233 }
 0xf35   :  { %v1236_v31 = vadd.f32 %v1621_v9, %v1234_v30 }
 0xf37   :  { %1758 = vtanh.f32 %v1236_v31 }
 0xf3c   :  { %v1283_v34 = vpop.permute.xlu1 %1282 }
 0xf3d   :  { %v1759_v32 = vpop.eup %1758  ;;  %v1285_v35 = vadd.f32 %v1622_v29, %v1283_v34  ;;  %v1308_v60 = vadd.f32 %v1306_v42, %v1283_v34  ;;  %v1657_v29 = vld [vmem:[%s2239_s4] ss:$0 sm:$0xff] }
 0xf3e   :  { %1240 = vrot.lane.b32.xlu2 %v1759_v32, %s1788_s14  ;;  %v2161_v32 = vld [vmem:[%s2238_s0] sm:$0xff] }
 0xf3f   :  { %v1626_v36 = vmul.f32 -1.442695, %v1285_v35  ;;  %v1627_v61 = vmul.f32 -1.442695, %v1308_v60  ;;  %v1630_v35 = vld [vmem:[%s2238_s0 + $0x38] sm:$0xff] }
 0xf41   :  { %1760 = vpow2.f32 %v1626_v36 }
 0xf44   :  { %v1333_v7 = vpop.permute.xlu1 %1332 }
 0xf45   :  { %v1334_v8 = vrot.slane %v1333_v7, 4 }
 0xf47   :  { %v1761_v37 = vpop.eup %1760 }
 0xf48   :  { %v1289_v38 = vadd.f32 1.0, %v1761_v37 }
 0xf4a   :  { %1762 = vrcp.f32 %v1289_v38  ;;  %v1301_v52 = vand.u32 2147483648, %v1289_v38  ;;  %vm1295_vm9 = vweird.f32 %v1289_v38  ;;  %v1299_v54 = vand.u32 2147483647, %v1289_v38 }
 0xf4b   :  { %1764 = vpow2.f32 %v1627_v61 }
 0xf4c   :  { %v1302_v56 = vor.u32 1.1754944e-38, %v1301_v52  ;;  %vm1300_vm11 = vcmp.eq.f32.partialorder %v1299_v54, 8.507059e+37 }
 0xf50   :  { %v1763_v39 = vpop.eup %1762 }
 0xf51   :  { %v1291_v40 = vmul.f32 %v1763_v39, %v1289_v38  ;;  %vm1296_vm8 = vweird.f32 %v1763_v39  ;;  %v1765_v62 = vpop.eup %1764 }
 0xf52   :  { %vm1297_vm10 = vmor %vm1295_vm9, %vm1296_vm8  ;;  %v1312_v63 = vadd.f32 1.0, %v1765_v62 }
 0xf53   :  { %v1292_v47 = vsub.f32 1.0, %v1291_v40 }
 0xf54   :  { %1766 = vrcp.f32 %v1312_v63  ;;  %v1324_v10 = vand.u32 2147483648, %v1312_v63  ;;  %vm1318_vm13 = vweird.f32 %v1312_v63  ;;  %v1322_v11 = vand.u32 2147483647, %v1312_v63 }
 0xf55   :  { %v1293_v23 = vmul.f32 %v1763_v39, %v1292_v47 }
 0xf56   :  { %v1325_v16 = vor.u32 1.1754944e-38, %v1324_v10  ;;  %vm1323_vm15 = vcmp.eq.f32.partialorder %v1322_v11, 8.507059e+37 }
 0xf57   :  { %v1294_v51 = vadd.f32 %v1763_v39, %v1293_v23 }
 0xf59   :  { %v1298_v0 = vsel %vm1297_vm10, %v1763_v39, %v1294_v51 }
 0xf5a   :  { %v1303_v33 = vsel %vm1300_vm11, %v1302_v56, %v1298_v0  ;;  %v1767_v1 = vpop.eup %1766 }
 0xf5b   :  { %v1331_v59 = vmul.f32 %v1329_v57, %v1303_v33  ;;  %v1314_v3 = vmul.f32 %v1767_v1, %v1312_v63  ;;  %vm1319_vm12 = vweird.f32 %v1767_v1 }
 0xf5c   :  { %vm1320_vm14 = vmor %vm1318_vm13, %vm1319_vm12 }
 0xf5d   :  { %v1315_v4 = vsub.f32 1.0, %v1314_v3 }
 0xf5f   :  { %v1316_v5 = vmul.f32 %v1767_v1, %v1315_v4 }
 0xf61   :  { %v1317_v9 = vadd.f32 %v1767_v1, %v1316_v5 }
 0xf63   :  { %v1321_v18 = vsel %vm1320_vm14, %v1767_v1, %v1317_v9 }
 0xf64   :  { %v1326_v19 = vsel %vm1323_vm15, %v1325_v16, %v1321_v18 }
 0xf65   :  { %v1342_v20 = vsub.f32 1.0, %v1326_v19  ;;  %v1344_v14 = vmul.f32 %v1326_v19, %v2110_v2 }
 0xf98   :  { %v1241_v44 = vpop.permute.xlu2 %1240 }
 0xf99   :  { %v1243_v46 = vmul.f32 %v1241_v44, %v1238_v43 }
 0xf9b   :  { %v1248_v49 = vadd.f32 %v1247_v45, %v1243_v46 }
 0xf9d   :  { %1347 = vst [vmem:[#allocation1] ss:$2 sm:$0xff] %v1248_v49 }
 0xfa4   :  { %v1348_v55 = vld.sshfl [vmem:[#allocation1] sm:$0xff pattern:$0x75316420] }
 0xfa5   :  { %1349 = vrot.lane.b32.xlu2 %v1348_v55, %s1788_s14  ;;  %1354 = vst [vmem:[#allocation1] ss:$2 sm:$0xff] %v1248_v49 }
 0xfac   :  { %v1355_v34 = vld.sshfl [vmem:[#allocation1] sm:$0xff pattern:$0x75316420] }
 0xfad   :  { %1337 = vrot.lane.b32.xlu2 %v1331_v59, %s1789_s15 }
 0xfff   :  { %v1350_v48 = vpop.permute.xlu2 %1349 }
0x1000   :  { %1352 = vst.msk [vmem:[#allocation2] sm:$0xf] %vm23_vm0, %v1350_v48 }
0x1007   :  { %v1338_v12 = vpop.permute.xlu2 %1337  ;;  %v1365_v13 = vld [vmem:[#allocation2] sm:$0xf] }
0x1008   :  { %v1340_v15 = vadd.f32 %v1338_v12, %v1334_v8  ;;  %1631 = vmatmul.msk.f32.vlgmr.msrb.gmra.mxu2 %vm38_vm1, %v1365_v13 }
0x100a   :  { %1768 = vtanh.f32 %v1340_v15  ;;  %v1496_v15 = vrot.slane %v2161_v32, 4 }
0x1010   :  { %v1769_v24 = vpop.eup %1768 }
0x1011   :  { %v1343_v25 = vmul.f32 %v1769_v24, %v1342_v20 }
0x1013   :  { %v1345_v26 = vadd.f32 %v1344_v14, %v1343_v25 }
0x1015   :  { %1629 = vst.msk [vmem:[%s2241_s6 + $0x4] sm:$0xf] %vm23_vm0, %v1345_v26 }
0x1016   :  { %1353 = vst.msk [vmem:[#allocation3] sm:$0xf] %vm23_vm0, %v1345_v26 }
0x101d   :  { %v2145_v22 = vld [vmem:[#allocation3] sm:$0xf] }
0x101e   :  { %1633 = vmatmul.msk.f32.vlgmr.msrb.gmra.mxu3 %vm38_vm1, %v2145_v22 }
0x108b   :  { %v1394_v6 = vpop.f32.mrf.mxu2 }
0x108c   :  { %v1395_v2 = vadd.f32 %v1656_v27, %v1394_v6 }
0x108e   :  { %1418 = vrot.lane.b32.xlu0 %v1395_v2, %s1787_s11  ;;  %v1397_v36 = vadd.f32 %v1630_v35, %v1395_v2 }
0x1090   :  { %v1632_v37 = vmul.f32 -1.442695, %v1397_v36 }
0x1092   :  { %1770 = vpow2.f32 %v1632_v37 }
0x1098   :  { %v1771_v38 = vpop.eup %1770 }
0x1099   :  { %v1401_v39 = vadd.f32 1.0, %v1771_v38 }
0x109b   :  { %1772 = vrcp.f32 %v1401_v39  ;;  %vm1407_vm2 = vweird.f32 %v1401_v39  ;;  %v1411_v44 = vand.u32 2147483647, %v1401_v39 }
0x109d   :  { %vm1412_vm4 = vcmp.eq.f32.partialorder %v1411_v44, 8.507059e+37 }
0x10a1   :  { %v1468_v30 = vpop.f32.mrf.mxu3 }
0x10a2   :  { %v1469_v31 = vadd.f32 %v1657_v29, %v1468_v30 }
0x10a4   :  { %1518 = vrot.lane.b32.xlu0 %v1469_v31, %s1789_s15  ;;  %1472 = vrot.lane.b32.xlu2 %v1469_v31, %s1788_s14 }
0x10ac   :  { %1522 = vrot.lane.b32.xlu0 %v2161_v32, %s1788_s14  ;;  %1434 = vrot.lane.b32.xlu2 %v1365_v13, %s1789_s15 }
0x10b4   :  { %211 = vrot.lane.b32.xlu0 %v1893_v21, %s1788_s14  ;;  %594 = vrot.lane.b32.xlu2 %v1992_v28, %s1788_s14  ;;  %v1773_v21 = vpop.eup %1772 }
0x10b5   :  { %v1403_v40 = vmul.f32 %v1773_v21, %v1401_v39  ;;  %vm1408_vm1 = vweird.f32 %v1773_v21 }
0x10b6   :  { %vm1409_vm3 = vmor %vm1407_vm2, %vm1408_vm1 }
0x10b7   :  { %v1404_v41 = vsub.f32 1.0, %v1403_v40 }
0x10b9   :  { %v1405_v28 = vmul.f32 %v1773_v21, %v1404_v41 }
0x10bb   :  { %v1406_v43 = vadd.f32 %v1773_v21, %v1405_v28 }
0x10bc   :  { %786 = vrot.lane.b32.xlu0 %v2036_v53, %s1788_s14  ;;  %v1413_v53 = vand.u32 2147483648, %v1401_v39 }
0x10bd   :  { %v1410_v45 = vsel %vm1409_vm3, %v1773_v21, %v1406_v43 }
0x10be   :  { %v1414_v47 = vor.u32 1.1754944e-38, %v1413_v53 }
0x10c0   :  { %v1415_v51 = vsel %vm1412_vm4, %v1414_v47, %v1410_v45 }
0x10c1   :  { %v1428_v26 = vsub.f32 1.0, %v1415_v51 }
0x10c4   :  { %1356 = vrot.lane.b32.xlu0 %v1355_v34, %s1788_s14 }
0x10fe   :  { %v1473_v46 = vpop.permute.xlu2 %1472 }
0x10ff   :  { %v1475_v49 = vadd.f32 %v1473_v46, %v2161_v32  ;;  %v1498_v18 = vadd.f32 %v1496_v15, %v1473_v46 }
0x1100   :  { %v1419_v23 = vpop.permute.xlu0 %1418 }
0x1101   :  { %v1634_v52 = vmul.f32 -1.442695, %v1475_v49  ;;  %v1421_v54 = vmul.f32 %v1419_v23, %v1415_v51  ;;  %v1635_v16 = vmul.f32 -1.442695, %v1498_v18 }
0x1103   :  { %1774 = vpow2.f32 %v1634_v52  ;;  %1423 = vrot.lane.b32.xlu1 %v1421_v54, %s1787_s11 }
0x1106   :  { %v1435_v55 = vpop.permute.xlu2 %1434 }
0x1107   :  { %v1437_v6 = vmul.f32 %v1435_v55, %v1415_v51 }
0x1109   :  { %v1775_v0 = vpop.eup %1774 }
0x110a   :  { %v1479_v56 = vadd.f32 1.0, %v1775_v0 }
0x110c   :  { %1776 = vrcp.f32 %v1479_v56  ;;  %v1491_v61 = vand.u32 2147483648, %v1479_v56  ;;  %v1489_v63 = vand.u32 2147483647, %v1479_v56  ;;  %vm1485_vm6 = vweird.f32 %v1479_v56 }
0x110e   :  { %v595_v33 = vpop.permute.xlu2 %594  ;;  %v1492_v3 = vor.u32 1.1754944e-38, %v1491_v61  ;;  %vm1490_vm8 = vcmp.eq.f32.partialorder %v1489_v63, 8.507059e+37 }
0x110f   :  { %1592 = vst.msk [vmem:[%s2242_s5 + $0x8] sm:$0xf] %vm23_vm0, %v595_v33 }
0x1112   :  { %v1777_v57 = vpop.eup %1776 }
0x1113   :  { %v1481_v59 = vmul.f32 %v1777_v57, %v1479_v56  ;;  %vm1486_vm5 = vweird.f32 %v1777_v57 }
0x1114   :  { %vm1487_vm7 = vmor %vm1485_vm6, %vm1486_vm5 }
0x1115   :  { %v1482_v42 = vsub.f32 1.0, %v1481_v59 }
0x1116   :  { %v1519_v60 = vpop.permute.xlu0 %1518 }
0x1117   :  { %v1483_v62 = vmul.f32 %v1777_v57, %v1482_v42 }
0x1119   :  { %v1484_v1 = vadd.f32 %v1777_v57, %v1483_v62 }
0x111b   :  { %v1488_v4 = vsel %vm1487_vm7, %v1777_v57, %v1484_v1 }
0x111c   :  { %v1493_v48 = vsel %vm1490_vm8, %v1492_v3, %v1488_v4 }
0x111d   :  { %v1521_v5 = vmul.f32 %v1519_v60, %v1493_v48 }
0x111e   :  { %v1523_v7 = vpop.permute.xlu0 %1522 }
0x111f   :  { %v1524_v30 = vrot.slane %v1523_v7, 4 }
0x1126   :  { %v212_v8 = vpop.permute.xlu0 %211 }
0x1127   :  { %214 = vst.msk [vmem:[%s2242_s5] sm:$0xf] %vm23_vm0, %v212_v8 }
0x112e   :  { %v787_v9 = vpop.permute.xlu0 %786 }
0x112f   :  { %1601 = vst.msk [vmem:[%s2242_s5 + $0xc] sm:$0xf] %vm23_vm0, %v787_v9 }
0x1136   :  { %v1357_v10 = vpop.permute.xlu0 %1356 }
0x1137   :  { %1628 = vst.msk [vmem:[%s2242_s5 + $0x18] sm:$0xf] %vm23_vm0, %v1357_v10 }
0x1175   :  { %v1424_v11 = vpop.permute.xlu1 %1423 }
0x1176   :  { %v1426_v12 = vadd.f32 %v1630_v35, %v1424_v11 }
0x1178   :  { %1778 = vtanh.f32 %v1426_v12 }
0x1179   :  { %1780 = vpow2.f32 %v1635_v16 }
0x117e   :  { %v1779_v13 = vpop.eup %1778 }
0x117f   :  { %1430 = vrot.lane.b32.xlu1 %v1779_v13, %s1788_s14  ;;  %v1781_v19 = vpop.eup %1780 }
0x1180   :  { %v1502_v20 = vadd.f32 1.0, %v1781_v19 }
0x1182   :  { %1782 = vrcp.f32 %v1502_v20  ;;  %v1514_v31 = vand.u32 2147483648, %v1502_v20  ;;  %vm1508_vm10 = vweird.f32 %v1502_v20  ;;  %v1512_v34 = vand.u32 2147483647, %v1502_v20 }
0x1184   :  { %v1515_v37 = vor.u32 1.1754944e-38, %v1514_v31  ;;  %vm1513_vm12 = vcmp.eq.f32.partialorder %v1512_v34, 8.507059e+37 }
0x1187   :  { %1527 = vrot.lane.b32.xlu1 %v1521_v5, %s1789_s15 }
0x1188   :  { %v1783_v24 = vpop.eup %1782 }
0x1189   :  { %v1504_v14 = vmul.f32 %v1783_v24, %v1502_v20  ;;  %vm1509_vm9 = vweird.f32 %v1783_v24 }
0x118a   :  { %vm1510_vm11 = vmor %vm1508_vm10, %vm1509_vm9 }
0x118b   :  { %v1505_v25 = vsub.f32 1.0, %v1504_v14 }
0x118d   :  { %v1506_v29 = vmul.f32 %v1783_v24, %v1505_v25 }
0x118f   :  { %402 = vrot.lane.b32.xlu1 %v1948_v58, %s1788_s14 }
0x1197   :  { %976 = vrot.lane.b32.xlu1 %v2094_v17, %s1788_s14  ;;  %v1507_v17 = vadd.f32 %v1783_v24, %v1506_v29 }
0x1199   :  { %v1511_v36 = vsel %vm1510_vm11, %v1783_v24, %v1507_v17 }
0x119a   :  { %v1516_v39 = vsel %vm1513_vm12, %v1515_v37, %v1511_v36 }
0x119b   :  { %v1532_v21 = vsub.f32 1.0, %v1516_v39  ;;  %v1534_v43 = vmul.f32 %v1516_v39, %v2145_v22 }
0x11f1   :  { %v1431_v27 = vpop.permute.xlu1 %1430 }
0x11f2   :  { %v1433_v2 = vmul.f32 %v1431_v27, %v1428_v26 }
0x11f4   :  { %v1438_v58 = vadd.f32 %v1437_v6, %v1433_v2 }
0x11f6   :  { %1537 = vst [vmem:[#allocation1] ss:$2 sm:$0xff] %v1438_v58 }
0x11f9   :  { %v1528_v32 = vpop.permute.xlu1 %1527 }
0x11fa   :  { %v1530_v35 = vadd.f32 %v1528_v32, %v1524_v30 }
0x11fc   :  { %1784 = vtanh.f32 %v1530_v35 }
0x11fd   :  { %v1538_v38 = vld.sshfl [vmem:[#allocation1] sm:$0xff pattern:$0x75316420] }
0x11fe   :  { %1539 = vrot.lane.b32.xlu2 %v1538_v38, %s1788_s14  ;;  %1544 = vst [vmem:[#allocation1] ss:$2 sm:$0xff] %v1438_v58 }
0x1201   :  { %v403_v40 = vpop.permute.xlu1 %402 }
0x1202   :  { %v1785_v41 = vpop.eup %1784  ;;  %1583 = vst.msk [vmem:[%s2242_s5 + $0x4] sm:$0xf] %vm23_vm0, %v403_v40 }
0x1203   :  { %v1533_v28 = vmul.f32 %v1785_v41, %v1532_v21 }
0x1205   :  { %v1535_v53 = vadd.f32 %v1534_v43, %v1533_v28  ;;  %v1545_v44 = vld.sshfl [vmem:[#allocation1] sm:$0xff pattern:$0x75316420] }
0x1206   :  { %1166 = vrot.lane.b32.xlu2 %v2133_v50, %s1788_s14  ;;  %1546 = vrot.lane.b32.xlu1 %v1545_v44, %s1788_s14 }
0x1207   :  { %1543 = vst.msk [vmem:[#allocation3] sm:$0xf] %vm23_vm0, %v1535_v53 }
0x1208   :  { %1551 = vst.msk [vmem:[%s2241_s6] sm:$0xf] %vm23_vm0, %v1535_v53 }
0x1209   :  { %v977_v45 = vpop.permute.xlu1 %976 }
0x120a   :  { %1610 = vst.msk [vmem:[%s2242_s5 + $0x10] sm:$0xf] %vm23_vm0, %v977_v45 }
0x120e   :  { %v1554_v22 = vld [vmem:[#allocation3] sm:$0xf] }
0x120f   :  { %1637 = vst.msk [vmem:[%s2243_s7 + $0x4] sm:$0xf] %vm23_vm0, %v1554_v22 }
0x1258   :  { %v1540_v50 = vpop.permute.xlu2 %1539 }
0x1259   :  { %1542 = vst.msk [vmem:[#allocation2] sm:$0xf] %vm23_vm0, %v1540_v50 }
0x1260   :  { %v1552_v46 = vld [vmem:[#allocation2] sm:$0xf]  ;;  %v1167_v47 = vpop.permute.xlu2 %1166 }
0x1261   :  { %1553 = vst.msk [vmem:[%s2243_s7] sm:$0xf] %vm23_vm0, %v1552_v46 }
0x1262   :  { %1619 = vst.msk [vmem:[%s2242_s5 + $0x14] sm:$0xf] %vm23_vm0, %v1167_v47 }
0x1278   :  { %v1547_v49 = vpop.permute.xlu1 %1546 }
0x1279   :  { %1636 = vst.msk [vmem:[%s2242_s5 + $0x1c] sm:$0xf] %vm23_vm0, %v1547_v49 }

</bundles_post_ra>
